<compile_context>
chip_gen: v7x
topology: tpu7x:2x2x1
jax: 0.10.0
libtpu: 0.0.40
codegen_flags: <defaults>
</compile_context>

<pallas_src>
import functools
import numpy as np
import jax
import jax.numpy as jnp
from jax.experimental import pallas as pl
from jax.experimental.pallas import tpu as pltpu


# --------------------------- host-side constant builders ----------------------- #

def _shift_masks(H, W):
    """(9, H*W) f32 validity masks for the 9 (dh, dw) taps of a 3x3 window, pad=1."""
    M = H * W
    idx = np.arange(M)
    h, w = idx // W, idx % W
    rows = []
    for dh in (-1, 0, 1):
        for dw in (-1, 0, 1):
            ok = (h + dh >= 0) & (h + dh < H) & (w + dw >= 0) & (w + dw < W)
            rows.append(ok.astype(np.float32))
    return np.stack(rows, axis=0)


def _pool_select(H, W):
    """(H*W, Ho*Wo) 0/1 matrix selecting the stride-2 output centers of MaxPool2d(3,2,1)."""
    Ho, Wo = (H - 1) // 2 + 1, (W - 1) // 2 + 1
    S = np.zeros((H * W, Ho * Wo), np.float32)
    for ho in range(Ho):
        for wo in range(Wo):
            S[(2 * ho) * W + 2 * wo, ho * Wo + wo] = 1.0
    return S


def _interp_matrix(out_size, in_size):
    """1-D factor of UpsamplingBilinear2d (bilinear, align_corners=True)."""
    A = np.zeros((out_size, in_size), dtype=np.float32)
    if out_size == 1 or in_size == 1:
        A[:, 0] = 1.0
        return A
    scale = (in_size - 1) / (out_size - 1)
    for o in range(out_size):
        c = o * scale
        i0 = min(int(np.floor(c)), in_size - 1)
        i1 = min(i0 + 1, in_size - 1)
        f = c - i0
        A[o, i0] += 1.0 - f
        A[o, i1] += f
    return A


def _interp_T(Ho, Wo, Hi, Wi):
    """(Hi*Wi, Ho*Wo) transposed separable bilinear matrix: up = x @ _interp_T."""
    return np.kron(_interp_matrix(Ho, Hi), _interp_matrix(Wo, Wi)).T.astype(np.float32)


# ------------------------------ fused forward kernel --------------------------- #

def _shift_lanes(v, d, M):
    """u[:, m] = v[:, m + d], zero-filled where m + d falls outside [0, M)."""
    if d == 0:
        return v
    rows = v.shape[0]
    pad = jnp.zeros((rows, abs(d)), v.dtype)
    if d > 0:
        return jnp.concatenate([v[:, d:], pad], axis=1)
    return jnp.concatenate([pad, v[:, :M + d]], axis=1)


def _make_fused_kernel(sizes):
    (H1, W1), (H2, W2), (H3, W3), (H4, W4) = sizes

    def kernel(x_ref, bn1_ref, w1_ref, b2_ref, w2_ref, b3_ref, w3_ref,
               bn6_ref, w6_ref,
               mk1_ref, mk2_ref, mk3_ref, mk4_ref,
               sel1_ref, sel2_ref, sel3_ref,
               at3_ref, at2_ref, at1_ref,
               o_ref):

        def res_block(x, bi, mask, W):
            """Pre-activation bottleneck ResidualBlock (BN-ReLU-1x1, BN-ReLU-3x3,
            BN-ReLU-1x1) with identity skip. BN2/BN3 scales already folded into weights."""
            M = x.shape[1]
            s1 = bn1_ref[2 * bi]                   # (C, 1)
            b1 = bn1_ref[2 * bi + 1]               # (C, 1)
            w1 = w1_ref[bi]                        # (c4p, C)  rows >= c4 are zero padding
            b2 = b2_ref[bi]                        # (c4p, 1)
            w2 = w2_ref[bi]                        # (c4, 9*c4p)
            b3 = b3_ref[bi]                        # (c4, 1)
            w3 = w3_ref[bi]                        # (C, c4)
            h1 = jnp.maximum(x * s1 + b1, 0.0)
            h2 = jnp.maximum(
                jnp.dot(w1, h1, preferred_element_type=jnp.float32) + b2, 0.0)   # (c4p, M)
            # 3x3 conv (pad=1): 9 lane-shifted + boundary-masked taps stacked along the
            # sublane axis (one 8-row tile per tap) and contracted in ONE MXU dot.
            offs = [dh * W + dw for dh in (-1, 0, 1) for dw in (-1, 0, 1)]
            patches = jnp.concatenate(
                [_shift_lanes(h2, d, M) * mask[k:k + 1, :] for k, d in enumerate(offs)],
                axis=0)                                                          # (9*c4p, M)
            h3 = jnp.maximum(
                jnp.dot(w2, patches, preferred_element_type=jnp.float32) + b3, 0.0)
            return jnp.dot(w3, h3, preferred_element_type=jnp.float32) + x

        def maxpool(x, mask, W, sel):
            """MaxPool2d(3, stride=2, pad=1): 8 shift+select max taps on the VPU, then the
            stride-2 subsample fused as a 0/1 selection matmul (result never leaves VMEM)."""
            M = x.shape[1]
            offs = [dh * W + dw for dh in (-1, 0, 1) for dw in (-1, 0, 1)]
            res = x                                  # center tap always valid
            for k, d in enumerate(offs):
                if d == 0:
                    continue
                mk = mask[k:k + 1, :]
                cand = _shift_lanes(x, d, M) * mk + x * (1.0 - mk)  # OOB -> center (neutral)
                res = jnp.maximum(res, cand)
            return jnp.dot(res, sel, preferred_element_type=jnp.float32)

        x = x_ref[0]                                 # one sample, (C, H1*W1)
        mk1, mk2 = mk1_ref[...], mk2_ref[...]
        mk3, mk4 = mk3_ref[...], mk4_ref[...]

        x = res_block(x, 0, mk1, W1)
        trunk = res_block(res_block(x, 1, mk1, W1), 2, mk1, W1)

        mp1 = maxpool(x, mk1, W1, sel1_ref[...])
        sm1 = res_block(mp1, 3, mk2, W2)
        sk1 = res_block(sm1, 4, mk2, W2)

        mp2 = maxpool(sm1, mk2, W2, sel2_ref[...])
        sm2 = res_block(mp2, 5, mk3, W3)
        sk2 = res_block(sm2, 6, mk3, W3)

        mp3 = maxpool(sm2, mk3, W3, sel3_ref[...])
        sm3 = res_block(res_block(mp3, 7, mk4, W4), 8, mk4, W4)

        # Bilinear upsample (align_corners) as one dot, fused with the following adds.
        out = jnp.dot(sm3, at3_ref[...], preferred_element_type=jnp.float32) + sm2 + sk2
        sm4 = res_block(out, 9, mk3, W3)
        out = jnp.dot(sm4, at2_ref[...], preferred_element_type=jnp.float32) + sm1 + sk1
        sm5 = res_block(out, 10, mk2, W2)
        oi1 = jnp.dot(sm5, at1_ref[...], preferred_element_type=jnp.float32) + trunk

        # softmax6: BN+ReLU+1x1, BN+ReLU+1x1, sigmoid; then (1 + mask) * trunk.
        h = jnp.maximum(oi1 * bn6_ref[0] + bn6_ref[1], 0.0)
        m = jnp.dot(w6_ref[0], h, preferred_element_type=jnp.float32)
        h = jnp.maximum(m * bn6_ref[2] + bn6_ref[3], 0.0)
        m = jnp.dot(w6_ref[1], h, preferred_element_type=jnp.float32)
        sig = 0.5 * (jnp.tanh(0.5 * m) + 1.0)        # numerically stable sigmoid (EUP tanh)
        msk = (1.0 + sig) * trunk

        o_ref[0] = res_block(msk, 11, mk1, W1)

    return kernel


# --------------------------- parameter packing / wrapper ----------------------- #

_BLOCK_ORDER = ["first", "trunk0", "trunk1", "softmax1", "skip1", "softmax2", "skip2",
                "softmax3_0", "softmax3_1", "softmax4", "softmax5", "last"]


def pack_params(params):
    """Fold BN2/BN3 scales into conv weights and stack all 12 blocks' parameters into a
    handful of arrays so the fused kernel needs only ~8 parameter DMAs total."""
    c4, C = params[_BLOCK_ORDER[0]]["w1"].shape
    c4p = ((c4 + 7) // 8) * 8                 # pad bottleneck channels to one sublane tile
    bn1, w1a, b2a, w2a, b3a, w3a = [], [], [], [], [], []
    for n in _BLOCK_ORDER:
        p = params[n]
        bn1.append(p["s1"])
        bn1.append(p["b1"])
        w1a.append(jnp.pad(p["s2"] * p["w1"], ((0, c4p - c4), (0, 0))))     # (c4p, C)
        b2a.append(jnp.pad(p["b2"], ((0, c4p - c4), (0, 0))))               # (c4p, 1)
        w2f = p["s3"][None] * p["w2"]                                       # (9, c4, c4)
        w2t = jnp.pad(jnp.transpose(w2f, (1, 0, 2)),
                      ((0, 0), (0, 0), (0, c4p - c4)))                      # (c4, 9, c4p)
        w2a.append(w2t.reshape(c4, 9 * c4p))                                # (c4, 9*c4p)
        b3a.append(p["b3"])                                                 # (c4, 1)
        w3a.append(p["w3"])                                                 # (C, c4)
    p6 = params["softmax6"]
    return dict(
        bn1=jnp.stack(bn1),                       # (24, C, 1)
        w1=jnp.stack(w1a), b2=jnp.stack(b2a),
        w2=jnp.stack(w2a), b3=jnp.stack(b3a), w3=jnp.stack(w3a),
        bn6=jnp.stack([p6["sA"], p6["bA"], p6["sB"], p6["bB"]]),            # (4, C, 1)
        w6=jnp.stack([p6["wA"], p6["wB"]]),                                 # (2, C, C)
    )


def _const_spec(shape):
    nd = len(shape)
    return pl.BlockSpec(shape, lambda n, _nd=nd: (0,) * _nd)


def attention_module_stage3(x_nchw, packed, size1=(9, 15), size2=(5, 8), size3=(3, 4)):
    N, C, H1, W1 = x_nchw.shape
    assert (H1, W1) == tuple(size1)
    H2, W2 = size2
    H3, W3 = size3
    H4, W4 = (H3 - 1) // 2 + 1, (W3 - 1) // 2 + 1
    sizes = ((H1, W1), (H2, W2), (H3, W3), (H4, W4))
    M1 = H1 * W1

    masks = [jnp.asarray(_shift_masks(H, W)) for (H, W) in sizes]
    sels = [jnp.asarray(_pool_select(H, W)) for (H, W) in sizes[:3]]
    at3 = jnp.asarray(_interp_T(H3, W3, H4, W4))
    at2 = jnp.asarray(_interp_T(H2, W2, H3, W3))
    at1 = jnp.asarray(_interp_T(H1, W1, H2, W2))

    # NCHW -> per-sample channel-major lane-dense view (N, C, H*W); a free reshape.
    x2 = x_nchw.reshape(N, C, M1).astype(jnp.float32)

    operands = [x2, packed["bn1"], packed["w1"], packed["b2"], packed["w2"],
                packed["b3"], packed["w3"], packed["bn6"], packed["w6"],
                *masks, *sels, at3, at2, at1]

    in_specs = [pl.BlockSpec((1, C, M1), lambda n: (n, 0, 0))]
    in_specs += [_const_spec(a.shape) for a in operands[1:]]

    out = pl.pallas_call(
        _make_fused_kernel(sizes),
        out_shape=jax.ShapeDtypeStruct((N, C, M1), jnp.float32),
        grid=(N,),                                   # one independent sample per grid step
        in_specs=in_specs,
        out_specs=pl.BlockSpec((1, C, M1), lambda n: (n, 0, 0)),
        compiler_params=pltpu.CompilerParams(
            dimension_semantics=("parallel",)),      # batch sharded across TCs on v7x
    )(*operands)
    return out.reshape(N, C, H1, W1)


# ------------------------------ parameter init --------------------------------- #

def _bn_affine(key, c, eps=1e-5):
    k1, k2, k3, k4 = jax.random.split(key, 4)
    gamma = jax.random.uniform(k1, (c, 1), minval=0.5, maxval=1.5)
    beta = 0.1 * jax.random.normal(k2, (c, 1))
    mean = 0.1 * jax.random.normal(k3, (c, 1))
    var = jax.random.uniform(k4, (c, 1), minval=0.5, maxval=1.5)
    s = gamma / jnp.sqrt(var + eps)
    b = beta - mean * s
    return s.astype(jnp.float32), b.astype(jnp.float32)


def make_residual_params(key, c):
    c4 = c // 4
    ks = jax.random.split(key, 6)
    s1, b1 = _bn_affine(ks[0], c)
    s2, b2 = _bn_affine(ks[1], c4)
    s3, b3 = _bn_affine(ks[2], c4)
    w1 = (0.1 * jax.random.normal(ks[3], (c4, c))).astype(jnp.float32)      # 1x1: C -> C/4
    w2 = (0.1 * jax.random.normal(ks[4], (9, c4, c4))).astype(jnp.float32)  # 3x3 taps [k,out,in]
    w3 = (0.1 * jax.random.normal(ks[5], (c, c4))).astype(jnp.float32)      # 1x1: C/4 -> C
    return dict(s1=s1, b1=b1, w1=w1, s2=s2, b2=b2, w2=w2, s3=s3, b3=b3, w3=w3)


# ------------------------- pure-JAX reference (for check) ---------------------- #

def _ref_block(x, p, N, H, W):
    C, M = x.shape
    c4 = p["w1"].shape[0]
    hp = jax.lax.Precision.HIGHEST
    h1 = jnp.maximum(x * p["s1"] + p["b1"], 0.0)
    a1 = jnp.einsum("oc,cm->om", p["w1"], h1, precision=hp)
    h2 = jnp.maximum(a1 * p["s2"] + p["b2"], 0.0).reshape(c4, N, H, W)
    h2p = jnp.pad(h2, ((0, 0), (0, 0), (1, 1), (1, 1)))
    acc = jnp.zeros((c4, N, H, W), jnp.float32)
    for k in range(9):
        kh, kw = k // 3, k % 3
        acc = acc + jnp.einsum("oc,cnhw->onhw", p["w2"][k],
                               h2p[:, :, kh:kh + H, kw:kw + W], precision=hp)
    h3 = jnp.maximum(acc.reshape(c4, M) * p["s3"] + p["b3"], 0.0)
    a3 = jnp.einsum("oc,cm->om", p["w3"], h3, precision=hp)
    return a3 + x


def _ref_maxpool(x, N, H, W):
    C, M = x.shape
    Ho, Wo = (H - 1) // 2 + 1, (W - 1) // 2 + 1
    xp = jnp.pad(x.reshape(C, N, H, W), ((0, 0), (0, 0), (1, 1), (1, 1)),
                 constant_values=-jnp.inf)
    r = None
    for kh in range(3):
        for kw in range(3):
            win = xp[:, :, kh:kh + H, kw:kw + W]
            r = win if r is None else jnp.maximum(r, win)
    return r[:, :, ::2, ::2].reshape(C, N * Ho * Wo)


def _ref_interp_add(x, N, Hi, Wi, Ho, Wo, *adds):
    C = x.shape[0]
    A = np.kron(_interp_matrix(Ho, Hi), _interp_matrix(Wo, Wi))
    up = jnp.dot(x.reshape(C * N, Hi * Wi), jnp.asarray(A.T),
                 precision=jax.lax.Precision.HIGHEST).reshape(C, N * Ho * Wo)
    for a in adds:
        up = up + a
    return up


def reference_forward(x_nchw, params, size1=(9, 15), size2=(5, 8), size3=(3, 4)):
    N, C, H1, W1 = x_nchw.shape
    H2, W2 = size2
    H3, W3 = size3
    H4, W4 = (H3 - 1) // 2 + 1, (W3 - 1) // 2 + 1
    hp = jax.lax.Precision.HIGHEST

    x = jnp.transpose(x_nchw, (1, 0, 2, 3)).reshape(C, N * H1 * W1).astype(jnp.float32)
    x = _ref_block(x, params["first"], N, H1, W1)
    trunk = _ref_block(_ref_block(x, params["trunk0"], N, H1, W1), params["trunk1"], N, H1, W1)

    mp1 = _ref_maxpool(x, N, H1, W1)
    sm1 = _ref_block(mp1, params["softmax1"], N, H2, W2)
    sk1 = _ref_block(sm1, params["skip1"], N, H2, W2)

    mp2 = _ref_maxpool(sm1, N, H2, W2)
    sm2 = _ref_block(mp2, params["softmax2"], N, H3, W3)
    sk2 = _ref_block(sm2, params["skip2"], N, H3, W3)

    mp3 = _ref_maxpool(sm2, N, H3, W3)
    sm3 = _ref_block(_ref_block(mp3, params["softmax3_0"], N, H4, W4),
                     params["softmax3_1"], N, H4, W4)

    out = _ref_interp_add(sm3, N, H4, W4, H3, W3, sm2, sk2)
    sm4 = _ref_block(out, params["softmax4"], N, H3, W3)
    out = _ref_interp_add(sm4, N, H3, W3, H2, W2, sm1, sk1)
    sm5 = _ref_block(out, params["softmax5"], N, H2, W2)
    oi1 = _ref_interp_add(sm5, N, H2, W2, H1, W1, trunk)

    p6 = params["softmax6"]
    h = jnp.maximum(oi1 * p6["sA"] + p6["bA"], 0.0)
    m = jnp.einsum("oc,cm->om", p6["wA"], h, precision=hp)
    h = jnp.maximum(m * p6["sB"] + p6["bB"], 0.0)
    m = jnp.einsum("oc,cm->om", p6["wB"], h, precision=hp)
    msk = (1.0 + jax.nn.sigmoid(m)) * trunk
    last = _ref_block(msk, params["last"], N, H1, W1)
    return jnp.transpose(last.reshape(C, N, H1, W1), (1, 0, 2, 3))


# ------------------------------------- main ------------------------------------ #

if __name__ == "__main__":
    N, C, H, W = 2, 16, 9, 15   # stage-3 default sizes: 9x15 -> 5x8 -> 3x4 -> 2x2
    key = jax.random.PRNGKey(0)
    keys = jax.random.split(key, 16)

    params = {n: make_residual_params(k, C) for n, k in zip(_BLOCK_ORDER, keys[:12])}
    k6 = jax.random.split(keys[12], 4)
    sA, bA = _bn_affine(k6[0], C)
    sB, bB = _bn_affine(k6[1], C)
    wA = (0.1 * jax.random.normal(k6[2], (C, C))).astype(jnp.float32)
    wB = (0.1 * jax.random.normal(k6[3], (C, C))).astype(jnp.float32)
    params["softmax6"] = dict(sA=sA, bA=bA, wA=wA, sB=sB, bB=bB, wB=wB)

    packed = pack_params(params)
    x = jax.random.normal(keys[13], (N, C, H, W), dtype=jnp.float32)

    fwd = jax.jit(functools.partial(attention_module_stage3, packed=packed))
    out = fwd(x)
    jax.block_until_ready(out)
    assert out.shape == (N, C, H, W) and out.dtype == jnp.float32

    # Pure-JAX reference check. Tolerance is bounded by default-precision MXU f32 dots in
    # the kernel vs the HIGHEST-precision XLA reference accumulated across 13 blocks.
    ref = jax.jit(functools.partial(reference_forward, params=params))(x)
    np.testing.assert_allclose(np.asarray(out), np.asarray(ref), rtol=5e-2, atol=5e-2)

    print("KERNEL_OK")
</pallas_src>

<mosaic_0001>
module attributes {stable_mosaic.version = 11 : i64} {
  func.func @kernel(%arg0: i32, %arg1: memref<1x16x135xf32, #tpu.memory_space<vmem>>, %arg2: memref<24x16x1xf32, #tpu.memory_space<vmem>>, %arg3: memref<12x8x16xf32, #tpu.memory_space<vmem>>, %arg4: memref<12x8x1xf32, #tpu.memory_space<vmem>>, %arg5: memref<12x4x72xf32, #tpu.memory_space<vmem>>, %arg6: memref<12x4x1xf32, #tpu.memory_space<vmem>>, %arg7: memref<12x16x4xf32, #tpu.memory_space<vmem>>, %arg8: memref<4x16x1xf32, #tpu.memory_space<vmem>>, %arg9: memref<2x16x16xf32, #tpu.memory_space<vmem>>, %arg10: memref<9x135xf32, #tpu.memory_space<vmem>>, %arg11: memref<9x40xf32, #tpu.memory_space<vmem>>, %arg12: memref<9x12xf32, #tpu.memory_space<vmem>>, %arg13: memref<9x4xf32, #tpu.memory_space<vmem>>, %arg14: memref<135x40xf32, #tpu.memory_space<vmem>>, %arg15: memref<40x12xf32, #tpu.memory_space<vmem>>, %arg16: memref<12x4xf32, #tpu.memory_space<vmem>>, %arg17: memref<4x12xf32, #tpu.memory_space<vmem>>, %arg18: memref<12x40xf32, #tpu.memory_space<vmem>>, %arg19: memref<40x135xf32, #tpu.memory_space<vmem>>, %arg20: memref<1x16x135xf32, #tpu.memory_space<vmem>>) attributes {dimension_semantics = [#tpu.dimension_semantics<parallel>], iteration_bounds = array<i64: 2>, scalar_prefetch = 0 : i64, scratch_operands = 0 : i64, tpu.core_type = #tpu.core_type<tc>, window_params = [{transform_indices = @transform_0, window_bounds = array<i64: 1, 16, 135>}, {pipeline_mode = #tpu.pipeline_mode<synchronous>, transform_indices = @transform_1, window_bounds = array<i64: 24, 16, 1>}, {pipeline_mode = #tpu.pipeline_mode<synchronous>, transform_indices = @transform_2, window_bounds = array<i64: 12, 8, 16>}, {pipeline_mode = #tpu.pipeline_mode<synchronous>, transform_indices = @transform_3, window_bounds = array<i64: 12, 8, 1>}, {pipeline_mode = #tpu.pipeline_mode<synchronous>, transform_indices = @transform_4, window_bounds = array<i64: 12, 4, 72>}, {pipeline_mode = #tpu.pipeline_mode<synchronous>, transform_indices = @transform_5, window_bounds = array<i64: 12, 4, 1>}, {pipeline_mode = #tpu.pipeline_mode<synchronous>, transform_indices = @transform_6, window_bounds = array<i64: 12, 16, 4>}, {pipeline_mode = #tpu.pipeline_mode<synchronous>, transform_indices = @transform_7, window_bounds = array<i64: 4, 16, 1>}, {pipeline_mode = #tpu.pipeline_mode<synchronous>, transform_indices = @transform_8, window_bounds = array<i64: 2, 16, 16>}, {pipeline_mode = #tpu.pipeline_mode<synchronous>, transform_indices = @transform_9, window_bounds = array<i64: 9, 135>}, {pipeline_mode = #tpu.pipeline_mode<synchronous>, transform_indices = @transform_10, window_bounds = array<i64: 9, 40>}, {pipeline_mode = #tpu.pipeline_mode<synchronous>, transform_indices = @transform_11, window_bounds = array<i64: 9, 12>}, {pipeline_mode = #tpu.pipeline_mode<synchronous>, transform_indices = @transform_12, window_bounds = array<i64: 9, 4>}, {pipeline_mode = #tpu.pipeline_mode<synchronous>, transform_indices = @transform_13, window_bounds = array<i64: 135, 40>}, {pipeline_mode = #tpu.pipeline_mode<synchronous>, transform_indices = @transform_14, window_bounds = array<i64: 40, 12>}, {pipeline_mode = #tpu.pipeline_mode<synchronous>, transform_indices = @transform_15, window_bounds = array<i64: 12, 4>}, {pipeline_mode = #tpu.pipeline_mode<synchronous>, transform_indices = @transform_16, window_bounds = array<i64: 4, 12>}, {pipeline_mode = #tpu.pipeline_mode<synchronous>, transform_indices = @transform_17, window_bounds = array<i64: 12, 40>}, {pipeline_mode = #tpu.pipeline_mode<synchronous>, transform_indices = @transform_18, window_bounds = array<i64: 40, 135>}, {transform_indices = @transform_19, window_bounds = array<i64: 1, 16, 135>}]} {
    %c0 = arith.constant 0 : index
    %c0_0 = arith.constant 0 : index
    %c0_1 = arith.constant 0 : index
    %0 = vector.load %arg1[%c0, %c0_0, %c0_1] : memref<1x16x135xf32, #tpu.memory_space<vmem>>, vector<1x16x135xf32>
    %1 = vector.shape_cast %0 : vector<1x16x135xf32> to vector<16x135xf32>
    %c0_2 = arith.constant 0 : index
    %c0_3 = arith.constant 0 : index
    %2 = vector.load %arg10[%c0_2, %c0_3] : memref<9x135xf32, #tpu.memory_space<vmem>>, vector<9x135xf32>
    %c0_4 = arith.constant 0 : index
    %c0_5 = arith.constant 0 : index
    %3 = vector.load %arg11[%c0_4, %c0_5] : memref<9x40xf32, #tpu.memory_space<vmem>>, vector<9x40xf32>
    %c0_6 = arith.constant 0 : index
    %c0_7 = arith.constant 0 : index
    %4 = vector.load %arg12[%c0_6, %c0_7] : memref<9x12xf32, #tpu.memory_space<vmem>>, vector<9x12xf32>
    %c0_8 = arith.constant 0 : index
    %c0_9 = arith.constant 0 : index
    %5 = vector.load %arg13[%c0_8, %c0_9] : memref<9x4xf32, #tpu.memory_space<vmem>>, vector<9x4xf32>
    %c0_10 = arith.constant 0 : index
    %c0_11 = arith.constant 0 : index
    %c0_12 = arith.constant 0 : index
    %6 = vector.load %arg2[%c0_10, %c0_11, %c0_12] : memref<24x16x1xf32, #tpu.memory_space<vmem>>, vector<1x16x1xf32>
    %7 = vector.shape_cast %6 : vector<1x16x1xf32> to vector<16x1xf32>
    %c1 = arith.constant 1 : index
    %c0_13 = arith.constant 0 : index
    %c0_14 = arith.constant 0 : index
    %8 = vector.load %arg2[%c1, %c0_13, %c0_14] : memref<24x16x1xf32, #tpu.memory_space<vmem>>, vector<1x16x1xf32>
    %9 = vector.shape_cast %8 : vector<1x16x1xf32> to vector<16x1xf32>
    %c0_15 = arith.constant 0 : index
    %c0_16 = arith.constant 0 : index
    %c0_17 = arith.constant 0 : index
    %10 = vector.load %arg3[%c0_15, %c0_16, %c0_17] : memref<12x8x16xf32, #tpu.memory_space<vmem>>, vector<1x8x16xf32>
    %11 = vector.shape_cast %10 : vector<1x8x16xf32> to vector<8x16xf32>
    %c0_18 = arith.constant 0 : index
    %c0_19 = arith.constant 0 : index
    %c0_20 = arith.constant 0 : index
    %12 = vector.load %arg4[%c0_18, %c0_19, %c0_20] : memref<12x8x1xf32, #tpu.memory_space<vmem>>, vector<1x8x1xf32>
    %13 = vector.shape_cast %12 : vector<1x8x1xf32> to vector<8x1xf32>
    %c0_21 = arith.constant 0 : index
    %c0_22 = arith.constant 0 : index
    %c0_23 = arith.constant 0 : index
    %14 = vector.load %arg5[%c0_21, %c0_22, %c0_23] : memref<12x4x72xf32, #tpu.memory_space<vmem>>, vector<1x4x72xf32>
    %15 = vector.shape_cast %14 : vector<1x4x72xf32> to vector<4x72xf32>
    %c0_24 = arith.constant 0 : index
    %c0_25 = arith.constant 0 : index
    %c0_26 = arith.constant 0 : index
    %16 = vector.load %arg6[%c0_24, %c0_25, %c0_26] : memref<12x4x1xf32, #tpu.memory_space<vmem>>, vector<1x4x1xf32>
    %17 = vector.shape_cast %16 : vector<1x4x1xf32> to vector<4x1xf32>
    %c0_27 = arith.constant 0 : index
    %c0_28 = arith.constant 0 : index
    %c0_29 = arith.constant 0 : index
    %18 = vector.load %arg7[%c0_27, %c0_28, %c0_29] : memref<12x16x4xf32, #tpu.memory_space<vmem>>, vector<1x16x4xf32>
    %19 = vector.shape_cast %18 : vector<1x16x4xf32> to vector<16x4xf32>
    %20 = vector.broadcast %7 : vector<16x1xf32> to vector<16x135xf32>
    %21 = arith.mulf %1, %20 : vector<16x135xf32>
    %22 = vector.broadcast %9 : vector<16x1xf32> to vector<16x135xf32>
    %23 = arith.addf %21, %22 : vector<16x135xf32>
    %cst = arith.constant 0.000000e+00 : f32
    %24 = vector.broadcast %cst : f32 to vector<16x135xf32>
    %25 = arith.maximumf %23, %24 : vector<16x135xf32>
    %cst_30 = arith.constant dense<0.000000e+00> : vector<8x135xf32>
    %26 = tpu.matmul %11, %25, %cst_30 {dimension_numbers = #tpu.dot_dimension_numbers<[1], [0], [0], [1], [0, 0, 1, 1], [], []>} : vector<8x16xf32>, vector<16x135xf32>, vector<8x135xf32> -> vector<8x135xf32>
    %27 = vector.broadcast %13 : vector<8x1xf32> to vector<8x135xf32>
    %28 = arith.addf %26, %27 : vector<8x135xf32>
    %cst_31 = arith.constant 0.000000e+00 : f32
    %29 = vector.broadcast %cst_31 : f32 to vector<8x135xf32>
    %30 = arith.maximumf %28, %29 : vector<8x135xf32>
    %cst_32 = arith.constant 0.000000e+00 : f32
    %31 = vector.broadcast %cst_32 : f32 to vector<8x16xf32>
    %32 = vector.extract_strided_slice %30 {offsets = [0, 0], sizes = [8, 119], strides = [1, 1]} : vector<8x135xf32> to vector<8x119xf32>
    %33 = tpu.concatenate %31, %32 in 1 : vector<8x16xf32>, vector<8x119xf32> -> vector<8x135xf32>
    %34 = vector.extract_strided_slice %2 {offsets = [0, 0], sizes = [1, 135], strides = [1, 1]} : vector<9x135xf32> to vector<1x135xf32>
    %35 = vector.broadcast %34 : vector<1x135xf32> to vector<8x135xf32>
    %36 = arith.mulf %33, %35 : vector<8x135xf32>
    %cst_33 = arith.constant 0.000000e+00 : f32
    %37 = vector.broadcast %cst_33 : f32 to vector<8x15xf32>
    %38 = vector.extract_strided_slice %30 {offsets = [0, 0], sizes = [8, 120], strides = [1, 1]} : vector<8x135xf32> to vector<8x120xf32>
    %39 = tpu.concatenate %37, %38 in 1 : vector<8x15xf32>, vector<8x120xf32> -> vector<8x135xf32>
    %40 = vector.extract_strided_slice %2 {offsets = [1, 0], sizes = [1, 135], strides = [1, 1]} : vector<9x135xf32> to vector<1x135xf32>
    %41 = vector.broadcast %40 : vector<1x135xf32> to vector<8x135xf32>
    %42 = arith.mulf %39, %41 : vector<8x135xf32>
    %cst_34 = arith.constant 0.000000e+00 : f32
    %43 = vector.broadcast %cst_34 : f32 to vector<8x14xf32>
    %44 = vector.extract_strided_slice %30 {offsets = [0, 0], sizes = [8, 121], strides = [1, 1]} : vector<8x135xf32> to vector<8x121xf32>
    %45 = tpu.concatenate %43, %44 in 1 : vector<8x14xf32>, vector<8x121xf32> -> vector<8x135xf32>
    %46 = vector.extract_strided_slice %2 {offsets = [2, 0], sizes = [1, 135], strides = [1, 1]} : vector<9x135xf32> to vector<1x135xf32>
    %47 = vector.broadcast %46 : vector<1x135xf32> to vector<8x135xf32>
    %48 = arith.mulf %45, %47 : vector<8x135xf32>
    %cst_35 = arith.constant 0.000000e+00 : f32
    %49 = vector.broadcast %cst_35 : f32 to vector<8x1xf32>
    %50 = vector.extract_strided_slice %30 {offsets = [0, 0], sizes = [8, 134], strides = [1, 1]} : vector<8x135xf32> to vector<8x134xf32>
    %51 = tpu.concatenate %49, %50 in 1 : vector<8x1xf32>, vector<8x134xf32> -> vector<8x135xf32>
    %52 = vector.extract_strided_slice %2 {offsets = [3, 0], sizes = [1, 135], strides = [1, 1]} : vector<9x135xf32> to vector<1x135xf32>
    %53 = vector.broadcast %52 : vector<1x135xf32> to vector<8x135xf32>
    %54 = arith.mulf %51, %53 : vector<8x135xf32>
    %55 = vector.extract_strided_slice %2 {offsets = [4, 0], sizes = [1, 135], strides = [1, 1]} : vector<9x135xf32> to vector<1x135xf32>
    %56 = vector.broadcast %55 : vector<1x135xf32> to vector<8x135xf32>
    %57 = arith.mulf %30, %56 : vector<8x135xf32>
    %cst_36 = arith.constant 0.000000e+00 : f32
    %58 = vector.broadcast %cst_36 : f32 to vector<8x1xf32>
    %59 = vector.extract_strided_slice %30 {offsets = [0, 1], sizes = [8, 134], strides = [1, 1]} : vector<8x135xf32> to vector<8x134xf32>
    %60 = tpu.concatenate %59, %58 in 1 : vector<8x134xf32>, vector<8x1xf32> -> vector<8x135xf32>
    %61 = vector.extract_strided_slice %2 {offsets = [5, 0], sizes = [1, 135], strides = [1, 1]} : vector<9x135xf32> to vector<1x135xf32>
    %62 = vector.broadcast %61 : vector<1x135xf32> to vector<8x135xf32>
    %63 = arith.mulf %60, %62 : vector<8x135xf32>
    %cst_37 = arith.constant 0.000000e+00 : f32
    %64 = vector.broadcast %cst_37 : f32 to vector<8x14xf32>
    %65 = vector.extract_strided_slice %30 {offsets = [0, 14], sizes = [8, 121], strides = [1, 1]} : vector<8x135xf32> to vector<8x121xf32>
    %66 = tpu.concatenate %65, %64 in 1 : vector<8x121xf32>, vector<8x14xf32> -> vector<8x135xf32>
    %67 = vector.extract_strided_slice %2 {offsets = [6, 0], sizes = [1, 135], strides = [1, 1]} : vector<9x135xf32> to vector<1x135xf32>
    %68 = vector.broadcast %67 : vector<1x135xf32> to vector<8x135xf32>
    %69 = arith.mulf %66, %68 : vector<8x135xf32>
    %cst_38 = arith.constant 0.000000e+00 : f32
    %70 = vector.broadcast %cst_38 : f32 to vector<8x15xf32>
    %71 = vector.extract_strided_slice %30 {offsets = [0, 15], sizes = [8, 120], strides = [1, 1]} : vector<8x135xf32> to vector<8x120xf32>
    %72 = tpu.concatenate %71, %70 in 1 : vector<8x120xf32>, vector<8x15xf32> -> vector<8x135xf32>
    %73 = vector.extract_strided_slice %2 {offsets = [7, 0], sizes = [1, 135], strides = [1, 1]} : vector<9x135xf32> to vector<1x135xf32>
    %74 = vector.broadcast %73 : vector<1x135xf32> to vector<8x135xf32>
    %75 = arith.mulf %72, %74 : vector<8x135xf32>
    %cst_39 = arith.constant 0.000000e+00 : f32
    %76 = vector.broadcast %cst_39 : f32 to vector<8x16xf32>
    %77 = vector.extract_strided_slice %30 {offsets = [0, 16], sizes = [8, 119], strides = [1, 1]} : vector<8x135xf32> to vector<8x119xf32>
    %78 = tpu.concatenate %77, %76 in 1 : vector<8x119xf32>, vector<8x16xf32> -> vector<8x135xf32>
    %79 = vector.extract_strided_slice %2 {offsets = [8, 0], sizes = [1, 135], strides = [1, 1]} : vector<9x135xf32> to vector<1x135xf32>
    %80 = vector.broadcast %79 : vector<1x135xf32> to vector<8x135xf32>
    %81 = arith.mulf %78, %80 : vector<8x135xf32>
    %82 = tpu.concatenate %36, %42, %48, %54, %57, %63, %69, %75, %81 in 0 : vector<8x135xf32>, vector<8x135xf32>, vector<8x135xf32>, vector<8x135xf32>, vector<8x135xf32>, vector<8x135xf32>, vector<8x135xf32>, vector<8x135xf32>, vector<8x135xf32> -> vector<72x135xf32>
    %cst_40 = arith.constant dense<0.000000e+00> : vector<4x135xf32>
    %83 = tpu.matmul %15, %82, %cst_40 {dimension_numbers = #tpu.dot_dimension_numbers<[1], [0], [0], [1], [0, 0, 1, 1], [], []>} : vector<4x72xf32>, vector<72x135xf32>, vector<4x135xf32> -> vector<4x135xf32>
    %84 = vector.broadcast %17 : vector<4x1xf32> to vector<4x135xf32>
    %85 = arith.addf %83, %84 : vector<4x135xf32>
    %cst_41 = arith.constant 0.000000e+00 : f32
    %86 = vector.broadcast %cst_41 : f32 to vector<4x135xf32>
    %87 = arith.maximumf %85, %86 : vector<4x135xf32>
    %cst_42 = arith.constant dense<0.000000e+00> : vector<16x135xf32>
    %88 = tpu.matmul %19, %87, %cst_42 {dimension_numbers = #tpu.dot_dimension_numbers<[1], [0], [0], [1], [0, 0, 1, 1], [], []>} : vector<16x4xf32>, vector<4x135xf32>, vector<16x135xf32> -> vector<16x135xf32>
    %89 = arith.addf %88, %1 : vector<16x135xf32>
    %c2 = arith.constant 2 : index
    %c0_43 = arith.constant 0 : index
    %c0_44 = arith.constant 0 : index
    %90 = vector.load %arg2[%c2, %c0_43, %c0_44] : memref<24x16x1xf32, #tpu.memory_space<vmem>>, vector<1x16x1xf32>
    %91 = vector.shape_cast %90 : vector<1x16x1xf32> to vector<16x1xf32>
    %c3 = arith.constant 3 : index
    %c0_45 = arith.constant 0 : index
    %c0_46 = arith.constant 0 : index
    %92 = vector.load %arg2[%c3, %c0_45, %c0_46] : memref<24x16x1xf32, #tpu.memory_space<vmem>>, vector<1x16x1xf32>
    %93 = vector.shape_cast %92 : vector<1x16x1xf32> to vector<16x1xf32>
    %c1_47 = arith.constant 1 : index
    %c0_48 = arith.constant 0 : index
    %c0_49 = arith.constant 0 : index
    %94 = vector.load %arg3[%c1_47, %c0_48, %c0_49] : memref<12x8x16xf32, #tpu.memory_space<vmem>>, vector<1x8x16xf32>
    %95 = vector.shape_cast %94 : vector<1x8x16xf32> to vector<8x16xf32>
    %c1_50 = arith.constant 1 : index
    %c0_51 = arith.constant 0 : index
    %c0_52 = arith.constant 0 : index
    %96 = vector.load %arg4[%c1_50, %c0_51, %c0_52] : memref<12x8x1xf32, #tpu.memory_space<vmem>>, vector<1x8x1xf32>
    %97 = vector.shape_cast %96 : vector<1x8x1xf32> to vector<8x1xf32>
    %c1_53 = arith.constant 1 : index
    %c0_54 = arith.constant 0 : index
    %c0_55 = arith.constant 0 : index
    %98 = vector.load %arg5[%c1_53, %c0_54, %c0_55] : memref<12x4x72xf32, #tpu.memory_space<vmem>>, vector<1x4x72xf32>
    %99 = vector.shape_cast %98 : vector<1x4x72xf32> to vector<4x72xf32>
    %c1_56 = arith.constant 1 : index
    %c0_57 = arith.constant 0 : index
    %c0_58 = arith.constant 0 : index
    %100 = vector.load %arg6[%c1_56, %c0_57, %c0_58] : memref<12x4x1xf32, #tpu.memory_space<vmem>>, vector<1x4x1xf32>
    %101 = vector.shape_cast %100 : vector<1x4x1xf32> to vector<4x1xf32>
    %c1_59 = arith.constant 1 : index
    %c0_60 = arith.constant 0 : index
    %c0_61 = arith.constant 0 : index
    %102 = vector.load %arg7[%c1_59, %c0_60, %c0_61] : memref<12x16x4xf32, #tpu.memory_space<vmem>>, vector<1x16x4xf32>
    %103 = vector.shape_cast %102 : vector<1x16x4xf32> to vector<16x4xf32>
    %104 = vector.broadcast %91 : vector<16x1xf32> to vector<16x135xf32>
    %105 = arith.mulf %89, %104 : vector<16x135xf32>
    %106 = vector.broadcast %93 : vector<16x1xf32> to vector<16x135xf32>
    %107 = arith.addf %105, %106 : vector<16x135xf32>
    %cst_62 = arith.constant 0.000000e+00 : f32
    %108 = vector.broadcast %cst_62 : f32 to vector<16x135xf32>
    %109 = arith.maximumf %107, %108 : vector<16x135xf32>
    %cst_63 = arith.constant dense<0.000000e+00> : vector<8x135xf32>
    %110 = tpu.matmul %95, %109, %cst_63 {dimension_numbers = #tpu.dot_dimension_numbers<[1], [0], [0], [1], [0, 0, 1, 1], [], []>} : vector<8x16xf32>, vector<16x135xf32>, vector<8x135xf32> -> vector<8x135xf32>
    %111 = vector.broadcast %97 : vector<8x1xf32> to vector<8x135xf32>
    %112 = arith.addf %110, %111 : vector<8x135xf32>
    %cst_64 = arith.constant 0.000000e+00 : f32
    %113 = vector.broadcast %cst_64 : f32 to vector<8x135xf32>
    %114 = arith.maximumf %112, %113 : vector<8x135xf32>
    %cst_65 = arith.constant 0.000000e+00 : f32
    %115 = vector.broadcast %cst_65 : f32 to vector<8x16xf32>
    %116 = vector.extract_strided_slice %114 {offsets = [0, 0], sizes = [8, 119], strides = [1, 1]} : vector<8x135xf32> to vector<8x119xf32>
    %117 = tpu.concatenate %115, %116 in 1 : vector<8x16xf32>, vector<8x119xf32> -> vector<8x135xf32>
    %118 = vector.extract_strided_slice %2 {offsets = [0, 0], sizes = [1, 135], strides = [1, 1]} : vector<9x135xf32> to vector<1x135xf32>
    %119 = vector.broadcast %118 : vector<1x135xf32> to vector<8x135xf32>
    %120 = arith.mulf %117, %119 : vector<8x135xf32>
    %cst_66 = arith.constant 0.000000e+00 : f32
    %121 = vector.broadcast %cst_66 : f32 to vector<8x15xf32>
    %122 = vector.extract_strided_slice %114 {offsets = [0, 0], sizes = [8, 120], strides = [1, 1]} : vector<8x135xf32> to vector<8x120xf32>
    %123 = tpu.concatenate %121, %122 in 1 : vector<8x15xf32>, vector<8x120xf32> -> vector<8x135xf32>
    %124 = vector.extract_strided_slice %2 {offsets = [1, 0], sizes = [1, 135], strides = [1, 1]} : vector<9x135xf32> to vector<1x135xf32>
    %125 = vector.broadcast %124 : vector<1x135xf32> to vector<8x135xf32>
    %126 = arith.mulf %123, %125 : vector<8x135xf32>
    %cst_67 = arith.constant 0.000000e+00 : f32
    %127 = vector.broadcast %cst_67 : f32 to vector<8x14xf32>
    %128 = vector.extract_strided_slice %114 {offsets = [0, 0], sizes = [8, 121], strides = [1, 1]} : vector<8x135xf32> to vector<8x121xf32>
    %129 = tpu.concatenate %127, %128 in 1 : vector<8x14xf32>, vector<8x121xf32> -> vector<8x135xf32>
    %130 = vector.extract_strided_slice %2 {offsets = [2, 0], sizes = [1, 135], strides = [1, 1]} : vector<9x135xf32> to vector<1x135xf32>
    %131 = vector.broadcast %130 : vector<1x135xf32> to vector<8x135xf32>
    %132 = arith.mulf %129, %131 : vector<8x135xf32>
    %cst_68 = arith.constant 0.000000e+00 : f32
    %133 = vector.broadcast %cst_68 : f32 to vector<8x1xf32>
    %134 = vector.extract_strided_slice %114 {offsets = [0, 0], sizes = [8, 134], strides = [1, 1]} : vector<8x135xf32> to vector<8x134xf32>
    %135 = tpu.concatenate %133, %134 in 1 : vector<8x1xf32>, vector<8x134xf32> -> vector<8x135xf32>
    %136 = vector.extract_strided_slice %2 {offsets = [3, 0], sizes = [1, 135], strides = [1, 1]} : vector<9x135xf32> to vector<1x135xf32>
    %137 = vector.broadcast %136 : vector<1x135xf32> to vector<8x135xf32>
    %138 = arith.mulf %135, %137 : vector<8x135xf32>
    %139 = vector.extract_strided_slice %2 {offsets = [4, 0], sizes = [1, 135], strides = [1, 1]} : vector<9x135xf32> to vector<1x135xf32>
    %140 = vector.broadcast %139 : vector<1x135xf32> to vector<8x135xf32>
    %141 = arith.mulf %114, %140 : vector<8x135xf32>
    %cst_69 = arith.constant 0.000000e+00 : f32
    %142 = vector.broadcast %cst_69 : f32 to vector<8x1xf32>
    %143 = vector.extract_strided_slice %114 {offsets = [0, 1], sizes = [8, 134], strides = [1, 1]} : vector<8x135xf32> to vector<8x134xf32>
    %144 = tpu.concatenate %143, %142 in 1 : vector<8x134xf32>, vector<8x1xf32> -> vector<8x135xf32>
    %145 = vector.extract_strided_slice %2 {offsets = [5, 0], sizes = [1, 135], strides = [1, 1]} : vector<9x135xf32> to vector<1x135xf32>
    %146 = vector.broadcast %145 : vector<1x135xf32> to vector<8x135xf32>
    %147 = arith.mulf %144, %146 : vector<8x135xf32>
    %cst_70 = arith.constant 0.000000e+00 : f32
    %148 = vector.broadcast %cst_70 : f32 to vector<8x14xf32>
    %149 = vector.extract_strided_slice %114 {offsets = [0, 14], sizes = [8, 121], strides = [1, 1]} : vector<8x135xf32> to vector<8x121xf32>
    %150 = tpu.concatenate %149, %148 in 1 : vector<8x121xf32>, vector<8x14xf32> -> vector<8x135xf32>
    %151 = vector.extract_strided_slice %2 {offsets = [6, 0], sizes = [1, 135], strides = [1, 1]} : vector<9x135xf32> to vector<1x135xf32>
    %152 = vector.broadcast %151 : vector<1x135xf32> to vector<8x135xf32>
    %153 = arith.mulf %150, %152 : vector<8x135xf32>
    %cst_71 = arith.constant 0.000000e+00 : f32
    %154 = vector.broadcast %cst_71 : f32 to vector<8x15xf32>
    %155 = vector.extract_strided_slice %114 {offsets = [0, 15], sizes = [8, 120], strides = [1, 1]} : vector<8x135xf32> to vector<8x120xf32>
    %156 = tpu.concatenate %155, %154 in 1 : vector<8x120xf32>, vector<8x15xf32> -> vector<8x135xf32>
    %157 = vector.extract_strided_slice %2 {offsets = [7, 0], sizes = [1, 135], strides = [1, 1]} : vector<9x135xf32> to vector<1x135xf32>
    %158 = vector.broadcast %157 : vector<1x135xf32> to vector<8x135xf32>
    %159 = arith.mulf %156, %158 : vector<8x135xf32>
    %cst_72 = arith.constant 0.000000e+00 : f32
    %160 = vector.broadcast %cst_72 : f32 to vector<8x16xf32>
    %161 = vector.extract_strided_slice %114 {offsets = [0, 16], sizes = [8, 119], strides = [1, 1]} : vector<8x135xf32> to vector<8x119xf32>
    %162 = tpu.concatenate %161, %160 in 1 : vector<8x119xf32>, vector<8x16xf32> -> vector<8x135xf32>
    %163 = vector.extract_strided_slice %2 {offsets = [8, 0], sizes = [1, 135], strides = [1, 1]} : vector<9x135xf32> to vector<1x135xf32>
    %164 = vector.broadcast %163 : vector<1x135xf32> to vector<8x135xf32>
    %165 = arith.mulf %162, %164 : vector<8x135xf32>
    %166 = tpu.concatenate %120, %126, %132, %138, %141, %147, %153, %159, %165 in 0 : vector<8x135xf32>, vector<8x135xf32>, vector<8x135xf32>, vector<8x135xf32>, vector<8x135xf32>, vector<8x135xf32>, vector<8x135xf32>, vector<8x135xf32>, vector<8x135xf32> -> vector<72x135xf32>
    %cst_73 = arith.constant dense<0.000000e+00> : vector<4x135xf32>
    %167 = tpu.matmul %99, %166, %cst_73 {dimension_numbers = #tpu.dot_dimension_numbers<[1], [0], [0], [1], [0, 0, 1, 1], [], []>} : vector<4x72xf32>, vector<72x135xf32>, vector<4x135xf32> -> vector<4x135xf32>
    %168 = vector.broadcast %101 : vector<4x1xf32> to vector<4x135xf32>
    %169 = arith.addf %167, %168 : vector<4x135xf32>
    %cst_74 = arith.constant 0.000000e+00 : f32
    %170 = vector.broadcast %cst_74 : f32 to vector<4x135xf32>
    %171 = arith.maximumf %169, %170 : vector<4x135xf32>
    %cst_75 = arith.constant dense<0.000000e+00> : vector<16x135xf32>
    %172 = tpu.matmul %103, %171, %cst_75 {dimension_numbers = #tpu.dot_dimension_numbers<[1], [0], [0], [1], [0, 0, 1, 1], [], []>} : vector<16x4xf32>, vector<4x135xf32>, vector<16x135xf32> -> vector<16x135xf32>
    %173 = arith.addf %172, %89 : vector<16x135xf32>
    %c4 = arith.constant 4 : index
    %c0_76 = arith.constant 0 : index
    %c0_77 = arith.constant 0 : index
    %174 = vector.load %arg2[%c4, %c0_76, %c0_77] : memref<24x16x1xf32, #tpu.memory_space<vmem>>, vector<1x16x1xf32>
    %175 = vector.shape_cast %174 : vector<1x16x1xf32> to vector<16x1xf32>
    %c5 = arith.constant 5 : index
    %c0_78 = arith.constant 0 : index
    %c0_79 = arith.constant 0 : index
    %176 = vector.load %arg2[%c5, %c0_78, %c0_79] : memref<24x16x1xf32, #tpu.memory_space<vmem>>, vector<1x16x1xf32>
    %177 = vector.shape_cast %176 : vector<1x16x1xf32> to vector<16x1xf32>
    %c2_80 = arith.constant 2 : index
    %c0_81 = arith.constant 0 : index
    %c0_82 = arith.constant 0 : index
    %178 = vector.load %arg3[%c2_80, %c0_81, %c0_82] : memref<12x8x16xf32, #tpu.memory_space<vmem>>, vector<1x8x16xf32>
    %179 = vector.shape_cast %178 : vector<1x8x16xf32> to vector<8x16xf32>
    %c2_83 = arith.constant 2 : index
    %c0_84 = arith.constant 0 : index
    %c0_85 = arith.constant 0 : index
    %180 = vector.load %arg4[%c2_83, %c0_84, %c0_85] : memref<12x8x1xf32, #tpu.memory_space<vmem>>, vector<1x8x1xf32>
    %181 = vector.shape_cast %180 : vector<1x8x1xf32> to vector<8x1xf32>
    %c2_86 = arith.constant 2 : index
    %c0_87 = arith.constant 0 : index
    %c0_88 = arith.constant 0 : index
    %182 = vector.load %arg5[%c2_86, %c0_87, %c0_88] : memref<12x4x72xf32, #tpu.memory_space<vmem>>, vector<1x4x72xf32>
    %183 = vector.shape_cast %182 : vector<1x4x72xf32> to vector<4x72xf32>
    %c2_89 = arith.constant 2 : index
    %c0_90 = arith.constant 0 : index
    %c0_91 = arith.constant 0 : index
    %184 = vector.load %arg6[%c2_89, %c0_90, %c0_91] : memref<12x4x1xf32, #tpu.memory_space<vmem>>, vector<1x4x1xf32>
    %185 = vector.shape_cast %184 : vector<1x4x1xf32> to vector<4x1xf32>
    %c2_92 = arith.constant 2 : index
    %c0_93 = arith.constant 0 : index
    %c0_94 = arith.constant 0 : index
    %186 = vector.load %arg7[%c2_92, %c0_93, %c0_94] : memref<12x16x4xf32, #tpu.memory_space<vmem>>, vector<1x16x4xf32>
    %187 = vector.shape_cast %186 : vector<1x16x4xf32> to vector<16x4xf32>
    %188 = vector.broadcast %175 : vector<16x1xf32> to vector<16x135xf32>
    %189 = arith.mulf %173, %188 : vector<16x135xf32>
    %190 = vector.broadcast %177 : vector<16x1xf32> to vector<16x135xf32>
    %191 = arith.addf %189, %190 : vector<16x135xf32>
    %cst_95 = arith.constant 0.000000e+00 : f32
    %192 = vector.broadcast %cst_95 : f32 to vector<16x135xf32>
    %193 = arith.maximumf %191, %192 : vector<16x135xf32>
    %cst_96 = arith.constant dense<0.000000e+00> : vector<8x135xf32>
    %194 = tpu.matmul %179, %193, %cst_96 {dimension_numbers = #tpu.dot_dimension_numbers<[1], [0], [0], [1], [0, 0, 1, 1], [], []>} : vector<8x16xf32>, vector<16x135xf32>, vector<8x135xf32> -> vector<8x135xf32>
    %195 = vector.broadcast %181 : vector<8x1xf32> to vector<8x135xf32>
    %196 = arith.addf %194, %195 : vector<8x135xf32>
    %cst_97 = arith.constant 0.000000e+00 : f32
    %197 = vector.broadcast %cst_97 : f32 to vector<8x135xf32>
    %198 = arith.maximumf %196, %197 : vector<8x135xf32>
    %cst_98 = arith.constant 0.000000e+00 : f32
    %199 = vector.broadcast %cst_98 : f32 to vector<8x16xf32>
    %200 = vector.extract_strided_slice %198 {offsets = [0, 0], sizes = [8, 119], strides = [1, 1]} : vector<8x135xf32> to vector<8x119xf32>
    %201 = tpu.concatenate %199, %200 in 1 : vector<8x16xf32>, vector<8x119xf32> -> vector<8x135xf32>
    %202 = vector.extract_strided_slice %2 {offsets = [0, 0], sizes = [1, 135], strides = [1, 1]} : vector<9x135xf32> to vector<1x135xf32>
    %203 = vector.broadcast %202 : vector<1x135xf32> to vector<8x135xf32>
    %204 = arith.mulf %201, %203 : vector<8x135xf32>
    %cst_99 = arith.constant 0.000000e+00 : f32
    %205 = vector.broadcast %cst_99 : f32 to vector<8x15xf32>
    %206 = vector.extract_strided_slice %198 {offsets = [0, 0], sizes = [8, 120], strides = [1, 1]} : vector<8x135xf32> to vector<8x120xf32>
    %207 = tpu.concatenate %205, %206 in 1 : vector<8x15xf32>, vector<8x120xf32> -> vector<8x135xf32>
    %208 = vector.extract_strided_slice %2 {offsets = [1, 0], sizes = [1, 135], strides = [1, 1]} : vector<9x135xf32> to vector<1x135xf32>
    %209 = vector.broadcast %208 : vector<1x135xf32> to vector<8x135xf32>
    %210 = arith.mulf %207, %209 : vector<8x135xf32>
    %cst_100 = arith.constant 0.000000e+00 : f32
    %211 = vector.broadcast %cst_100 : f32 to vector<8x14xf32>
    %212 = vector.extract_strided_slice %198 {offsets = [0, 0], sizes = [8, 121], strides = [1, 1]} : vector<8x135xf32> to vector<8x121xf32>
    %213 = tpu.concatenate %211, %212 in 1 : vector<8x14xf32>, vector<8x121xf32> -> vector<8x135xf32>
    %214 = vector.extract_strided_slice %2 {offsets = [2, 0], sizes = [1, 135], strides = [1, 1]} : vector<9x135xf32> to vector<1x135xf32>
    %215 = vector.broadcast %214 : vector<1x135xf32> to vector<8x135xf32>
    %216 = arith.mulf %213, %215 : vector<8x135xf32>
    %cst_101 = arith.constant 0.000000e+00 : f32
    %217 = vector.broadcast %cst_101 : f32 to vector<8x1xf32>
    %218 = vector.extract_strided_slice %198 {offsets = [0, 0], sizes = [8, 134], strides = [1, 1]} : vector<8x135xf32> to vector<8x134xf32>
    %219 = tpu.concatenate %217, %218 in 1 : vector<8x1xf32>, vector<8x134xf32> -> vector<8x135xf32>
    %220 = vector.extract_strided_slice %2 {offsets = [3, 0], sizes = [1, 135], strides = [1, 1]} : vector<9x135xf32> to vector<1x135xf32>
    %221 = vector.broadcast %220 : vector<1x135xf32> to vector<8x135xf32>
    %222 = arith.mulf %219, %221 : vector<8x135xf32>
    %223 = vector.extract_strided_slice %2 {offsets = [4, 0], sizes = [1, 135], strides = [1, 1]} : vector<9x135xf32> to vector<1x135xf32>
    %224 = vector.broadcast %223 : vector<1x135xf32> to vector<8x135xf32>
    %225 = arith.mulf %198, %224 : vector<8x135xf32>
    %cst_102 = arith.constant 0.000000e+00 : f32
    %226 = vector.broadcast %cst_102 : f32 to vector<8x1xf32>
    %227 = vector.extract_strided_slice %198 {offsets = [0, 1], sizes = [8, 134], strides = [1, 1]} : vector<8x135xf32> to vector<8x134xf32>
    %228 = tpu.concatenate %227, %226 in 1 : vector<8x134xf32>, vector<8x1xf32> -> vector<8x135xf32>
    %229 = vector.extract_strided_slice %2 {offsets = [5, 0], sizes = [1, 135], strides = [1, 1]} : vector<9x135xf32> to vector<1x135xf32>
    %230 = vector.broadcast %229 : vector<1x135xf32> to vector<8x135xf32>
    %231 = arith.mulf %228, %230 : vector<8x135xf32>
    %cst_103 = arith.constant 0.000000e+00 : f32
    %232 = vector.broadcast %cst_103 : f32 to vector<8x14xf32>
    %233 = vector.extract_strided_slice %198 {offsets = [0, 14], sizes = [8, 121], strides = [1, 1]} : vector<8x135xf32> to vector<8x121xf32>
    %234 = tpu.concatenate %233, %232 in 1 : vector<8x121xf32>, vector<8x14xf32> -> vector<8x135xf32>
    %235 = vector.extract_strided_slice %2 {offsets = [6, 0], sizes = [1, 135], strides = [1, 1]} : vector<9x135xf32> to vector<1x135xf32>
    %236 = vector.broadcast %235 : vector<1x135xf32> to vector<8x135xf32>
    %237 = arith.mulf %234, %236 : vector<8x135xf32>
    %cst_104 = arith.constant 0.000000e+00 : f32
    %238 = vector.broadcast %cst_104 : f32 to vector<8x15xf32>
    %239 = vector.extract_strided_slice %198 {offsets = [0, 15], sizes = [8, 120], strides = [1, 1]} : vector<8x135xf32> to vector<8x120xf32>
    %240 = tpu.concatenate %239, %238 in 1 : vector<8x120xf32>, vector<8x15xf32> -> vector<8x135xf32>
    %241 = vector.extract_strided_slice %2 {offsets = [7, 0], sizes = [1, 135], strides = [1, 1]} : vector<9x135xf32> to vector<1x135xf32>
    %242 = vector.broadcast %241 : vector<1x135xf32> to vector<8x135xf32>
    %243 = arith.mulf %240, %242 : vector<8x135xf32>
    %cst_105 = arith.constant 0.000000e+00 : f32
    %244 = vector.broadcast %cst_105 : f32 to vector<8x16xf32>
    %245 = vector.extract_strided_slice %198 {offsets = [0, 16], sizes = [8, 119], strides = [1, 1]} : vector<8x135xf32> to vector<8x119xf32>
    %246 = tpu.concatenate %245, %244 in 1 : vector<8x119xf32>, vector<8x16xf32> -> vector<8x135xf32>
    %247 = vector.extract_strided_slice %2 {offsets = [8, 0], sizes = [1, 135], strides = [1, 1]} : vector<9x135xf32> to vector<1x135xf32>
    %248 = vector.broadcast %247 : vector<1x135xf32> to vector<8x135xf32>
    %249 = arith.mulf %246, %248 : vector<8x135xf32>
    %250 = tpu.concatenate %204, %210, %216, %222, %225, %231, %237, %243, %249 in 0 : vector<8x135xf32>, vector<8x135xf32>, vector<8x135xf32>, vector<8x135xf32>, vector<8x135xf32>, vector<8x135xf32>, vector<8x135xf32>, vector<8x135xf32>, vector<8x135xf32> -> vector<72x135xf32>
    %cst_106 = arith.constant dense<0.000000e+00> : vector<4x135xf32>
    %251 = tpu.matmul %183, %250, %cst_106 {dimension_numbers = #tpu.dot_dimension_numbers<[1], [0], [0], [1], [0, 0, 1, 1], [], []>} : vector<4x72xf32>, vector<72x135xf32>, vector<4x135xf32> -> vector<4x135xf32>
    %252 = vector.broadcast %185 : vector<4x1xf32> to vector<4x135xf32>
    %253 = arith.addf %251, %252 : vector<4x135xf32>
    %cst_107 = arith.constant 0.000000e+00 : f32
    %254 = vector.broadcast %cst_107 : f32 to vector<4x135xf32>
    %255 = arith.maximumf %253, %254 : vector<4x135xf32>
    %cst_108 = arith.constant dense<0.000000e+00> : vector<16x135xf32>
    %256 = tpu.matmul %187, %255, %cst_108 {dimension_numbers = #tpu.dot_dimension_numbers<[1], [0], [0], [1], [0, 0, 1, 1], [], []>} : vector<16x4xf32>, vector<4x135xf32>, vector<16x135xf32> -> vector<16x135xf32>
    %257 = arith.addf %256, %173 : vector<16x135xf32>
    %c0_109 = arith.constant 0 : index
    %c0_110 = arith.constant 0 : index
    %258 = vector.load %arg14[%c0_109, %c0_110] : memref<135x40xf32, #tpu.memory_space<vmem>>, vector<135x40xf32>
    %259 = vector.extract_strided_slice %2 {offsets = [0, 0], sizes = [1, 135], strides = [1, 1]} : vector<9x135xf32> to vector<1x135xf32>
    %cst_111 = arith.constant 0.000000e+00 : f32
    %260 = vector.broadcast %cst_111 : f32 to vector<16x16xf32>
    %261 = vector.extract_strided_slice %89 {offsets = [0, 0], sizes = [16, 119], strides = [1, 1]} : vector<16x135xf32> to vector<16x119xf32>
    %262 = tpu.concatenate %260, %261 in 1 : vector<16x16xf32>, vector<16x119xf32> -> vector<16x135xf32>
    %263 = vector.broadcast %259 : vector<1x135xf32> to vector<16x135xf32>
    %264 = arith.mulf %262, %263 : vector<16x135xf32>
    %cst_112 = arith.constant 1.000000e+00 : f32
    %265 = vector.broadcast %cst_112 : f32 to vector<1x135xf32>
    %266 = arith.subf %265, %259 : vector<1x135xf32>
    %267 = vector.broadcast %266 : vector<1x135xf32> to vector<16x135xf32>
    %268 = arith.mulf %89, %267 : vector<16x135xf32>
    %269 = arith.addf %264, %268 : vector<16x135xf32>
    %270 = arith.maximumf %89, %269 : vector<16x135xf32>
    %271 = vector.extract_strided_slice %2 {offsets = [1, 0], sizes = [1, 135], strides = [1, 1]} : vector<9x135xf32> to vector<1x135xf32>
    %cst_113 = arith.constant 0.000000e+00 : f32
    %272 = vector.broadcast %cst_113 : f32 to vector<16x15xf32>
    %273 = vector.extract_strided_slice %89 {offsets = [0, 0], sizes = [16, 120], strides = [1, 1]} : vector<16x135xf32> to vector<16x120xf32>
    %274 = tpu.concatenate %272, %273 in 1 : vector<16x15xf32>, vector<16x120xf32> -> vector<16x135xf32>
    %275 = vector.broadcast %271 : vector<1x135xf32> to vector<16x135xf32>
    %276 = arith.mulf %274, %275 : vector<16x135xf32>
    %cst_114 = arith.constant 1.000000e+00 : f32
    %277 = vector.broadcast %cst_114 : f32 to vector<1x135xf32>
    %278 = arith.subf %277, %271 : vector<1x135xf32>
    %279 = vector.broadcast %278 : vector<1x135xf32> to vector<16x135xf32>
    %280 = arith.mulf %89, %279 : vector<16x135xf32>
    %281 = arith.addf %276, %280 : vector<16x135xf32>
    %282 = arith.maximumf %270, %281 : vector<16x135xf32>
    %283 = vector.extract_strided_slice %2 {offsets = [2, 0], sizes = [1, 135], strides = [1, 1]} : vector<9x135xf32> to vector<1x135xf32>
    %cst_115 = arith.constant 0.000000e+00 : f32
    %284 = vector.broadcast %cst_115 : f32 to vector<16x14xf32>
    %285 = vector.extract_strided_slice %89 {offsets = [0, 0], sizes = [16, 121], strides = [1, 1]} : vector<16x135xf32> to vector<16x121xf32>
    %286 = tpu.concatenate %284, %285 in 1 : vector<16x14xf32>, vector<16x121xf32> -> vector<16x135xf32>
    %287 = vector.broadcast %283 : vector<1x135xf32> to vector<16x135xf32>
    %288 = arith.mulf %286, %287 : vector<16x135xf32>
    %cst_116 = arith.constant 1.000000e+00 : f32
    %289 = vector.broadcast %cst_116 : f32 to vector<1x135xf32>
    %290 = arith.subf %289, %283 : vector<1x135xf32>
    %291 = vector.broadcast %290 : vector<1x135xf32> to vector<16x135xf32>
    %292 = arith.mulf %89, %291 : vector<16x135xf32>
    %293 = arith.addf %288, %292 : vector<16x135xf32>
    %294 = arith.maximumf %282, %293 : vector<16x135xf32>
    %295 = vector.extract_strided_slice %2 {offsets = [3, 0], sizes = [1, 135], strides = [1, 1]} : vector<9x135xf32> to vector<1x135xf32>
    %cst_117 = arith.constant 0.000000e+00 : f32
    %296 = vector.broadcast %cst_117 : f32 to vector<16x1xf32>
    %297 = vector.extract_strided_slice %89 {offsets = [0, 0], sizes = [16, 134], strides = [1, 1]} : vector<16x135xf32> to vector<16x134xf32>
    %298 = tpu.concatenate %296, %297 in 1 : vector<16x1xf32>, vector<16x134xf32> -> vector<16x135xf32>
    %299 = vector.broadcast %295 : vector<1x135xf32> to vector<16x135xf32>
    %300 = arith.mulf %298, %299 : vector<16x135xf32>
    %cst_118 = arith.constant 1.000000e+00 : f32
    %301 = vector.broadcast %cst_118 : f32 to vector<1x135xf32>
    %302 = arith.subf %301, %295 : vector<1x135xf32>
    %303 = vector.broadcast %302 : vector<1x135xf32> to vector<16x135xf32>
    %304 = arith.mulf %89, %303 : vector<16x135xf32>
    %305 = arith.addf %300, %304 : vector<16x135xf32>
    %306 = arith.maximumf %294, %305 : vector<16x135xf32>
    %307 = vector.extract_strided_slice %2 {offsets = [5, 0], sizes = [1, 135], strides = [1, 1]} : vector<9x135xf32> to vector<1x135xf32>
    %cst_119 = arith.constant 0.000000e+00 : f32
    %308 = vector.broadcast %cst_119 : f32 to vector<16x1xf32>
    %309 = vector.extract_strided_slice %89 {offsets = [0, 1], sizes = [16, 134], strides = [1, 1]} : vector<16x135xf32> to vector<16x134xf32>
    %310 = tpu.concatenate %309, %308 in 1 : vector<16x134xf32>, vector<16x1xf32> -> vector<16x135xf32>
    %311 = vector.broadcast %307 : vector<1x135xf32> to vector<16x135xf32>
    %312 = arith.mulf %310, %311 : vector<16x135xf32>
    %cst_120 = arith.constant 1.000000e+00 : f32
    %313 = vector.broadcast %cst_120 : f32 to vector<1x135xf32>
    %314 = arith.subf %313, %307 : vector<1x135xf32>
    %315 = vector.broadcast %314 : vector<1x135xf32> to vector<16x135xf32>
    %316 = arith.mulf %89, %315 : vector<16x135xf32>
    %317 = arith.addf %312, %316 : vector<16x135xf32>
    %318 = arith.maximumf %306, %317 : vector<16x135xf32>
    %319 = vector.extract_strided_slice %2 {offsets = [6, 0], sizes = [1, 135], strides = [1, 1]} : vector<9x135xf32> to vector<1x135xf32>
    %cst_121 = arith.constant 0.000000e+00 : f32
    %320 = vector.broadcast %cst_121 : f32 to vector<16x14xf32>
    %321 = vector.extract_strided_slice %89 {offsets = [0, 14], sizes = [16, 121], strides = [1, 1]} : vector<16x135xf32> to vector<16x121xf32>
    %322 = tpu.concatenate %321, %320 in 1 : vector<16x121xf32>, vector<16x14xf32> -> vector<16x135xf32>
    %323 = vector.broadcast %319 : vector<1x135xf32> to vector<16x135xf32>
    %324 = arith.mulf %322, %323 : vector<16x135xf32>
    %cst_122 = arith.constant 1.000000e+00 : f32
    %325 = vector.broadcast %cst_122 : f32 to vector<1x135xf32>
    %326 = arith.subf %325, %319 : vector<1x135xf32>
    %327 = vector.broadcast %326 : vector<1x135xf32> to vector<16x135xf32>
    %328 = arith.mulf %89, %327 : vector<16x135xf32>
    %329 = arith.addf %324, %328 : vector<16x135xf32>
    %330 = arith.maximumf %318, %329 : vector<16x135xf32>
    %331 = vector.extract_strided_slice %2 {offsets = [7, 0], sizes = [1, 135], strides = [1, 1]} : vector<9x135xf32> to vector<1x135xf32>
    %cst_123 = arith.constant 0.000000e+00 : f32
    %332 = vector.broadcast %cst_123 : f32 to vector<16x15xf32>
    %333 = vector.extract_strided_slice %89 {offsets = [0, 15], sizes = [16, 120], strides = [1, 1]} : vector<16x135xf32> to vector<16x120xf32>
    %334 = tpu.concatenate %333, %332 in 1 : vector<16x120xf32>, vector<16x15xf32> -> vector<16x135xf32>
    %335 = vector.broadcast %331 : vector<1x135xf32> to vector<16x135xf32>
    %336 = arith.mulf %334, %335 : vector<16x135xf32>
    %cst_124 = arith.constant 1.000000e+00 : f32
    %337 = vector.broadcast %cst_124 : f32 to vector<1x135xf32>
    %338 = arith.subf %337, %331 : vector<1x135xf32>
    %339 = vector.broadcast %338 : vector<1x135xf32> to vector<16x135xf32>
    %340 = arith.mulf %89, %339 : vector<16x135xf32>
    %341 = arith.addf %336, %340 : vector<16x135xf32>
    %342 = arith.maximumf %330, %341 : vector<16x135xf32>
    %343 = vector.extract_strided_slice %2 {offsets = [8, 0], sizes = [1, 135], strides = [1, 1]} : vector<9x135xf32> to vector<1x135xf32>
    %cst_125 = arith.constant 0.000000e+00 : f32
    %344 = vector.broadcast %cst_125 : f32 to vector<16x16xf32>
    %345 = vector.extract_strided_slice %89 {offsets = [0, 16], sizes = [16, 119], strides = [1, 1]} : vector<16x135xf32> to vector<16x119xf32>
    %346 = tpu.concatenate %345, %344 in 1 : vector<16x119xf32>, vector<16x16xf32> -> vector<16x135xf32>
    %347 = vector.broadcast %343 : vector<1x135xf32> to vector<16x135xf32>
    %348 = arith.mulf %346, %347 : vector<16x135xf32>
    %cst_126 = arith.constant 1.000000e+00 : f32
    %349 = vector.broadcast %cst_126 : f32 to vector<1x135xf32>
    %350 = arith.subf %349, %343 : vector<1x135xf32>
    %351 = vector.broadcast %350 : vector<1x135xf32> to vector<16x135xf32>
    %352 = arith.mulf %89, %351 : vector<16x135xf32>
    %353 = arith.addf %348, %352 : vector<16x135xf32>
    %354 = arith.maximumf %342, %353 : vector<16x135xf32>
    %cst_127 = arith.constant dense<0.000000e+00> : vector<16x40xf32>
    %355 = tpu.matmul %354, %258, %cst_127 {dimension_numbers = #tpu.dot_dimension_numbers<[1], [0], [0], [1], [0, 0, 1, 1], [], []>} : vector<16x135xf32>, vector<135x40xf32>, vector<16x40xf32> -> vector<16x40xf32>
    %c6 = arith.constant 6 : index
    %c0_128 = arith.constant 0 : index
    %c0_129 = arith.constant 0 : index
    %356 = vector.load %arg2[%c6, %c0_128, %c0_129] : memref<24x16x1xf32, #tpu.memory_space<vmem>>, vector<1x16x1xf32>
    %357 = vector.shape_cast %356 : vector<1x16x1xf32> to vector<16x1xf32>
    %c7 = arith.constant 7 : index
    %c0_130 = arith.constant 0 : index
    %c0_131 = arith.constant 0 : index
    %358 = vector.load %arg2[%c7, %c0_130, %c0_131] : memref<24x16x1xf32, #tpu.memory_space<vmem>>, vector<1x16x1xf32>
    %359 = vector.shape_cast %358 : vector<1x16x1xf32> to vector<16x1xf32>
    %c3_132 = arith.constant 3 : index
    %c0_133 = arith.constant 0 : index
    %c0_134 = arith.constant 0 : index
    %360 = vector.load %arg3[%c3_132, %c0_133, %c0_134] : memref<12x8x16xf32, #tpu.memory_space<vmem>>, vector<1x8x16xf32>
    %361 = vector.shape_cast %360 : vector<1x8x16xf32> to vector<8x16xf32>
    %c3_135 = arith.constant 3 : index
    %c0_136 = arith.constant 0 : index
    %c0_137 = arith.constant 0 : index
    %362 = vector.load %arg4[%c3_135, %c0_136, %c0_137] : memref<12x8x1xf32, #tpu.memory_space<vmem>>, vector<1x8x1xf32>
    %363 = vector.shape_cast %362 : vector<1x8x1xf32> to vector<8x1xf32>
    %c3_138 = arith.constant 3 : index
    %c0_139 = arith.constant 0 : index
    %c0_140 = arith.constant 0 : index
    %364 = vector.load %arg5[%c3_138, %c0_139, %c0_140] : memref<12x4x72xf32, #tpu.memory_space<vmem>>, vector<1x4x72xf32>
    %365 = vector.shape_cast %364 : vector<1x4x72xf32> to vector<4x72xf32>
    %c3_141 = arith.constant 3 : index
    %c0_142 = arith.constant 0 : index
    %c0_143 = arith.constant 0 : index
    %366 = vector.load %arg6[%c3_141, %c0_142, %c0_143] : memref<12x4x1xf32, #tpu.memory_space<vmem>>, vector<1x4x1xf32>
    %367 = vector.shape_cast %366 : vector<1x4x1xf32> to vector<4x1xf32>
    %c3_144 = arith.constant 3 : index
    %c0_145 = arith.constant 0 : index
    %c0_146 = arith.constant 0 : index
    %368 = vector.load %arg7[%c3_144, %c0_145, %c0_146] : memref<12x16x4xf32, #tpu.memory_space<vmem>>, vector<1x16x4xf32>
    %369 = vector.shape_cast %368 : vector<1x16x4xf32> to vector<16x4xf32>
    %370 = vector.broadcast %357 : vector<16x1xf32> to vector<16x40xf32>
    %371 = arith.mulf %355, %370 : vector<16x40xf32>
    %372 = vector.broadcast %359 : vector<16x1xf32> to vector<16x40xf32>
    %373 = arith.addf %371, %372 : vector<16x40xf32>
    %cst_147 = arith.constant 0.000000e+00 : f32
    %374 = vector.broadcast %cst_147 : f32 to vector<16x40xf32>
    %375 = arith.maximumf %373, %374 : vector<16x40xf32>
    %cst_148 = arith.constant dense<0.000000e+00> : vector<8x40xf32>
    %376 = tpu.matmul %361, %375, %cst_148 {dimension_numbers = #tpu.dot_dimension_numbers<[1], [0], [0], [1], [0, 0, 1, 1], [], []>} : vector<8x16xf32>, vector<16x40xf32>, vector<8x40xf32> -> vector<8x40xf32>
    %377 = vector.broadcast %363 : vector<8x1xf32> to vector<8x40xf32>
    %378 = arith.addf %376, %377 : vector<8x40xf32>
    %cst_149 = arith.constant 0.000000e+00 : f32
    %379 = vector.broadcast %cst_149 : f32 to vector<8x40xf32>
    %380 = arith.maximumf %378, %379 : vector<8x40xf32>
    %cst_150 = arith.constant 0.000000e+00 : f32
    %381 = vector.broadcast %cst_150 : f32 to vector<8x9xf32>
    %382 = vector.extract_strided_slice %380 {offsets = [0, 0], sizes = [8, 31], strides = [1, 1]} : vector<8x40xf32> to vector<8x31xf32>
    %383 = tpu.concatenate %381, %382 in 1 : vector<8x9xf32>, vector<8x31xf32> -> vector<8x40xf32>
    %384 = vector.extract_strided_slice %3 {offsets = [0, 0], sizes = [1, 40], strides = [1, 1]} : vector<9x40xf32> to vector<1x40xf32>
    %385 = vector.broadcast %384 : vector<1x40xf32> to vector<8x40xf32>
    %386 = arith.mulf %383, %385 : vector<8x40xf32>
    %cst_151 = arith.constant 0.000000e+00 : f32
    %387 = vector.broadcast %cst_151 : f32 to vector<8x8xf32>
    %388 = vector.extract_strided_slice %380 {offsets = [0, 0], sizes = [8, 32], strides = [1, 1]} : vector<8x40xf32> to vector<8x32xf32>
    %389 = tpu.concatenate %387, %388 in 1 : vector<8x8xf32>, vector<8x32xf32> -> vector<8x40xf32>
    %390 = vector.extract_strided_slice %3 {offsets = [1, 0], sizes = [1, 40], strides = [1, 1]} : vector<9x40xf32> to vector<1x40xf32>
    %391 = vector.broadcast %390 : vector<1x40xf32> to vector<8x40xf32>
    %392 = arith.mulf %389, %391 : vector<8x40xf32>
    %cst_152 = arith.constant 0.000000e+00 : f32
    %393 = vector.broadcast %cst_152 : f32 to vector<8x7xf32>
    %394 = vector.extract_strided_slice %380 {offsets = [0, 0], sizes = [8, 33], strides = [1, 1]} : vector<8x40xf32> to vector<8x33xf32>
    %395 = tpu.concatenate %393, %394 in 1 : vector<8x7xf32>, vector<8x33xf32> -> vector<8x40xf32>
    %396 = vector.extract_strided_slice %3 {offsets = [2, 0], sizes = [1, 40], strides = [1, 1]} : vector<9x40xf32> to vector<1x40xf32>
    %397 = vector.broadcast %396 : vector<1x40xf32> to vector<8x40xf32>
    %398 = arith.mulf %395, %397 : vector<8x40xf32>
    %cst_153 = arith.constant 0.000000e+00 : f32
    %399 = vector.broadcast %cst_153 : f32 to vector<8x1xf32>
    %400 = vector.extract_strided_slice %380 {offsets = [0, 0], sizes = [8, 39], strides = [1, 1]} : vector<8x40xf32> to vector<8x39xf32>
    %401 = tpu.concatenate %399, %400 in 1 : vector<8x1xf32>, vector<8x39xf32> -> vector<8x40xf32>
    %402 = vector.extract_strided_slice %3 {offsets = [3, 0], sizes = [1, 40], strides = [1, 1]} : vector<9x40xf32> to vector<1x40xf32>
    %403 = vector.broadcast %402 : vector<1x40xf32> to vector<8x40xf32>
    %404 = arith.mulf %401, %403 : vector<8x40xf32>
    %405 = vector.extract_strided_slice %3 {offsets = [4, 0], sizes = [1, 40], strides = [1, 1]} : vector<9x40xf32> to vector<1x40xf32>
    %406 = vector.broadcast %405 : vector<1x40xf32> to vector<8x40xf32>
    %407 = arith.mulf %380, %406 : vector<8x40xf32>
    %cst_154 = arith.constant 0.000000e+00 : f32
    %408 = vector.broadcast %cst_154 : f32 to vector<8x1xf32>
    %409 = vector.extract_strided_slice %380 {offsets = [0, 1], sizes = [8, 39], strides = [1, 1]} : vector<8x40xf32> to vector<8x39xf32>
    %410 = tpu.concatenate %409, %408 in 1 : vector<8x39xf32>, vector<8x1xf32> -> vector<8x40xf32>
    %411 = vector.extract_strided_slice %3 {offsets = [5, 0], sizes = [1, 40], strides = [1, 1]} : vector<9x40xf32> to vector<1x40xf32>
    %412 = vector.broadcast %411 : vector<1x40xf32> to vector<8x40xf32>
    %413 = arith.mulf %410, %412 : vector<8x40xf32>
    %cst_155 = arith.constant 0.000000e+00 : f32
    %414 = vector.broadcast %cst_155 : f32 to vector<8x7xf32>
    %415 = vector.extract_strided_slice %380 {offsets = [0, 7], sizes = [8, 33], strides = [1, 1]} : vector<8x40xf32> to vector<8x33xf32>
    %416 = tpu.concatenate %415, %414 in 1 : vector<8x33xf32>, vector<8x7xf32> -> vector<8x40xf32>
    %417 = vector.extract_strided_slice %3 {offsets = [6, 0], sizes = [1, 40], strides = [1, 1]} : vector<9x40xf32> to vector<1x40xf32>
    %418 = vector.broadcast %417 : vector<1x40xf32> to vector<8x40xf32>
    %419 = arith.mulf %416, %418 : vector<8x40xf32>
    %cst_156 = arith.constant 0.000000e+00 : f32
    %420 = vector.broadcast %cst_156 : f32 to vector<8x8xf32>
    %421 = vector.extract_strided_slice %380 {offsets = [0, 8], sizes = [8, 32], strides = [1, 1]} : vector<8x40xf32> to vector<8x32xf32>
    %422 = tpu.concatenate %421, %420 in 1 : vector<8x32xf32>, vector<8x8xf32> -> vector<8x40xf32>
    %423 = vector.extract_strided_slice %3 {offsets = [7, 0], sizes = [1, 40], strides = [1, 1]} : vector<9x40xf32> to vector<1x40xf32>
    %424 = vector.broadcast %423 : vector<1x40xf32> to vector<8x40xf32>
    %425 = arith.mulf %422, %424 : vector<8x40xf32>
    %cst_157 = arith.constant 0.000000e+00 : f32
    %426 = vector.broadcast %cst_157 : f32 to vector<8x9xf32>
    %427 = vector.extract_strided_slice %380 {offsets = [0, 9], sizes = [8, 31], strides = [1, 1]} : vector<8x40xf32> to vector<8x31xf32>
    %428 = tpu.concatenate %427, %426 in 1 : vector<8x31xf32>, vector<8x9xf32> -> vector<8x40xf32>
    %429 = vector.extract_strided_slice %3 {offsets = [8, 0], sizes = [1, 40], strides = [1, 1]} : vector<9x40xf32> to vector<1x40xf32>
    %430 = vector.broadcast %429 : vector<1x40xf32> to vector<8x40xf32>
    %431 = arith.mulf %428, %430 : vector<8x40xf32>
    %432 = tpu.concatenate %386, %392, %398, %404, %407, %413, %419, %425, %431 in 0 : vector<8x40xf32>, vector<8x40xf32>, vector<8x40xf32>, vector<8x40xf32>, vector<8x40xf32>, vector<8x40xf32>, vector<8x40xf32>, vector<8x40xf32>, vector<8x40xf32> -> vector<72x40xf32>
    %cst_158 = arith.constant dense<0.000000e+00> : vector<4x40xf32>
    %433 = tpu.matmul %365, %432, %cst_158 {dimension_numbers = #tpu.dot_dimension_numbers<[1], [0], [0], [1], [0, 0, 1, 1], [], []>} : vector<4x72xf32>, vector<72x40xf32>, vector<4x40xf32> -> vector<4x40xf32>
    %434 = vector.broadcast %367 : vector<4x1xf32> to vector<4x40xf32>
    %435 = arith.addf %433, %434 : vector<4x40xf32>
    %cst_159 = arith.constant 0.000000e+00 : f32
    %436 = vector.broadcast %cst_159 : f32 to vector<4x40xf32>
    %437 = arith.maximumf %435, %436 : vector<4x40xf32>
    %cst_160 = arith.constant dense<0.000000e+00> : vector<16x40xf32>
    %438 = tpu.matmul %369, %437, %cst_160 {dimension_numbers = #tpu.dot_dimension_numbers<[1], [0], [0], [1], [0, 0, 1, 1], [], []>} : vector<16x4xf32>, vector<4x40xf32>, vector<16x40xf32> -> vector<16x40xf32>
    %439 = arith.addf %438, %355 : vector<16x40xf32>
    %c8 = arith.constant 8 : index
    %c0_161 = arith.constant 0 : index
    %c0_162 = arith.constant 0 : index
    %440 = vector.load %arg2[%c8, %c0_161, %c0_162] : memref<24x16x1xf32, #tpu.memory_space<vmem>>, vector<1x16x1xf32>
    %441 = vector.shape_cast %440 : vector<1x16x1xf32> to vector<16x1xf32>
    %c9 = arith.constant 9 : index
    %c0_163 = arith.constant 0 : index
    %c0_164 = arith.constant 0 : index
    %442 = vector.load %arg2[%c9, %c0_163, %c0_164] : memref<24x16x1xf32, #tpu.memory_space<vmem>>, vector<1x16x1xf32>
    %443 = vector.shape_cast %442 : vector<1x16x1xf32> to vector<16x1xf32>
    %c4_165 = arith.constant 4 : index
    %c0_166 = arith.constant 0 : index
    %c0_167 = arith.constant 0 : index
    %444 = vector.load %arg3[%c4_165, %c0_166, %c0_167] : memref<12x8x16xf32, #tpu.memory_space<vmem>>, vector<1x8x16xf32>
    %445 = vector.shape_cast %444 : vector<1x8x16xf32> to vector<8x16xf32>
    %c4_168 = arith.constant 4 : index
    %c0_169 = arith.constant 0 : index
    %c0_170 = arith.constant 0 : index
    %446 = vector.load %arg4[%c4_168, %c0_169, %c0_170] : memref<12x8x1xf32, #tpu.memory_space<vmem>>, vector<1x8x1xf32>
    %447 = vector.shape_cast %446 : vector<1x8x1xf32> to vector<8x1xf32>
    %c4_171 = arith.constant 4 : index
    %c0_172 = arith.constant 0 : index
    %c0_173 = arith.constant 0 : index
    %448 = vector.load %arg5[%c4_171, %c0_172, %c0_173] : memref<12x4x72xf32, #tpu.memory_space<vmem>>, vector<1x4x72xf32>
    %449 = vector.shape_cast %448 : vector<1x4x72xf32> to vector<4x72xf32>
    %c4_174 = arith.constant 4 : index
    %c0_175 = arith.constant 0 : index
    %c0_176 = arith.constant 0 : index
    %450 = vector.load %arg6[%c4_174, %c0_175, %c0_176] : memref<12x4x1xf32, #tpu.memory_space<vmem>>, vector<1x4x1xf32>
    %451 = vector.shape_cast %450 : vector<1x4x1xf32> to vector<4x1xf32>
    %c4_177 = arith.constant 4 : index
    %c0_178 = arith.constant 0 : index
    %c0_179 = arith.constant 0 : index
    %452 = vector.load %arg7[%c4_177, %c0_178, %c0_179] : memref<12x16x4xf32, #tpu.memory_space<vmem>>, vector<1x16x4xf32>
    %453 = vector.shape_cast %452 : vector<1x16x4xf32> to vector<16x4xf32>
    %454 = vector.broadcast %441 : vector<16x1xf32> to vector<16x40xf32>
    %455 = arith.mulf %439, %454 : vector<16x40xf32>
    %456 = vector.broadcast %443 : vector<16x1xf32> to vector<16x40xf32>
    %457 = arith.addf %455, %456 : vector<16x40xf32>
    %cst_180 = arith.constant 0.000000e+00 : f32
    %458 = vector.broadcast %cst_180 : f32 to vector<16x40xf32>
    %459 = arith.maximumf %457, %458 : vector<16x40xf32>
    %cst_181 = arith.constant dense<0.000000e+00> : vector<8x40xf32>
    %460 = tpu.matmul %445, %459, %cst_181 {dimension_numbers = #tpu.dot_dimension_numbers<[1], [0], [0], [1], [0, 0, 1, 1], [], []>} : vector<8x16xf32>, vector<16x40xf32>, vector<8x40xf32> -> vector<8x40xf32>
    %461 = vector.broadcast %447 : vector<8x1xf32> to vector<8x40xf32>
    %462 = arith.addf %460, %461 : vector<8x40xf32>
    %cst_182 = arith.constant 0.000000e+00 : f32
    %463 = vector.broadcast %cst_182 : f32 to vector<8x40xf32>
    %464 = arith.maximumf %462, %463 : vector<8x40xf32>
    %cst_183 = arith.constant 0.000000e+00 : f32
    %465 = vector.broadcast %cst_183 : f32 to vector<8x9xf32>
    %466 = vector.extract_strided_slice %464 {offsets = [0, 0], sizes = [8, 31], strides = [1, 1]} : vector<8x40xf32> to vector<8x31xf32>
    %467 = tpu.concatenate %465, %466 in 1 : vector<8x9xf32>, vector<8x31xf32> -> vector<8x40xf32>
    %468 = vector.extract_strided_slice %3 {offsets = [0, 0], sizes = [1, 40], strides = [1, 1]} : vector<9x40xf32> to vector<1x40xf32>
    %469 = vector.broadcast %468 : vector<1x40xf32> to vector<8x40xf32>
    %470 = arith.mulf %467, %469 : vector<8x40xf32>
    %cst_184 = arith.constant 0.000000e+00 : f32
    %471 = vector.broadcast %cst_184 : f32 to vector<8x8xf32>
    %472 = vector.extract_strided_slice %464 {offsets = [0, 0], sizes = [8, 32], strides = [1, 1]} : vector<8x40xf32> to vector<8x32xf32>
    %473 = tpu.concatenate %471, %472 in 1 : vector<8x8xf32>, vector<8x32xf32> -> vector<8x40xf32>
    %474 = vector.extract_strided_slice %3 {offsets = [1, 0], sizes = [1, 40], strides = [1, 1]} : vector<9x40xf32> to vector<1x40xf32>
    %475 = vector.broadcast %474 : vector<1x40xf32> to vector<8x40xf32>
    %476 = arith.mulf %473, %475 : vector<8x40xf32>
    %cst_185 = arith.constant 0.000000e+00 : f32
    %477 = vector.broadcast %cst_185 : f32 to vector<8x7xf32>
    %478 = vector.extract_strided_slice %464 {offsets = [0, 0], sizes = [8, 33], strides = [1, 1]} : vector<8x40xf32> to vector<8x33xf32>
    %479 = tpu.concatenate %477, %478 in 1 : vector<8x7xf32>, vector<8x33xf32> -> vector<8x40xf32>
    %480 = vector.extract_strided_slice %3 {offsets = [2, 0], sizes = [1, 40], strides = [1, 1]} : vector<9x40xf32> to vector<1x40xf32>
    %481 = vector.broadcast %480 : vector<1x40xf32> to vector<8x40xf32>
    %482 = arith.mulf %479, %481 : vector<8x40xf32>
    %cst_186 = arith.constant 0.000000e+00 : f32
    %483 = vector.broadcast %cst_186 : f32 to vector<8x1xf32>
    %484 = vector.extract_strided_slice %464 {offsets = [0, 0], sizes = [8, 39], strides = [1, 1]} : vector<8x40xf32> to vector<8x39xf32>
    %485 = tpu.concatenate %483, %484 in 1 : vector<8x1xf32>, vector<8x39xf32> -> vector<8x40xf32>
    %486 = vector.extract_strided_slice %3 {offsets = [3, 0], sizes = [1, 40], strides = [1, 1]} : vector<9x40xf32> to vector<1x40xf32>
    %487 = vector.broadcast %486 : vector<1x40xf32> to vector<8x40xf32>
    %488 = arith.mulf %485, %487 : vector<8x40xf32>
    %489 = vector.extract_strided_slice %3 {offsets = [4, 0], sizes = [1, 40], strides = [1, 1]} : vector<9x40xf32> to vector<1x40xf32>
    %490 = vector.broadcast %489 : vector<1x40xf32> to vector<8x40xf32>
    %491 = arith.mulf %464, %490 : vector<8x40xf32>
    %cst_187 = arith.constant 0.000000e+00 : f32
    %492 = vector.broadcast %cst_187 : f32 to vector<8x1xf32>
    %493 = vector.extract_strided_slice %464 {offsets = [0, 1], sizes = [8, 39], strides = [1, 1]} : vector<8x40xf32> to vector<8x39xf32>
    %494 = tpu.concatenate %493, %492 in 1 : vector<8x39xf32>, vector<8x1xf32> -> vector<8x40xf32>
    %495 = vector.extract_strided_slice %3 {offsets = [5, 0], sizes = [1, 40], strides = [1, 1]} : vector<9x40xf32> to vector<1x40xf32>
    %496 = vector.broadcast %495 : vector<1x40xf32> to vector<8x40xf32>
    %497 = arith.mulf %494, %496 : vector<8x40xf32>
    %cst_188 = arith.constant 0.000000e+00 : f32
    %498 = vector.broadcast %cst_188 : f32 to vector<8x7xf32>
    %499 = vector.extract_strided_slice %464 {offsets = [0, 7], sizes = [8, 33], strides = [1, 1]} : vector<8x40xf32> to vector<8x33xf32>
    %500 = tpu.concatenate %499, %498 in 1 : vector<8x33xf32>, vector<8x7xf32> -> vector<8x40xf32>
    %501 = vector.extract_strided_slice %3 {offsets = [6, 0], sizes = [1, 40], strides = [1, 1]} : vector<9x40xf32> to vector<1x40xf32>
    %502 = vector.broadcast %501 : vector<1x40xf32> to vector<8x40xf32>
    %503 = arith.mulf %500, %502 : vector<8x40xf32>
    %cst_189 = arith.constant 0.000000e+00 : f32
    %504 = vector.broadcast %cst_189 : f32 to vector<8x8xf32>
    %505 = vector.extract_strided_slice %464 {offsets = [0, 8], sizes = [8, 32], strides = [1, 1]} : vector<8x40xf32> to vector<8x32xf32>
    %506 = tpu.concatenate %505, %504 in 1 : vector<8x32xf32>, vector<8x8xf32> -> vector<8x40xf32>
    %507 = vector.extract_strided_slice %3 {offsets = [7, 0], sizes = [1, 40], strides = [1, 1]} : vector<9x40xf32> to vector<1x40xf32>
    %508 = vector.broadcast %507 : vector<1x40xf32> to vector<8x40xf32>
    %509 = arith.mulf %506, %508 : vector<8x40xf32>
    %cst_190 = arith.constant 0.000000e+00 : f32
    %510 = vector.broadcast %cst_190 : f32 to vector<8x9xf32>
    %511 = vector.extract_strided_slice %464 {offsets = [0, 9], sizes = [8, 31], strides = [1, 1]} : vector<8x40xf32> to vector<8x31xf32>
    %512 = tpu.concatenate %511, %510 in 1 : vector<8x31xf32>, vector<8x9xf32> -> vector<8x40xf32>
    %513 = vector.extract_strided_slice %3 {offsets = [8, 0], sizes = [1, 40], strides = [1, 1]} : vector<9x40xf32> to vector<1x40xf32>
    %514 = vector.broadcast %513 : vector<1x40xf32> to vector<8x40xf32>
    %515 = arith.mulf %512, %514 : vector<8x40xf32>
    %516 = tpu.concatenate %470, %476, %482, %488, %491, %497, %503, %509, %515 in 0 : vector<8x40xf32>, vector<8x40xf32>, vector<8x40xf32>, vector<8x40xf32>, vector<8x40xf32>, vector<8x40xf32>, vector<8x40xf32>, vector<8x40xf32>, vector<8x40xf32> -> vector<72x40xf32>
    %cst_191 = arith.constant dense<0.000000e+00> : vector<4x40xf32>
    %517 = tpu.matmul %449, %516, %cst_191 {dimension_numbers = #tpu.dot_dimension_numbers<[1], [0], [0], [1], [0, 0, 1, 1], [], []>} : vector<4x72xf32>, vector<72x40xf32>, vector<4x40xf32> -> vector<4x40xf32>
    %518 = vector.broadcast %451 : vector<4x1xf32> to vector<4x40xf32>
    %519 = arith.addf %517, %518 : vector<4x40xf32>
    %cst_192 = arith.constant 0.000000e+00 : f32
    %520 = vector.broadcast %cst_192 : f32 to vector<4x40xf32>
    %521 = arith.maximumf %519, %520 : vector<4x40xf32>
    %cst_193 = arith.constant dense<0.000000e+00> : vector<16x40xf32>
    %522 = tpu.matmul %453, %521, %cst_193 {dimension_numbers = #tpu.dot_dimension_numbers<[1], [0], [0], [1], [0, 0, 1, 1], [], []>} : vector<16x4xf32>, vector<4x40xf32>, vector<16x40xf32> -> vector<16x40xf32>
    %523 = arith.addf %522, %439 : vector<16x40xf32>
    %c0_194 = arith.constant 0 : index
    %c0_195 = arith.constant 0 : index
    %524 = vector.load %arg15[%c0_194, %c0_195] : memref<40x12xf32, #tpu.memory_space<vmem>>, vector<40x12xf32>
    %525 = vector.extract_strided_slice %3 {offsets = [0, 0], sizes = [1, 40], strides = [1, 1]} : vector<9x40xf32> to vector<1x40xf32>
    %cst_196 = arith.constant 0.000000e+00 : f32
    %526 = vector.broadcast %cst_196 : f32 to vector<16x9xf32>
    %527 = vector.extract_strided_slice %439 {offsets = [0, 0], sizes = [16, 31], strides = [1, 1]} : vector<16x40xf32> to vector<16x31xf32>
    %528 = tpu.concatenate %526, %527 in 1 : vector<16x9xf32>, vector<16x31xf32> -> vector<16x40xf32>
    %529 = vector.broadcast %525 : vector<1x40xf32> to vector<16x40xf32>
    %530 = arith.mulf %528, %529 : vector<16x40xf32>
    %cst_197 = arith.constant 1.000000e+00 : f32
    %531 = vector.broadcast %cst_197 : f32 to vector<1x40xf32>
    %532 = arith.subf %531, %525 : vector<1x40xf32>
    %533 = vector.broadcast %532 : vector<1x40xf32> to vector<16x40xf32>
    %534 = arith.mulf %439, %533 : vector<16x40xf32>
    %535 = arith.addf %530, %534 : vector<16x40xf32>
    %536 = arith.maximumf %439, %535 : vector<16x40xf32>
    %537 = vector.extract_strided_slice %3 {offsets = [1, 0], sizes = [1, 40], strides = [1, 1]} : vector<9x40xf32> to vector<1x40xf32>
    %cst_198 = arith.constant 0.000000e+00 : f32
    %538 = vector.broadcast %cst_198 : f32 to vector<16x8xf32>
    %539 = vector.extract_strided_slice %439 {offsets = [0, 0], sizes = [16, 32], strides = [1, 1]} : vector<16x40xf32> to vector<16x32xf32>
    %540 = tpu.concatenate %538, %539 in 1 : vector<16x8xf32>, vector<16x32xf32> -> vector<16x40xf32>
    %541 = vector.broadcast %537 : vector<1x40xf32> to vector<16x40xf32>
    %542 = arith.mulf %540, %541 : vector<16x40xf32>
    %cst_199 = arith.constant 1.000000e+00 : f32
    %543 = vector.broadcast %cst_199 : f32 to vector<1x40xf32>
    %544 = arith.subf %543, %537 : vector<1x40xf32>
    %545 = vector.broadcast %544 : vector<1x40xf32> to vector<16x40xf32>
    %546 = arith.mulf %439, %545 : vector<16x40xf32>
    %547 = arith.addf %542, %546 : vector<16x40xf32>
    %548 = arith.maximumf %536, %547 : vector<16x40xf32>
    %549 = vector.extract_strided_slice %3 {offsets = [2, 0], sizes = [1, 40], strides = [1, 1]} : vector<9x40xf32> to vector<1x40xf32>
    %cst_200 = arith.constant 0.000000e+00 : f32
    %550 = vector.broadcast %cst_200 : f32 to vector<16x7xf32>
    %551 = vector.extract_strided_slice %439 {offsets = [0, 0], sizes = [16, 33], strides = [1, 1]} : vector<16x40xf32> to vector<16x33xf32>
    %552 = tpu.concatenate %550, %551 in 1 : vector<16x7xf32>, vector<16x33xf32> -> vector<16x40xf32>
    %553 = vector.broadcast %549 : vector<1x40xf32> to vector<16x40xf32>
    %554 = arith.mulf %552, %553 : vector<16x40xf32>
    %cst_201 = arith.constant 1.000000e+00 : f32
    %555 = vector.broadcast %cst_201 : f32 to vector<1x40xf32>
    %556 = arith.subf %555, %549 : vector<1x40xf32>
    %557 = vector.broadcast %556 : vector<1x40xf32> to vector<16x40xf32>
    %558 = arith.mulf %439, %557 : vector<16x40xf32>
    %559 = arith.addf %554, %558 : vector<16x40xf32>
    %560 = arith.maximumf %548, %559 : vector<16x40xf32>
    %561 = vector.extract_strided_slice %3 {offsets = [3, 0], sizes = [1, 40], strides = [1, 1]} : vector<9x40xf32> to vector<1x40xf32>
    %cst_202 = arith.constant 0.000000e+00 : f32
    %562 = vector.broadcast %cst_202 : f32 to vector<16x1xf32>
    %563 = vector.extract_strided_slice %439 {offsets = [0, 0], sizes = [16, 39], strides = [1, 1]} : vector<16x40xf32> to vector<16x39xf32>
    %564 = tpu.concatenate %562, %563 in 1 : vector<16x1xf32>, vector<16x39xf32> -> vector<16x40xf32>
    %565 = vector.broadcast %561 : vector<1x40xf32> to vector<16x40xf32>
    %566 = arith.mulf %564, %565 : vector<16x40xf32>
    %cst_203 = arith.constant 1.000000e+00 : f32
    %567 = vector.broadcast %cst_203 : f32 to vector<1x40xf32>
    %568 = arith.subf %567, %561 : vector<1x40xf32>
    %569 = vector.broadcast %568 : vector<1x40xf32> to vector<16x40xf32>
    %570 = arith.mulf %439, %569 : vector<16x40xf32>
    %571 = arith.addf %566, %570 : vector<16x40xf32>
    %572 = arith.maximumf %560, %571 : vector<16x40xf32>
    %573 = vector.extract_strided_slice %3 {offsets = [5, 0], sizes = [1, 40], strides = [1, 1]} : vector<9x40xf32> to vector<1x40xf32>
    %cst_204 = arith.constant 0.000000e+00 : f32
    %574 = vector.broadcast %cst_204 : f32 to vector<16x1xf32>
    %575 = vector.extract_strided_slice %439 {offsets = [0, 1], sizes = [16, 39], strides = [1, 1]} : vector<16x40xf32> to vector<16x39xf32>
    %576 = tpu.concatenate %575, %574 in 1 : vector<16x39xf32>, vector<16x1xf32> -> vector<16x40xf32>
    %577 = vector.broadcast %573 : vector<1x40xf32> to vector<16x40xf32>
    %578 = arith.mulf %576, %577 : vector<16x40xf32>
    %cst_205 = arith.constant 1.000000e+00 : f32
    %579 = vector.broadcast %cst_205 : f32 to vector<1x40xf32>
    %580 = arith.subf %579, %573 : vector<1x40xf32>
    %581 = vector.broadcast %580 : vector<1x40xf32> to vector<16x40xf32>
    %582 = arith.mulf %439, %581 : vector<16x40xf32>
    %583 = arith.addf %578, %582 : vector<16x40xf32>
    %584 = arith.maximumf %572, %583 : vector<16x40xf32>
    %585 = vector.extract_strided_slice %3 {offsets = [6, 0], sizes = [1, 40], strides = [1, 1]} : vector<9x40xf32> to vector<1x40xf32>
    %cst_206 = arith.constant 0.000000e+00 : f32
    %586 = vector.broadcast %cst_206 : f32 to vector<16x7xf32>
    %587 = vector.extract_strided_slice %439 {offsets = [0, 7], sizes = [16, 33], strides = [1, 1]} : vector<16x40xf32> to vector<16x33xf32>
    %588 = tpu.concatenate %587, %586 in 1 : vector<16x33xf32>, vector<16x7xf32> -> vector<16x40xf32>
    %589 = vector.broadcast %585 : vector<1x40xf32> to vector<16x40xf32>
    %590 = arith.mulf %588, %589 : vector<16x40xf32>
    %cst_207 = arith.constant 1.000000e+00 : f32
    %591 = vector.broadcast %cst_207 : f32 to vector<1x40xf32>
    %592 = arith.subf %591, %585 : vector<1x40xf32>
    %593 = vector.broadcast %592 : vector<1x40xf32> to vector<16x40xf32>
    %594 = arith.mulf %439, %593 : vector<16x40xf32>
    %595 = arith.addf %590, %594 : vector<16x40xf32>
    %596 = arith.maximumf %584, %595 : vector<16x40xf32>
    %597 = vector.extract_strided_slice %3 {offsets = [7, 0], sizes = [1, 40], strides = [1, 1]} : vector<9x40xf32> to vector<1x40xf32>
    %cst_208 = arith.constant 0.000000e+00 : f32
    %598 = vector.broadcast %cst_208 : f32 to vector<16x8xf32>
    %599 = vector.extract_strided_slice %439 {offsets = [0, 8], sizes = [16, 32], strides = [1, 1]} : vector<16x40xf32> to vector<16x32xf32>
    %600 = tpu.concatenate %599, %598 in 1 : vector<16x32xf32>, vector<16x8xf32> -> vector<16x40xf32>
    %601 = vector.broadcast %597 : vector<1x40xf32> to vector<16x40xf32>
    %602 = arith.mulf %600, %601 : vector<16x40xf32>
    %cst_209 = arith.constant 1.000000e+00 : f32
    %603 = vector.broadcast %cst_209 : f32 to vector<1x40xf32>
    %604 = arith.subf %603, %597 : vector<1x40xf32>
    %605 = vector.broadcast %604 : vector<1x40xf32> to vector<16x40xf32>
    %606 = arith.mulf %439, %605 : vector<16x40xf32>
    %607 = arith.addf %602, %606 : vector<16x40xf32>
    %608 = arith.maximumf %596, %607 : vector<16x40xf32>
    %609 = vector.extract_strided_slice %3 {offsets = [8, 0], sizes = [1, 40], strides = [1, 1]} : vector<9x40xf32> to vector<1x40xf32>
    %cst_210 = arith.constant 0.000000e+00 : f32
    %610 = vector.broadcast %cst_210 : f32 to vector<16x9xf32>
    %611 = vector.extract_strided_slice %439 {offsets = [0, 9], sizes = [16, 31], strides = [1, 1]} : vector<16x40xf32> to vector<16x31xf32>
    %612 = tpu.concatenate %611, %610 in 1 : vector<16x31xf32>, vector<16x9xf32> -> vector<16x40xf32>
    %613 = vector.broadcast %609 : vector<1x40xf32> to vector<16x40xf32>
    %614 = arith.mulf %612, %613 : vector<16x40xf32>
    %cst_211 = arith.constant 1.000000e+00 : f32
    %615 = vector.broadcast %cst_211 : f32 to vector<1x40xf32>
    %616 = arith.subf %615, %609 : vector<1x40xf32>
    %617 = vector.broadcast %616 : vector<1x40xf32> to vector<16x40xf32>
    %618 = arith.mulf %439, %617 : vector<16x40xf32>
    %619 = arith.addf %614, %618 : vector<16x40xf32>
    %620 = arith.maximumf %608, %619 : vector<16x40xf32>
    %cst_212 = arith.constant dense<0.000000e+00> : vector<16x12xf32>
    %621 = tpu.matmul %620, %524, %cst_212 {dimension_numbers = #tpu.dot_dimension_numbers<[1], [0], [0], [1], [0, 0, 1, 1], [], []>} : vector<16x40xf32>, vector<40x12xf32>, vector<16x12xf32> -> vector<16x12xf32>
    %c10 = arith.constant 10 : index
    %c0_213 = arith.constant 0 : index
    %c0_214 = arith.constant 0 : index
    %622 = vector.load %arg2[%c10, %c0_213, %c0_214] : memref<24x16x1xf32, #tpu.memory_space<vmem>>, vector<1x16x1xf32>
    %623 = vector.shape_cast %622 : vector<1x16x1xf32> to vector<16x1xf32>
    %c11 = arith.constant 11 : index
    %c0_215 = arith.constant 0 : index
    %c0_216 = arith.constant 0 : index
    %624 = vector.load %arg2[%c11, %c0_215, %c0_216] : memref<24x16x1xf32, #tpu.memory_space<vmem>>, vector<1x16x1xf32>
    %625 = vector.shape_cast %624 : vector<1x16x1xf32> to vector<16x1xf32>
    %c5_217 = arith.constant 5 : index
    %c0_218 = arith.constant 0 : index
    %c0_219 = arith.constant 0 : index
    %626 = vector.load %arg3[%c5_217, %c0_218, %c0_219] : memref<12x8x16xf32, #tpu.memory_space<vmem>>, vector<1x8x16xf32>
    %627 = vector.shape_cast %626 : vector<1x8x16xf32> to vector<8x16xf32>
    %c5_220 = arith.constant 5 : index
    %c0_221 = arith.constant 0 : index
    %c0_222 = arith.constant 0 : index
    %628 = vector.load %arg4[%c5_220, %c0_221, %c0_222] : memref<12x8x1xf32, #tpu.memory_space<vmem>>, vector<1x8x1xf32>
    %629 = vector.shape_cast %628 : vector<1x8x1xf32> to vector<8x1xf32>
    %c5_223 = arith.constant 5 : index
    %c0_224 = arith.constant 0 : index
    %c0_225 = arith.constant 0 : index
    %630 = vector.load %arg5[%c5_223, %c0_224, %c0_225] : memref<12x4x72xf32, #tpu.memory_space<vmem>>, vector<1x4x72xf32>
    %631 = vector.shape_cast %630 : vector<1x4x72xf32> to vector<4x72xf32>
    %c5_226 = arith.constant 5 : index
    %c0_227 = arith.constant 0 : index
    %c0_228 = arith.constant 0 : index
    %632 = vector.load %arg6[%c5_226, %c0_227, %c0_228] : memref<12x4x1xf32, #tpu.memory_space<vmem>>, vector<1x4x1xf32>
    %633 = vector.shape_cast %632 : vector<1x4x1xf32> to vector<4x1xf32>
    %c5_229 = arith.constant 5 : index
    %c0_230 = arith.constant 0 : index
    %c0_231 = arith.constant 0 : index
    %634 = vector.load %arg7[%c5_229, %c0_230, %c0_231] : memref<12x16x4xf32, #tpu.memory_space<vmem>>, vector<1x16x4xf32>
    %635 = vector.shape_cast %634 : vector<1x16x4xf32> to vector<16x4xf32>
    %636 = vector.broadcast %623 : vector<16x1xf32> to vector<16x12xf32>
    %637 = arith.mulf %621, %636 : vector<16x12xf32>
    %638 = vector.broadcast %625 : vector<16x1xf32> to vector<16x12xf32>
    %639 = arith.addf %637, %638 : vector<16x12xf32>
    %cst_232 = arith.constant 0.000000e+00 : f32
    %640 = vector.broadcast %cst_232 : f32 to vector<16x12xf32>
    %641 = arith.maximumf %639, %640 : vector<16x12xf32>
    %cst_233 = arith.constant dense<0.000000e+00> : vector<8x12xf32>
    %642 = tpu.matmul %627, %641, %cst_233 {dimension_numbers = #tpu.dot_dimension_numbers<[1], [0], [0], [1], [0, 0, 1, 1], [], []>} : vector<8x16xf32>, vector<16x12xf32>, vector<8x12xf32> -> vector<8x12xf32>
    %643 = vector.broadcast %629 : vector<8x1xf32> to vector<8x12xf32>
    %644 = arith.addf %642, %643 : vector<8x12xf32>
    %cst_234 = arith.constant 0.000000e+00 : f32
    %645 = vector.broadcast %cst_234 : f32 to vector<8x12xf32>
    %646 = arith.maximumf %644, %645 : vector<8x12xf32>
    %cst_235 = arith.constant 0.000000e+00 : f32
    %647 = vector.broadcast %cst_235 : f32 to vector<8x5xf32>
    %648 = vector.extract_strided_slice %646 {offsets = [0, 0], sizes = [8, 7], strides = [1, 1]} : vector<8x12xf32> to vector<8x7xf32>
    %649 = tpu.concatenate %647, %648 in 1 : vector<8x5xf32>, vector<8x7xf32> -> vector<8x12xf32>
    %650 = vector.extract_strided_slice %4 {offsets = [0, 0], sizes = [1, 12], strides = [1, 1]} : vector<9x12xf32> to vector<1x12xf32>
    %651 = vector.broadcast %650 : vector<1x12xf32> to vector<8x12xf32>
    %652 = arith.mulf %649, %651 : vector<8x12xf32>
    %cst_236 = arith.constant 0.000000e+00 : f32
    %653 = vector.broadcast %cst_236 : f32 to vector<8x4xf32>
    %654 = vector.extract_strided_slice %646 {offsets = [0, 0], sizes = [8, 8], strides = [1, 1]} : vector<8x12xf32> to vector<8x8xf32>
    %655 = tpu.concatenate %653, %654 in 1 : vector<8x4xf32>, vector<8x8xf32> -> vector<8x12xf32>
    %656 = vector.extract_strided_slice %4 {offsets = [1, 0], sizes = [1, 12], strides = [1, 1]} : vector<9x12xf32> to vector<1x12xf32>
    %657 = vector.broadcast %656 : vector<1x12xf32> to vector<8x12xf32>
    %658 = arith.mulf %655, %657 : vector<8x12xf32>
    %cst_237 = arith.constant 0.000000e+00 : f32
    %659 = vector.broadcast %cst_237 : f32 to vector<8x3xf32>
    %660 = vector.extract_strided_slice %646 {offsets = [0, 0], sizes = [8, 9], strides = [1, 1]} : vector<8x12xf32> to vector<8x9xf32>
    %661 = tpu.concatenate %659, %660 in 1 : vector<8x3xf32>, vector<8x9xf32> -> vector<8x12xf32>
    %662 = vector.extract_strided_slice %4 {offsets = [2, 0], sizes = [1, 12], strides = [1, 1]} : vector<9x12xf32> to vector<1x12xf32>
    %663 = vector.broadcast %662 : vector<1x12xf32> to vector<8x12xf32>
    %664 = arith.mulf %661, %663 : vector<8x12xf32>
    %cst_238 = arith.constant 0.000000e+00 : f32
    %665 = vector.broadcast %cst_238 : f32 to vector<8x1xf32>
    %666 = vector.extract_strided_slice %646 {offsets = [0, 0], sizes = [8, 11], strides = [1, 1]} : vector<8x12xf32> to vector<8x11xf32>
    %667 = tpu.concatenate %665, %666 in 1 : vector<8x1xf32>, vector<8x11xf32> -> vector<8x12xf32>
    %668 = vector.extract_strided_slice %4 {offsets = [3, 0], sizes = [1, 12], strides = [1, 1]} : vector<9x12xf32> to vector<1x12xf32>
    %669 = vector.broadcast %668 : vector<1x12xf32> to vector<8x12xf32>
    %670 = arith.mulf %667, %669 : vector<8x12xf32>
    %671 = vector.extract_strided_slice %4 {offsets = [4, 0], sizes = [1, 12], strides = [1, 1]} : vector<9x12xf32> to vector<1x12xf32>
    %672 = vector.broadcast %671 : vector<1x12xf32> to vector<8x12xf32>
    %673 = arith.mulf %646, %672 : vector<8x12xf32>
    %cst_239 = arith.constant 0.000000e+00 : f32
    %674 = vector.broadcast %cst_239 : f32 to vector<8x1xf32>
    %675 = vector.extract_strided_slice %646 {offsets = [0, 1], sizes = [8, 11], strides = [1, 1]} : vector<8x12xf32> to vector<8x11xf32>
    %676 = tpu.concatenate %675, %674 in 1 : vector<8x11xf32>, vector<8x1xf32> -> vector<8x12xf32>
    %677 = vector.extract_strided_slice %4 {offsets = [5, 0], sizes = [1, 12], strides = [1, 1]} : vector<9x12xf32> to vector<1x12xf32>
    %678 = vector.broadcast %677 : vector<1x12xf32> to vector<8x12xf32>
    %679 = arith.mulf %676, %678 : vector<8x12xf32>
    %cst_240 = arith.constant 0.000000e+00 : f32
    %680 = vector.broadcast %cst_240 : f32 to vector<8x3xf32>
    %681 = vector.extract_strided_slice %646 {offsets = [0, 3], sizes = [8, 9], strides = [1, 1]} : vector<8x12xf32> to vector<8x9xf32>
    %682 = tpu.concatenate %681, %680 in 1 : vector<8x9xf32>, vector<8x3xf32> -> vector<8x12xf32>
    %683 = vector.extract_strided_slice %4 {offsets = [6, 0], sizes = [1, 12], strides = [1, 1]} : vector<9x12xf32> to vector<1x12xf32>
    %684 = vector.broadcast %683 : vector<1x12xf32> to vector<8x12xf32>
    %685 = arith.mulf %682, %684 : vector<8x12xf32>
    %cst_241 = arith.constant 0.000000e+00 : f32
    %686 = vector.broadcast %cst_241 : f32 to vector<8x4xf32>
    %687 = vector.extract_strided_slice %646 {offsets = [0, 4], sizes = [8, 8], strides = [1, 1]} : vector<8x12xf32> to vector<8x8xf32>
    %688 = tpu.concatenate %687, %686 in 1 : vector<8x8xf32>, vector<8x4xf32> -> vector<8x12xf32>
    %689 = vector.extract_strided_slice %4 {offsets = [7, 0], sizes = [1, 12], strides = [1, 1]} : vector<9x12xf32> to vector<1x12xf32>
    %690 = vector.broadcast %689 : vector<1x12xf32> to vector<8x12xf32>
    %691 = arith.mulf %688, %690 : vector<8x12xf32>
    %cst_242 = arith.constant 0.000000e+00 : f32
    %692 = vector.broadcast %cst_242 : f32 to vector<8x5xf32>
    %693 = vector.extract_strided_slice %646 {offsets = [0, 5], sizes = [8, 7], strides = [1, 1]} : vector<8x12xf32> to vector<8x7xf32>
    %694 = tpu.concatenate %693, %692 in 1 : vector<8x7xf32>, vector<8x5xf32> -> vector<8x12xf32>
    %695 = vector.extract_strided_slice %4 {offsets = [8, 0], sizes = [1, 12], strides = [1, 1]} : vector<9x12xf32> to vector<1x12xf32>
    %696 = vector.broadcast %695 : vector<1x12xf32> to vector<8x12xf32>
    %697 = arith.mulf %694, %696 : vector<8x12xf32>
    %698 = tpu.concatenate %652, %658, %664, %670, %673, %679, %685, %691, %697 in 0 : vector<8x12xf32>, vector<8x12xf32>, vector<8x12xf32>, vector<8x12xf32>, vector<8x12xf32>, vector<8x12xf32>, vector<8x12xf32>, vector<8x12xf32>, vector<8x12xf32> -> vector<72x12xf32>
    %cst_243 = arith.constant dense<0.000000e+00> : vector<4x12xf32>
    %699 = tpu.matmul %631, %698, %cst_243 {dimension_numbers = #tpu.dot_dimension_numbers<[1], [0], [0], [1], [0, 0, 1, 1], [], []>} : vector<4x72xf32>, vector<72x12xf32>, vector<4x12xf32> -> vector<4x12xf32>
    %700 = vector.broadcast %633 : vector<4x1xf32> to vector<4x12xf32>
    %701 = arith.addf %699, %700 : vector<4x12xf32>
    %cst_244 = arith.constant 0.000000e+00 : f32
    %702 = vector.broadcast %cst_244 : f32 to vector<4x12xf32>
    %703 = arith.maximumf %701, %702 : vector<4x12xf32>
    %cst_245 = arith.constant dense<0.000000e+00> : vector<16x12xf32>
    %704 = tpu.matmul %635, %703, %cst_245 {dimension_numbers = #tpu.dot_dimension_numbers<[1], [0], [0], [1], [0, 0, 1, 1], [], []>} : vector<16x4xf32>, vector<4x12xf32>, vector<16x12xf32> -> vector<16x12xf32>
    %705 = arith.addf %704, %621 : vector<16x12xf32>
    %c12 = arith.constant 12 : index
    %c0_246 = arith.constant 0 : index
    %c0_247 = arith.constant 0 : index
    %706 = vector.load %arg2[%c12, %c0_246, %c0_247] : memref<24x16x1xf32, #tpu.memory_space<vmem>>, vector<1x16x1xf32>
    %707 = vector.shape_cast %706 : vector<1x16x1xf32> to vector<16x1xf32>
    %c13 = arith.constant 13 : index
    %c0_248 = arith.constant 0 : index
    %c0_249 = arith.constant 0 : index
    %708 = vector.load %arg2[%c13, %c0_248, %c0_249] : memref<24x16x1xf32, #tpu.memory_space<vmem>>, vector<1x16x1xf32>
    %709 = vector.shape_cast %708 : vector<1x16x1xf32> to vector<16x1xf32>
    %c6_250 = arith.constant 6 : index
    %c0_251 = arith.constant 0 : index
    %c0_252 = arith.constant 0 : index
    %710 = vector.load %arg3[%c6_250, %c0_251, %c0_252] : memref<12x8x16xf32, #tpu.memory_space<vmem>>, vector<1x8x16xf32>
    %711 = vector.shape_cast %710 : vector<1x8x16xf32> to vector<8x16xf32>
    %c6_253 = arith.constant 6 : index
    %c0_254 = arith.constant 0 : index
    %c0_255 = arith.constant 0 : index
    %712 = vector.load %arg4[%c6_253, %c0_254, %c0_255] : memref<12x8x1xf32, #tpu.memory_space<vmem>>, vector<1x8x1xf32>
    %713 = vector.shape_cast %712 : vector<1x8x1xf32> to vector<8x1xf32>
    %c6_256 = arith.constant 6 : index
    %c0_257 = arith.constant 0 : index
    %c0_258 = arith.constant 0 : index
    %714 = vector.load %arg5[%c6_256, %c0_257, %c0_258] : memref<12x4x72xf32, #tpu.memory_space<vmem>>, vector<1x4x72xf32>
    %715 = vector.shape_cast %714 : vector<1x4x72xf32> to vector<4x72xf32>
    %c6_259 = arith.constant 6 : index
    %c0_260 = arith.constant 0 : index
    %c0_261 = arith.constant 0 : index
    %716 = vector.load %arg6[%c6_259, %c0_260, %c0_261] : memref<12x4x1xf32, #tpu.memory_space<vmem>>, vector<1x4x1xf32>
    %717 = vector.shape_cast %716 : vector<1x4x1xf32> to vector<4x1xf32>
    %c6_262 = arith.constant 6 : index
    %c0_263 = arith.constant 0 : index
    %c0_264 = arith.constant 0 : index
    %718 = vector.load %arg7[%c6_262, %c0_263, %c0_264] : memref<12x16x4xf32, #tpu.memory_space<vmem>>, vector<1x16x4xf32>
    %719 = vector.shape_cast %718 : vector<1x16x4xf32> to vector<16x4xf32>
    %720 = vector.broadcast %707 : vector<16x1xf32> to vector<16x12xf32>
    %721 = arith.mulf %705, %720 : vector<16x12xf32>
    %722 = vector.broadcast %709 : vector<16x1xf32> to vector<16x12xf32>
    %723 = arith.addf %721, %722 : vector<16x12xf32>
    %cst_265 = arith.constant 0.000000e+00 : f32
    %724 = vector.broadcast %cst_265 : f32 to vector<16x12xf32>
    %725 = arith.maximumf %723, %724 : vector<16x12xf32>
    %cst_266 = arith.constant dense<0.000000e+00> : vector<8x12xf32>
    %726 = tpu.matmul %711, %725, %cst_266 {dimension_numbers = #tpu.dot_dimension_numbers<[1], [0], [0], [1], [0, 0, 1, 1], [], []>} : vector<8x16xf32>, vector<16x12xf32>, vector<8x12xf32> -> vector<8x12xf32>
    %727 = vector.broadcast %713 : vector<8x1xf32> to vector<8x12xf32>
    %728 = arith.addf %726, %727 : vector<8x12xf32>
    %cst_267 = arith.constant 0.000000e+00 : f32
    %729 = vector.broadcast %cst_267 : f32 to vector<8x12xf32>
    %730 = arith.maximumf %728, %729 : vector<8x12xf32>
    %cst_268 = arith.constant 0.000000e+00 : f32
    %731 = vector.broadcast %cst_268 : f32 to vector<8x5xf32>
    %732 = vector.extract_strided_slice %730 {offsets = [0, 0], sizes = [8, 7], strides = [1, 1]} : vector<8x12xf32> to vector<8x7xf32>
    %733 = tpu.concatenate %731, %732 in 1 : vector<8x5xf32>, vector<8x7xf32> -> vector<8x12xf32>
    %734 = vector.extract_strided_slice %4 {offsets = [0, 0], sizes = [1, 12], strides = [1, 1]} : vector<9x12xf32> to vector<1x12xf32>
    %735 = vector.broadcast %734 : vector<1x12xf32> to vector<8x12xf32>
    %736 = arith.mulf %733, %735 : vector<8x12xf32>
    %cst_269 = arith.constant 0.000000e+00 : f32
    %737 = vector.broadcast %cst_269 : f32 to vector<8x4xf32>
    %738 = vector.extract_strided_slice %730 {offsets = [0, 0], sizes = [8, 8], strides = [1, 1]} : vector<8x12xf32> to vector<8x8xf32>
    %739 = tpu.concatenate %737, %738 in 1 : vector<8x4xf32>, vector<8x8xf32> -> vector<8x12xf32>
    %740 = vector.extract_strided_slice %4 {offsets = [1, 0], sizes = [1, 12], strides = [1, 1]} : vector<9x12xf32> to vector<1x12xf32>
    %741 = vector.broadcast %740 : vector<1x12xf32> to vector<8x12xf32>
    %742 = arith.mulf %739, %741 : vector<8x12xf32>
    %cst_270 = arith.constant 0.000000e+00 : f32
    %743 = vector.broadcast %cst_270 : f32 to vector<8x3xf32>
    %744 = vector.extract_strided_slice %730 {offsets = [0, 0], sizes = [8, 9], strides = [1, 1]} : vector<8x12xf32> to vector<8x9xf32>
    %745 = tpu.concatenate %743, %744 in 1 : vector<8x3xf32>, vector<8x9xf32> -> vector<8x12xf32>
    %746 = vector.extract_strided_slice %4 {offsets = [2, 0], sizes = [1, 12], strides = [1, 1]} : vector<9x12xf32> to vector<1x12xf32>
    %747 = vector.broadcast %746 : vector<1x12xf32> to vector<8x12xf32>
    %748 = arith.mulf %745, %747 : vector<8x12xf32>
    %cst_271 = arith.constant 0.000000e+00 : f32
    %749 = vector.broadcast %cst_271 : f32 to vector<8x1xf32>
    %750 = vector.extract_strided_slice %730 {offsets = [0, 0], sizes = [8, 11], strides = [1, 1]} : vector<8x12xf32> to vector<8x11xf32>
    %751 = tpu.concatenate %749, %750 in 1 : vector<8x1xf32>, vector<8x11xf32> -> vector<8x12xf32>
    %752 = vector.extract_strided_slice %4 {offsets = [3, 0], sizes = [1, 12], strides = [1, 1]} : vector<9x12xf32> to vector<1x12xf32>
    %753 = vector.broadcast %752 : vector<1x12xf32> to vector<8x12xf32>
    %754 = arith.mulf %751, %753 : vector<8x12xf32>
    %755 = vector.extract_strided_slice %4 {offsets = [4, 0], sizes = [1, 12], strides = [1, 1]} : vector<9x12xf32> to vector<1x12xf32>
    %756 = vector.broadcast %755 : vector<1x12xf32> to vector<8x12xf32>
    %757 = arith.mulf %730, %756 : vector<8x12xf32>
    %cst_272 = arith.constant 0.000000e+00 : f32
    %758 = vector.broadcast %cst_272 : f32 to vector<8x1xf32>
    %759 = vector.extract_strided_slice %730 {offsets = [0, 1], sizes = [8, 11], strides = [1, 1]} : vector<8x12xf32> to vector<8x11xf32>
    %760 = tpu.concatenate %759, %758 in 1 : vector<8x11xf32>, vector<8x1xf32> -> vector<8x12xf32>
    %761 = vector.extract_strided_slice %4 {offsets = [5, 0], sizes = [1, 12], strides = [1, 1]} : vector<9x12xf32> to vector<1x12xf32>
    %762 = vector.broadcast %761 : vector<1x12xf32> to vector<8x12xf32>
    %763 = arith.mulf %760, %762 : vector<8x12xf32>
    %cst_273 = arith.constant 0.000000e+00 : f32
    %764 = vector.broadcast %cst_273 : f32 to vector<8x3xf32>
    %765 = vector.extract_strided_slice %730 {offsets = [0, 3], sizes = [8, 9], strides = [1, 1]} : vector<8x12xf32> to vector<8x9xf32>
    %766 = tpu.concatenate %765, %764 in 1 : vector<8x9xf32>, vector<8x3xf32> -> vector<8x12xf32>
    %767 = vector.extract_strided_slice %4 {offsets = [6, 0], sizes = [1, 12], strides = [1, 1]} : vector<9x12xf32> to vector<1x12xf32>
    %768 = vector.broadcast %767 : vector<1x12xf32> to vector<8x12xf32>
    %769 = arith.mulf %766, %768 : vector<8x12xf32>
    %cst_274 = arith.constant 0.000000e+00 : f32
    %770 = vector.broadcast %cst_274 : f32 to vector<8x4xf32>
    %771 = vector.extract_strided_slice %730 {offsets = [0, 4], sizes = [8, 8], strides = [1, 1]} : vector<8x12xf32> to vector<8x8xf32>
    %772 = tpu.concatenate %771, %770 in 1 : vector<8x8xf32>, vector<8x4xf32> -> vector<8x12xf32>
    %773 = vector.extract_strided_slice %4 {offsets = [7, 0], sizes = [1, 12], strides = [1, 1]} : vector<9x12xf32> to vector<1x12xf32>
    %774 = vector.broadcast %773 : vector<1x12xf32> to vector<8x12xf32>
    %775 = arith.mulf %772, %774 : vector<8x12xf32>
    %cst_275 = arith.constant 0.000000e+00 : f32
    %776 = vector.broadcast %cst_275 : f32 to vector<8x5xf32>
    %777 = vector.extract_strided_slice %730 {offsets = [0, 5], sizes = [8, 7], strides = [1, 1]} : vector<8x12xf32> to vector<8x7xf32>
    %778 = tpu.concatenate %777, %776 in 1 : vector<8x7xf32>, vector<8x5xf32> -> vector<8x12xf32>
    %779 = vector.extract_strided_slice %4 {offsets = [8, 0], sizes = [1, 12], strides = [1, 1]} : vector<9x12xf32> to vector<1x12xf32>
    %780 = vector.broadcast %779 : vector<1x12xf32> to vector<8x12xf32>
    %781 = arith.mulf %778, %780 : vector<8x12xf32>
    %782 = tpu.concatenate %736, %742, %748, %754, %757, %763, %769, %775, %781 in 0 : vector<8x12xf32>, vector<8x12xf32>, vector<8x12xf32>, vector<8x12xf32>, vector<8x12xf32>, vector<8x12xf32>, vector<8x12xf32>, vector<8x12xf32>, vector<8x12xf32> -> vector<72x12xf32>
    %cst_276 = arith.constant dense<0.000000e+00> : vector<4x12xf32>
    %783 = tpu.matmul %715, %782, %cst_276 {dimension_numbers = #tpu.dot_dimension_numbers<[1], [0], [0], [1], [0, 0, 1, 1], [], []>} : vector<4x72xf32>, vector<72x12xf32>, vector<4x12xf32> -> vector<4x12xf32>
    %784 = vector.broadcast %717 : vector<4x1xf32> to vector<4x12xf32>
    %785 = arith.addf %783, %784 : vector<4x12xf32>
    %cst_277 = arith.constant 0.000000e+00 : f32
    %786 = vector.broadcast %cst_277 : f32 to vector<4x12xf32>
    %787 = arith.maximumf %785, %786 : vector<4x12xf32>
    %cst_278 = arith.constant dense<0.000000e+00> : vector<16x12xf32>
    %788 = tpu.matmul %719, %787, %cst_278 {dimension_numbers = #tpu.dot_dimension_numbers<[1], [0], [0], [1], [0, 0, 1, 1], [], []>} : vector<16x4xf32>, vector<4x12xf32>, vector<16x12xf32> -> vector<16x12xf32>
    %789 = arith.addf %788, %705 : vector<16x12xf32>
    %c0_279 = arith.constant 0 : index
    %c0_280 = arith.constant 0 : index
    %790 = vector.load %arg16[%c0_279, %c0_280] : memref<12x4xf32, #tpu.memory_space<vmem>>, vector<12x4xf32>
    %791 = vector.extract_strided_slice %4 {offsets = [0, 0], sizes = [1, 12], strides = [1, 1]} : vector<9x12xf32> to vector<1x12xf32>
    %cst_281 = arith.constant 0.000000e+00 : f32
    %792 = vector.broadcast %cst_281 : f32 to vector<16x5xf32>
    %793 = vector.extract_strided_slice %705 {offsets = [0, 0], sizes = [16, 7], strides = [1, 1]} : vector<16x12xf32> to vector<16x7xf32>
    %794 = tpu.concatenate %792, %793 in 1 : vector<16x5xf32>, vector<16x7xf32> -> vector<16x12xf32>
    %795 = vector.broadcast %791 : vector<1x12xf32> to vector<16x12xf32>
    %796 = arith.mulf %794, %795 : vector<16x12xf32>
    %cst_282 = arith.constant 1.000000e+00 : f32
    %797 = vector.broadcast %cst_282 : f32 to vector<1x12xf32>
    %798 = arith.subf %797, %791 : vector<1x12xf32>
    %799 = vector.broadcast %798 : vector<1x12xf32> to vector<16x12xf32>
    %800 = arith.mulf %705, %799 : vector<16x12xf32>
    %801 = arith.addf %796, %800 : vector<16x12xf32>
    %802 = arith.maximumf %705, %801 : vector<16x12xf32>
    %803 = vector.extract_strided_slice %4 {offsets = [1, 0], sizes = [1, 12], strides = [1, 1]} : vector<9x12xf32> to vector<1x12xf32>
    %cst_283 = arith.constant 0.000000e+00 : f32
    %804 = vector.broadcast %cst_283 : f32 to vector<16x4xf32>
    %805 = vector.extract_strided_slice %705 {offsets = [0, 0], sizes = [16, 8], strides = [1, 1]} : vector<16x12xf32> to vector<16x8xf32>
    %806 = tpu.concatenate %804, %805 in 1 : vector<16x4xf32>, vector<16x8xf32> -> vector<16x12xf32>
    %807 = vector.broadcast %803 : vector<1x12xf32> to vector<16x12xf32>
    %808 = arith.mulf %806, %807 : vector<16x12xf32>
    %cst_284 = arith.constant 1.000000e+00 : f32
    %809 = vector.broadcast %cst_284 : f32 to vector<1x12xf32>
    %810 = arith.subf %809, %803 : vector<1x12xf32>
    %811 = vector.broadcast %810 : vector<1x12xf32> to vector<16x12xf32>
    %812 = arith.mulf %705, %811 : vector<16x12xf32>
    %813 = arith.addf %808, %812 : vector<16x12xf32>
    %814 = arith.maximumf %802, %813 : vector<16x12xf32>
    %815 = vector.extract_strided_slice %4 {offsets = [2, 0], sizes = [1, 12], strides = [1, 1]} : vector<9x12xf32> to vector<1x12xf32>
    %cst_285 = arith.constant 0.000000e+00 : f32
    %816 = vector.broadcast %cst_285 : f32 to vector<16x3xf32>
    %817 = vector.extract_strided_slice %705 {offsets = [0, 0], sizes = [16, 9], strides = [1, 1]} : vector<16x12xf32> to vector<16x9xf32>
    %818 = tpu.concatenate %816, %817 in 1 : vector<16x3xf32>, vector<16x9xf32> -> vector<16x12xf32>
    %819 = vector.broadcast %815 : vector<1x12xf32> to vector<16x12xf32>
    %820 = arith.mulf %818, %819 : vector<16x12xf32>
    %cst_286 = arith.constant 1.000000e+00 : f32
    %821 = vector.broadcast %cst_286 : f32 to vector<1x12xf32>
    %822 = arith.subf %821, %815 : vector<1x12xf32>
    %823 = vector.broadcast %822 : vector<1x12xf32> to vector<16x12xf32>
    %824 = arith.mulf %705, %823 : vector<16x12xf32>
    %825 = arith.addf %820, %824 : vector<16x12xf32>
    %826 = arith.maximumf %814, %825 : vector<16x12xf32>
    %827 = vector.extract_strided_slice %4 {offsets = [3, 0], sizes = [1, 12], strides = [1, 1]} : vector<9x12xf32> to vector<1x12xf32>
    %cst_287 = arith.constant 0.000000e+00 : f32
    %828 = vector.broadcast %cst_287 : f32 to vector<16x1xf32>
    %829 = vector.extract_strided_slice %705 {offsets = [0, 0], sizes = [16, 11], strides = [1, 1]} : vector<16x12xf32> to vector<16x11xf32>
    %830 = tpu.concatenate %828, %829 in 1 : vector<16x1xf32>, vector<16x11xf32> -> vector<16x12xf32>
    %831 = vector.broadcast %827 : vector<1x12xf32> to vector<16x12xf32>
    %832 = arith.mulf %830, %831 : vector<16x12xf32>
    %cst_288 = arith.constant 1.000000e+00 : f32
    %833 = vector.broadcast %cst_288 : f32 to vector<1x12xf32>
    %834 = arith.subf %833, %827 : vector<1x12xf32>
    %835 = vector.broadcast %834 : vector<1x12xf32> to vector<16x12xf32>
    %836 = arith.mulf %705, %835 : vector<16x12xf32>
    %837 = arith.addf %832, %836 : vector<16x12xf32>
    %838 = arith.maximumf %826, %837 : vector<16x12xf32>
    %839 = vector.extract_strided_slice %4 {offsets = [5, 0], sizes = [1, 12], strides = [1, 1]} : vector<9x12xf32> to vector<1x12xf32>
    %cst_289 = arith.constant 0.000000e+00 : f32
    %840 = vector.broadcast %cst_289 : f32 to vector<16x1xf32>
    %841 = vector.extract_strided_slice %705 {offsets = [0, 1], sizes = [16, 11], strides = [1, 1]} : vector<16x12xf32> to vector<16x11xf32>
    %842 = tpu.concatenate %841, %840 in 1 : vector<16x11xf32>, vector<16x1xf32> -> vector<16x12xf32>
    %843 = vector.broadcast %839 : vector<1x12xf32> to vector<16x12xf32>
    %844 = arith.mulf %842, %843 : vector<16x12xf32>
    %cst_290 = arith.constant 1.000000e+00 : f32
    %845 = vector.broadcast %cst_290 : f32 to vector<1x12xf32>
    %846 = arith.subf %845, %839 : vector<1x12xf32>
    %847 = vector.broadcast %846 : vector<1x12xf32> to vector<16x12xf32>
    %848 = arith.mulf %705, %847 : vector<16x12xf32>
    %849 = arith.addf %844, %848 : vector<16x12xf32>
    %850 = arith.maximumf %838, %849 : vector<16x12xf32>
    %851 = vector.extract_strided_slice %4 {offsets = [6, 0], sizes = [1, 12], strides = [1, 1]} : vector<9x12xf32> to vector<1x12xf32>
    %cst_291 = arith.constant 0.000000e+00 : f32
    %852 = vector.broadcast %cst_291 : f32 to vector<16x3xf32>
    %853 = vector.extract_strided_slice %705 {offsets = [0, 3], sizes = [16, 9], strides = [1, 1]} : vector<16x12xf32> to vector<16x9xf32>
    %854 = tpu.concatenate %853, %852 in 1 : vector<16x9xf32>, vector<16x3xf32> -> vector<16x12xf32>
    %855 = vector.broadcast %851 : vector<1x12xf32> to vector<16x12xf32>
    %856 = arith.mulf %854, %855 : vector<16x12xf32>
    %cst_292 = arith.constant 1.000000e+00 : f32
    %857 = vector.broadcast %cst_292 : f32 to vector<1x12xf32>
    %858 = arith.subf %857, %851 : vector<1x12xf32>
    %859 = vector.broadcast %858 : vector<1x12xf32> to vector<16x12xf32>
    %860 = arith.mulf %705, %859 : vector<16x12xf32>
    %861 = arith.addf %856, %860 : vector<16x12xf32>
    %862 = arith.maximumf %850, %861 : vector<16x12xf32>
    %863 = vector.extract_strided_slice %4 {offsets = [7, 0], sizes = [1, 12], strides = [1, 1]} : vector<9x12xf32> to vector<1x12xf32>
    %cst_293 = arith.constant 0.000000e+00 : f32
    %864 = vector.broadcast %cst_293 : f32 to vector<16x4xf32>
    %865 = vector.extract_strided_slice %705 {offsets = [0, 4], sizes = [16, 8], strides = [1, 1]} : vector<16x12xf32> to vector<16x8xf32>
    %866 = tpu.concatenate %865, %864 in 1 : vector<16x8xf32>, vector<16x4xf32> -> vector<16x12xf32>
    %867 = vector.broadcast %863 : vector<1x12xf32> to vector<16x12xf32>
    %868 = arith.mulf %866, %867 : vector<16x12xf32>
    %cst_294 = arith.constant 1.000000e+00 : f32
    %869 = vector.broadcast %cst_294 : f32 to vector<1x12xf32>
    %870 = arith.subf %869, %863 : vector<1x12xf32>
    %871 = vector.broadcast %870 : vector<1x12xf32> to vector<16x12xf32>
    %872 = arith.mulf %705, %871 : vector<16x12xf32>
    %873 = arith.addf %868, %872 : vector<16x12xf32>
    %874 = arith.maximumf %862, %873 : vector<16x12xf32>
    %875 = vector.extract_strided_slice %4 {offsets = [8, 0], sizes = [1, 12], strides = [1, 1]} : vector<9x12xf32> to vector<1x12xf32>
    %cst_295 = arith.constant 0.000000e+00 : f32
    %876 = vector.broadcast %cst_295 : f32 to vector<16x5xf32>
    %877 = vector.extract_strided_slice %705 {offsets = [0, 5], sizes = [16, 7], strides = [1, 1]} : vector<16x12xf32> to vector<16x7xf32>
    %878 = tpu.concatenate %877, %876 in 1 : vector<16x7xf32>, vector<16x5xf32> -> vector<16x12xf32>
    %879 = vector.broadcast %875 : vector<1x12xf32> to vector<16x12xf32>
    %880 = arith.mulf %878, %879 : vector<16x12xf32>
    %cst_296 = arith.constant 1.000000e+00 : f32
    %881 = vector.broadcast %cst_296 : f32 to vector<1x12xf32>
    %882 = arith.subf %881, %875 : vector<1x12xf32>
    %883 = vector.broadcast %882 : vector<1x12xf32> to vector<16x12xf32>
    %884 = arith.mulf %705, %883 : vector<16x12xf32>
    %885 = arith.addf %880, %884 : vector<16x12xf32>
    %886 = arith.maximumf %874, %885 : vector<16x12xf32>
    %cst_297 = arith.constant dense<0.000000e+00> : vector<16x4xf32>
    %887 = tpu.matmul %886, %790, %cst_297 {dimension_numbers = #tpu.dot_dimension_numbers<[1], [0], [0], [1], [0, 0, 1, 1], [], []>} : vector<16x12xf32>, vector<12x4xf32>, vector<16x4xf32> -> vector<16x4xf32>
    %c14 = arith.constant 14 : index
    %c0_298 = arith.constant 0 : index
    %c0_299 = arith.constant 0 : index
    %888 = vector.load %arg2[%c14, %c0_298, %c0_299] : memref<24x16x1xf32, #tpu.memory_space<vmem>>, vector<1x16x1xf32>
    %889 = vector.shape_cast %888 : vector<1x16x1xf32> to vector<16x1xf32>
    %c15 = arith.constant 15 : index
    %c0_300 = arith.constant 0 : index
    %c0_301 = arith.constant 0 : index
    %890 = vector.load %arg2[%c15, %c0_300, %c0_301] : memref<24x16x1xf32, #tpu.memory_space<vmem>>, vector<1x16x1xf32>
    %891 = vector.shape_cast %890 : vector<1x16x1xf32> to vector<16x1xf32>
    %c7_302 = arith.constant 7 : index
    %c0_303 = arith.constant 0 : index
    %c0_304 = arith.constant 0 : index
    %892 = vector.load %arg3[%c7_302, %c0_303, %c0_304] : memref<12x8x16xf32, #tpu.memory_space<vmem>>, vector<1x8x16xf32>
    %893 = vector.shape_cast %892 : vector<1x8x16xf32> to vector<8x16xf32>
    %c7_305 = arith.constant 7 : index
    %c0_306 = arith.constant 0 : index
    %c0_307 = arith.constant 0 : index
    %894 = vector.load %arg4[%c7_305, %c0_306, %c0_307] : memref<12x8x1xf32, #tpu.memory_space<vmem>>, vector<1x8x1xf32>
    %895 = vector.shape_cast %894 : vector<1x8x1xf32> to vector<8x1xf32>
    %c7_308 = arith.constant 7 : index
    %c0_309 = arith.constant 0 : index
    %c0_310 = arith.constant 0 : index
    %896 = vector.load %arg5[%c7_308, %c0_309, %c0_310] : memref<12x4x72xf32, #tpu.memory_space<vmem>>, vector<1x4x72xf32>
    %897 = vector.shape_cast %896 : vector<1x4x72xf32> to vector<4x72xf32>
    %c7_311 = arith.constant 7 : index
    %c0_312 = arith.constant 0 : index
    %c0_313 = arith.constant 0 : index
    %898 = vector.load %arg6[%c7_311, %c0_312, %c0_313] : memref<12x4x1xf32, #tpu.memory_space<vmem>>, vector<1x4x1xf32>
    %899 = vector.shape_cast %898 : vector<1x4x1xf32> to vector<4x1xf32>
    %c7_314 = arith.constant 7 : index
    %c0_315 = arith.constant 0 : index
    %c0_316 = arith.constant 0 : index
    %900 = vector.load %arg7[%c7_314, %c0_315, %c0_316] : memref<12x16x4xf32, #tpu.memory_space<vmem>>, vector<1x16x4xf32>
    %901 = vector.shape_cast %900 : vector<1x16x4xf32> to vector<16x4xf32>
    %902 = vector.broadcast %889 : vector<16x1xf32> to vector<16x4xf32>
    %903 = arith.mulf %887, %902 : vector<16x4xf32>
    %904 = vector.broadcast %891 : vector<16x1xf32> to vector<16x4xf32>
    %905 = arith.addf %903, %904 : vector<16x4xf32>
    %cst_317 = arith.constant 0.000000e+00 : f32
    %906 = vector.broadcast %cst_317 : f32 to vector<16x4xf32>
    %907 = arith.maximumf %905, %906 : vector<16x4xf32>
    %cst_318 = arith.constant dense<0.000000e+00> : vector<8x4xf32>
    %908 = tpu.matmul %893, %907, %cst_318 {dimension_numbers = #tpu.dot_dimension_numbers<[1], [0], [0], [1], [0, 0, 1, 1], [], []>} : vector<8x16xf32>, vector<16x4xf32>, vector<8x4xf32> -> vector<8x4xf32>
    %909 = vector.broadcast %895 : vector<8x1xf32> to vector<8x4xf32>
    %910 = arith.addf %908, %909 : vector<8x4xf32>
    %cst_319 = arith.constant 0.000000e+00 : f32
    %911 = vector.broadcast %cst_319 : f32 to vector<8x4xf32>
    %912 = arith.maximumf %910, %911 : vector<8x4xf32>
    %cst_320 = arith.constant 0.000000e+00 : f32
    %913 = vector.broadcast %cst_320 : f32 to vector<8x3xf32>
    %914 = vector.extract_strided_slice %912 {offsets = [0, 0], sizes = [8, 1], strides = [1, 1]} : vector<8x4xf32> to vector<8x1xf32>
    %915 = tpu.concatenate %913, %914 in 1 : vector<8x3xf32>, vector<8x1xf32> -> vector<8x4xf32>
    %916 = vector.extract_strided_slice %5 {offsets = [0, 0], sizes = [1, 4], strides = [1, 1]} : vector<9x4xf32> to vector<1x4xf32>
    %917 = vector.broadcast %916 : vector<1x4xf32> to vector<8x4xf32>
    %918 = arith.mulf %915, %917 : vector<8x4xf32>
    %cst_321 = arith.constant 0.000000e+00 : f32
    %919 = vector.broadcast %cst_321 : f32 to vector<8x2xf32>
    %920 = vector.extract_strided_slice %912 {offsets = [0, 0], sizes = [8, 2], strides = [1, 1]} : vector<8x4xf32> to vector<8x2xf32>
    %921 = tpu.concatenate %919, %920 in 1 : vector<8x2xf32>, vector<8x2xf32> -> vector<8x4xf32>
    %922 = vector.extract_strided_slice %5 {offsets = [1, 0], sizes = [1, 4], strides = [1, 1]} : vector<9x4xf32> to vector<1x4xf32>
    %923 = vector.broadcast %922 : vector<1x4xf32> to vector<8x4xf32>
    %924 = arith.mulf %921, %923 : vector<8x4xf32>
    %cst_322 = arith.constant 0.000000e+00 : f32
    %925 = vector.broadcast %cst_322 : f32 to vector<8x1xf32>
    %926 = vector.extract_strided_slice %912 {offsets = [0, 0], sizes = [8, 3], strides = [1, 1]} : vector<8x4xf32> to vector<8x3xf32>
    %927 = tpu.concatenate %925, %926 in 1 : vector<8x1xf32>, vector<8x3xf32> -> vector<8x4xf32>
    %928 = vector.extract_strided_slice %5 {offsets = [2, 0], sizes = [1, 4], strides = [1, 1]} : vector<9x4xf32> to vector<1x4xf32>
    %929 = vector.broadcast %928 : vector<1x4xf32> to vector<8x4xf32>
    %930 = arith.mulf %927, %929 : vector<8x4xf32>
    %cst_323 = arith.constant 0.000000e+00 : f32
    %931 = vector.broadcast %cst_323 : f32 to vector<8x1xf32>
    %932 = vector.extract_strided_slice %912 {offsets = [0, 0], sizes = [8, 3], strides = [1, 1]} : vector<8x4xf32> to vector<8x3xf32>
    %933 = tpu.concatenate %931, %932 in 1 : vector<8x1xf32>, vector<8x3xf32> -> vector<8x4xf32>
    %934 = vector.extract_strided_slice %5 {offsets = [3, 0], sizes = [1, 4], strides = [1, 1]} : vector<9x4xf32> to vector<1x4xf32>
    %935 = vector.broadcast %934 : vector<1x4xf32> to vector<8x4xf32>
    %936 = arith.mulf %933, %935 : vector<8x4xf32>
    %937 = vector.extract_strided_slice %5 {offsets = [4, 0], sizes = [1, 4], strides = [1, 1]} : vector<9x4xf32> to vector<1x4xf32>
    %938 = vector.broadcast %937 : vector<1x4xf32> to vector<8x4xf32>
    %939 = arith.mulf %912, %938 : vector<8x4xf32>
    %cst_324 = arith.constant 0.000000e+00 : f32
    %940 = vector.broadcast %cst_324 : f32 to vector<8x1xf32>
    %941 = vector.extract_strided_slice %912 {offsets = [0, 1], sizes = [8, 3], strides = [1, 1]} : vector<8x4xf32> to vector<8x3xf32>
    %942 = tpu.concatenate %941, %940 in 1 : vector<8x3xf32>, vector<8x1xf32> -> vector<8x4xf32>
    %943 = vector.extract_strided_slice %5 {offsets = [5, 0], sizes = [1, 4], strides = [1, 1]} : vector<9x4xf32> to vector<1x4xf32>
    %944 = vector.broadcast %943 : vector<1x4xf32> to vector<8x4xf32>
    %945 = arith.mulf %942, %944 : vector<8x4xf32>
    %cst_325 = arith.constant 0.000000e+00 : f32
    %946 = vector.broadcast %cst_325 : f32 to vector<8x1xf32>
    %947 = vector.extract_strided_slice %912 {offsets = [0, 1], sizes = [8, 3], strides = [1, 1]} : vector<8x4xf32> to vector<8x3xf32>
    %948 = tpu.concatenate %947, %946 in 1 : vector<8x3xf32>, vector<8x1xf32> -> vector<8x4xf32>
    %949 = vector.extract_strided_slice %5 {offsets = [6, 0], sizes = [1, 4], strides = [1, 1]} : vector<9x4xf32> to vector<1x4xf32>
    %950 = vector.broadcast %949 : vector<1x4xf32> to vector<8x4xf32>
    %951 = arith.mulf %948, %950 : vector<8x4xf32>
    %cst_326 = arith.constant 0.000000e+00 : f32
    %952 = vector.broadcast %cst_326 : f32 to vector<8x2xf32>
    %953 = vector.extract_strided_slice %912 {offsets = [0, 2], sizes = [8, 2], strides = [1, 1]} : vector<8x4xf32> to vector<8x2xf32>
    %954 = tpu.concatenate %953, %952 in 1 : vector<8x2xf32>, vector<8x2xf32> -> vector<8x4xf32>
    %955 = vector.extract_strided_slice %5 {offsets = [7, 0], sizes = [1, 4], strides = [1, 1]} : vector<9x4xf32> to vector<1x4xf32>
    %956 = vector.broadcast %955 : vector<1x4xf32> to vector<8x4xf32>
    %957 = arith.mulf %954, %956 : vector<8x4xf32>
    %cst_327 = arith.constant 0.000000e+00 : f32
    %958 = vector.broadcast %cst_327 : f32 to vector<8x3xf32>
    %959 = vector.extract_strided_slice %912 {offsets = [0, 3], sizes = [8, 1], strides = [1, 1]} : vector<8x4xf32> to vector<8x1xf32>
    %960 = tpu.concatenate %959, %958 in 1 : vector<8x1xf32>, vector<8x3xf32> -> vector<8x4xf32>
    %961 = vector.extract_strided_slice %5 {offsets = [8, 0], sizes = [1, 4], strides = [1, 1]} : vector<9x4xf32> to vector<1x4xf32>
    %962 = vector.broadcast %961 : vector<1x4xf32> to vector<8x4xf32>
    %963 = arith.mulf %960, %962 : vector<8x4xf32>
    %964 = tpu.concatenate %918, %924, %930, %936, %939, %945, %951, %957, %963 in 0 : vector<8x4xf32>, vector<8x4xf32>, vector<8x4xf32>, vector<8x4xf32>, vector<8x4xf32>, vector<8x4xf32>, vector<8x4xf32>, vector<8x4xf32>, vector<8x4xf32> -> vector<72x4xf32>
    %cst_328 = arith.constant dense<0.000000e+00> : vector<4x4xf32>
    %965 = tpu.matmul %897, %964, %cst_328 {dimension_numbers = #tpu.dot_dimension_numbers<[1], [0], [0], [1], [0, 0, 1, 1], [], []>} : vector<4x72xf32>, vector<72x4xf32>, vector<4x4xf32> -> vector<4x4xf32>
    %966 = vector.broadcast %899 : vector<4x1xf32> to vector<4x4xf32>
    %967 = arith.addf %965, %966 : vector<4x4xf32>
    %cst_329 = arith.constant 0.000000e+00 : f32
    %968 = vector.broadcast %cst_329 : f32 to vector<4x4xf32>
    %969 = arith.maximumf %967, %968 : vector<4x4xf32>
    %cst_330 = arith.constant dense<0.000000e+00> : vector<16x4xf32>
    %970 = tpu.matmul %901, %969, %cst_330 {dimension_numbers = #tpu.dot_dimension_numbers<[1], [0], [0], [1], [0, 0, 1, 1], [], []>} : vector<16x4xf32>, vector<4x4xf32>, vector<16x4xf32> -> vector<16x4xf32>
    %971 = arith.addf %970, %887 : vector<16x4xf32>
    %c16 = arith.constant 16 : index
    %c0_331 = arith.constant 0 : index
    %c0_332 = arith.constant 0 : index
    %972 = vector.load %arg2[%c16, %c0_331, %c0_332] : memref<24x16x1xf32, #tpu.memory_space<vmem>>, vector<1x16x1xf32>
    %973 = vector.shape_cast %972 : vector<1x16x1xf32> to vector<16x1xf32>
    %c17 = arith.constant 17 : index
    %c0_333 = arith.constant 0 : index
    %c0_334 = arith.constant 0 : index
    %974 = vector.load %arg2[%c17, %c0_333, %c0_334] : memref<24x16x1xf32, #tpu.memory_space<vmem>>, vector<1x16x1xf32>
    %975 = vector.shape_cast %974 : vector<1x16x1xf32> to vector<16x1xf32>
    %c8_335 = arith.constant 8 : index
    %c0_336 = arith.constant 0 : index
    %c0_337 = arith.constant 0 : index
    %976 = vector.load %arg3[%c8_335, %c0_336, %c0_337] : memref<12x8x16xf32, #tpu.memory_space<vmem>>, vector<1x8x16xf32>
    %977 = vector.shape_cast %976 : vector<1x8x16xf32> to vector<8x16xf32>
    %c8_338 = arith.constant 8 : index
    %c0_339 = arith.constant 0 : index
    %c0_340 = arith.constant 0 : index
    %978 = vector.load %arg4[%c8_338, %c0_339, %c0_340] : memref<12x8x1xf32, #tpu.memory_space<vmem>>, vector<1x8x1xf32>
    %979 = vector.shape_cast %978 : vector<1x8x1xf32> to vector<8x1xf32>
    %c8_341 = arith.constant 8 : index
    %c0_342 = arith.constant 0 : index
    %c0_343 = arith.constant 0 : index
    %980 = vector.load %arg5[%c8_341, %c0_342, %c0_343] : memref<12x4x72xf32, #tpu.memory_space<vmem>>, vector<1x4x72xf32>
    %981 = vector.shape_cast %980 : vector<1x4x72xf32> to vector<4x72xf32>
    %c8_344 = arith.constant 8 : index
    %c0_345 = arith.constant 0 : index
    %c0_346 = arith.constant 0 : index
    %982 = vector.load %arg6[%c8_344, %c0_345, %c0_346] : memref<12x4x1xf32, #tpu.memory_space<vmem>>, vector<1x4x1xf32>
    %983 = vector.shape_cast %982 : vector<1x4x1xf32> to vector<4x1xf32>
    %c8_347 = arith.constant 8 : index
    %c0_348 = arith.constant 0 : index
    %c0_349 = arith.constant 0 : index
    %984 = vector.load %arg7[%c8_347, %c0_348, %c0_349] : memref<12x16x4xf32, #tpu.memory_space<vmem>>, vector<1x16x4xf32>
    %985 = vector.shape_cast %984 : vector<1x16x4xf32> to vector<16x4xf32>
    %986 = vector.broadcast %973 : vector<16x1xf32> to vector<16x4xf32>
    %987 = arith.mulf %971, %986 : vector<16x4xf32>
    %988 = vector.broadcast %975 : vector<16x1xf32> to vector<16x4xf32>
    %989 = arith.addf %987, %988 : vector<16x4xf32>
    %cst_350 = arith.constant 0.000000e+00 : f32
    %990 = vector.broadcast %cst_350 : f32 to vector<16x4xf32>
    %991 = arith.maximumf %989, %990 : vector<16x4xf32>
    %cst_351 = arith.constant dense<0.000000e+00> : vector<8x4xf32>
    %992 = tpu.matmul %977, %991, %cst_351 {dimension_numbers = #tpu.dot_dimension_numbers<[1], [0], [0], [1], [0, 0, 1, 1], [], []>} : vector<8x16xf32>, vector<16x4xf32>, vector<8x4xf32> -> vector<8x4xf32>
    %993 = vector.broadcast %979 : vector<8x1xf32> to vector<8x4xf32>
    %994 = arith.addf %992, %993 : vector<8x4xf32>
    %cst_352 = arith.constant 0.000000e+00 : f32
    %995 = vector.broadcast %cst_352 : f32 to vector<8x4xf32>
    %996 = arith.maximumf %994, %995 : vector<8x4xf32>
    %cst_353 = arith.constant 0.000000e+00 : f32
    %997 = vector.broadcast %cst_353 : f32 to vector<8x3xf32>
    %998 = vector.extract_strided_slice %996 {offsets = [0, 0], sizes = [8, 1], strides = [1, 1]} : vector<8x4xf32> to vector<8x1xf32>
    %999 = tpu.concatenate %997, %998 in 1 : vector<8x3xf32>, vector<8x1xf32> -> vector<8x4xf32>
    %1000 = vector.extract_strided_slice %5 {offsets = [0, 0], sizes = [1, 4], strides = [1, 1]} : vector<9x4xf32> to vector<1x4xf32>
    %1001 = vector.broadcast %1000 : vector<1x4xf32> to vector<8x4xf32>
    %1002 = arith.mulf %999, %1001 : vector<8x4xf32>
    %cst_354 = arith.constant 0.000000e+00 : f32
    %1003 = vector.broadcast %cst_354 : f32 to vector<8x2xf32>
    %1004 = vector.extract_strided_slice %996 {offsets = [0, 0], sizes = [8, 2], strides = [1, 1]} : vector<8x4xf32> to vector<8x2xf32>
    %1005 = tpu.concatenate %1003, %1004 in 1 : vector<8x2xf32>, vector<8x2xf32> -> vector<8x4xf32>
    %1006 = vector.extract_strided_slice %5 {offsets = [1, 0], sizes = [1, 4], strides = [1, 1]} : vector<9x4xf32> to vector<1x4xf32>
    %1007 = vector.broadcast %1006 : vector<1x4xf32> to vector<8x4xf32>
    %1008 = arith.mulf %1005, %1007 : vector<8x4xf32>
    %cst_355 = arith.constant 0.000000e+00 : f32
    %1009 = vector.broadcast %cst_355 : f32 to vector<8x1xf32>
    %1010 = vector.extract_strided_slice %996 {offsets = [0, 0], sizes = [8, 3], strides = [1, 1]} : vector<8x4xf32> to vector<8x3xf32>
    %1011 = tpu.concatenate %1009, %1010 in 1 : vector<8x1xf32>, vector<8x3xf32> -> vector<8x4xf32>
    %1012 = vector.extract_strided_slice %5 {offsets = [2, 0], sizes = [1, 4], strides = [1, 1]} : vector<9x4xf32> to vector<1x4xf32>
    %1013 = vector.broadcast %1012 : vector<1x4xf32> to vector<8x4xf32>
    %1014 = arith.mulf %1011, %1013 : vector<8x4xf32>
    %cst_356 = arith.constant 0.000000e+00 : f32
    %1015 = vector.broadcast %cst_356 : f32 to vector<8x1xf32>
    %1016 = vector.extract_strided_slice %996 {offsets = [0, 0], sizes = [8, 3], strides = [1, 1]} : vector<8x4xf32> to vector<8x3xf32>
    %1017 = tpu.concatenate %1015, %1016 in 1 : vector<8x1xf32>, vector<8x3xf32> -> vector<8x4xf32>
    %1018 = vector.extract_strided_slice %5 {offsets = [3, 0], sizes = [1, 4], strides = [1, 1]} : vector<9x4xf32> to vector<1x4xf32>
    %1019 = vector.broadcast %1018 : vector<1x4xf32> to vector<8x4xf32>
    %1020 = arith.mulf %1017, %1019 : vector<8x4xf32>
    %1021 = vector.extract_strided_slice %5 {offsets = [4, 0], sizes = [1, 4], strides = [1, 1]} : vector<9x4xf32> to vector<1x4xf32>
    %1022 = vector.broadcast %1021 : vector<1x4xf32> to vector<8x4xf32>
    %1023 = arith.mulf %996, %1022 : vector<8x4xf32>
    %cst_357 = arith.constant 0.000000e+00 : f32
    %1024 = vector.broadcast %cst_357 : f32 to vector<8x1xf32>
    %1025 = vector.extract_strided_slice %996 {offsets = [0, 1], sizes = [8, 3], strides = [1, 1]} : vector<8x4xf32> to vector<8x3xf32>
    %1026 = tpu.concatenate %1025, %1024 in 1 : vector<8x3xf32>, vector<8x1xf32> -> vector<8x4xf32>
    %1027 = vector.extract_strided_slice %5 {offsets = [5, 0], sizes = [1, 4], strides = [1, 1]} : vector<9x4xf32> to vector<1x4xf32>
    %1028 = vector.broadcast %1027 : vector<1x4xf32> to vector<8x4xf32>
    %1029 = arith.mulf %1026, %1028 : vector<8x4xf32>
    %cst_358 = arith.constant 0.000000e+00 : f32
    %1030 = vector.broadcast %cst_358 : f32 to vector<8x1xf32>
    %1031 = vector.extract_strided_slice %996 {offsets = [0, 1], sizes = [8, 3], strides = [1, 1]} : vector<8x4xf32> to vector<8x3xf32>
    %1032 = tpu.concatenate %1031, %1030 in 1 : vector<8x3xf32>, vector<8x1xf32> -> vector<8x4xf32>
    %1033 = vector.extract_strided_slice %5 {offsets = [6, 0], sizes = [1, 4], strides = [1, 1]} : vector<9x4xf32> to vector<1x4xf32>
    %1034 = vector.broadcast %1033 : vector<1x4xf32> to vector<8x4xf32>
    %1035 = arith.mulf %1032, %1034 : vector<8x4xf32>
    %cst_359 = arith.constant 0.000000e+00 : f32
    %1036 = vector.broadcast %cst_359 : f32 to vector<8x2xf32>
    %1037 = vector.extract_strided_slice %996 {offsets = [0, 2], sizes = [8, 2], strides = [1, 1]} : vector<8x4xf32> to vector<8x2xf32>
    %1038 = tpu.concatenate %1037, %1036 in 1 : vector<8x2xf32>, vector<8x2xf32> -> vector<8x4xf32>
    %1039 = vector.extract_strided_slice %5 {offsets = [7, 0], sizes = [1, 4], strides = [1, 1]} : vector<9x4xf32> to vector<1x4xf32>
    %1040 = vector.broadcast %1039 : vector<1x4xf32> to vector<8x4xf32>
    %1041 = arith.mulf %1038, %1040 : vector<8x4xf32>
    %cst_360 = arith.constant 0.000000e+00 : f32
    %1042 = vector.broadcast %cst_360 : f32 to vector<8x3xf32>
    %1043 = vector.extract_strided_slice %996 {offsets = [0, 3], sizes = [8, 1], strides = [1, 1]} : vector<8x4xf32> to vector<8x1xf32>
    %1044 = tpu.concatenate %1043, %1042 in 1 : vector<8x1xf32>, vector<8x3xf32> -> vector<8x4xf32>
    %1045 = vector.extract_strided_slice %5 {offsets = [8, 0], sizes = [1, 4], strides = [1, 1]} : vector<9x4xf32> to vector<1x4xf32>
    %1046 = vector.broadcast %1045 : vector<1x4xf32> to vector<8x4xf32>
    %1047 = arith.mulf %1044, %1046 : vector<8x4xf32>
    %1048 = tpu.concatenate %1002, %1008, %1014, %1020, %1023, %1029, %1035, %1041, %1047 in 0 : vector<8x4xf32>, vector<8x4xf32>, vector<8x4xf32>, vector<8x4xf32>, vector<8x4xf32>, vector<8x4xf32>, vector<8x4xf32>, vector<8x4xf32>, vector<8x4xf32> -> vector<72x4xf32>
    %cst_361 = arith.constant dense<0.000000e+00> : vector<4x4xf32>
    %1049 = tpu.matmul %981, %1048, %cst_361 {dimension_numbers = #tpu.dot_dimension_numbers<[1], [0], [0], [1], [0, 0, 1, 1], [], []>} : vector<4x72xf32>, vector<72x4xf32>, vector<4x4xf32> -> vector<4x4xf32>
    %1050 = vector.broadcast %983 : vector<4x1xf32> to vector<4x4xf32>
    %1051 = arith.addf %1049, %1050 : vector<4x4xf32>
    %cst_362 = arith.constant 0.000000e+00 : f32
    %1052 = vector.broadcast %cst_362 : f32 to vector<4x4xf32>
    %1053 = arith.maximumf %1051, %1052 : vector<4x4xf32>
    %cst_363 = arith.constant dense<0.000000e+00> : vector<16x4xf32>
    %1054 = tpu.matmul %985, %1053, %cst_363 {dimension_numbers = #tpu.dot_dimension_numbers<[1], [0], [0], [1], [0, 0, 1, 1], [], []>} : vector<16x4xf32>, vector<4x4xf32>, vector<16x4xf32> -> vector<16x4xf32>
    %1055 = arith.addf %1054, %971 : vector<16x4xf32>
    %c0_364 = arith.constant 0 : index
    %c0_365 = arith.constant 0 : index
    %1056 = vector.load %arg17[%c0_364, %c0_365] : memref<4x12xf32, #tpu.memory_space<vmem>>, vector<4x12xf32>
    %cst_366 = arith.constant dense<0.000000e+00> : vector<16x12xf32>
    %1057 = tpu.matmul %1055, %1056, %cst_366 {dimension_numbers = #tpu.dot_dimension_numbers<[1], [0], [0], [1], [0, 0, 1, 1], [], []>} : vector<16x4xf32>, vector<4x12xf32>, vector<16x12xf32> -> vector<16x12xf32>
    %1058 = arith.addf %1057, %705 : vector<16x12xf32>
    %1059 = arith.addf %1058, %789 : vector<16x12xf32>
    %c18 = arith.constant 18 : index
    %c0_367 = arith.constant 0 : index
    %c0_368 = arith.constant 0 : index
    %1060 = vector.load %arg2[%c18, %c0_367, %c0_368] : memref<24x16x1xf32, #tpu.memory_space<vmem>>, vector<1x16x1xf32>
    %1061 = vector.shape_cast %1060 : vector<1x16x1xf32> to vector<16x1xf32>
    %c19 = arith.constant 19 : index
    %c0_369 = arith.constant 0 : index
    %c0_370 = arith.constant 0 : index
    %1062 = vector.load %arg2[%c19, %c0_369, %c0_370] : memref<24x16x1xf32, #tpu.memory_space<vmem>>, vector<1x16x1xf32>
    %1063 = vector.shape_cast %1062 : vector<1x16x1xf32> to vector<16x1xf32>
    %c9_371 = arith.constant 9 : index
    %c0_372 = arith.constant 0 : index
    %c0_373 = arith.constant 0 : index
    %1064 = vector.load %arg3[%c9_371, %c0_372, %c0_373] : memref<12x8x16xf32, #tpu.memory_space<vmem>>, vector<1x8x16xf32>
    %1065 = vector.shape_cast %1064 : vector<1x8x16xf32> to vector<8x16xf32>
    %c9_374 = arith.constant 9 : index
    %c0_375 = arith.constant 0 : index
    %c0_376 = arith.constant 0 : index
    %1066 = vector.load %arg4[%c9_374, %c0_375, %c0_376] : memref<12x8x1xf32, #tpu.memory_space<vmem>>, vector<1x8x1xf32>
    %1067 = vector.shape_cast %1066 : vector<1x8x1xf32> to vector<8x1xf32>
    %c9_377 = arith.constant 9 : index
    %c0_378 = arith.constant 0 : index
    %c0_379 = arith.constant 0 : index
    %1068 = vector.load %arg5[%c9_377, %c0_378, %c0_379] : memref<12x4x72xf32, #tpu.memory_space<vmem>>, vector<1x4x72xf32>
    %1069 = vector.shape_cast %1068 : vector<1x4x72xf32> to vector<4x72xf32>
    %c9_380 = arith.constant 9 : index
    %c0_381 = arith.constant 0 : index
    %c0_382 = arith.constant 0 : index
    %1070 = vector.load %arg6[%c9_380, %c0_381, %c0_382] : memref<12x4x1xf32, #tpu.memory_space<vmem>>, vector<1x4x1xf32>
    %1071 = vector.shape_cast %1070 : vector<1x4x1xf32> to vector<4x1xf32>
    %c9_383 = arith.constant 9 : index
    %c0_384 = arith.constant 0 : index
    %c0_385 = arith.constant 0 : index
    %1072 = vector.load %arg7[%c9_383, %c0_384, %c0_385] : memref<12x16x4xf32, #tpu.memory_space<vmem>>, vector<1x16x4xf32>
    %1073 = vector.shape_cast %1072 : vector<1x16x4xf32> to vector<16x4xf32>
    %1074 = vector.broadcast %1061 : vector<16x1xf32> to vector<16x12xf32>
    %1075 = arith.mulf %1059, %1074 : vector<16x12xf32>
    %1076 = vector.broadcast %1063 : vector<16x1xf32> to vector<16x12xf32>
    %1077 = arith.addf %1075, %1076 : vector<16x12xf32>
    %cst_386 = arith.constant 0.000000e+00 : f32
    %1078 = vector.broadcast %cst_386 : f32 to vector<16x12xf32>
    %1079 = arith.maximumf %1077, %1078 : vector<16x12xf32>
    %cst_387 = arith.constant dense<0.000000e+00> : vector<8x12xf32>
    %1080 = tpu.matmul %1065, %1079, %cst_387 {dimension_numbers = #tpu.dot_dimension_numbers<[1], [0], [0], [1], [0, 0, 1, 1], [], []>} : vector<8x16xf32>, vector<16x12xf32>, vector<8x12xf32> -> vector<8x12xf32>
    %1081 = vector.broadcast %1067 : vector<8x1xf32> to vector<8x12xf32>
    %1082 = arith.addf %1080, %1081 : vector<8x12xf32>
    %cst_388 = arith.constant 0.000000e+00 : f32
    %1083 = vector.broadcast %cst_388 : f32 to vector<8x12xf32>
    %1084 = arith.maximumf %1082, %1083 : vector<8x12xf32>
    %cst_389 = arith.constant 0.000000e+00 : f32
    %1085 = vector.broadcast %cst_389 : f32 to vector<8x5xf32>
    %1086 = vector.extract_strided_slice %1084 {offsets = [0, 0], sizes = [8, 7], strides = [1, 1]} : vector<8x12xf32> to vector<8x7xf32>
    %1087 = tpu.concatenate %1085, %1086 in 1 : vector<8x5xf32>, vector<8x7xf32> -> vector<8x12xf32>
    %1088 = vector.extract_strided_slice %4 {offsets = [0, 0], sizes = [1, 12], strides = [1, 1]} : vector<9x12xf32> to vector<1x12xf32>
    %1089 = vector.broadcast %1088 : vector<1x12xf32> to vector<8x12xf32>
    %1090 = arith.mulf %1087, %1089 : vector<8x12xf32>
    %cst_390 = arith.constant 0.000000e+00 : f32
    %1091 = vector.broadcast %cst_390 : f32 to vector<8x4xf32>
    %1092 = vector.extract_strided_slice %1084 {offsets = [0, 0], sizes = [8, 8], strides = [1, 1]} : vector<8x12xf32> to vector<8x8xf32>
    %1093 = tpu.concatenate %1091, %1092 in 1 : vector<8x4xf32>, vector<8x8xf32> -> vector<8x12xf32>
    %1094 = vector.extract_strided_slice %4 {offsets = [1, 0], sizes = [1, 12], strides = [1, 1]} : vector<9x12xf32> to vector<1x12xf32>
    %1095 = vector.broadcast %1094 : vector<1x12xf32> to vector<8x12xf32>
    %1096 = arith.mulf %1093, %1095 : vector<8x12xf32>
    %cst_391 = arith.constant 0.000000e+00 : f32
    %1097 = vector.broadcast %cst_391 : f32 to vector<8x3xf32>
    %1098 = vector.extract_strided_slice %1084 {offsets = [0, 0], sizes = [8, 9], strides = [1, 1]} : vector<8x12xf32> to vector<8x9xf32>
    %1099 = tpu.concatenate %1097, %1098 in 1 : vector<8x3xf32>, vector<8x9xf32> -> vector<8x12xf32>
    %1100 = vector.extract_strided_slice %4 {offsets = [2, 0], sizes = [1, 12], strides = [1, 1]} : vector<9x12xf32> to vector<1x12xf32>
    %1101 = vector.broadcast %1100 : vector<1x12xf32> to vector<8x12xf32>
    %1102 = arith.mulf %1099, %1101 : vector<8x12xf32>
    %cst_392 = arith.constant 0.000000e+00 : f32
    %1103 = vector.broadcast %cst_392 : f32 to vector<8x1xf32>
    %1104 = vector.extract_strided_slice %1084 {offsets = [0, 0], sizes = [8, 11], strides = [1, 1]} : vector<8x12xf32> to vector<8x11xf32>
    %1105 = tpu.concatenate %1103, %1104 in 1 : vector<8x1xf32>, vector<8x11xf32> -> vector<8x12xf32>
    %1106 = vector.extract_strided_slice %4 {offsets = [3, 0], sizes = [1, 12], strides = [1, 1]} : vector<9x12xf32> to vector<1x12xf32>
    %1107 = vector.broadcast %1106 : vector<1x12xf32> to vector<8x12xf32>
    %1108 = arith.mulf %1105, %1107 : vector<8x12xf32>
    %1109 = vector.extract_strided_slice %4 {offsets = [4, 0], sizes = [1, 12], strides = [1, 1]} : vector<9x12xf32> to vector<1x12xf32>
    %1110 = vector.broadcast %1109 : vector<1x12xf32> to vector<8x12xf32>
    %1111 = arith.mulf %1084, %1110 : vector<8x12xf32>
    %cst_393 = arith.constant 0.000000e+00 : f32
    %1112 = vector.broadcast %cst_393 : f32 to vector<8x1xf32>
    %1113 = vector.extract_strided_slice %1084 {offsets = [0, 1], sizes = [8, 11], strides = [1, 1]} : vector<8x12xf32> to vector<8x11xf32>
    %1114 = tpu.concatenate %1113, %1112 in 1 : vector<8x11xf32>, vector<8x1xf32> -> vector<8x12xf32>
    %1115 = vector.extract_strided_slice %4 {offsets = [5, 0], sizes = [1, 12], strides = [1, 1]} : vector<9x12xf32> to vector<1x12xf32>
    %1116 = vector.broadcast %1115 : vector<1x12xf32> to vector<8x12xf32>
    %1117 = arith.mulf %1114, %1116 : vector<8x12xf32>
    %cst_394 = arith.constant 0.000000e+00 : f32
    %1118 = vector.broadcast %cst_394 : f32 to vector<8x3xf32>
    %1119 = vector.extract_strided_slice %1084 {offsets = [0, 3], sizes = [8, 9], strides = [1, 1]} : vector<8x12xf32> to vector<8x9xf32>
    %1120 = tpu.concatenate %1119, %1118 in 1 : vector<8x9xf32>, vector<8x3xf32> -> vector<8x12xf32>
    %1121 = vector.extract_strided_slice %4 {offsets = [6, 0], sizes = [1, 12], strides = [1, 1]} : vector<9x12xf32> to vector<1x12xf32>
    %1122 = vector.broadcast %1121 : vector<1x12xf32> to vector<8x12xf32>
    %1123 = arith.mulf %1120, %1122 : vector<8x12xf32>
    %cst_395 = arith.constant 0.000000e+00 : f32
    %1124 = vector.broadcast %cst_395 : f32 to vector<8x4xf32>
    %1125 = vector.extract_strided_slice %1084 {offsets = [0, 4], sizes = [8, 8], strides = [1, 1]} : vector<8x12xf32> to vector<8x8xf32>
    %1126 = tpu.concatenate %1125, %1124 in 1 : vector<8x8xf32>, vector<8x4xf32> -> vector<8x12xf32>
    %1127 = vector.extract_strided_slice %4 {offsets = [7, 0], sizes = [1, 12], strides = [1, 1]} : vector<9x12xf32> to vector<1x12xf32>
    %1128 = vector.broadcast %1127 : vector<1x12xf32> to vector<8x12xf32>
    %1129 = arith.mulf %1126, %1128 : vector<8x12xf32>
    %cst_396 = arith.constant 0.000000e+00 : f32
    %1130 = vector.broadcast %cst_396 : f32 to vector<8x5xf32>
    %1131 = vector.extract_strided_slice %1084 {offsets = [0, 5], sizes = [8, 7], strides = [1, 1]} : vector<8x12xf32> to vector<8x7xf32>
    %1132 = tpu.concatenate %1131, %1130 in 1 : vector<8x7xf32>, vector<8x5xf32> -> vector<8x12xf32>
    %1133 = vector.extract_strided_slice %4 {offsets = [8, 0], sizes = [1, 12], strides = [1, 1]} : vector<9x12xf32> to vector<1x12xf32>
    %1134 = vector.broadcast %1133 : vector<1x12xf32> to vector<8x12xf32>
    %1135 = arith.mulf %1132, %1134 : vector<8x12xf32>
    %1136 = tpu.concatenate %1090, %1096, %1102, %1108, %1111, %1117, %1123, %1129, %1135 in 0 : vector<8x12xf32>, vector<8x12xf32>, vector<8x12xf32>, vector<8x12xf32>, vector<8x12xf32>, vector<8x12xf32>, vector<8x12xf32>, vector<8x12xf32>, vector<8x12xf32> -> vector<72x12xf32>
    %cst_397 = arith.constant dense<0.000000e+00> : vector<4x12xf32>
    %1137 = tpu.matmul %1069, %1136, %cst_397 {dimension_numbers = #tpu.dot_dimension_numbers<[1], [0], [0], [1], [0, 0, 1, 1], [], []>} : vector<4x72xf32>, vector<72x12xf32>, vector<4x12xf32> -> vector<4x12xf32>
    %1138 = vector.broadcast %1071 : vector<4x1xf32> to vector<4x12xf32>
    %1139 = arith.addf %1137, %1138 : vector<4x12xf32>
    %cst_398 = arith.constant 0.000000e+00 : f32
    %1140 = vector.broadcast %cst_398 : f32 to vector<4x12xf32>
    %1141 = arith.maximumf %1139, %1140 : vector<4x12xf32>
    %cst_399 = arith.constant dense<0.000000e+00> : vector<16x12xf32>
    %1142 = tpu.matmul %1073, %1141, %cst_399 {dimension_numbers = #tpu.dot_dimension_numbers<[1], [0], [0], [1], [0, 0, 1, 1], [], []>} : vector<16x4xf32>, vector<4x12xf32>, vector<16x12xf32> -> vector<16x12xf32>
    %1143 = arith.addf %1142, %1059 : vector<16x12xf32>
    %c0_400 = arith.constant 0 : index
    %c0_401 = arith.constant 0 : index
    %1144 = vector.load %arg18[%c0_400, %c0_401] : memref<12x40xf32, #tpu.memory_space<vmem>>, vector<12x40xf32>
    %cst_402 = arith.constant dense<0.000000e+00> : vector<16x40xf32>
    %1145 = tpu.matmul %1143, %1144, %cst_402 {dimension_numbers = #tpu.dot_dimension_numbers<[1], [0], [0], [1], [0, 0, 1, 1], [], []>} : vector<16x12xf32>, vector<12x40xf32>, vector<16x40xf32> -> vector<16x40xf32>
    %1146 = arith.addf %1145, %439 : vector<16x40xf32>
    %1147 = arith.addf %1146, %523 : vector<16x40xf32>
    %c20 = arith.constant 20 : index
    %c0_403 = arith.constant 0 : index
    %c0_404 = arith.constant 0 : index
    %1148 = vector.load %arg2[%c20, %c0_403, %c0_404] : memref<24x16x1xf32, #tpu.memory_space<vmem>>, vector<1x16x1xf32>
    %1149 = vector.shape_cast %1148 : vector<1x16x1xf32> to vector<16x1xf32>
    %c21 = arith.constant 21 : index
    %c0_405 = arith.constant 0 : index
    %c0_406 = arith.constant 0 : index
    %1150 = vector.load %arg2[%c21, %c0_405, %c0_406] : memref<24x16x1xf32, #tpu.memory_space<vmem>>, vector<1x16x1xf32>
    %1151 = vector.shape_cast %1150 : vector<1x16x1xf32> to vector<16x1xf32>
    %c10_407 = arith.constant 10 : index
    %c0_408 = arith.constant 0 : index
    %c0_409 = arith.constant 0 : index
    %1152 = vector.load %arg3[%c10_407, %c0_408, %c0_409] : memref<12x8x16xf32, #tpu.memory_space<vmem>>, vector<1x8x16xf32>
    %1153 = vector.shape_cast %1152 : vector<1x8x16xf32> to vector<8x16xf32>
    %c10_410 = arith.constant 10 : index
    %c0_411 = arith.constant 0 : index
    %c0_412 = arith.constant 0 : index
    %1154 = vector.load %arg4[%c10_410, %c0_411, %c0_412] : memref<12x8x1xf32, #tpu.memory_space<vmem>>, vector<1x8x1xf32>
    %1155 = vector.shape_cast %1154 : vector<1x8x1xf32> to vector<8x1xf32>
    %c10_413 = arith.constant 10 : index
    %c0_414 = arith.constant 0 : index
    %c0_415 = arith.constant 0 : index
    %1156 = vector.load %arg5[%c10_413, %c0_414, %c0_415] : memref<12x4x72xf32, #tpu.memory_space<vmem>>, vector<1x4x72xf32>
    %1157 = vector.shape_cast %1156 : vector<1x4x72xf32> to vector<4x72xf32>
    %c10_416 = arith.constant 10 : index
    %c0_417 = arith.constant 0 : index
    %c0_418 = arith.constant 0 : index
    %1158 = vector.load %arg6[%c10_416, %c0_417, %c0_418] : memref<12x4x1xf32, #tpu.memory_space<vmem>>, vector<1x4x1xf32>
    %1159 = vector.shape_cast %1158 : vector<1x4x1xf32> to vector<4x1xf32>
    %c10_419 = arith.constant 10 : index
    %c0_420 = arith.constant 0 : index
    %c0_421 = arith.constant 0 : index
    %1160 = vector.load %arg7[%c10_419, %c0_420, %c0_421] : memref<12x16x4xf32, #tpu.memory_space<vmem>>, vector<1x16x4xf32>
    %1161 = vector.shape_cast %1160 : vector<1x16x4xf32> to vector<16x4xf32>
    %1162 = vector.broadcast %1149 : vector<16x1xf32> to vector<16x40xf32>
    %1163 = arith.mulf %1147, %1162 : vector<16x40xf32>
    %1164 = vector.broadcast %1151 : vector<16x1xf32> to vector<16x40xf32>
    %1165 = arith.addf %1163, %1164 : vector<16x40xf32>
    %cst_422 = arith.constant 0.000000e+00 : f32
    %1166 = vector.broadcast %cst_422 : f32 to vector<16x40xf32>
    %1167 = arith.maximumf %1165, %1166 : vector<16x40xf32>
    %cst_423 = arith.constant dense<0.000000e+00> : vector<8x40xf32>
    %1168 = tpu.matmul %1153, %1167, %cst_423 {dimension_numbers = #tpu.dot_dimension_numbers<[1], [0], [0], [1], [0, 0, 1, 1], [], []>} : vector<8x16xf32>, vector<16x40xf32>, vector<8x40xf32> -> vector<8x40xf32>
    %1169 = vector.broadcast %1155 : vector<8x1xf32> to vector<8x40xf32>
    %1170 = arith.addf %1168, %1169 : vector<8x40xf32>
    %cst_424 = arith.constant 0.000000e+00 : f32
    %1171 = vector.broadcast %cst_424 : f32 to vector<8x40xf32>
    %1172 = arith.maximumf %1170, %1171 : vector<8x40xf32>
    %cst_425 = arith.constant 0.000000e+00 : f32
    %1173 = vector.broadcast %cst_425 : f32 to vector<8x9xf32>
    %1174 = vector.extract_strided_slice %1172 {offsets = [0, 0], sizes = [8, 31], strides = [1, 1]} : vector<8x40xf32> to vector<8x31xf32>
    %1175 = tpu.concatenate %1173, %1174 in 1 : vector<8x9xf32>, vector<8x31xf32> -> vector<8x40xf32>
    %1176 = vector.extract_strided_slice %3 {offsets = [0, 0], sizes = [1, 40], strides = [1, 1]} : vector<9x40xf32> to vector<1x40xf32>
    %1177 = vector.broadcast %1176 : vector<1x40xf32> to vector<8x40xf32>
    %1178 = arith.mulf %1175, %1177 : vector<8x40xf32>
    %cst_426 = arith.constant 0.000000e+00 : f32
    %1179 = vector.broadcast %cst_426 : f32 to vector<8x8xf32>
    %1180 = vector.extract_strided_slice %1172 {offsets = [0, 0], sizes = [8, 32], strides = [1, 1]} : vector<8x40xf32> to vector<8x32xf32>
    %1181 = tpu.concatenate %1179, %1180 in 1 : vector<8x8xf32>, vector<8x32xf32> -> vector<8x40xf32>
    %1182 = vector.extract_strided_slice %3 {offsets = [1, 0], sizes = [1, 40], strides = [1, 1]} : vector<9x40xf32> to vector<1x40xf32>
    %1183 = vector.broadcast %1182 : vector<1x40xf32> to vector<8x40xf32>
    %1184 = arith.mulf %1181, %1183 : vector<8x40xf32>
    %cst_427 = arith.constant 0.000000e+00 : f32
    %1185 = vector.broadcast %cst_427 : f32 to vector<8x7xf32>
    %1186 = vector.extract_strided_slice %1172 {offsets = [0, 0], sizes = [8, 33], strides = [1, 1]} : vector<8x40xf32> to vector<8x33xf32>
    %1187 = tpu.concatenate %1185, %1186 in 1 : vector<8x7xf32>, vector<8x33xf32> -> vector<8x40xf32>
    %1188 = vector.extract_strided_slice %3 {offsets = [2, 0], sizes = [1, 40], strides = [1, 1]} : vector<9x40xf32> to vector<1x40xf32>
    %1189 = vector.broadcast %1188 : vector<1x40xf32> to vector<8x40xf32>
    %1190 = arith.mulf %1187, %1189 : vector<8x40xf32>
    %cst_428 = arith.constant 0.000000e+00 : f32
    %1191 = vector.broadcast %cst_428 : f32 to vector<8x1xf32>
    %1192 = vector.extract_strided_slice %1172 {offsets = [0, 0], sizes = [8, 39], strides = [1, 1]} : vector<8x40xf32> to vector<8x39xf32>
    %1193 = tpu.concatenate %1191, %1192 in 1 : vector<8x1xf32>, vector<8x39xf32> -> vector<8x40xf32>
    %1194 = vector.extract_strided_slice %3 {offsets = [3, 0], sizes = [1, 40], strides = [1, 1]} : vector<9x40xf32> to vector<1x40xf32>
    %1195 = vector.broadcast %1194 : vector<1x40xf32> to vector<8x40xf32>
    %1196 = arith.mulf %1193, %1195 : vector<8x40xf32>
    %1197 = vector.extract_strided_slice %3 {offsets = [4, 0], sizes = [1, 40], strides = [1, 1]} : vector<9x40xf32> to vector<1x40xf32>
    %1198 = vector.broadcast %1197 : vector<1x40xf32> to vector<8x40xf32>
    %1199 = arith.mulf %1172, %1198 : vector<8x40xf32>
    %cst_429 = arith.constant 0.000000e+00 : f32
    %1200 = vector.broadcast %cst_429 : f32 to vector<8x1xf32>
    %1201 = vector.extract_strided_slice %1172 {offsets = [0, 1], sizes = [8, 39], strides = [1, 1]} : vector<8x40xf32> to vector<8x39xf32>
    %1202 = tpu.concatenate %1201, %1200 in 1 : vector<8x39xf32>, vector<8x1xf32> -> vector<8x40xf32>
    %1203 = vector.extract_strided_slice %3 {offsets = [5, 0], sizes = [1, 40], strides = [1, 1]} : vector<9x40xf32> to vector<1x40xf32>
    %1204 = vector.broadcast %1203 : vector<1x40xf32> to vector<8x40xf32>
    %1205 = arith.mulf %1202, %1204 : vector<8x40xf32>
    %cst_430 = arith.constant 0.000000e+00 : f32
    %1206 = vector.broadcast %cst_430 : f32 to vector<8x7xf32>
    %1207 = vector.extract_strided_slice %1172 {offsets = [0, 7], sizes = [8, 33], strides = [1, 1]} : vector<8x40xf32> to vector<8x33xf32>
    %1208 = tpu.concatenate %1207, %1206 in 1 : vector<8x33xf32>, vector<8x7xf32> -> vector<8x40xf32>
    %1209 = vector.extract_strided_slice %3 {offsets = [6, 0], sizes = [1, 40], strides = [1, 1]} : vector<9x40xf32> to vector<1x40xf32>
    %1210 = vector.broadcast %1209 : vector<1x40xf32> to vector<8x40xf32>
    %1211 = arith.mulf %1208, %1210 : vector<8x40xf32>
    %cst_431 = arith.constant 0.000000e+00 : f32
    %1212 = vector.broadcast %cst_431 : f32 to vector<8x8xf32>
    %1213 = vector.extract_strided_slice %1172 {offsets = [0, 8], sizes = [8, 32], strides = [1, 1]} : vector<8x40xf32> to vector<8x32xf32>
    %1214 = tpu.concatenate %1213, %1212 in 1 : vector<8x32xf32>, vector<8x8xf32> -> vector<8x40xf32>
    %1215 = vector.extract_strided_slice %3 {offsets = [7, 0], sizes = [1, 40], strides = [1, 1]} : vector<9x40xf32> to vector<1x40xf32>
    %1216 = vector.broadcast %1215 : vector<1x40xf32> to vector<8x40xf32>
    %1217 = arith.mulf %1214, %1216 : vector<8x40xf32>
    %cst_432 = arith.constant 0.000000e+00 : f32
    %1218 = vector.broadcast %cst_432 : f32 to vector<8x9xf32>
    %1219 = vector.extract_strided_slice %1172 {offsets = [0, 9], sizes = [8, 31], strides = [1, 1]} : vector<8x40xf32> to vector<8x31xf32>
    %1220 = tpu.concatenate %1219, %1218 in 1 : vector<8x31xf32>, vector<8x9xf32> -> vector<8x40xf32>
    %1221 = vector.extract_strided_slice %3 {offsets = [8, 0], sizes = [1, 40], strides = [1, 1]} : vector<9x40xf32> to vector<1x40xf32>
    %1222 = vector.broadcast %1221 : vector<1x40xf32> to vector<8x40xf32>
    %1223 = arith.mulf %1220, %1222 : vector<8x40xf32>
    %1224 = tpu.concatenate %1178, %1184, %1190, %1196, %1199, %1205, %1211, %1217, %1223 in 0 : vector<8x40xf32>, vector<8x40xf32>, vector<8x40xf32>, vector<8x40xf32>, vector<8x40xf32>, vector<8x40xf32>, vector<8x40xf32>, vector<8x40xf32>, vector<8x40xf32> -> vector<72x40xf32>
    %cst_433 = arith.constant dense<0.000000e+00> : vector<4x40xf32>
    %1225 = tpu.matmul %1157, %1224, %cst_433 {dimension_numbers = #tpu.dot_dimension_numbers<[1], [0], [0], [1], [0, 0, 1, 1], [], []>} : vector<4x72xf32>, vector<72x40xf32>, vector<4x40xf32> -> vector<4x40xf32>
    %1226 = vector.broadcast %1159 : vector<4x1xf32> to vector<4x40xf32>
    %1227 = arith.addf %1225, %1226 : vector<4x40xf32>
    %cst_434 = arith.constant 0.000000e+00 : f32
    %1228 = vector.broadcast %cst_434 : f32 to vector<4x40xf32>
    %1229 = arith.maximumf %1227, %1228 : vector<4x40xf32>
    %cst_435 = arith.constant dense<0.000000e+00> : vector<16x40xf32>
    %1230 = tpu.matmul %1161, %1229, %cst_435 {dimension_numbers = #tpu.dot_dimension_numbers<[1], [0], [0], [1], [0, 0, 1, 1], [], []>} : vector<16x4xf32>, vector<4x40xf32>, vector<16x40xf32> -> vector<16x40xf32>
    %1231 = arith.addf %1230, %1147 : vector<16x40xf32>
    %c0_436 = arith.constant 0 : index
    %c0_437 = arith.constant 0 : index
    %1232 = vector.load %arg19[%c0_436, %c0_437] : memref<40x135xf32, #tpu.memory_space<vmem>>, vector<40x135xf32>
    %cst_438 = arith.constant dense<0.000000e+00> : vector<16x135xf32>
    %1233 = tpu.matmul %1231, %1232, %cst_438 {dimension_numbers = #tpu.dot_dimension_numbers<[1], [0], [0], [1], [0, 0, 1, 1], [], []>} : vector<16x40xf32>, vector<40x135xf32>, vector<16x135xf32> -> vector<16x135xf32>
    %1234 = arith.addf %1233, %257 : vector<16x135xf32>
    %c0_439 = arith.constant 0 : index
    %c0_440 = arith.constant 0 : index
    %c0_441 = arith.constant 0 : index
    %1235 = vector.load %arg8[%c0_439, %c0_440, %c0_441] : memref<4x16x1xf32, #tpu.memory_space<vmem>>, vector<1x16x1xf32>
    %1236 = vector.shape_cast %1235 : vector<1x16x1xf32> to vector<16x1xf32>
    %1237 = vector.broadcast %1236 : vector<16x1xf32> to vector<16x135xf32>
    %1238 = arith.mulf %1234, %1237 : vector<16x135xf32>
    %c1_442 = arith.constant 1 : index
    %c0_443 = arith.constant 0 : index
    %c0_444 = arith.constant 0 : index
    %1239 = vector.load %arg8[%c1_442, %c0_443, %c0_444] : memref<4x16x1xf32, #tpu.memory_space<vmem>>, vector<1x16x1xf32>
    %1240 = vector.shape_cast %1239 : vector<1x16x1xf32> to vector<16x1xf32>
    %1241 = vector.broadcast %1240 : vector<16x1xf32> to vector<16x135xf32>
    %1242 = arith.addf %1238, %1241 : vector<16x135xf32>
    %cst_445 = arith.constant 0.000000e+00 : f32
    %1243 = vector.broadcast %cst_445 : f32 to vector<16x135xf32>
    %1244 = arith.maximumf %1242, %1243 : vector<16x135xf32>
    %c0_446 = arith.constant 0 : index
    %c0_447 = arith.constant 0 : index
    %c0_448 = arith.constant 0 : index
    %1245 = vector.load %arg9[%c0_446, %c0_447, %c0_448] : memref<2x16x16xf32, #tpu.memory_space<vmem>>, vector<1x16x16xf32>
    %1246 = vector.shape_cast %1245 : vector<1x16x16xf32> to vector<16x16xf32>
    %cst_449 = arith.constant dense<0.000000e+00> : vector<16x135xf32>
    %1247 = tpu.matmul %1246, %1244, %cst_449 {dimension_numbers = #tpu.dot_dimension_numbers<[1], [0], [0], [1], [0, 0, 1, 1], [], []>} : vector<16x16xf32>, vector<16x135xf32>, vector<16x135xf32> -> vector<16x135xf32>
    %c2_450 = arith.constant 2 : index
    %c0_451 = arith.constant 0 : index
    %c0_452 = arith.constant 0 : index
    %1248 = vector.load %arg8[%c2_450, %c0_451, %c0_452] : memref<4x16x1xf32, #tpu.memory_space<vmem>>, vector<1x16x1xf32>
    %1249 = vector.shape_cast %1248 : vector<1x16x1xf32> to vector<16x1xf32>
    %1250 = vector.broadcast %1249 : vector<16x1xf32> to vector<16x135xf32>
    %1251 = arith.mulf %1247, %1250 : vector<16x135xf32>
    %c3_453 = arith.constant 3 : index
    %c0_454 = arith.constant 0 : index
    %c0_455 = arith.constant 0 : index
    %1252 = vector.load %arg8[%c3_453, %c0_454, %c0_455] : memref<4x16x1xf32, #tpu.memory_space<vmem>>, vector<1x16x1xf32>
    %1253 = vector.shape_cast %1252 : vector<1x16x1xf32> to vector<16x1xf32>
    %1254 = vector.broadcast %1253 : vector<16x1xf32> to vector<16x135xf32>
    %1255 = arith.addf %1251, %1254 : vector<16x135xf32>
    %cst_456 = arith.constant 0.000000e+00 : f32
    %1256 = vector.broadcast %cst_456 : f32 to vector<16x135xf32>
    %1257 = arith.maximumf %1255, %1256 : vector<16x135xf32>
    %c1_457 = arith.constant 1 : index
    %c0_458 = arith.constant 0 : index
    %c0_459 = arith.constant 0 : index
    %1258 = vector.load %arg9[%c1_457, %c0_458, %c0_459] : memref<2x16x16xf32, #tpu.memory_space<vmem>>, vector<1x16x16xf32>
    %1259 = vector.shape_cast %1258 : vector<1x16x16xf32> to vector<16x16xf32>
    %cst_460 = arith.constant dense<0.000000e+00> : vector<16x135xf32>
    %1260 = tpu.matmul %1259, %1257, %cst_460 {dimension_numbers = #tpu.dot_dimension_numbers<[1], [0], [0], [1], [0, 0, 1, 1], [], []>} : vector<16x16xf32>, vector<16x135xf32>, vector<16x135xf32> -> vector<16x135xf32>
    %cst_461 = arith.constant 5.000000e-01 : f32
    %1261 = vector.broadcast %cst_461 : f32 to vector<16x135xf32>
    %1262 = arith.mulf %1261, %1260 : vector<16x135xf32>
    %1263 = math.tanh %1262 : vector<16x135xf32>
    %cst_462 = arith.constant 1.000000e+00 : f32
    %1264 = vector.broadcast %cst_462 : f32 to vector<16x135xf32>
    %1265 = arith.addf %1263, %1264 : vector<16x135xf32>
    %cst_463 = arith.constant 5.000000e-01 : f32
    %1266 = vector.broadcast %cst_463 : f32 to vector<16x135xf32>
    %1267 = arith.mulf %1266, %1265 : vector<16x135xf32>
    %cst_464 = arith.constant 1.000000e+00 : f32
    %1268 = vector.broadcast %cst_464 : f32 to vector<16x135xf32>
    %1269 = arith.addf %1268, %1267 : vector<16x135xf32>
    %1270 = arith.mulf %1269, %257 : vector<16x135xf32>
    %c22 = arith.constant 22 : index
    %c0_465 = arith.constant 0 : index
    %c0_466 = arith.constant 0 : index
    %1271 = vector.load %arg2[%c22, %c0_465, %c0_466] : memref<24x16x1xf32, #tpu.memory_space<vmem>>, vector<1x16x1xf32>
    %1272 = vector.shape_cast %1271 : vector<1x16x1xf32> to vector<16x1xf32>
    %c23 = arith.constant 23 : index
    %c0_467 = arith.constant 0 : index
    %c0_468 = arith.constant 0 : index
    %1273 = vector.load %arg2[%c23, %c0_467, %c0_468] : memref<24x16x1xf32, #tpu.memory_space<vmem>>, vector<1x16x1xf32>
    %1274 = vector.shape_cast %1273 : vector<1x16x1xf32> to vector<16x1xf32>
    %c11_469 = arith.constant 11 : index
    %c0_470 = arith.constant 0 : index
    %c0_471 = arith.constant 0 : index
    %1275 = vector.load %arg3[%c11_469, %c0_470, %c0_471] : memref<12x8x16xf32, #tpu.memory_space<vmem>>, vector<1x8x16xf32>
    %1276 = vector.shape_cast %1275 : vector<1x8x16xf32> to vector<8x16xf32>
    %c11_472 = arith.constant 11 : index
    %c0_473 = arith.constant 0 : index
    %c0_474 = arith.constant 0 : index
    %1277 = vector.load %arg4[%c11_472, %c0_473, %c0_474] : memref<12x8x1xf32, #tpu.memory_space<vmem>>, vector<1x8x1xf32>
    %1278 = vector.shape_cast %1277 : vector<1x8x1xf32> to vector<8x1xf32>
    %c11_475 = arith.constant 11 : index
    %c0_476 = arith.constant 0 : index
    %c0_477 = arith.constant 0 : index
    %1279 = vector.load %arg5[%c11_475, %c0_476, %c0_477] : memref<12x4x72xf32, #tpu.memory_space<vmem>>, vector<1x4x72xf32>
    %1280 = vector.shape_cast %1279 : vector<1x4x72xf32> to vector<4x72xf32>
    %c11_478 = arith.constant 11 : index
    %c0_479 = arith.constant 0 : index
    %c0_480 = arith.constant 0 : index
    %1281 = vector.load %arg6[%c11_478, %c0_479, %c0_480] : memref<12x4x1xf32, #tpu.memory_space<vmem>>, vector<1x4x1xf32>
    %1282 = vector.shape_cast %1281 : vector<1x4x1xf32> to vector<4x1xf32>
    %c11_481 = arith.constant 11 : index
    %c0_482 = arith.constant 0 : index
    %c0_483 = arith.constant 0 : index
    %1283 = vector.load %arg7[%c11_481, %c0_482, %c0_483] : memref<12x16x4xf32, #tpu.memory_space<vmem>>, vector<1x16x4xf32>
    %1284 = vector.shape_cast %1283 : vector<1x16x4xf32> to vector<16x4xf32>
    %1285 = vector.broadcast %1272 : vector<16x1xf32> to vector<16x135xf32>
    %1286 = arith.mulf %1270, %1285 : vector<16x135xf32>
    %1287 = vector.broadcast %1274 : vector<16x1xf32> to vector<16x135xf32>
    %1288 = arith.addf %1286, %1287 : vector<16x135xf32>
    %cst_484 = arith.constant 0.000000e+00 : f32
    %1289 = vector.broadcast %cst_484 : f32 to vector<16x135xf32>
    %1290 = arith.maximumf %1288, %1289 : vector<16x135xf32>
    %cst_485 = arith.constant dense<0.000000e+00> : vector<8x135xf32>
    %1291 = tpu.matmul %1276, %1290, %cst_485 {dimension_numbers = #tpu.dot_dimension_numbers<[1], [0], [0], [1], [0, 0, 1, 1], [], []>} : vector<8x16xf32>, vector<16x135xf32>, vector<8x135xf32> -> vector<8x135xf32>
    %1292 = vector.broadcast %1278 : vector<8x1xf32> to vector<8x135xf32>
    %1293 = arith.addf %1291, %1292 : vector<8x135xf32>
    %cst_486 = arith.constant 0.000000e+00 : f32
    %1294 = vector.broadcast %cst_486 : f32 to vector<8x135xf32>
    %1295 = arith.maximumf %1293, %1294 : vector<8x135xf32>
    %cst_487 = arith.constant 0.000000e+00 : f32
    %1296 = vector.broadcast %cst_487 : f32 to vector<8x16xf32>
    %1297 = vector.extract_strided_slice %1295 {offsets = [0, 0], sizes = [8, 119], strides = [1, 1]} : vector<8x135xf32> to vector<8x119xf32>
    %1298 = tpu.concatenate %1296, %1297 in 1 : vector<8x16xf32>, vector<8x119xf32> -> vector<8x135xf32>
    %1299 = vector.extract_strided_slice %2 {offsets = [0, 0], sizes = [1, 135], strides = [1, 1]} : vector<9x135xf32> to vector<1x135xf32>
    %1300 = vector.broadcast %1299 : vector<1x135xf32> to vector<8x135xf32>
    %1301 = arith.mulf %1298, %1300 : vector<8x135xf32>
    %cst_488 = arith.constant 0.000000e+00 : f32
    %1302 = vector.broadcast %cst_488 : f32 to vector<8x15xf32>
    %1303 = vector.extract_strided_slice %1295 {offsets = [0, 0], sizes = [8, 120], strides = [1, 1]} : vector<8x135xf32> to vector<8x120xf32>
    %1304 = tpu.concatenate %1302, %1303 in 1 : vector<8x15xf32>, vector<8x120xf32> -> vector<8x135xf32>
    %1305 = vector.extract_strided_slice %2 {offsets = [1, 0], sizes = [1, 135], strides = [1, 1]} : vector<9x135xf32> to vector<1x135xf32>
    %1306 = vector.broadcast %1305 : vector<1x135xf32> to vector<8x135xf32>
    %1307 = arith.mulf %1304, %1306 : vector<8x135xf32>
    %cst_489 = arith.constant 0.000000e+00 : f32
    %1308 = vector.broadcast %cst_489 : f32 to vector<8x14xf32>
    %1309 = vector.extract_strided_slice %1295 {offsets = [0, 0], sizes = [8, 121], strides = [1, 1]} : vector<8x135xf32> to vector<8x121xf32>
    %1310 = tpu.concatenate %1308, %1309 in 1 : vector<8x14xf32>, vector<8x121xf32> -> vector<8x135xf32>
    %1311 = vector.extract_strided_slice %2 {offsets = [2, 0], sizes = [1, 135], strides = [1, 1]} : vector<9x135xf32> to vector<1x135xf32>
    %1312 = vector.broadcast %1311 : vector<1x135xf32> to vector<8x135xf32>
    %1313 = arith.mulf %1310, %1312 : vector<8x135xf32>
    %cst_490 = arith.constant 0.000000e+00 : f32
    %1314 = vector.broadcast %cst_490 : f32 to vector<8x1xf32>
    %1315 = vector.extract_strided_slice %1295 {offsets = [0, 0], sizes = [8, 134], strides = [1, 1]} : vector<8x135xf32> to vector<8x134xf32>
    %1316 = tpu.concatenate %1314, %1315 in 1 : vector<8x1xf32>, vector<8x134xf32> -> vector<8x135xf32>
    %1317 = vector.extract_strided_slice %2 {offsets = [3, 0], sizes = [1, 135], strides = [1, 1]} : vector<9x135xf32> to vector<1x135xf32>
    %1318 = vector.broadcast %1317 : vector<1x135xf32> to vector<8x135xf32>
    %1319 = arith.mulf %1316, %1318 : vector<8x135xf32>
    %1320 = vector.extract_strided_slice %2 {offsets = [4, 0], sizes = [1, 135], strides = [1, 1]} : vector<9x135xf32> to vector<1x135xf32>
    %1321 = vector.broadcast %1320 : vector<1x135xf32> to vector<8x135xf32>
    %1322 = arith.mulf %1295, %1321 : vector<8x135xf32>
    %cst_491 = arith.constant 0.000000e+00 : f32
    %1323 = vector.broadcast %cst_491 : f32 to vector<8x1xf32>
    %1324 = vector.extract_strided_slice %1295 {offsets = [0, 1], sizes = [8, 134], strides = [1, 1]} : vector<8x135xf32> to vector<8x134xf32>
    %1325 = tpu.concatenate %1324, %1323 in 1 : vector<8x134xf32>, vector<8x1xf32> -> vector<8x135xf32>
    %1326 = vector.extract_strided_slice %2 {offsets = [5, 0], sizes = [1, 135], strides = [1, 1]} : vector<9x135xf32> to vector<1x135xf32>
    %1327 = vector.broadcast %1326 : vector<1x135xf32> to vector<8x135xf32>
    %1328 = arith.mulf %1325, %1327 : vector<8x135xf32>
    %cst_492 = arith.constant 0.000000e+00 : f32
    %1329 = vector.broadcast %cst_492 : f32 to vector<8x14xf32>
    %1330 = vector.extract_strided_slice %1295 {offsets = [0, 14], sizes = [8, 121], strides = [1, 1]} : vector<8x135xf32> to vector<8x121xf32>
    %1331 = tpu.concatenate %1330, %1329 in 1 : vector<8x121xf32>, vector<8x14xf32> -> vector<8x135xf32>
    %1332 = vector.extract_strided_slice %2 {offsets = [6, 0], sizes = [1, 135], strides = [1, 1]} : vector<9x135xf32> to vector<1x135xf32>
    %1333 = vector.broadcast %1332 : vector<1x135xf32> to vector<8x135xf32>
    %1334 = arith.mulf %1331, %1333 : vector<8x135xf32>
    %cst_493 = arith.constant 0.000000e+00 : f32
    %1335 = vector.broadcast %cst_493 : f32 to vector<8x15xf32>
    %1336 = vector.extract_strided_slice %1295 {offsets = [0, 15], sizes = [8, 120], strides = [1, 1]} : vector<8x135xf32> to vector<8x120xf32>
    %1337 = tpu.concatenate %1336, %1335 in 1 : vector<8x120xf32>, vector<8x15xf32> -> vector<8x135xf32>
    %1338 = vector.extract_strided_slice %2 {offsets = [7, 0], sizes = [1, 135], strides = [1, 1]} : vector<9x135xf32> to vector<1x135xf32>
    %1339 = vector.broadcast %1338 : vector<1x135xf32> to vector<8x135xf32>
    %1340 = arith.mulf %1337, %1339 : vector<8x135xf32>
    %cst_494 = arith.constant 0.000000e+00 : f32
    %1341 = vector.broadcast %cst_494 : f32 to vector<8x16xf32>
    %1342 = vector.extract_strided_slice %1295 {offsets = [0, 16], sizes = [8, 119], strides = [1, 1]} : vector<8x135xf32> to vector<8x119xf32>
    %1343 = tpu.concatenate %1342, %1341 in 1 : vector<8x119xf32>, vector<8x16xf32> -> vector<8x135xf32>
    %1344 = vector.extract_strided_slice %2 {offsets = [8, 0], sizes = [1, 135], strides = [1, 1]} : vector<9x135xf32> to vector<1x135xf32>
    %1345 = vector.broadcast %1344 : vector<1x135xf32> to vector<8x135xf32>
    %1346 = arith.mulf %1343, %1345 : vector<8x135xf32>
    %1347 = tpu.concatenate %1301, %1307, %1313, %1319, %1322, %1328, %1334, %1340, %1346 in 0 : vector<8x135xf32>, vector<8x135xf32>, vector<8x135xf32>, vector<8x135xf32>, vector<8x135xf32>, vector<8x135xf32>, vector<8x135xf32>, vector<8x135xf32>, vector<8x135xf32> -> vector<72x135xf32>
    %cst_495 = arith.constant dense<0.000000e+00> : vector<4x135xf32>
    %1348 = tpu.matmul %1280, %1347, %cst_495 {dimension_numbers = #tpu.dot_dimension_numbers<[1], [0], [0], [1], [0, 0, 1, 1], [], []>} : vector<4x72xf32>, vector<72x135xf32>, vector<4x135xf32> -> vector<4x135xf32>
    %1349 = vector.broadcast %1282 : vector<4x1xf32> to vector<4x135xf32>
    %1350 = arith.addf %1348, %1349 : vector<4x135xf32>
    %cst_496 = arith.constant 0.000000e+00 : f32
    %1351 = vector.broadcast %cst_496 : f32 to vector<4x135xf32>
    %1352 = arith.maximumf %1350, %1351 : vector<4x135xf32>
    %cst_497 = arith.constant dense<0.000000e+00> : vector<16x135xf32>
    %1353 = tpu.matmul %1284, %1352, %cst_497 {dimension_numbers = #tpu.dot_dimension_numbers<[1], [0], [0], [1], [0, 0, 1, 1], [], []>} : vector<16x4xf32>, vector<4x135xf32>, vector<16x135xf32> -> vector<16x135xf32>
    %1354 = arith.addf %1353, %1270 : vector<16x135xf32>
    %c0_498 = arith.constant 0 : index
    %c0_499 = arith.constant 0 : index
    %c0_500 = arith.constant 0 : index
    %1355 = vector.load %arg20[%c0_498, %c0_499, %c0_500] : memref<1x16x135xf32, #tpu.memory_space<vmem>>, vector<1x16x135xf32>
    %1356 = vector.shape_cast %1355 : vector<1x16x135xf32> to vector<16x135xf32>
    %1357 = vector.shape_cast %1354 : vector<16x135xf32> to vector<1x16x135xf32>
    tpu.vector_store %arg20[%c0_498, %c0_499, %c0_500], %1357 {strides = array<i32>} : memref<1x16x135xf32, #tpu.memory_space<vmem>>, vector<1x16x135xf32>,
    return
  }
  func.func @transform_0(%arg0: i32) -> (i32, i32, i32) {
    %c0_i32 = arith.constant 0 : i32
    %c0_i32_0 = arith.constant 0 : i32
    %c0_i32_1 = arith.constant 0 : i32
    return %arg0, %c0_i32, %c0_i32_0 : i32, i32, i32
  }
  func.func @transform_1(%arg0: i32) -> (i32, i32, i32) {
    %c0_i32 = arith.constant 0 : i32
    %c0_i32_0 = arith.constant 0 : i32
    %c0_i32_1 = arith.constant 0 : i32
    %c0_i32_2 = arith.constant 0 : i32
    return %c0_i32, %c0_i32_0, %c0_i32_1 : i32, i32, i32
  }
  func.func @transform_2(%arg0: i32) -> (i32, i32, i32) {
    %c0_i32 = arith.constant 0 : i32
    %c0_i32_0 = arith.constant 0 : i32
    %c0_i32_1 = arith.constant 0 : i32
    %c0_i32_2 = arith.constant 0 : i32
    return %c0_i32, %c0_i32_0, %c0_i32_1 : i32, i32, i32
  }
  func.func @transform_3(%arg0: i32) -> (i32, i32, i32) {
    %c0_i32 = arith.constant 0 : i32
    %c0_i32_0 = arith.constant 0 : i32
    %c0_i32_1 = arith.constant 0 : i32
    %c0_i32_2 = arith.constant 0 : i32
    return %c0_i32, %c0_i32_0, %c0_i32_1 : i32, i32, i32
  }
  func.func @transform_4(%arg0: i32) -> (i32, i32, i32) {
    %c0_i32 = arith.constant 0 : i32
    %c0_i32_0 = arith.constant 0 : i32
    %c0_i32_1 = arith.constant 0 : i32
    %c0_i32_2 = arith.constant 0 : i32
    return %c0_i32, %c0_i32_0, %c0_i32_1 : i32, i32, i32
  }
  func.func @transform_5(%arg0: i32) -> (i32, i32, i32) {
    %c0_i32 = arith.constant 0 : i32
    %c0_i32_0 = arith.constant 0 : i32
    %c0_i32_1 = arith.constant 0 : i32
    %c0_i32_2 = arith.constant 0 : i32
    return %c0_i32, %c0_i32_0, %c0_i32_1 : i32, i32, i32
  }
  func.func @transform_6(%arg0: i32) -> (i32, i32, i32) {
    %c0_i32 = arith.constant 0 : i32
    %c0_i32_0 = arith.constant 0 : i32
    %c0_i32_1 = arith.constant 0 : i32
    %c0_i32_2 = arith.constant 0 : i32
    return %c0_i32, %c0_i32_0, %c0_i32_1 : i32, i32, i32
  }
  func.func @transform_7(%arg0: i32) -> (i32, i32, i32) {
    %c0_i32 = arith.constant 0 : i32
    %c0_i32_0 = arith.constant 0 : i32
    %c0_i32_1 = arith.constant 0 : i32
    %c0_i32_2 = arith.constant 0 : i32
    return %c0_i32, %c0_i32_0, %c0_i32_1 : i32, i32, i32
  }
  func.func @transform_8(%arg0: i32) -> (i32, i32, i32) {
    %c0_i32 = arith.constant 0 : i32
    %c0_i32_0 = arith.constant 0 : i32
    %c0_i32_1 = arith.constant 0 : i32
    %c0_i32_2 = arith.constant 0 : i32
    return %c0_i32, %c0_i32_0, %c0_i32_1 : i32, i32, i32
  }
  func.func @transform_9(%arg0: i32) -> (i32, i32) {
    %c0_i32 = arith.constant 0 : i32
    %c0_i32_0 = arith.constant 0 : i32
    %c0_i32_1 = arith.constant 0 : i32
    return %c0_i32, %c0_i32_0 : i32, i32
  }
  func.func @transform_10(%arg0: i32) -> (i32, i32) {
    %c0_i32 = arith.constant 0 : i32
    %c0_i32_0 = arith.constant 0 : i32
    %c0_i32_1 = arith.constant 0 : i32
    return %c0_i32, %c0_i32_0 : i32, i32
  }
  func.func @transform_11(%arg0: i32) -> (i32, i32) {
    %c0_i32 = arith.constant 0 : i32
    %c0_i32_0 = arith.constant 0 : i32
    %c0_i32_1 = arith.constant 0 : i32
    return %c0_i32, %c0_i32_0 : i32, i32
  }
  func.func @transform_12(%arg0: i32) -> (i32, i32) {
    %c0_i32 = arith.constant 0 : i32
    %c0_i32_0 = arith.constant 0 : i32
    %c0_i32_1 = arith.constant 0 : i32
    return %c0_i32, %c0_i32_0 : i32, i32
  }
  func.func @transform_13(%arg0: i32) -> (i32, i32) {
    %c0_i32 = arith.constant 0 : i32
    %c0_i32_0 = arith.constant 0 : i32
    %c0_i32_1 = arith.constant 0 : i32
    return %c0_i32, %c0_i32_0 : i32, i32
  }
  func.func @transform_14(%arg0: i32) -> (i32, i32) {
    %c0_i32 = arith.constant 0 : i32
    %c0_i32_0 = arith.constant 0 : i32
    %c0_i32_1 = arith.constant 0 : i32
    return %c0_i32, %c0_i32_0 : i32, i32
  }
  func.func @transform_15(%arg0: i32) -> (i32, i32) {
    %c0_i32 = arith.constant 0 : i32
    %c0_i32_0 = arith.constant 0 : i32
    %c0_i32_1 = arith.constant 0 : i32
    return %c0_i32, %c0_i32_0 : i32, i32
  }
  func.func @transform_16(%arg0: i32) -> (i32, i32) {
    %c0_i32 = arith.constant 0 : i32
    %c0_i32_0 = arith.constant 0 : i32
    %c0_i32_1 = arith.constant 0 : i32
    return %c0_i32, %c0_i32_0 : i32, i32
  }
  func.func @transform_17(%arg0: i32) -> (i32, i32) {
    %c0_i32 = arith.constant 0 : i32
    %c0_i32_0 = arith.constant 0 : i32
    %c0_i32_1 = arith.constant 0 : i32
    return %c0_i32, %c0_i32_0 : i32, i32
  }
  func.func @transform_18(%arg0: i32) -> (i32, i32) {
    %c0_i32 = arith.constant 0 : i32
    %c0_i32_0 = arith.constant 0 : i32
    %c0_i32_1 = arith.constant 0 : i32
    return %c0_i32, %c0_i32_0 : i32, i32
  }
  func.func @transform_19(%arg0: i32) -> (i32, i32, i32) {
    %c0_i32 = arith.constant 0 : i32
    %c0_i32_0 = arith.constant 0 : i32
    %c0_i32_1 = arith.constant 0 : i32
    return %arg0, %c0_i32, %c0_i32_0 : i32, i32, i32
  }
}

</mosaic_0001>

<bundles_post_ra>
// kernel: attention_module_stage3.1
= control target key start
LH: loop header
LB: loop body
LE: loop exit
PB: predicated region body
PF: predicated region fallthrough
CT: control target
= control target key end

     0   :  { %s10493_s0 = inlined_call_operand.vmem [shape: f32[2,16,135], index: 0, kind: input, shape index: {}]   ;;  %s10494_s1 = inlined_call_operand.hbm [shape: f32[24,16,1], index: 1, kind: input, shape index: {}]   ;;  %s10495_s2 = inlined_call_operand.hbm [shape: f32[12,8,16], index: 2, kind: input, shape index: {}]   ;;  %s10496_s3 = inlined_call_operand.hbm [shape: f32[12,8,1], index: 3, kind: input, shape index: {}]   ;;  %s10497_s4 = inlined_call_operand.hbm [shape: f32[12,4,72], index: 4, kind: input, shape index: {}]   ;;  %s10498_s5 = inlined_call_operand.hbm [shape: f32[12,4,1], index: 5, kind: input, shape index: {}]   ;;  %s10499_s6 = inlined_call_operand.vmem [shape: f32[12,16,4], index: 6, kind: input, shape index: {}]   ;;  %s10500_s7 = inlined_call_operand.vmem [shape: f32[4,16,1], index: 7, kind: input, shape index: {}]   ;;  %s10501_s8 = inlined_call_operand.hbm [shape: f32[2,16,16], index: 8, kind: input, shape index: {}]   ;;  %s10502_s9 = inlined_call_operand.hbm [shape: f32[9,135], index: 9, kind: input, shape index: {}]   ;;  %s10503_s10 = inlined_call_operand.hbm [shape: f32[9,40], index: 10, kind: input, shape index: {}]   ;;  %s10504_s11 = inlined_call_operand.hbm [shape: f32[9,12], index: 11, kind: input, shape index: {}]   ;;  %s10505_s12 = inlined_call_operand.hbm [shape: f32[9,4], index: 12, kind: input, shape index: {}]   ;;  %s10506_s13 = inlined_call_operand.vmem [shape: f32[135,40], index: 13, kind: input, shape index: {}]   ;;  %s10507_s14 = inlined_call_operand.hbm [shape: f32[40,12], index: 14, kind: input, shape index: {}]   ;;  %s10508_s15 = inlined_call_operand.hbm [shape: f32[12,4], index: 15, kind: input, shape index: {}]   ;;  %s10509_s16 = inlined_call_operand.hbm [shape: f32[4,12], index: 16, kind: input, shape index: {}]   ;;  %s10510_s17 = inlined_call_operand.hbm [shape: f32[12,40], index: 17, kind: input, shape index: {}]   ;;  %s10511_s18 = inlined_call_operand.hbm [shape: f32[40,135], index: 18, kind: input, shape index: {}]   ;;  %s10512_s19 = inlined_call_operand.vmem [shape: f32[2,16,135], index: 19, kind: output, shape index: {}]  }
   0x1   :  { %10616 = sst [smem:[#allocation68_spill]] %s10493_s0 }
   0x2   :  { %10617 = sst [smem:[#allocation69_spill]] %s10494_s1 }
   0x3   :  { %10618 = sst [smem:[#allocation70_spill]] %s10495_s2 }
   0x4   :  { %10619 = sst [smem:[#allocation71_spill]] %s10496_s3 }
   0x5   :  { %10620 = sst [smem:[#allocation72_spill]] %s10497_s4 }
   0x6   :  { %10621 = sst [smem:[#allocation73_spill]] %s10499_s6 }
   0x7   :  { %10622 = sst [smem:[#allocation74_spill]] %s10500_s7 }
   0x8   :  { %10623 = sst [smem:[#allocation75_spill]] %s10501_s8 }
   0x9   :  { %10624 = sst [smem:[#allocation76_spill]] %s10506_s13 }
   0xa   :  { %10625 = sst [smem:[#allocation77_spill]] %s10512_s19 }
   0xb   :  { %24 = vsyncpa [#allocation3], 0 }
   0xc   :  { %25 = vsyncpa [#allocation5], 0 }
   0xd   :  { %26 = vsyncpa [#allocation8], 0 }
   0xe   :  { %27 = vsyncpa [#allocation11], 0 }
   0xf   :  { %28 = vsyncpa [#allocation14], 0 }
  0x10   :  { %29 = vsyncpa [#allocation17], 0 }
  0x11   :  { %30 = vsyncpa [#allocation20], 0 }
  0x12   :  { %31 = vsyncpa [#allocation23], 0  ;;  %s8418_s0 = smov 0  }
  0x13 LB: > { %10626 = sst [smem:[#allocation33_spill]] %s8268_s0  ;;  %s8424_s30 = sadd.s32 4294967295, %s8268_s0   ;;  %s8268_s0 = sphi %s8418_s0, %s37_s0  }
  0x14   : > { %p6740_p0 = scmp.ge.s32.totalorder %s8268_s0, 1  ;;  %p472_p1 = scmp.lt.s32.totalorder %s8268_s0, 3 }
  0x15   : > { %p10525_p2 = scmp.eq.s32.totalorder %s8424_s30, 0  ;;  %s8270_s21 = smov [#allocation4]  }
  0x16   : > { %p8429_p3 = pnand %p6740_p0, %p472_p1  ;;  %s497_s1 = sshll.u32 %s8270_s21, 4  ;;  %s8433_s1 = int_to_ptr.vmem [resolvable:$true] %s497_s1 }
  0x17   : > { %s8271_s22 = smov [#allocation7]   ;;  %s8272_s24 = smov [#allocation10]  }
  0x18   : > { %s10627_s20 = scalar_select %p8429_p3, 1, 0 }
  0x19   : > { %p7668_p4 = pneg %p8429_p3  ;;  %s523_s2 = sshll.u32 %s8271_s22, 4  ;;  %s8437_s2 = int_to_ptr.vmem [resolvable:$true] %s523_s2 }
  0x1a   : > { %s8445_s25 = sshll.u32 %s8272_s24, 4  ;;  %s10629_s27 = sld [smem:[#allocation70_spill]]  ;;  %s556_s25 = int_to_ptr.vmem [resolvable:$true] %s8445_s25 }
  0x1b   : > { %p8441_p5 = pnand %p10525_p2, %p7668_p4 }
  0x1d   : > { %p8455_p7 = pneg %p8441_p5 }
  0x20   : > { %s7810_s28 = scalar_lea.hbm %s10629_s27, 1536 }
  0x21   : > { %p7811_p6 = scmp.ne.s32.totalorder %s10629_s27, %s7810_s28  ;;  %p7817_p10 = scmp.lt.u32.totalorder %s7810_s28, %s10629_s27 }
  0x23   : > { %p7813_p8 = pnand %p8455_p7, %p7811_p6 }
  0x25   : > { %p7814_p9 = pneg %p7813_p8 }
  0x27   : > { %p7819_p11 = pnand %p7817_p10, %p7814_p9 }
  0x29   : > { %7822 = shalt.err (!%p7819_p11)
}
  0x2a   : > { %s7823_s3 = scalar_lea.vmem %s8433_s1, 1536  ;;  %p7831_p1 = scmp.lt.s32.totalorder %s8433_s1, %s8433_s1 }
  0x2b   : > { %p7824_p12 = scmp.ne.s32.totalorder %s8433_s1, %s7823_s3  ;;  %p7832_p4 = scmp.lt.s32.totalorder %s7823_s3, %s7823_s3 }
  0x2d   : > { %p7826_p13 = pnand %p7824_p12, %p8455_p7  ;;  %p7833_p6 = por %p7832_p4, %p7831_p1 }
  0x2f   : > { %p7827_p0 = pneg %p7826_p13 }
  0x31   : > { %p7834_p8 = pnand %p7833_p6, %p7827_p0 }
  0x33   : > { %7837 = shalt.err (!%p7834_p8)
}
  0x34   : > { %s10520_s26 = smov 128   ;;  %s10522_s0 = smov 8  }
  0x35   : > { %7674 = dma.hbm_to_vmem [thread:$0]  (!%p8441_p5), %s10629_s27, 1536, %s8433_s1, [#allocation5], %s10520_s26, %s10520_s26, %s10522_s0  }
  0x36   : > { %s10631_s4 = sld [smem:[#allocation72_spill]] }
  0x3c   : > { %s7838_s3 = scalar_lea.hbm %s10631_s4, 768 }
  0x3d   : > { %p7839_p9 = scmp.ne.s32.totalorder %s10631_s4, %s7838_s3  ;;  %p7845_p12 = scmp.lt.u32.totalorder %s7838_s3, %s10631_s4 }
  0x3f   : > { %p7841_p10 = pnand %p7839_p9, %p8455_p7 }
  0x41   : > { %p7842_p11 = pneg %p7841_p10 }
  0x43   : > { %p7847_p13 = pnand %p7845_p12, %p7842_p11 }
  0x45   : > { %7850 = shalt.err (!%p7847_p13)
}
  0x46   : > { %s7851_s1 = scalar_lea.vmem %s8437_s2, 768  ;;  %p7859_p6 = scmp.lt.s32.totalorder %s8437_s2, %s8437_s2 }
  0x47   : > { %p7852_p0 = scmp.ne.s32.totalorder %s8437_s2, %s7851_s1  ;;  %p7860_p8 = scmp.lt.s32.totalorder %s7851_s1, %s7851_s1 }
  0x49   : > { %p7854_p1 = pnand %p7852_p0, %p8455_p7  ;;  %p7861_p9 = por %p7860_p8, %p7859_p6 }
  0x4b   : > { %p7855_p4 = pneg %p7854_p1 }
  0x4d   : > { %p7862_p10 = pnand %p7861_p9, %p7855_p4 }
  0x4f   : > { %7865 = shalt.err (!%p7862_p10)
}
  0x50   : > { %s10527_s7 = smov 64   ;;  %s10528_s6 = smov 4  }
  0x51   : > { %7680 = dma.hbm_to_vmem [thread:$0]  (!%p8441_p5), %s10631_s4, 768, %s8437_s2, [#allocation8], %s10527_s7, %s10527_s7, %s10528_s6  }
  0x52   : > { %s8277_s28 = smov [#allocation13]   ;;  %s10632_s8 = sld [smem:[#allocation75_spill]] }
  0x53   : > { %s581_s29 = sshll.u32 %s8277_s28, 4  ;;  %s582_s29 = int_to_ptr.vmem [resolvable:$true] %s581_s29 }
  0x58   : > { %s7866_s3 = scalar_lea.hbm %s10632_s8, 512 }
  0x59   : > { %p7867_p11 = scmp.ne.s32.totalorder %s10632_s8, %s7866_s3  ;;  %p7873_p0 = scmp.lt.u32.totalorder %s7866_s3, %s10632_s8 }
  0x5b   : > { %p7869_p12 = pnand %p7867_p11, %p8455_p7 }
  0x5d   : > { %p7870_p13 = pneg %p7869_p12 }
  0x5f   : > { %p7875_p1 = pnand %p7873_p0, %p7870_p13 }
  0x61   : > { %7878 = shalt.err (!%p7875_p1)
}
  0x62   : > { %s7879_s2 = scalar_lea.vmem %s556_s25, 512  ;;  %p7887_p9 = scmp.lt.s32.totalorder %s556_s25, %s556_s25 }
  0x63   : > { %p7880_p4 = scmp.ne.s32.totalorder %s556_s25, %s7879_s2  ;;  %p7888_p10 = scmp.lt.s32.totalorder %s7879_s2, %s7879_s2 }
  0x65   : > { %p7882_p6 = pnand %p7880_p4, %p8455_p7  ;;  %p7889_p2 = por %p7888_p10, %p7887_p9 }
  0x67   : > { %p7883_p8 = pneg %p7882_p6 }
  0x69   : > { %p7890_p3 = pnand %p7889_p2, %p7883_p8 }
  0x6b   : > { %7893 = shalt.err (!%p7890_p3)
}
  0x6c   : > { %s10633_s26 = smov 8   ;;  %s10634_s13 = smov 128  }
  0x6d   : > { %7686 = dma.hbm_to_vmem [thread:$0]  (!%p8441_p5), %s10632_s8, 512, %s556_s25, [#allocation11], %s10634_s13, %s10634_s13, %s10633_s26  }
  0x6e   : > { %s7894_s21 = scalar_lea.hbm %s10503_s10, 256 }
  0x6f   : > { %p7895_p2 = scmp.ne.s32.totalorder %s10503_s10, %s7894_s21  ;;  %p7901_p12 = scmp.lt.u32.totalorder %s7894_s21, %s10503_s10 }
  0x71   : > { %p7897_p3 = pnand %p7895_p2, %p8455_p7 }
  0x73   : > { %p7898_p11 = pneg %p7897_p3 }
  0x75   : > { %p7903_p13 = pnand %p7901_p12, %p7898_p11 }
  0x77   : > { %7906 = shalt.err (!%p7903_p13)
}
  0x78   : > { %s7907_s27 = scalar_lea.vmem %s582_s29, 256  ;;  %p7915_p6 = scmp.lt.s32.totalorder %s582_s29, %s582_s29 }
  0x79   : > { %p7908_p0 = scmp.ne.s32.totalorder %s582_s29, %s7907_s27  ;;  %p7916_p8 = scmp.lt.s32.totalorder %s7907_s27, %s7907_s27 }
  0x7b   : > { %p7910_p1 = pnand %p7908_p0, %p8455_p7  ;;  %p7917_p9 = por %p7916_p8, %p7915_p6 }
  0x7d   : > { %p7911_p4 = pneg %p7910_p1 }
  0x7f   : > { %p7918_p10 = pnand %p7917_p9, %p7911_p4 }
  0x81   : > { %7921 = shalt.err (!%p7918_p10)
}
  0x82   : > { %7692 = dma.hbm_to_vmem [thread:$0]  (!%p8441_p5), %s10503_s10, 256, %s582_s29, [#allocation14], %s10634_s13, %s10634_s13, %s10633_s26  }
  0x83   : > { %s8278_s19 = smov [#allocation16]   ;;  %s8279_s21 = smov [#allocation19]  }
  0x84   : > { %s607_s28 = sshll.u32 %s8278_s19, 4  ;;  %s636_s24 = sshll.u32 %s8279_s21, 4  ;;  %s608_s28 = int_to_ptr.vmem [resolvable:$true] %s607_s28  ;;  %s637_s24 = int_to_ptr.vmem [resolvable:$true] %s636_s24 }
  0x85   : > { %s7922_s2 = scalar_lea.hbm %s10505_s12, 256 }
  0x86   : > { %p7923_p2 = scmp.ne.s32.totalorder %s10505_s12, %s7922_s2  ;;  %p7929_p12 = scmp.lt.u32.totalorder %s7922_s2, %s10505_s12 }
  0x88   : > { %p7925_p3 = pnand %p7923_p2, %p8455_p7 }
  0x8a   : > { %p7926_p11 = pneg %p7925_p3 }
  0x8c   : > { %p7931_p13 = pnand %p7929_p12, %p7926_p11 }
  0x8e   : > { %7934 = shalt.err (!%p7931_p13)
}
  0x8f   : > { %s7935_s29 = scalar_lea.vmem %s608_s28, 256  ;;  %p7943_p6 = scmp.lt.s32.totalorder %s608_s28, %s608_s28 }
  0x90   : > { %p7936_p0 = scmp.ne.s32.totalorder %s608_s28, %s7935_s29  ;;  %p7944_p8 = scmp.lt.s32.totalorder %s7935_s29, %s7935_s29 }
  0x92   : > { %p7938_p1 = pnand %p7936_p0, %p8455_p7  ;;  %p7945_p9 = por %p7944_p8, %p7943_p6 }
  0x94   : > { %p7939_p4 = pneg %p7938_p1 }
  0x96   : > { %p7946_p10 = pnand %p7945_p9, %p7939_p4 }
  0x98   : > { %7949 = shalt.err (!%p7946_p10)
}
  0x99   : > { %7698 = dma.hbm_to_vmem [thread:$0]  (!%p8441_p5), %s10505_s12, 256, %s608_s28, [#allocation17], %s10634_s13, %s10634_s13, %s10633_s26  }
  0x9a   : > { %s7950_s21 = scalar_lea.hbm %s10508_s15, 256 }
  0x9b   : > { %p7951_p2 = scmp.ne.s32.totalorder %s10508_s15, %s7950_s21  ;;  %p7957_p12 = scmp.lt.u32.totalorder %s7950_s21, %s10508_s15 }
  0x9d   : > { %p7953_p3 = pnand %p7951_p2, %p8455_p7 }
  0x9f   : > { %p7954_p11 = pneg %p7953_p3 }
  0xa1   : > { %p7959_p13 = pnand %p7957_p12, %p7954_p11 }
  0xa3   : > { %7962 = shalt.err (!%p7959_p13)
}
  0xa4   : > { %s7963_s25 = scalar_lea.vmem %s637_s24, 256  ;;  %p7971_p6 = scmp.lt.s32.totalorder %s637_s24, %s637_s24 }
  0xa5   : > { %p7964_p0 = scmp.ne.s32.totalorder %s637_s24, %s7963_s25  ;;  %p7972_p8 = scmp.lt.s32.totalorder %s7963_s25, %s7963_s25 }
  0xa7   : > { %p7966_p1 = pnand %p7964_p0, %p8455_p7  ;;  %p7973_p9 = por %p7972_p8, %p7971_p6 }
  0xa9   : > { %p7967_p4 = pneg %p7966_p1 }
  0xab   : > { %p7974_p10 = pnand %p7973_p9, %p7967_p4 }
  0xad   : > { %7977 = shalt.err (!%p7974_p10)
}
  0xae   : > { %7704 = dma.hbm_to_vmem [thread:$0]  (!%p8441_p5), %s10508_s15, 256, %s637_s24, [#allocation20], %s10634_s13, %s10634_s13, %s10633_s26  }
  0xaf   : > { %s8280_s7 = smov [#allocation22]   ;;  %s8281_s0 = smov [#allocation2]  }
  0xb0   : > { %s660_s6 = sshll.u32 %s8280_s7, 4  ;;  %s484_s19 = sshll.u32 %s8281_s0, 4  ;;  %s661_s6 = int_to_ptr.vmem [resolvable:$true] %s660_s6  ;;  %s485_s19 = int_to_ptr.vmem [resolvable:$true] %s484_s19 }
  0xb1   : > { %s7978_s1 = scalar_lea.hbm %s10510_s17, 256 }
  0xb2   : > { %p7979_p2 = scmp.ne.s32.totalorder %s10510_s17, %s7978_s1  ;;  %p7985_p12 = scmp.lt.u32.totalorder %s7978_s1, %s10510_s17 }
  0xb4   : > { %p7981_p3 = pnand %p7979_p2, %p8455_p7 }
  0xb6   : > { %p7982_p11 = pneg %p7981_p3 }
  0xb8   : > { %p7987_p13 = pnand %p7985_p12, %p7982_p11 }
  0xba   : > { %7990 = shalt.err (!%p7987_p13)
}
  0xbb   : > { %s7991_s24 = scalar_lea.vmem %s661_s6, 256  ;;  %p7999_p6 = scmp.lt.s32.totalorder %s661_s6, %s661_s6 }
  0xbc   : > { %p7992_p0 = scmp.ne.s32.totalorder %s661_s6, %s7991_s24  ;;  %p8000_p8 = scmp.lt.s32.totalorder %s7991_s24, %s7991_s24 }
  0xbe   : > { %p7994_p1 = pnand %p7992_p0, %p8455_p7  ;;  %p8001_p9 = por %p8000_p8, %p7999_p6 }
  0xc0   : > { %p7995_p4 = pneg %p7994_p1 }
  0xc2   : > { %p8002_p10 = pnand %p8001_p9, %p7995_p4 }
  0xc4   : > { %8005 = shalt.err (!%p8002_p10)
}
  0xc5   : > { %7710 = dma.hbm_to_vmem [thread:$0]  (!%p8441_p5), %s10510_s17, 256, %s661_s6, [#allocation23], %s10634_s13, %s10634_s13, %s10633_s26  }
  0xc6   : > { %s10635_s3 = sld [smem:[#allocation69_spill]] }
  0xcc   : > { %s8006_s1 = scalar_lea.hbm %s10635_s3, 6144 }
  0xcd   : > { %p8007_p2 = scmp.ne.s32.totalorder %s10635_s3, %s8006_s1  ;;  %p8013_p12 = scmp.lt.u32.totalorder %s8006_s1, %s10635_s3 }
  0xcf   : > { %p8009_p3 = pnand %p8007_p2, %p8455_p7 }
  0xd1   : > { %p8010_p11 = pneg %p8009_p3 }
  0xd3   : > { %p8015_p13 = pnand %p8013_p12, %p8010_p11 }
  0xd5   : > { %8018 = shalt.err (!%p8015_p13)
}
  0xd6   : > { %s8019_s24 = scalar_lea.vmem %s485_s19, 6144  ;;  %p8027_p6 = scmp.lt.s32.totalorder %s485_s19, %s485_s19 }
  0xd7   : > { %p8020_p0 = scmp.ne.s32.totalorder %s485_s19, %s8019_s24  ;;  %p8028_p8 = scmp.lt.s32.totalorder %s8019_s24, %s8019_s24 }
  0xd9   : > { %p8022_p1 = pnand %p8020_p0, %p8455_p7  ;;  %p8029_p9 = por %p8028_p8, %p8027_p6 }
  0xdb   : > { %p8023_p4 = pneg %p8022_p1 }
  0xdd   : > { %p8030_p10 = pnand %p8029_p9, %p8023_p4 }
  0xdf   : > { %8033 = shalt.err (!%p8030_p10)
}
  0xe0   : > { %7671 = dma.hbm_to_vmem [thread:$0]  (!%p8441_p5), %s10635_s3, 6144, %s485_s19, [#allocation3], %s10634_s13, %s10634_s13, %s10633_s26  }
  0xe1   : > { %s8282_s7 = smov [#allocation6]   ;;  %s8283_s21 = smov [#allocation9]  }
  0xe2   : > { %s510_s0 = sshll.u32 %s8282_s7, 4  ;;  %s536_s1 = sshll.u32 %s8283_s21, 4  ;;  %s511_s0 = int_to_ptr.vmem [resolvable:$true] %s510_s0  ;;  %s537_s1 = int_to_ptr.vmem [resolvable:$true] %s536_s1 }
  0xe3   : > { %s10636_s25 = sld [smem:[#allocation71_spill]] }
  0xe9   : > { %s8034_s28 = scalar_lea.hbm %s10636_s25, 1536 }
  0xea   : > { %p8035_p2 = scmp.ne.s32.totalorder %s10636_s25, %s8034_s28  ;;  %p8041_p12 = scmp.lt.u32.totalorder %s8034_s28, %s10636_s25 }
  0xec   : > { %p8037_p3 = pnand %p8035_p2, %p8455_p7 }
  0xee   : > { %p8038_p11 = pneg %p8037_p3 }
  0xf0   : > { %p8043_p13 = pnand %p8041_p12, %p8038_p11 }
  0xf2   : > { %8046 = shalt.err (!%p8043_p13)
}
  0xf3   : > { %s8047_s19 = scalar_lea.vmem %s511_s0, 1536  ;;  %p8055_p6 = scmp.lt.s32.totalorder %s511_s0, %s511_s0 }
  0xf4   : > { %p8048_p0 = scmp.ne.s32.totalorder %s511_s0, %s8047_s19  ;;  %p8056_p8 = scmp.lt.s32.totalorder %s8047_s19, %s8047_s19 }
  0xf6   : > { %p8050_p1 = pnand %p8048_p0, %p8455_p7  ;;  %p8057_p9 = por %p8056_p8, %p8055_p6 }
  0xf8   : > { %p8051_p4 = pneg %p8050_p1 }
  0xfa   : > { %p8058_p10 = pnand %p8057_p9, %p8051_p4 }
  0xfc   : > { %8061 = shalt.err (!%p8058_p10)
}
  0xfd   : > { %7677 = dma.hbm_to_vmem [thread:$0]  (!%p8441_p5), %s10636_s25, 1536, %s511_s0, [#allocation5], %s10634_s13, %s10634_s13, %s10633_s26  }
  0xfe   : > { %s8062_s21 = scalar_lea.hbm %s10498_s5, 768 }
  0xff   : > { %p8063_p2 = scmp.ne.s32.totalorder %s10498_s5, %s8062_s21  ;;  %p8069_p12 = scmp.lt.u32.totalorder %s8062_s21, %s10498_s5 }
 0x101   : > { %p8065_p3 = pnand %p8063_p2, %p8455_p7 }
 0x103   : > { %p8066_p11 = pneg %p8065_p3 }
 0x105   : > { %p8071_p13 = pnand %p8069_p12, %p8066_p11 }
 0x107   : > { %8074 = shalt.err (!%p8071_p13)
}
 0x108   : > { %s8075_s6 = scalar_lea.vmem %s537_s1, 768  ;;  %p8083_p6 = scmp.lt.s32.totalorder %s537_s1, %s537_s1 }
 0x109   : > { %p8076_p0 = scmp.ne.s32.totalorder %s537_s1, %s8075_s6  ;;  %p8084_p8 = scmp.lt.s32.totalorder %s8075_s6, %s8075_s6 }
 0x10b   : > { %p8078_p1 = pnand %p8076_p0, %p8455_p7  ;;  %p8085_p9 = por %p8084_p8, %p8083_p6 }
 0x10d   : > { %p8079_p4 = pneg %p8078_p1 }
 0x10f   : > { %p8086_p10 = pnand %p8085_p9, %p8079_p4 }
 0x111   : > { %8089 = shalt.err (!%p8086_p10)
}
 0x112   : > { %s10637_s0 = smov 4   ;;  %s10638_s19 = smov 64  }
 0x113   : > { %7683 = dma.hbm_to_vmem [thread:$0]  (!%p8441_p5), %s10498_s5, 768, %s537_s1, [#allocation8], %s10638_s19, %s10638_s19, %s10637_s0  }
 0x114   : > { %s8284_s29 = smov [#allocation12]   ;;  %s8090_s27 = scalar_lea.hbm %s10502_s9, 512 }
 0x115   : > { %s568_s7 = sshll.u32 %s8284_s29, 4  ;;  %p8091_p2 = scmp.ne.s32.totalorder %s10502_s9, %s8090_s27  ;;  %s569_s7 = int_to_ptr.vmem [resolvable:$true] %s568_s7 }
 0x116   : > { %p8097_p12 = scmp.lt.u32.totalorder %s8090_s27, %s10502_s9 }
 0x117   : > { %p8093_p3 = pnand %p8091_p2, %p8455_p7 }
 0x119   : > { %p8094_p11 = pneg %p8093_p3 }
 0x11b   : > { %p8099_p13 = pnand %p8097_p12, %p8094_p11 }
 0x11d   : > { %8102 = shalt.err (!%p8099_p13)
}
 0x11e   : > { %s8103_s1 = scalar_lea.vmem %s569_s7, 512  ;;  %p8111_p6 = scmp.lt.s32.totalorder %s569_s7, %s569_s7 }
 0x11f   : > { %p8104_p0 = scmp.ne.s32.totalorder %s569_s7, %s8103_s1  ;;  %p8112_p8 = scmp.lt.s32.totalorder %s8103_s1, %s8103_s1 }
 0x121   : > { %p8106_p1 = pnand %p8104_p0, %p8455_p7  ;;  %p8113_p9 = por %p8112_p8, %p8111_p6 }
 0x123   : > { %p8107_p4 = pneg %p8106_p1 }
 0x125   : > { %p8114_p10 = pnand %p8113_p9, %p8107_p4 }
 0x127   : > { %8117 = shalt.err (!%p8114_p10)
}
 0x128   : > { %s8285_s0 = smov 256   ;;  %s8286_s19 = smov 16  }
 0x129   : > { %7689 = dma.hbm_to_vmem [thread:$0]  (!%p8441_p5), %s10502_s9, 512, %s569_s7, [#allocation11], %s8285_s0, %s8285_s0, %s8286_s19  }
 0x12a   : > { %s8287_s8 = smov [#allocation15]   ;;  %s8288_s21 = smov [#allocation18]  }
 0x12b   : > { %s594_s29 = sshll.u32 %s8287_s8, 4  ;;  %s623_s2 = sshll.u32 %s8288_s21, 4  ;;  %s595_s29 = int_to_ptr.vmem [resolvable:$true] %s594_s29  ;;  %s8695_s2 = int_to_ptr.vmem [resolvable:$true] %s623_s2 }
 0x12c   : > { %s8118_s24 = scalar_lea.hbm %s10504_s11, 256 }
 0x12d   : > { %p8119_p2 = scmp.ne.s32.totalorder %s10504_s11, %s8118_s24  ;;  %p8125_p12 = scmp.lt.u32.totalorder %s8118_s24, %s10504_s11 }
 0x12f   : > { %p8121_p3 = pnand %p8119_p2, %p8455_p7 }
 0x131   : > { %p8122_p11 = pneg %p8121_p3 }
 0x133   : > { %p8127_p13 = pnand %p8125_p12, %p8122_p11 }
 0x135   : > { %8130 = shalt.err (!%p8127_p13)
}
 0x136   : > { %s8131_s4 = scalar_lea.vmem %s595_s29, 256  ;;  %p8139_p6 = scmp.lt.s32.totalorder %s595_s29, %s595_s29 }
 0x137   : > { %p8132_p0 = scmp.ne.s32.totalorder %s595_s29, %s8131_s4  ;;  %p8140_p8 = scmp.lt.s32.totalorder %s8131_s4, %s8131_s4 }
 0x139   : > { %p8134_p1 = pnand %p8132_p0, %p8455_p7  ;;  %p8141_p9 = por %p8140_p8, %p8139_p6 }
 0x13b   : > { %p8135_p4 = pneg %p8134_p1 }
 0x13d   : > { %p8142_p10 = pnand %p8141_p9, %p8135_p4 }
 0x13f   : > { %8145 = shalt.err (!%p8142_p10)
}
 0x140   : > { %7695 = dma.hbm_to_vmem [thread:$0]  (!%p8441_p5), %s10504_s11, 256, %s595_s29, [#allocation14], %s10634_s13, %s10634_s13, %s10633_s26  }
 0x141   : > { %s8146_s24 = scalar_lea.hbm %s10507_s14, 640 }
 0x142   : > { %p8147_p2 = scmp.ne.s32.totalorder %s10507_s14, %s8146_s24  ;;  %p8153_p12 = scmp.lt.u32.totalorder %s8146_s24, %s10507_s14 }
 0x144   : > { %p8149_p3 = pnand %p8147_p2, %p8455_p7 }
 0x146   : > { %p8150_p11 = pneg %p8149_p3 }
 0x148   : > { %p8155_p13 = pnand %p8153_p12, %p8150_p11 }
 0x14a   : > { %8158 = shalt.err (!%p8155_p13)
}
 0x14b   : > { %s8159_s29 = scalar_lea.vmem %s8695_s2, 640  ;;  %p8167_p6 = scmp.lt.s32.totalorder %s8695_s2, %s8695_s2 }
 0x14c   : > { %p8160_p0 = scmp.ne.s32.totalorder %s8695_s2, %s8159_s29  ;;  %p8168_p8 = scmp.lt.s32.totalorder %s8159_s29, %s8159_s29 }
 0x14e   : > { %p8162_p1 = pnand %p8160_p0, %p8455_p7  ;;  %p8169_p9 = por %p8168_p8, %p8167_p6 }
 0x150   : > { %p8163_p4 = pneg %p8162_p1 }
 0x152   : > { %p8170_p10 = pnand %p8169_p9, %p8163_p4 }
 0x154   : > { %8173 = shalt.err (!%p8170_p10)
}
 0x155   : > { %7701 = dma.hbm_to_vmem [thread:$0]  (!%p8441_p5), %s10507_s14, 640, %s8695_s2, [#allocation17], %s10634_s13, %s10634_s13, %s10633_s26  }
 0x156   : > { %s8289_s21 = smov [#allocation21]   ;;  %s8290_s28 = smov [#allocation24]  }
 0x157   : > { %s650_s27 = sshll.u32 %s8289_s21, 4  ;;  %s673_s24 = sshll.u32 %s8290_s28, 4  ;;  %s651_s27 = int_to_ptr.vmem [resolvable:$true] %s650_s27  ;;  %s8744_s24 = int_to_ptr.vmem [resolvable:$true] %s673_s24 }
 0x158   : > { %s8174_s3 = scalar_lea.hbm %s10509_s16, 64 }
 0x159   : > { %p8175_p2 = scmp.ne.s32.totalorder %s10509_s16, %s8174_s3  ;;  %p8181_p12 = scmp.lt.u32.totalorder %s8174_s3, %s10509_s16 }
 0x15b   : > { %p8177_p3 = pnand %p8175_p2, %p8455_p7 }
 0x15d   : > { %p8178_p11 = pneg %p8177_p3 }
 0x15f   : > { %p8183_p13 = pnand %p8181_p12, %p8178_p11 }
 0x161   : > { %8186 = shalt.err (!%p8183_p13)
}
 0x162   : > { %s8187_s13 = scalar_lea.vmem %s651_s27, 64  ;;  %p8195_p6 = scmp.lt.s32.totalorder %s651_s27, %s651_s27 }
 0x163   : > { %p8188_p0 = scmp.ne.s32.totalorder %s651_s27, %s8187_s13  ;;  %p8196_p8 = scmp.lt.s32.totalorder %s8187_s13, %s8187_s13 }
 0x165   : > { %p8190_p1 = pnand %p8188_p0, %p8455_p7  ;;  %p8197_p9 = por %p8196_p8, %p8195_p6 }
 0x167   : > { %p8191_p4 = pneg %p8190_p1 }
 0x169   : > { %p8198_p10 = pnand %p8197_p9, %p8191_p4 }
 0x16b   : > { %8201 = shalt.err (!%p8198_p10)
}
 0x16c   : > { %7707 = dma.hbm_to_vmem [thread:$0]  (!%p8441_p5), %s10509_s16, 64, %s651_s27, [#allocation20]  }
 0x16d   : > { %s8202_s6 = scalar_lea.hbm %s10511_s18, 1280 }
 0x16e   : > { %p8203_p2 = scmp.ne.s32.totalorder %s10511_s18, %s8202_s6  ;;  %p8209_p12 = scmp.lt.u32.totalorder %s8202_s6, %s10511_s18 }
 0x170   : > { %p8205_p3 = pnand %p8203_p2, %p8455_p7 }
 0x172   : > { %p8206_p11 = pneg %p8205_p3 }
 0x174   : > { %p8211_p13 = pnand %p8209_p12, %p8206_p11 }
 0x176   : > { %8214 = shalt.err (!%p8211_p13)
}
 0x177   : > { %s8215_s27 = scalar_lea.vmem %s8744_s24, 1280  ;;  %p8223_p6 = scmp.lt.s32.totalorder %s8744_s24, %s8744_s24 }
 0x178   : > { %p8216_p0 = scmp.ne.s32.totalorder %s8744_s24, %s8215_s27  ;;  %p8224_p8 = scmp.lt.s32.totalorder %s8215_s27, %s8215_s27 }
 0x17a   : > { %p8218_p1 = pnand %p8216_p0, %p8455_p7  ;;  %p8225_p9 = por %p8224_p8, %p8223_p6 }
 0x17c   : > { %p8219_p4 = pneg %p8218_p1 }
 0x17e   : > { %p8226_p10 = pnand %p8225_p9, %p8219_p4 }
 0x180   : > { %8229 = shalt.err (!%p8226_p10)
}
 0x181   : > { %7713 = dma.hbm_to_vmem [thread:$0]  (!%p8441_p5), %s10511_s18, 1280, %s8744_s24, [#allocation23], %s8285_s0, %s8285_s0, %s8286_s19  }
 0x182   : > { %p10639_p2 = scmp.ne.s32.totalorder %s10627_s20, 0 }
 0x184   : > { %697 = sbr.rel (%p10639_p2) target bundleno = 11350 (0x2c56), region = 96 }
 0x18b   : > { %p10640_p7 = scmp.eq.s32.totalorder %s8424_s30, 0 }
 0x18d   : > { %8235 = dma.done.wait (%p10640_p7), [#allocation3], 6144   ;;  %p10641_p3 = pmov %p10640_p7 }
 0x18f   : > { %8237 = vsyncadd (%p10641_p3), [#allocation3], 4294961152  ;;  %p10642_p11 = pmov %p10641_p3 }
 0x190   : > { %p10643_p12 = pmov %p10641_p3 }
 0x191   : > { %8239 = dma.done.wait (%p10642_p11), [#allocation5], 3072  }
 0x192   : > { %8241 = vsyncadd (%p10643_p12), [#allocation5], 4294964224  ;;  %p10644_p13 = pmov %p10641_p3 }
 0x193   : > { %p10645_p5 = pmov %p10641_p3 }
 0x194   : > { %8243 = dma.done.wait (%p10644_p13), [#allocation8], 1536  }
 0x195   : > { %8245 = vsyncadd (%p10645_p5), [#allocation8], 4294965760  ;;  %p10646_p0 = pmov %p10641_p3 }
 0x197   : > { %8247 = dma.done.wait (%p10646_p0), [#allocation11], 1024   ;;  %p10647_p1 = pmov %p10646_p0 }
 0x198   : > { %p10648_p4 = pmov %p10646_p0 }
 0x199   : > { %8249 = vsyncadd (%p10647_p1), [#allocation11], 4294966272 }
 0x19a   : > { %8251 = dma.done.wait (%p10648_p4), [#allocation14], 512   ;;  %p10649_p6 = pmov %p10646_p0 }
 0x19b   : > { %p10650_p8 = pmov %p10646_p0 }
 0x19c   : > { %8253 = vsyncadd (%p10649_p6), [#allocation14], 4294966784 }
 0x19d   : > { %8255 = dma.done.wait (%p10650_p8), [#allocation17], 896   ;;  %p10651_p9 = pmov %p10646_p0 }
 0x19e   : > { %p10652_p10 = pmov %p10646_p0 }
 0x19f   : > { %8257 = vsyncadd (%p10651_p9), [#allocation17], 4294966400 }
 0x1a0   : > { %8259 = dma.done.wait (%p10652_p10), [#allocation20], 320   ;;  %p10653_p2 = pmov %p10646_p0 }
 0x1a1   : > { %p10654_p7 = pmov %p10646_p0 }
 0x1a2   : > { %8261 = vsyncadd (%p10653_p2), [#allocation20], 4294966976 }
 0x1a3   : > { %8263 = dma.done.wait (%p10654_p7), [#allocation23], 1536   ;;  %p10655_p3 = pmov %p10646_p0 }
 0x1a4   : > { %v8291_v0 = vmov 0   ;;  %v836_v1 = vld [vmem:[#allocation2 + $0x10] sm:$0xff]  ;;  %v833_v2 = vld [vmem:[#allocation2] sm:$0xff]  ;;  %v837_v3 = vld [vmem:[#allocation2 + $0x18] sm:$0xff]  ;;  %v10530_v6 = vmov 0.0   ;;  %p809_p11 = scmp.lt.s32.totalorder %s8424_s30, 1  ;;  %v963_v43 = vlaneseq }
 0x1a5   : > { %8265 = vsyncadd (%p10655_p3), [#allocation23], 4294965760  ;;  %7801 = vset.pattern.permute.xlu1 %v8291_v0  ;;  %7800 = vset.pattern.permute.xlu0 %v8291_v0  ;;  %v834_v4 = vld [vmem:[#allocation2 + $0x8] sm:$0xff]  ;;  %v839_v5 = vld [vmem:[#allocation6] sm:$0xff]  ;;  %s10656_s0 = sld [smem:[#allocation68_spill]]  ;;  %vm881_vm0 = vcmask 130048  }
 0x1a6   : > { %860 = vperm.xlu1 %7801, %v836_v1   ;;  %846 = vperm.xlu0 %7800, %v833_v2   ;;  %s10786_s30 = smov (!%p809_p11, %s8424_s30), 1  ;;  %v838_v29 = vld [vmem:[#allocation4] sm:$0xff]  ;;  %s10602_s24 = smov 15   ;;  %v841_v37 = vld [vmem:[#allocation9] sm:$0xf]  ;;  %v1285_v38 = vld [vmem:[#allocation2 + $0x28] sm:$0xff] }
 0x1a7   : > { %949 = vmatprep.mubr.f32.mxu0 %v10530_v6  ;;  %1183 = vmatprep.mubr.f32.mxu1 %v10530_v6  ;;  %s10581_s20 = sshll.u32 %s10786_s30, 5  ;;  %s10601_s13 = smov 16   ;;  %v1284_v39 = vld [vmem:[#allocation2 + $0x20] sm:$0xff]  ;;  %v1288_v40 = vld [vmem:[#allocation2 + $0x38] sm:$0xff]  ;;  %v1287_v41 = vld [vmem:[#allocation2 + $0x30] sm:$0xff]  ;;  %v964_v44 = vshrl.u32 %v963_v43, 7 }
 0x1a8   : > { %s10599_s2 = smov 114   ;;  %s8296_s8 = smov 1   ;;  %v1292_v42 = vld [vmem:[#allocation6 + $0x8] sm:$0xff]  ;;  %v8886_v48 = vld [vmem:[#allocation12] sm:$0xff]  ;;  %vm10597_vm1 = vcmask 121856   ;;  %vm1008_vm2 = vcmask 7168  }
 0x1a9   : > { %s10595_s21 = smov 14   ;;  %s8298_s28 = smov 127   ;;  %v8880_v45 = vsub.s32 0, %v964_v44  ;;  %v8882_v46 = vsub.s32 1, %v964_v44  ;;  %v8884_v47 = vld [vmem:[#allocation12 + $0x8] sm:$0xff]  ;;  %v8904_v55 = vsub.s32 3, %v964_v44 }
 0x1aa   : > { %865 = vperm.xlu1 %7801, %v837_v3   ;;  %851 = vperm.xlu0 %7800, %v834_v4   ;;  %s10593_s6 = smov 113   ;;  %s10582_s1 = smov 112   ;;  %v8906_v56 = vsub.s32 2, %v964_v44  ;;  %v8914_v0 = vsub.s32 4, %v964_v44  ;;  %v8916_v4 = vsub.s32 5, %v964_v44  ;;  %vm10596_vm3 = vcmask 113664  }
 0x1ab   : > { %s813_s19 = scalar_lea.vmem %s10656_s0, %s10581_s20  ;;  %10657 = vst [vmem:[#allocation34_spill] sm:$0xff] %v8880_v45  ;;  %10658 = vst [vmem:[#allocation35_spill] sm:$0xff] %v8882_v46  ;;  %v8890_v49 = vrot.slane %v8884_v47, %v8880_v45  ;;  %v8894_v50 = vrot.slane %v8884_v47, %v8882_v46  ;;  %v8898_v51 = vrot.slane %v8886_v48, %v8880_v45  ;;  %vm10592_vm4 = vcmask 48128   ;;  %s10683_s29 = sld [smem:[#allocation73_spill]] }
 0x1ac   : > { %v8836_v7 = vld [vmem:[%s813_s19] sm:$0xff]  ;;  %v8838_v8 = vld [vmem:[%s813_s19 + $0x8] sm:$0xff]  ;;  %v8842_v13 = vld [vmem:[%s813_s19 + $0x10] sm:$0xff]  ;;  %v8902_v52 = vrot.slane %v8886_v48, %v8882_v46  ;;  %10663 = vst [vmem:[#allocation40_spill] sm:$0xff] %v8904_v55  ;;  %vm10580_vm5 = vcmask 1039360   ;;  %vm10579_vm6 = vcmask 932864  }
 0x1ad   : > { %v8844_v14 = vld [vmem:[%s813_s19 + $0x18] sm:$0xff]  ;;  %10659 = vst [vmem:[#allocation36_spill] sm:$0xff] %v8890_v49  ;;  %10660 = vst [vmem:[#allocation37_spill] sm:$0xff] %v8894_v50  ;;  %vm10578_vm7 = vcmask 990208   ;;  %vm10577_vm8 = vcmask 924672   ;;  %vm10576_vm9 = vcmask 982016  }
 0x1ae   : > { %878 = vperm.xlu0 %7800, %v839_v5   ;;  %10661 = vst [vmem:[#allocation38_spill] sm:$0xff] %v8898_v51  ;;  %10662 = vst [vmem:[#allocation39_spill] sm:$0xff] %v8902_v52  ;;  %v8918_v5 = vsub.s32 7, %v964_v44  ;;  %vm10575_vm10 = vcmask 916480   ;;  %vm10574_vm11 = vcmask 973824   ;;  %vm1115_vm12 = vcmask 588800  }
 0x1af   : > { %10664 = vst [vmem:[#allocation41_spill] sm:$0xff] %v8906_v56  ;;  %10665 = vst [vmem:[#allocation42_spill] sm:$0xff] %v8914_v0  ;;  %vm1199_vm13 = vcmask 1043456   ;;  %vm1192_vm14 = vcmask 31744   ;;  %s10692_s7 = sld [smem:[#allocation76_spill]]  ;;  %vm2324_vm15 = vcmask 56320  }
 0x1b0   : > { %10666 = vst [vmem:[#allocation43_spill] sm:$0xff] %v8916_v4  ;;  %10667 = vst [vmem:[#allocation44_spill] sm:$0xff] %v8918_v5  ;;  %s8303_s22 = smov 8   ;;  %s8304_s0 = smov 9  }
 0x1b1   : > { %s8305_s19 = smov 7   ;;  %s10615_s3 = smov 121  }
 0x1b2   : > { %s10614_s27 = smov 119   ;;  %s10603_s4 = smov 120  }
 0x1b3   : > { %s8309_s20 = smov 4   ;;  %s8311_s26 = smov 3  }
 0x1b4   : > { %s8312_s23 = smov 125  }
 0x225   : > { %v861_v9 = vpop.permute.xlu1 %860  ;;  %v847_v10 = vpop.permute.xlu0 %846 }
 0x226   : > { %v854_v11 = vmul.f32 %v847_v10, %v8836_v7  ;;  %v855_v12 = vmul.f32 %v847_v10, %v8838_v8  ;;  %v8926_v10 = vrot.slane %v8884_v47, %v8906_v56 }
 0x228   : > { %v869_v18 = vadd.f32 %v861_v9, %v855_v12  ;;  %v868_v19 = vadd.f32 %v861_v9, %v854_v11  ;;  %v8922_v9 = vrot.slane %v8886_v48, %v8904_v55  ;;  %10669 = vst [vmem:[#allocation46_spill] sm:$0xff] %v8926_v10  ;;  %v8930_v11 = vrot.slane %v8884_v47, %v8904_v55 }
 0x229   : > { %v852_v15 = vpop.permute.xlu0 %851  ;;  %v866_v20 = vpop.permute.xlu1 %865  ;;  %v8934_v12 = vrot.slane %v8886_v48, %v8906_v56 }
 0x22a   : > { %v856_v16 = vmul.f32 %v852_v15, %v8842_v13  ;;  %v857_v17 = vmul.f32 %v852_v15, %v8844_v14  ;;  %v873_v23 = vmax.f32 %v869_v18, 0.0  ;;  %v872_v25 = vmax.f32 %v868_v19, 0.0  ;;  %10668 = vst [vmem:[#allocation45_spill] sm:$0xff] %v8922_v9  ;;  %10670 = vst [vmem:[#allocation47_spill] sm:$0xff] %v8930_v11 }
 0x22b   : > { %10671 = vst [vmem:[#allocation48_spill] sm:$0xff] %v8934_v12  ;;  %v8936_v15 = vsub.s32 6, %v964_v44  ;;  %v8945_v18 = vrot.slane %v8886_v48, %v8914_v0 }
 0x22c   : > { %v871_v21 = vadd.f32 %v866_v20, %v857_v17  ;;  %v870_v22 = vadd.f32 %v866_v20, %v856_v16  ;;  %v8941_v17 = vrot.slane %v8884_v47, %v8914_v0 }
 0x22d   : > { %v879_v30 = vpop.permute.xlu0 %878  ;;  %10672 = vst [vmem:[#allocation49_spill] sm:$0xff] %v8936_v15  ;;  %10674 = vst [vmem:[#allocation51_spill] sm:$0xff] %v8945_v18 }
 0x22e   : > { %v875_v24 = vmax.f32 %v871_v21, 0.0  ;;  %v874_v26 = vmax.f32 %v870_v22, 0.0  ;;  %10673 = vst [vmem:[#allocation50_spill] sm:$0xff] %v8941_v17  ;;  %v8949_v21 = vrot.slane %v8884_v47, %v8916_v4  ;;  %v1069_v22 = vrot.slane %v8884_v47, %v8936_v15 }
 0x230   : > { %v7336_v27 = vpack.c.bf16 %v875_v24, %v873_v23  ;;  %v7338_v28 = vpack.c.bf16 %v874_v26, %v872_v25  ;;  %10675 = vst [vmem:[#allocation52_spill] sm:$0xff] %v8949_v21  ;;  %v1088_v23 = vrot.slane %v8884_v47, %v8918_v5 }
 0x232   : > { %7337 = vmatprep.subr.bf16.mxu0 %v7336_v27 }
 0x233   : > { %7339 = vmatpush1.bf16.msra.mxu0 %v7338_v28 }
 0x236   : > { %6777 = vmatmul.mubr.msk.f32.vlgmr.msra.gmra.mrb[0].mxu0 %vm881_vm0, %v838_v29 }
 0x237   : > { %1270 = vmatprep.mubr.f32.mxu0 %v10530_v6 }
 0x309   : > { %v951_v31 = vpop.f32.mrb[0].mxu0 }
 0x30a   : > { %v952_v32 = vadd.f32 %v951_v31, %v879_v30  ;;  %v953_v33 = vpop.f32.mrb[1].mxu0 }
 0x30b   : > { %v954_v35 = vadd.f32 %v953_v33, %v879_v30  ;;  %v8963_v30 = vrot.slane %v8886_v48, %v8916_v4 }
 0x30c   : > { %v8850_v34 = vmax.f32 %v952_v32, 0.0 }
 0x30d   : > { %v8860_v36 = vmax.f32 %v954_v35, 0.0  ;;  %10676 = vst [vmem:[#allocation53_spill] sm:$0xff] %v8963_v30 }
 0x30e   : > { %973 = vrot.lane.b32.xlu0 %v8850_v34, %s10602_s24  ;;  %959 = vrot.lane.b32.xlu1 %v8850_v34, %s10601_s13 }
 0x30f   : > { %v1032_v44 = vmul.f32 %v8941_v17, %v8860_v36 }
 0x312   : > { %1053 = vrot.lane.b32.xlu0 %v8850_v34, %s10599_s2  ;;  %1004 = vrot.lane.b32.xlu1 %v8850_v34, %s8296_s8 }
 0x316   : > { %1006 = vrot.lane.b32.xlu0 %v8860_v36, %s8296_s8  ;;  %988 = vrot.lane.b32.xlu1 %v8850_v34, %s10595_s21 }
 0x31a   : > { %1035 = vrot.lane.b32.xlu0 %v8860_v36, %s8298_s28  ;;  %1033 = vrot.lane.b32.xlu1 %v8850_v34, %s8298_s28 }
 0x31e   : > { %1072 = vrot.lane.b32.xlu0 %v8850_v34, %s10593_s6  ;;  %1055 = vrot.lane.b32.xlu1 %v8860_v36, %s10599_s2 }
 0x322   : > { %1091 = vrot.lane.b32.xlu0 %v8850_v34, %s10582_s1  ;;  %1074 = vrot.lane.b32.xlu1 %v8860_v36, %s10593_s6 }
 0x326   : > { %1112 = vperm.xlu0 %7800, %v841_v37   ;;  %1093 = vrot.lane.b32.xlu1 %v8860_v36, %s10582_s1  ;;  %v8965_v37 = vmul.f32 0.0, %v1069_v22  ;;  %v8990_v36 = vrot.slane %v8886_v48, %v8918_v5 }
 0x328   : > { %10680 = vst [vmem:[#allocation57_spill] sm:$0xff] %v8990_v36 }
 0x32a   : > { %1307 = vperm.xlu0 %7800, %v1285_v38   ;;  %1302 = vperm.xlu1 %7801, %v1284_v39   ;;  %v8967_v38 = vmul.f32 0.0, %v1088_v23 }
 0x32c   : > { %10677 = vst [vmem:[#allocation54_spill] sm:$0xff] %v8967_v38 }
 0x32e   : > { %1321 = vperm.xlu0 %7800, %v1288_v40   ;;  %1316 = vperm.xlu1 %7801, %v1287_v41   ;;  %v1031_v41 = vmul.f32 %v8945_v18, %v8850_v34 }
 0x332   : > { %1334 = vperm.xlu1 %7801, %v1292_v42  }
 0x380   : > { %v974_v53 = vpop.permute.xlu0 %973  ;;  %v960_v54 = vpop.permute.xlu1 %959 }
 0x381   : > { %v977_v57 = vsel %vm10597_vm1, 0.0, %v974_v53  ;;  %v962_v58 = vsel %vm881_vm0, 0.0, %v960_v54  ;;  %v972_v59 = vmul.f32 %v8890_v49, %v960_v54  ;;  %v987_v60 = vmul.f32 %v8894_v50, %v974_v53 }
 0x382   : > { %v971_v61 = vmul.f32 %v8898_v51, %v962_v58  ;;  %v986_v62 = vmul.f32 %v8902_v52, %v977_v57  ;;  %v8979_v58 = vpack.c.bf16 %v8967_v38, %v8965_v37 }
 0x383   : > { %v7340_v63 = vpack.c.bf16 %v987_v60, %v972_v59  ;;  %v8982_v59 = vld [vmem:[#allocation12 + $0x18] sm:$0x1] }
 0x384   : > { %v1054_v1 = vpop.permute.xlu0 %1053  ;;  %v1005_v2 = vpop.permute.xlu1 %1004  ;;  %v7342_v3 = vpack.c.bf16 %v986_v62, %v971_v61  ;;  %10678 = vst [vmem:[#allocation55_spill] sm:$0xff] %v8979_v58  ;;  %v8986_v61 = vrot.slane %v8886_v48, %v8936_v15 }
 0x385   : > { %7341 = vmatprep.subr.bf16.mxu1 %v7340_v63  ;;  %v1012_v16 = vsel %vm1008_vm2, 0.0, %v1005_v2 }
 0x386   : > { %7343 = vmatpush1.bf16.msra.mxu1 %v7342_v3  ;;  %v1021_v27 = vmul.f32 %v8922_v9, %v1012_v16  ;;  %10679 = vst [vmem:[#allocation56_spill] sm:$0xff] %v8986_v61  ;;  %v8998_v16 = vld [vmem:[#allocation12 + $0x10] sm:$0x1] }
 0x388   : > { %v1007_v19 = vpop.permute.xlu0 %1006  ;;  %v989_v20 = vpop.permute.xlu1 %988 }
 0x389   : > { %v1009_v24 = vsel %vm1008_vm2, %v1005_v2, %v1007_v19  ;;  %v992_v25 = vsel %vm10596_vm3, 0.0, %v989_v20  ;;  %v1002_v26 = vmul.f32 %v8926_v10, %v989_v20 }
 0x38a   : > { %v1022_v28 = vmul.f32 %v8930_v11, %v1009_v24  ;;  %v1001_v29 = vmul.f32 %v8934_v12, %v992_v25  ;;  %v9006_v25 = vrot.slane %v8998_v16, %v8880_v45 }
 0x38c   : > { %v1036_v31 = vpop.permute.xlu0 %1035  ;;  %v1034_v32 = vpop.permute.xlu1 %1033  ;;  %v7344_v33 = vpack.c.bf16 %v1022_v28, %v1002_v26  ;;  %v7346_v35 = vpack.c.bf16 %v1021_v27, %v1001_v29  ;;  %10682 = vst [vmem:[#allocation59_spill] sm:$0xff] %v9006_v25 }
 0x38d   : > { %v1042_v39 = vsel %vm10592_vm4, %v1036_v31, 0.0  ;;  %v1038_v40 = vsel %vm10580_vm5, %v1034_v32, %v1036_v31  ;;  %v840_v31 = vld [vmem:[#allocation7] sm:$0xf] }
 0x38e   : > { %v1052_v42 = vmul.f32 %v8949_v21, %v1042_v39  ;;  %v1051_v43 = vmul.f32 %v8963_v30, %v1038_v40  ;;  %7345 = vmatprep.subr.bf16.mxu1 %v7344_v33 }
 0x38f   : > { %7347 = vmatpush1.bf16.msra.mxu1 %v7346_v35 }
 0x390   : > { %v1056_v53 = vpop.permute.xlu1 %1055  ;;  %v7348_v54 = vpack.c.bf16 %v1052_v42, %v1032_v44  ;;  %v7350_v57 = vpack.c.bf16 %v1051_v43, %v1031_v41  ;;  %v1073_v60 = vpop.permute.xlu0 %1072  ;;  %v842_v43 = vld [vmem:[%s10683_s29] sm:$0xff]  ;;  %v843_v44 = vld [vmem:[%s10683_s29 + $0x8] sm:$0xff] }
 0x391   : > { %v1058_v34 = vsel %vm10579_vm6, %v1054_v1, %v1056_v53  ;;  %v1107_v1 = vrot.slane %v8982_v59, %v8880_v45 }
 0x392   : > { %7349 = vmatprep.subr.bf16.mxu1 %v7348_v54  ;;  %v1061_v62 = vsel %vm10578_vm7, %v1058_v34, 0.0 }
 0x393   : > { %7351 = vmatpush1.bf16.msra.mxu1 %v7350_v57  ;;  %v1070_v19 = vmul.f32 %v8986_v61, %v1061_v62  ;;  %v9002_v24 = vmul.f32 0.0, %v1107_v1 }
 0x394   : > { %v1075_v63 = vpop.permute.xlu1 %1074  ;;  %7353 = vmatprep.subr.bf16.mxu1 %v8979_v58  ;;  %v1092_v22 = vpop.permute.xlu0 %1091 }
 0x395   : > { %v1077_v2 = vsel %vm10577_vm8, %v1073_v60, %v1075_v63  ;;  %10681 = vst [vmem:[#allocation58_spill] sm:$0xff] %v9002_v24 }
 0x396   : > { %v1080_v3 = vsel %vm10576_vm9, %v1077_v2, 0.0 }
 0x397   : > { %v1089_v20 = vmul.f32 %v8990_v36, %v1080_v3 }
 0x398   : > { %v1094_v23 = vpop.permute.xlu1 %1093 }
 0x399   : > { %v1096_v26 = vsel %vm10575_vm10, %v1092_v22, %v1094_v23  ;;  %v7354_v27 = vpack.c.bf16 %v1089_v20, %v1070_v19 }
 0x39a   : > { %v1099_v28 = vsel %vm10574_vm11, %v1096_v26, 0.0 }
 0x39b   : > { %7355 = vmatpush1.bf16.msra.mxu1 %v7354_v27  ;;  %v1108_v29 = vmul.f32 %v9006_v25, %v1099_v28 }
 0x39c   : > { %1135 = vmatprep.subr.mxu1 %v9002_v24 }
 0x39f   : > { %1136 = vmatpush1.msra.mxu1 %v1108_v29 }
 0x3a0   : > { %6778 = vmatmul.mubr.msk.f32.vlgmr.msra.gmra.mrb[0].mxu1 %vm1115_vm12, %v840_v31 }
 0x3a1   : > { %1636 = vmatprep.mubr.f32.mxu1 %v10530_v6 }
 0x3a5   : > { %v1113_v32 = vpop.permute.xlu0 %1112 }
 0x3a9   : > { %v1303_v54 = vpop.permute.xlu1 %1302  ;;  %v1308_v60 = vpop.permute.xlu0 %1307 }
 0x3ad   : > { %v1317_v22 = vpop.permute.xlu1 %1316  ;;  %v1322_v23 = vpop.permute.xlu0 %1321 }
 0x473   : > { %v1185_v33 = vpop.f32.mrb[0].mxu1 }
 0x474   : > { %v1186_v35 = vadd.f32 %v1185_v33, %v1113_v32  ;;  %v1187_v39 = vpop.f32.mrb[1].mxu1 }
 0x475   : > { %v1188_v40 = vadd.f32 %v1187_v39, %v1113_v32 }
 0x476   : > { %v1190_v42 = vmax.f32 %v1186_v35, 0.0 }
 0x477   : > { %v1191_v41 = vmax.f32 %v1188_v40, 0.0  ;;  %v1335_v40 = vpop.permute.xlu1 %1334 }
 0x479   : > { %6779 = vmatprep.subr.msk.mxu0 %vm1199_vm13, %v1191_v41 }
 0x47a   : > { %6780 = vmatpush1.msk.msra.mxu0 %vm1199_vm13, %v1190_v42 }
 0x47b   : > { %6781 = vmatmul.mubr.msk.f32.vlgmr.msra.gmra.mrb[2].mxu0 %vm1192_vm14, %v842_v43 }
 0x47c   : > { %1276 = vmatprep.mubr.f32.mxu0 %v10530_v6 }
 0x47f   : > { %6782 = vmatmul.mubr.msk.f32.gmra.mrb[4].mxu0 %vm1192_vm14, %v843_v44 }
 0x480   : > { %1404 = vmatprep.mubr.f32.mxu0 %v10530_v6 }
 0x54e   : > { %v1272_v53 = vpop.f32.mrb[2].mxu0 }
 0x54f   : > { %v9027_v57 = vadd.f32 %v1272_v53, %v8836_v7  ;;  %v1274_v34 = vpop.f32.mrb[3].mxu0 }
 0x550   : > { %v9030_v62 = vadd.f32 %v1274_v34, %v8838_v8  ;;  %v1296_v34 = vld [vmem:[#allocation9 + $0x4] sm:$0xf] }
 0x551   : > { %v1310_v19 = vmul.f32 %v1303_v54, %v9027_v57 }
 0x552   : > { %v1278_v63 = vpop.f32.mrb[4].mxu0  ;;  %v1311_v1 = vmul.f32 %v1303_v54, %v9030_v62 }
 0x553   : > { %v9034_v2 = vadd.f32 %v1278_v63, %v8842_v13  ;;  %v1280_v3 = vpop.f32.mrb[5].mxu0  ;;  %v1324_v27 = vadd.f32 %v1317_v22, %v1310_v19  ;;  %v1650_v63 = vld [vmem:[#allocation2 + $0x40] sm:$0xff]  ;;  %v1658_v19 = vld [vmem:[#allocation6 + $0x10] sm:$0xff] }
 0x554   : > { %v9038_v20 = vadd.f32 %v1280_v3, %v8844_v14  ;;  %v1325_v8 = vadd.f32 %v1317_v22, %v1311_v1  ;;  %v1290_v14 = vld [vmem:[#allocation4 + $0x8] sm:$0xff]  ;;  %v1654_v1 = vld [vmem:[#allocation2 + $0x58] sm:$0xff]  ;;  %v1653_v3 = vld [vmem:[#allocation2 + $0x50] sm:$0xff] }
 0x555   : > { %v1312_v7 = vmul.f32 %v1308_v60, %v9034_v2  ;;  %v1328_v33 = vmax.f32 %v1324_v27, 0.0 }
 0x556   : > { %v1313_v26 = vmul.f32 %v1308_v60, %v9038_v20  ;;  %v1329_v32 = vmax.f32 %v1325_v8, 0.0  ;;  %v1651_v60 = vld [vmem:[#allocation2 + $0x48] sm:$0xff] }
 0x557   : > { %v1326_v28 = vadd.f32 %v1322_v23, %v1312_v7 }
 0x558   : > { %v1327_v29 = vadd.f32 %v1322_v23, %v1313_v26 }
 0x559   : > { %v1330_v31 = vmax.f32 %v1326_v28, 0.0 }
 0x55a   : > { %v1331_v13 = vmax.f32 %v1327_v29, 0.0 }
 0x55b   : > { %v7358_v39 = vpack.c.bf16 %v1330_v31, %v1328_v33 }
 0x55c   : > { %v7356_v35 = vpack.c.bf16 %v1331_v13, %v1329_v32 }
 0x55e   : > { %7357 = vmatprep.subr.bf16.mxu0 %v7356_v35 }
 0x55f   : > { %7359 = vmatpush1.bf16.msra.mxu0 %v7358_v39 }
 0x562   : > { %6785 = vmatmul.mubr.msk.f32.vlgmr.msra.gmra.mrb[6].mxu0 %vm881_vm0, %v1290_v14 }
 0x563   : > { %1551 = vmatprep.mubr.f32.mxu0 %v10530_v6 }
 0x635   : > { %v1406_v41 = vpop.f32.mrb[6].mxu0 }
 0x636   : > { %v1407_v42 = vadd.f32 %v1406_v41, %v1335_v40  ;;  %v1408_v43 = vpop.f32.mrb[7].mxu0 }
 0x637   : > { %v1409_v53 = vadd.f32 %v1408_v43, %v1335_v40 }
 0x638   : > { %v1411_v44 = vmax.f32 %v1407_v42, 0.0 }
 0x639   : > { %v1412_v54 = vmax.f32 %v1409_v53, 0.0 }
 0x63a   : > { %1420 = vrot.lane.b32.xlu1 %v1411_v44, %s10602_s24  ;;  %1414 = vrot.lane.b32.xlu0 %v1411_v44, %s10601_s13 }
 0x63e   : > { %1455 = vrot.lane.b32.xlu1 %v1411_v44, %s10599_s2  ;;  %1433 = vrot.lane.b32.xlu0 %v1411_v44, %s8296_s8 }
 0x642   : > { %1435 = vrot.lane.b32.xlu1 %v1412_v54, %s8296_s8  ;;  %1426 = vrot.lane.b32.xlu0 %v1411_v44, %s10595_s21 }
 0x646   : > { %1447 = vrot.lane.b32.xlu1 %v1412_v54, %s8298_s28  ;;  %1445 = vrot.lane.b32.xlu0 %v1411_v44, %s8298_s28 }
 0x64a   : > { %1463 = vrot.lane.b32.xlu1 %v1411_v44, %s10593_s6  ;;  %1457 = vrot.lane.b32.xlu0 %v1412_v54, %s10599_s2 }
 0x64e   : > { %1471 = vrot.lane.b32.xlu1 %v1411_v44, %s10582_s1  ;;  %1465 = vrot.lane.b32.xlu0 %v1412_v54, %s10593_s6 }
 0x652   : > { %1481 = vperm.xlu1 %7801, %v1296_v34   ;;  %1473 = vrot.lane.b32.xlu0 %v1412_v54, %s10582_s1 }
 0x656   : > { %1673 = vperm.xlu1 %7801, %v1651_v60   ;;  %1668 = vperm.xlu0 %7800, %v1650_v63  }
 0x65a   : > { %1687 = vperm.xlu1 %7801, %v1654_v1   ;;  %1682 = vperm.xlu0 %7800, %v1653_v3  }
 0x65e   : > { %1700 = vperm.xlu0 %7800, %v1658_v19  }
 0x6ac   : > { %v1421_v22 = vpop.permute.xlu1 %1420  ;;  %v1415_v7 = vpop.permute.xlu0 %1414 }
 0x6ad   : > { %v1423_v23 = vsel %vm10597_vm1, 0.0, %v1421_v22  ;;  %v1425_v26 = vmul.f32 %v1421_v22, %v8894_v50  ;;  %v1417_v8 = vsel %vm881_vm0, 0.0, %v1415_v7  ;;  %v1419_v27 = vmul.f32 %v1415_v7, %v8890_v49 }
 0x6ae   : > { %v1424_v28 = vmul.f32 %v1423_v23, %v8902_v52  ;;  %v1418_v29 = vmul.f32 %v1417_v8, %v8898_v51  ;;  %v1443_v23 = vmul.f32 %v1411_v44, %v8945_v18  ;;  %v1444_v8 = vmul.f32 %v1412_v54, %v8941_v17 }
 0x6af   : > { %v7360_v31 = vpack.c.bf16 %v1425_v26, %v1419_v27 }
 0x6b0   : > { %v7362_v32 = vpack.c.bf16 %v1424_v28, %v1418_v29  ;;  %v1456_v13 = vpop.permute.xlu1 %1455  ;;  %v1434_v33 = vpop.permute.xlu0 %1433 }
 0x6b1   : > { %7361 = vmatprep.subr.bf16.mxu0 %v7360_v31  ;;  %v1440_v35 = vsel %vm1008_vm2, 0.0, %v1434_v33 }
 0x6b2   : > { %7363 = vmatpush1.bf16.msra.mxu0 %v7362_v32  ;;  %v1441_v43 = vmul.f32 %v1440_v35, %v8922_v9 }
 0x6b4   : > { %v1436_v39 = vpop.permute.xlu1 %1435  ;;  %v1427_v14 = vpop.permute.xlu0 %1426 }
 0x6b5   : > { %v1437_v40 = vsel %vm1008_vm2, %v1434_v33, %v1436_v39  ;;  %v1429_v41 = vsel %vm10596_vm3, 0.0, %v1427_v14  ;;  %v1431_v42 = vmul.f32 %v1427_v14, %v8926_v10 }
 0x6b6   : > { %v1442_v53 = vmul.f32 %v1437_v40, %v8930_v11  ;;  %v1430_v34 = vmul.f32 %v1429_v41, %v8934_v12 }
 0x6b8   : > { %v7366_v60 = vpack.c.bf16 %v1441_v43, %v1430_v34  ;;  %v1448_v63 = vpop.permute.xlu1 %1447  ;;  %v1446_v1 = vpop.permute.xlu0 %1445  ;;  %v7364_v3 = vpack.c.bf16 %v1442_v53, %v1431_v42  ;;  %v1294_v34 = vld [vmem:[#allocation7 + $0x4] sm:$0xf] }
 0x6b9   : > { %v1452_v19 = vsel %vm10592_vm4, %v1448_v63, 0.0  ;;  %v1449_v22 = vsel %vm10580_vm5, %v1446_v1, %v1448_v63 }
 0x6ba   : > { %v1454_v7 = vmul.f32 %v1452_v19, %v8949_v21  ;;  %v1453_v26 = vmul.f32 %v1449_v22, %v8963_v30  ;;  %7365 = vmatprep.subr.bf16.mxu0 %v7364_v3 }
 0x6bb   : > { %7367 = vmatpush1.bf16.msra.mxu0 %v7366_v60 }
 0x6bc   : > { %v7370_v27 = vpack.c.bf16 %v1453_v26, %v1443_v23  ;;  %v1458_v28 = vpop.permute.xlu0 %1457  ;;  %v7368_v29 = vpack.c.bf16 %v1454_v7, %v1444_v8  ;;  %v1464_v32 = vpop.permute.xlu1 %1463  ;;  %v6783_v23 = vld [vmem:[%s10683_s29 + $0x10] sm:$0xff]  ;;  %v6784_v26 = vld [vmem:[%s10683_s29 + $0x18] sm:$0xff] }
 0x6bd   : > { %v1459_v31 = vsel %vm10579_vm6, %v1456_v13, %v1458_v28 }
 0x6be   : > { %7369 = vmatprep.subr.bf16.mxu0 %v7368_v29  ;;  %v1461_v33 = vsel %vm10578_vm7, %v1459_v31, 0.0 }
 0x6bf   : > { %7371 = vmatpush1.bf16.msra.mxu0 %v7370_v27  ;;  %v1462_v54 = vmul.f32 %v1461_v33, %v8986_v61 }
 0x6c0   : > { %v1466_v35 = vpop.permute.xlu0 %1465  ;;  %7373 = vmatprep.subr.bf16.mxu0 %v8979_v58  ;;  %v1472_v40 = vpop.permute.xlu1 %1471 }
 0x6c1   : > { %v1467_v44 = vsel %vm10577_vm8, %v1464_v32, %v1466_v35 }
 0x6c2   : > { %v1469_v39 = vsel %vm10576_vm9, %v1467_v44, 0.0 }
 0x6c3   : > { %v1470_v14 = vmul.f32 %v1469_v39, %v8990_v36 }
 0x6c4   : > { %v1474_v41 = vpop.permute.xlu0 %1473 }
 0x6c5   : > { %v7374_v42 = vpack.c.bf16 %v1470_v14, %v1462_v54  ;;  %v1475_v13 = vsel %vm10575_vm10, %v1472_v40, %v1474_v41 }
 0x6c6   : > { %v1477_v43 = vsel %vm10574_vm11, %v1475_v13, 0.0 }
 0x6c7   : > { %7375 = vmatpush1.bf16.msra.mxu0 %v7374_v42  ;;  %v1478_v53 = vmul.f32 %v1477_v43, %v9006_v25 }
 0x6c8   : > { %1503 = vmatprep.subr.mxu0 %v9002_v24 }
 0x6cb   : > { %1504 = vmatpush1.msra.mxu0 %v1478_v53 }
 0x6cc   : > { %6786 = vmatmul.mubr.msk.f32.vlgmr.msra.gmra.mrb[8].mxu0 %vm1115_vm12, %v1294_v34 }
 0x6cd   : > { %2002 = vmatprep.mubr.f32.mxu0 %v10530_v6 }
 0x6d1   : > { %v1482_v60 = vpop.permute.xlu1 %1481 }
 0x6d5   : > { %v1669_v27 = vpop.permute.xlu0 %1668  ;;  %v1674_v31 = vpop.permute.xlu1 %1673 }
 0x6d9   : > { %v1683_v40 = vpop.permute.xlu0 %1682  ;;  %v1688_v42 = vpop.permute.xlu1 %1687 }
 0x79f   : > { %v1553_v63 = vpop.f32.mrb[8].mxu0 }
 0x7a0   : > { %v1554_v1 = vadd.f32 %v1553_v63, %v1482_v60  ;;  %v1555_v3 = vpop.f32.mrb[9].mxu0 }
 0x7a1   : > { %v1556_v19 = vadd.f32 %v1555_v3, %v1482_v60 }
 0x7a2   : > { %v1558_v7 = vmax.f32 %v1554_v1, 0.0 }
 0x7a3   : > { %v1559_v22 = vmax.f32 %v1556_v19, 0.0 }
 0x7a5   : > { %6787 = vmatprep.subr.msk.mxu1 %vm1199_vm13, %v1559_v22 }
 0x7a6   : > { %6788 = vmatpush1.msk.msra.mxu1 %vm1199_vm13, %v1558_v7 }
 0x7a7   : > { %6789 = vmatmul.mubr.msk.f32.vlgmr.msra.gmra.mrb[2].mxu1 %vm1192_vm14, %v6783_v23  ;;  %v1656_v23 = vld [vmem:[#allocation4 + $0x10] sm:$0xff] }
 0x7a8   : > { %1642 = vmatprep.mubr.f32.mxu1 %v10530_v6 }
 0x7ab   : > { %6790 = vmatmul.mubr.msk.f32.gmra.mrb[4].mxu1 %vm1192_vm14, %v6784_v26  ;;  %v1701_v26 = vpop.permute.xlu0 %1700 }
 0x7ac   : > { %1770 = vmatprep.mubr.f32.mxu1 %v10530_v6 }
 0x87a   : > { %v1638_v8 = vpop.f32.mrb[2].mxu1 }
 0x87b   : > { %v9102_v28 = vadd.f32 %v1638_v8, %v9027_v57  ;;  %v1640_v29 = vpop.f32.mrb[3].mxu1 }
 0x87c   : > { %v9105_v32 = vadd.f32 %v1640_v29, %v9030_v62 }
 0x87d   : > { %10684 = vst [vmem:[#allocation60_spill] sm:$0xff] %v9102_v28  ;;  %v1676_v44 = vmul.f32 %v1669_v27, %v9102_v28 }
 0x87e   : > { %10685 = vst [vmem:[#allocation61_spill] sm:$0xff] %v9105_v32  ;;  %v1677_v33 = vmul.f32 %v1669_v27, %v9105_v32  ;;  %v1644_v35 = vpop.f32.mrb[4].mxu1 }
 0x87f   : > { %v9110_v39 = vadd.f32 %v1644_v35, %v9034_v2  ;;  %v1646_v54 = vpop.f32.mrb[5].mxu1  ;;  %v1690_v53 = vadd.f32 %v1683_v40, %v1676_v44  ;;  %v1662_v44 = vld [vmem:[#allocation9 + $0x8] sm:$0xf] }
 0x880   : > { %v9113_v14 = vadd.f32 %v1646_v54, %v9038_v20  ;;  %v1691_v13 = vadd.f32 %v1683_v40, %v1677_v33  ;;  %v2412_v54 = vld [vmem:[#allocation2 + $0x68] sm:$0xff]  ;;  %v2411_v40 = vld [vmem:[#allocation2 + $0x60] sm:$0xff] }
 0x881   : > { %10686 = vst [vmem:[#allocation62_spill] sm:$0xff] %v9110_v39  ;;  %v1678_v41 = vmul.f32 %v1674_v31, %v9110_v39  ;;  %v1694_v19 = vmax.f32 %v1690_v53, 0.0 }
 0x882   : > { %10687 = vst [vmem:[#allocation63_spill] sm:$0xff] %v9113_v14  ;;  %v1679_v43 = vmul.f32 %v1674_v31, %v9113_v14  ;;  %v1695_v1 = vmax.f32 %v1691_v13, 0.0  ;;  %v2419_v13 = vld [vmem:[#allocation6 + $0x18] sm:$0xff] }
 0x883   : > { %v1692_v34 = vadd.f32 %v1688_v42, %v1678_v41  ;;  %v2415_v41 = vld [vmem:[#allocation2 + $0x78] sm:$0xff] }
 0x884   : > { %v1693_v60 = vadd.f32 %v1688_v42, %v1679_v43  ;;  %v2414_v42 = vld [vmem:[#allocation2 + $0x70] sm:$0xff] }
 0x885   : > { %v1696_v63 = vmax.f32 %v1692_v34, 0.0 }
 0x886   : > { %v1697_v3 = vmax.f32 %v1693_v60, 0.0 }
 0x887   : > { %v7378_v7 = vpack.c.bf16 %v1696_v63, %v1694_v19 }
 0x888   : > { %v7376_v22 = vpack.c.bf16 %v1697_v3, %v1695_v1 }
 0x88a   : > { %7377 = vmatprep.subr.bf16.mxu1 %v7376_v22 }
 0x88b   : > { %7379 = vmatpush1.bf16.msra.mxu1 %v7378_v7 }
 0x88e   : > { %6793 = vmatmul.mubr.msk.f32.vlgmr.msra.gmra.mrb[6].mxu1 %vm881_vm0, %v1656_v23 }
 0x88f   : > { %1917 = vmatprep.mubr.f32.mxu1 %v10530_v6 }
 0x961   : > { %v1772_v8 = vpop.f32.mrb[6].mxu1 }
 0x962   : > { %v1773_v27 = vadd.f32 %v1772_v8, %v1701_v26  ;;  %v1774_v29 = vpop.f32.mrb[7].mxu1 }
 0x963   : > { %v1775_v33 = vadd.f32 %v1774_v29, %v1701_v26 }
 0x964   : > { %v9119_v31 = vmax.f32 %v1773_v27, 0.0 }
 0x965   : > { %v9129_v35 = vmax.f32 %v1775_v33, 0.0 }
 0x966   : > { %1786 = vrot.lane.b32.xlu0 %v9119_v31, %s10602_s24  ;;  %1780 = vrot.lane.b32.xlu1 %v9119_v31, %s10601_s13 }
 0x96a   : > { %1821 = vrot.lane.b32.xlu0 %v9119_v31, %s10599_s2  ;;  %1799 = vrot.lane.b32.xlu1 %v9119_v31, %s8296_s8 }
 0x96e   : > { %1801 = vrot.lane.b32.xlu0 %v9129_v35, %s8296_s8  ;;  %1792 = vrot.lane.b32.xlu1 %v9119_v31, %s10595_s21 }
 0x972   : > { %1813 = vrot.lane.b32.xlu0 %v9129_v35, %s8298_s28  ;;  %1811 = vrot.lane.b32.xlu1 %v9119_v31, %s8298_s28 }
 0x976   : > { %1829 = vrot.lane.b32.xlu0 %v9119_v31, %s10593_s6  ;;  %1823 = vrot.lane.b32.xlu1 %v9129_v35, %s10599_s2 }
 0x97a   : > { %1837 = vrot.lane.b32.xlu0 %v9119_v31, %s10582_s1  ;;  %1831 = vrot.lane.b32.xlu1 %v9129_v35, %s10593_s6 }
 0x97e   : > { %1847 = vperm.xlu0 %7800, %v1662_v44   ;;  %1839 = vrot.lane.b32.xlu1 %v9129_v35, %s10582_s1 }
 0x982   : > { %2068 = vrot.lane.b32.xlu0 %v9027_v57, %s10602_s24  ;;  %2034 = vrot.lane.b32.xlu1 %v9027_v57, %s10601_s13 }
 0x986   : > { %2100 = vrot.lane.b32.xlu0 %v9027_v57, %s10595_s21  ;;  %2036 = vrot.lane.b32.xlu1 %v9034_v2, %s10601_s13  ;;  %s8317_s13 = smov 126  }
 0x98a   : > { %2136 = vrot.lane.b32.xlu0 %v9030_v62, %s8296_s8  ;;  %2134 = vrot.lane.b32.xlu1 %v9027_v57, %s8296_s8 }
 0x98e   : > { %2176 = vrot.lane.b32.xlu0 %v9030_v62, %s8298_s28  ;;  %2070 = vrot.lane.b32.xlu1 %v9034_v2, %s10602_s24  ;;  %s8316_s24 = smov 2  }
 0x992   : > { %2174 = vrot.lane.b32.xlu0 %v9027_v57, %s8298_s28  ;;  %2102 = vrot.lane.b32.xlu1 %v9034_v2, %s10595_s21  ;;  %s8314_s21 = smov 124  }
 0x996   : > { %2140 = vrot.lane.b32.xlu0 %v9038_v20, %s8296_s8  ;;  %2138 = vrot.lane.b32.xlu1 %v9034_v2, %s8296_s8 }
 0x99a   : > { %2216 = vrot.lane.b32.xlu0 %v9030_v62, %s10599_s2  ;;  %2214 = vrot.lane.b32.xlu1 %v9027_v57, %s10599_s2 }
 0x99e   : > { %2250 = vrot.lane.b32.xlu0 %v9027_v57, %s10593_s6  ;;  %2180 = vrot.lane.b32.xlu1 %v9038_v20, %s8298_s28 }
 0x9a2   : > { %2178 = vrot.lane.b32.xlu0 %v9034_v2, %s8298_s28  ;;  %2252 = vrot.lane.b32.xlu1 %v9030_v62, %s10593_s6 }
 0x9a6   : > { %2220 = vrot.lane.b32.xlu0 %v9038_v20, %s10599_s2  ;;  %2218 = vrot.lane.b32.xlu1 %v9034_v2, %s10599_s2  ;;  %s10728_s2 = smov 120  }
 0x9aa   : > { %2288 = vrot.lane.b32.xlu0 %v9030_v62, %s10582_s1  ;;  %2286 = vrot.lane.b32.xlu1 %v9027_v57, %s10582_s1 }
 0x9ae   : > { %2256 = vrot.lane.b32.xlu0 %v9038_v20, %s10593_s6  ;;  %2254 = vrot.lane.b32.xlu1 %v9034_v2, %s10593_s6  ;;  %s8313_s6 = smov 123  }
 0x9b2   : > { %2292 = vrot.lane.b32.xlu0 %v9038_v20, %s10582_s1  ;;  %2290 = vrot.lane.b32.xlu1 %v9034_v2, %s10582_s1  ;;  %s8310_s1 = smov 5  }
 0x9b6   : > { %2434 = vperm.xlu0 %7800, %v2412_v54   ;;  %2429 = vperm.xlu1 %7801, %v2411_v40  }
 0x9ba   : > { %2446 = vperm.xlu0 %7800, %v2415_v41   ;;  %2441 = vperm.xlu1 %7801, %v2414_v42  }
 0x9be   : > { %2455 = vperm.xlu1 %7801, %v2419_v13  }
 0x9d8   : > { %v1787_v43 = vpop.permute.xlu0 %1786  ;;  %v1781_v53 = vpop.permute.xlu1 %1780 }
 0x9d9   : > { %v1789_v34 = vsel %vm10597_vm1, 0.0, %v1787_v43  ;;  %v1791_v60 = vmul.f32 %v1787_v43, %v8894_v50  ;;  %v1783_v63 = vsel %vm881_vm0, 0.0, %v1781_v53  ;;  %v1785_v1 = vmul.f32 %v1781_v53, %v8890_v49 }
 0x9da   : > { %v1790_v3 = vmul.f32 %v1789_v34, %v8902_v52  ;;  %v1784_v19 = vmul.f32 %v1783_v63, %v8898_v51 }
 0x9db   : > { %v7380_v22 = vpack.c.bf16 %v1791_v60, %v1785_v1 }
 0x9dc   : > { %v7382_v7 = vpack.c.bf16 %v1790_v3, %v1784_v19  ;;  %v1822_v23 = vpop.permute.xlu0 %1821  ;;  %v1800_v26 = vpop.permute.xlu1 %1799  ;;  %v1809_v3 = vmul.f32 %v9119_v31, %v8945_v18 }
 0x9dd   : > { %7381 = vmatprep.subr.bf16.mxu1 %v7380_v22  ;;  %v1806_v8 = vsel %vm1008_vm2, 0.0, %v1800_v26  ;;  %v1810_v22 = vmul.f32 %v9129_v35, %v8941_v17 }
 0x9de   : > { %7383 = vmatpush1.bf16.msra.mxu1 %v7382_v7  ;;  %v1807_v40 = vmul.f32 %v1806_v8, %v8922_v9 }
 0x9e0   : > { %v1802_v27 = vpop.permute.xlu0 %1801  ;;  %v1793_v29 = vpop.permute.xlu1 %1792 }
 0x9e1   : > { %v1803_v33 = vsel %vm1008_vm2, %v1800_v26, %v1802_v27  ;;  %v1795_v44 = vsel %vm10596_vm3, 0.0, %v1793_v29  ;;  %v1797_v54 = vmul.f32 %v1793_v29, %v8926_v10 }
 0x9e2   : > { %v1808_v41 = vmul.f32 %v1803_v33, %v8930_v11  ;;  %v1796_v42 = vmul.f32 %v1795_v44, %v8934_v12 }
 0x9e4   : > { %v7386_v13 = vpack.c.bf16 %v1807_v40, %v1796_v42  ;;  %v1814_v43 = vpop.permute.xlu0 %1813  ;;  %v1812_v53 = vpop.permute.xlu1 %1811  ;;  %v7384_v34 = vpack.c.bf16 %v1808_v41, %v1797_v54 }
 0x9e5   : > { %v1818_v60 = vsel %vm10592_vm4, %v1814_v43, 0.0  ;;  %v1815_v63 = vsel %vm10580_vm5, %v1812_v53, %v1814_v43 }
 0x9e6   : > { %v1820_v1 = vmul.f32 %v1818_v60, %v8949_v21  ;;  %v1819_v19 = vmul.f32 %v1815_v63, %v8963_v30  ;;  %7385 = vmatprep.subr.bf16.mxu1 %v7384_v34  ;;  %v1660_v34 = vld [vmem:[#allocation7 + $0x8] sm:$0xf]  ;;  %v10532_v60 = vmov 0.0|0.0  }
 0x9e7   : > { %7387 = vmatpush1.bf16.msra.mxu1 %v7386_v13 }
 0x9e8   : > { %v7390_v7 = vpack.c.bf16 %v1819_v19, %v1809_v3  ;;  %v1824_v26 = vpop.permute.xlu1 %1823  ;;  %v7388_v8 = vpack.c.bf16 %v1820_v1, %v1810_v22  ;;  %v1830_v29 = vpop.permute.xlu0 %1829 }
 0x9e9   : > { %v1825_v27 = vsel %vm10579_vm6, %v1822_v23, %v1824_v26 }
 0x9ea   : > { %7389 = vmatprep.subr.bf16.mxu1 %v7388_v8  ;;  %v1827_v33 = vsel %vm10578_vm7, %v1825_v27, 0.0 }
 0x9eb   : > { %7391 = vmatpush1.bf16.msra.mxu1 %v7390_v7  ;;  %v1828_v35 = vmul.f32 %v1827_v33, %v8986_v61 }
 0x9ec   : > { %v1832_v44 = vpop.permute.xlu1 %1831  ;;  %7393 = vmatprep.subr.bf16.mxu1 %v8979_v58  ;;  %v1838_v41 = vpop.permute.xlu0 %1837 }
 0x9ed   : > { %v1833_v31 = vsel %vm10577_vm8, %v1830_v29, %v1832_v44  ;;  %v2047_v29 = vsub.f32 1.0, %v8884_v47 }
 0x9ee   : > { %v1835_v54 = vsel %vm10576_vm9, %v1833_v31, 0.0 }
 0x9ef   : > { %v1836_v40 = vmul.f32 %v1835_v54, %v8990_v36  ;;  %v9253_v44 = vrot.slane %v2047_v29, %v8880_v45  ;;  %v9267_v47 = vrot.slane %v2047_v29, %v8906_v56  ;;  %v9280_v6 = vrot.slane %v2047_v29, %v8904_v55 }
 0x9f0   : > { %v1840_v42 = vpop.permute.xlu1 %1839  ;;  %v9301_v0 = vrot.slane %v2047_v29, %v8936_v15 }
 0x9f1   : > { %v7394_v13 = vpack.c.bf16 %v1836_v40, %v1828_v35  ;;  %v1841_v23 = vsel %vm10575_vm10, %v1838_v41, %v1840_v42  ;;  %v9260_v35 = vrot.slane %v2047_v29, %v8882_v46  ;;  %v2057_v40 = vmul.f32 %v9253_v44, %v9030_v62 }
 0x9f2   : > { %v1843_v43 = vsel %vm10574_vm11, %v1841_v23, 0.0  ;;  %v2121_v17 = vmul.f32 %v9267_v47, %v9030_v62  ;;  %v2163_v14 = vmul.f32 %v9280_v6, %v9030_v62 }
 0x9f3   : > { %7395 = vmatpush1.bf16.msra.mxu1 %v7394_v13  ;;  %v1844_v53 = vmul.f32 %v1843_v43, %v9006_v25  ;;  %v2089_v43 = vmul.f32 %v9260_v35, %v9030_v62 }
 0x9f4   : > { %1869 = vmatprep.subr.mxu1 %v9002_v24  ;;  %v9237_v3 = vpop.permute.xlu1 %2034 }
 0x9f5   : > { %v2043_v54 = vmul.f32 %v9237_v3, %v8890_v49 }
 0x9f7   : > { %1870 = vmatpush1.msra.mxu1 %v1844_v53  ;;  %v2061_v23 = vadd.f32 %v2057_v40, %v2043_v54  ;;  %v9288_v54 = vrot.slane %v2047_v29, %v8916_v4 }
 0x9f8   : > { %6794 = vmatmul.mubr.msk.f32.vlgmr.msra.gmra.mrb[8].mxu1 %vm1115_vm12, %v1660_v34  ;;  %7420 = vmatprep.subr.bf16.mxu1 %v10532_v60  ;;  %v9241_v22 = vpop.permute.xlu1 %2036 }
 0x9f9   : > { %v2065_v40 = vmax.f32 %v9030_v62, %v2061_v23 }
 0x9fc   : > { %v9243_v26 = vpop.permute.xlu1 %2134 }
 0x9fd   : > { %v1848_v63 = vpop.permute.xlu0 %1847 }
 0xa00   : > { %v9247_v27 = vpop.permute.xlu1 %2070 }
 0xa01   : > { %v9235_v1 = vpop.permute.xlu0 %2068 }
 0xa02   : > { %v2077_v41 = vmul.f32 %v9235_v1, %v8894_v50 }
 0xa04   : > { %v9255_v31 = vpop.permute.xlu1 %2102  ;;  %v2093_v58 = vadd.f32 %v2089_v43, %v2077_v41 }
 0xa05   : > { %v9239_v19 = vpop.permute.xlu0 %2100 }
 0xa06   : > { %v2109_v53 = vmul.f32 %v9239_v19, %v8926_v10  ;;  %v2097_v28 = vmax.f32 %v2065_v40, %v2093_v58  ;;  %v2303_v58 = vsub.f32 1.0, %v8982_v59  ;;  %v2015_v59 = vld [vmem:[%s10692_s7] sm:$0xff] }
 0xa08   : > { %v9277_v34 = vpop.permute.xlu1 %2138  ;;  %v2125_v18 = vadd.f32 %v2121_v17, %v2109_v53  ;;  %v2239_v53 = vmul.f32 %v9301_v0, %v9030_v62 }
 0xa09   : > { %v2137_v7 = vpop.permute.xlu0 %2136 }
 0xa0a   : > { %v2142_v13 = vsel %vm1008_vm2, %v9243_v26, %v2137_v7  ;;  %v2129_v25 = vmax.f32 %v2097_v28, %v2125_v18  ;;  %v2243_v18 = vadd.f32 %v2239_v53, %v8965_v37  ;;  %v2302_v53 = vsub.f32 1.0, %v8998_v16 }
 0xa0b   : > { %v2151_v7 = vmul.f32 %v2142_v13, %v8930_v11  ;;  %v2203_v13 = vmul.f32 %v9288_v54, %v9030_v62 }
 0xa0c   : > { %v9296_v43 = vpop.permute.xlu1 %2214 }
 0xa0d   : > { %v9245_v8 = vpop.permute.xlu0 %2176  ;;  %v2167_v41 = vadd.f32 %v2163_v14, %v2151_v7  ;;  %v2046_v14 = vsub.f32 1.0, %v8886_v48  ;;  %v2016_v48 = vld [vmem:[%s10692_s7 + $0x8] sm:$0xff] }
 0xa0e   : > { %v2188_v60 = vsel %vm10592_vm4, %v9245_v8, 0.0 }
 0xa0f   : > { %v2191_v39 = vmul.f32 %v2188_v60, %v8949_v21  ;;  %v2171_v17 = vmax.f32 %v2129_v25, %v2167_v41  ;;  %v9308_v60 = vrot.slane %v2047_v29, %v8918_v5  ;;  %v9318_v41 = vrot.slane %v2303_v58, %v8880_v45 }
 0xa10   : > { %v9312_v40 = vpop.permute.xlu1 %2180  ;;  %v2083_v58 = vrot.slane %v2046_v14, %v8882_v46  ;;  %v2197_v16 = vrot.slane %v2046_v14, %v8916_v4  ;;  %v10693_v4 = vmov 0.0|0.0   ;;  %v2123_v46 = vmul.f32 %v9267_v47, %v9038_v20 }
 0xa11   : > { %v9250_v33 = vpop.permute.xlu0 %2174  ;;  %v2207_v23 = vadd.f32 %v2203_v13, %v2191_v39  ;;  %10690 = vst [vmem:[#allocation66_spill] sm:$0xff] %v9308_v60  ;;  %v2275_v39 = vmul.f32 %v9308_v60, %v9030_v62  ;;  %10691 = vst [vmem:[#allocation67_spill] sm:$0xff] %v9318_v41  ;;  %v2051_v13 = vrot.slane %v2046_v14, %v8880_v45 }
 0xa12   : > { %10688 = vst [vmem:[#allocation64_spill] sm:$0xff] %v9250_v33  ;;  %v7397_v33 = vpack.c.bf16 %v2016_v48, %v2015_v59  ;;  %v9360_v48 = vrot.slane %v2302_v53, %v8880_v45  ;;  %v2091_v45 = vmul.f32 %v9260_v35, %v9038_v20  ;;  %v2041_v35 = vsel %vm881_vm0, 0.0, %v9241_v22 }
 0xa13   : > { %v2211_v7 = vmax.f32 %v2171_v17, %v2207_v23 }
 0xa14   : > { %v9333_v60 = vpop.permute.xlu1 %2252 }
 0xa15   : > { %v9269_v42 = vpop.permute.xlu0 %2140  ;;  %v2247_v23 = vmax.f32 %v2211_v7, %v2243_v18  ;;  %v2313_v7 = vmul.f32 %v9318_v41, %v9030_v62  ;;  %v9343_v18 = vrot.slane %v2046_v14, %v8936_v15  ;;  %v2056_v62 = vmul.f32 %v2051_v13, %v9027_v57 }
 0xa19   : > { %v9294_v32 = vpop.permute.xlu0 %2216 }
 0xa1d   : > { %v9305_v36 = vpop.permute.xlu0 %2250 }
 0xa1e   : > { %10689 = vst [vmem:[#allocation65_spill] sm:$0xff] %v9305_v36  ;;  %v6791_v36 = vld [vmem:[%s10683_s29 + $0x20] sm:$0xff] }
 0xa21   : > { %v9328_v17 = vpop.permute.xlu0 %2178 }
 0xa25   : > { %v9375_v53 = vpop.permute.xlu0 %2220 }
 0xacb   : > { %v1919_v61 = vpop.f32.mrb[8].mxu1 }
 0xacc   : > { %v1920_v28 = vadd.f32 %v1919_v61, %v1848_v63  ;;  %v1921_v25 = vpop.f32.mrb[9].mxu1  ;;  %v2157_v61 = vrot.slane %v2046_v14, %v8904_v55  ;;  %v2279_v55 = vadd.f32 %v2275_v39, %v8967_v38  ;;  %v2018_v39 = vld [vmem:[%s10692_s7 + $0x18] sm:$0xff]  ;;  %v9463_v38 = vmul.f32 %v9343_v18, %v9034_v2 }
 0xacd   : > { %v1922_v29 = vadd.f32 %v1921_v25, %v1848_v63  ;;  %v2115_v63 = vrot.slane %v2046_v14, %v8906_v56  ;;  %v9373_v56 = vmul.f32 %v2083_v58, %v9034_v2 }
 0xace   : > { %v1924_v30 = vmax.f32 %v1920_v28, 0.0  ;;  %v2017_v28 = vld [vmem:[%s10692_s7 + $0x10] sm:$0xff]  ;;  %v9357_v59 = vmul.f32 %v2157_v61, %v9027_v57 }
 0xacf   : > { %v1925_v25 = vmax.f32 %v1922_v29, 0.0  ;;  %v9346_v29 = vrot.slane %v2046_v14, %v8918_v5  ;;  %v2283_v14 = vmax.f32 %v2247_v23, %v2279_v55  ;;  %v9365_v5 = vmul.f32 %v2083_v58, %v9027_v57  ;;  %v6792_v55 = vld [vmem:[%s10683_s29 + $0x28] sm:$0xff] }
 0xad0   : > { %v9368_v15 = vmul.f32 %v2115_v63, %v9027_v57  ;;  %v2317_v23 = vadd.f32 %v2313_v7, %v9002_v24  ;;  %v9387_v58 = vmul.f32 %v2115_v63, %v9034_v2  ;;  %v2020_v7 = vld [vmem:[%s10692_s7 + $0x28] sm:$0xff]  ;;  %v2045_v63 = vmul.f32 %v9241_v22, %v8890_v49 }
 0xad1   : > { %6795 = vmatprep.subr.msk.mxu0 %vm1199_vm13, %v1925_v25  ;;  %v2058_v25 = vmul.f32 %v2051_v13, %v9034_v2  ;;  %v7400_v13 = vpack.c.bf16 %v2018_v39, %v2017_v28  ;;  %v9402_v28 = vpop.permute.xlu1 %2218  ;;  %v9407_v24 = vmul.f32 %v2157_v61, %v9034_v2  ;;  %v2079_v22 = vmul.f32 %v9247_v27, %v8894_v50 }
 0xad2   : > { %6796 = vmatpush1.msk.msra.mxu0 %vm1199_vm13, %v1924_v30  ;;  %v10694_v30 = vmov 0.0   ;;  %v2321_v39 = vmax.f32 %v2283_v14, %v2317_v23  ;;  %v2165_v14 = vmul.f32 %v9280_v6, %v9038_v20  ;;  %v2241_v23 = vmul.f32 %v9301_v0, %v9038_v20  ;;  %v2021_v6 = vld [vmem:[%s10692_s7 + $0x30] sm:$0xff] }
 0xad3   : > { %6797 = vmatmul.mubr.msk.f32.vlgmr.msra.gmra.mrb[10].mxu0 %vm1192_vm14, %v6791_v36  ;;  %7396 = vmatprep.subr.bf16.mxu0 %v10693_v4  ;;  %v2059_v36 = vmul.f32 %v9253_v44, %v9038_v20  ;;  %v2040_v44 = vsel %vm881_vm0, 0.0, %v9237_v3  ;;  %v9414_v3 = vmul.f32 %v2197_v16, %v9027_v57  ;;  %v2111_v0 = vmul.f32 %v9255_v31, %v8926_v10 }
 0xad4   : > { %7398 = vmatpush1.bf16.msra.mxu0 %v7397_v33  ;;  %2008 = vmatprep.mubr.f32.mxu0 %v10694_v30  ;;  %v2019_v33 = vld [vmem:[%s10692_s7 + $0x20] sm:$0xff]  ;;  %v9411_v30 = vmul.f32 %v9288_v54, %v9038_v20  ;;  %v2042_v61 = vmul.f32 %v2040_v44, %v8898_v51  ;;  %v2044_v54 = vmul.f32 %v2041_v35, %v8898_v51  ;;  %v2289_v44 = vpop.permute.xlu0 %2288  ;;  %v2148_v35 = vsel %vm1008_vm2, 0.0, %v9243_v26 }
 0xad5   : > { %7399 = vmatprep.subr.bf16.mxu0 %v10693_v4  ;;  %v7403_v47 = vpack.c.bf16 %v2020_v7, %v2019_v33  ;;  %v2063_v33 = vadd.f32 %v2059_v36, %v2045_v63  ;;  %v2074_v7 = vsel %vm10597_vm1, 0.0, %v9235_v1  ;;  %v9450_v36 = vmul.f32 %v9346_v29, %v9027_v57  ;;  %v2287_v49 = vpop.permute.xlu1 %2286 }
 0xad6   : > { %v9453_v1 = vmul.f32 %v2197_v16, %v9034_v2  ;;  %v2095_v63 = vadd.f32 %v2091_v45, %v2079_v22  ;;  %v2106_v10 = vsel %vm10596_vm3, 0.0, %v9239_v19  ;;  %v2060_v26 = vadd.f32 %v2056_v62, %v2042_v61  ;;  %v2023_v45 = vld [vmem:[%s10692_s7 + $0x40] sm:$0xff]  ;;  %v2024_v19 = vld [vmem:[%s10692_s7 + $0x48] sm:$0xff] }
 0xad7   : > { %6798 = vmatmul.mubr.msk.f32.gmra.mrb[12].mxu0 %vm1192_vm14, %v6792_v55  ;;  %v2143_v55 = vsel %vm1008_vm2, %v9277_v34, %v9269_v42  ;;  %v9442_v42 = vmul.f32 %v9343_v18, %v9027_v57  ;;  %v9458_v41 = vadd.f32 %v2058_v25, %v2044_v54  ;;  %v2067_v16 = vmax.f32 %v9038_v20, %v2063_v33 }
 0xad8   : > { %7401 = vmatpush1.bf16.msra.mxu0 %v7400_v13  ;;  %6800 = vmatprep.mubr.msk.f32.mxu0 %vm2324_vm15, %v2321_v39  ;;  %v2022_v13 = vld [vmem:[%s10692_s7 + $0x38] sm:$0xff]  ;;  %v2075_v39 = vsel %vm10597_vm1, 0.0, %v9247_v27  ;;  %v2153_v51 = vmul.f32 %v2143_v55, %v8930_v11  ;;  %v2076_v27 = vmul.f32 %v2074_v7, %v8902_v52  ;;  %v2150_v62 = vmul.f32 %v2148_v35, %v8922_v9 }
 0xad9   : > { %7402 = vmatprep.subr.bf16.mxu0 %v10693_v4  ;;  %v7406_v50 = vpack.c.bf16 %v2022_v13, %v2021_v6  ;;  %v2127_v25 = vadd.f32 %v2123_v46, %v2111_v0  ;;  %v9475_v22 = vadd.f32 %v2241_v23, %v8965_v37  ;;  %v2078_v18 = vmul.f32 %v2075_v39, %v8902_v52  ;;  %v2257_v46 = vpop.permute.xlu0 %2256  ;;  %v10696_v39 = vld [vmem:[#allocation65_spill] sm:$0xff] }
 0xada   : > { %v2189_v61 = vsel %vm10592_vm4, %v9312_v40, 0.0  ;;  %v9483_v54 = vmul.f32 %v9360_v48, %v9027_v57  ;;  %v2099_v55 = vmax.f32 %v2067_v16, %v2095_v63  ;;  %v2107_v6 = vsel %vm10596_vm3, 0.0, %v9255_v31 }
 0xadb   : > { %v2169_v13 = vadd.f32 %v2165_v14, %v2153_v51  ;;  %v7409_v37 = vpack.c.bf16 %v2024_v19, %v2023_v45  ;;  %v2064_v23 = vmax.f32 %v9027_v57, %v2060_v26  ;;  %v2092_v33 = vadd.f32 %v9365_v5, %v2076_v27  ;;  %v2025_v51 = vld [vmem:[%s10692_s7 + $0x50] sm:$0xff]  ;;  %v10695_v5 = vld [vmem:[#allocation64_spill] sm:$0xff]  ;;  %v10697_v19 = vld [vmem:[#allocation53_spill] sm:$0xff] }
 0xadc   : > { %7404 = vmatpush1.bf16.msra.mxu0 %v7403_v47  ;;  %v2108_v47 = vmul.f32 %v2106_v10, %v8934_v12  ;;  %v2066_v10 = vmax.f32 %v9034_v2, %v9458_v41  ;;  %v2222_v7 = vsel %vm10579_vm6, %v9296_v43, %v9294_v32  ;;  %v2166_v57 = vadd.f32 %v9357_v59, %v2150_v62  ;;  %v2255_v32 = vpop.permute.xlu1 %2254 }
 0xadd   : > { %7405 = vmatprep.subr.bf16.mxu0 %v10693_v4  ;;  %v2131_v31 = vmax.f32 %v2099_v55, %v2127_v25  ;;  %v2193_v41 = vmul.f32 %v2189_v61, %v8949_v21  ;;  %v2182_v14 = vsel %vm10580_vm5, %v10695_v5, %v9245_v8  ;;  %v2110_v43 = vmul.f32 %v2107_v6, %v8934_v12 }
 0xade   : > { %v2124_v0 = vadd.f32 %v9368_v15, %v2108_v47  ;;  %v2149_v35 = vsel %vm1008_vm2, 0.0, %v9277_v34  ;;  %v2258_v63 = vsel %vm10577_vm8, %v10696_v39, %v9333_v60  ;;  %v2094_v59 = vadd.f32 %v9373_v56, %v2078_v18  ;;  %v2027_v56 = vld [vmem:[%s10692_s7 + $0x60] sm:$0xff]  ;;  %v2028_v60 = vld [vmem:[%s10692_s7 + $0x68] sm:$0xff] }
 0xadf   : > { %v2173_v26 = vmax.f32 %v2131_v31, %v2169_v13  ;;  %v2226_v27 = vsel %vm10578_vm7, %v2222_v7, 0.0  ;;  %v2096_v8 = vmax.f32 %v2064_v23, %v2092_v33  ;;  %v2190_v16 = vmul.f32 %v2182_v14, %v10697_v19  ;;  %v10698_v47 = vld [vmem:[#allocation56_spill] sm:$0xff]  ;;  %v10699_v7 = vld [vmem:[#allocation57_spill] sm:$0xff] }
 0xae0   : > { %7407 = vmatpush1.bf16.msra.mxu0 %v7406_v50  ;;  %v2026_v50 = vld [vmem:[%s10692_s7 + $0x58] sm:$0xff]  ;;  %v2223_v15 = vsel %vm10579_vm6, %v9402_v28, %v9375_v53  ;;  %v2294_v34 = vsel %vm10575_vm10, %v2287_v49, %v2289_v44  ;;  %v2152_v62 = vmul.f32 %v2149_v35, %v8922_v9  ;;  %v2209_v25 = vadd.f32 %v9411_v30, %v2193_v41  ;;  %v2293_v53 = vpop.permute.xlu0 %2292  ;;  %v2291_v13 = vpop.permute.xlu1 %2290  ;;  %v10700_v41 = vld [vmem:[#allocation66_spill] sm:$0xff] }
 0xae1   : > { %7408 = vmatprep.subr.bf16.mxu0 %v10693_v4  ;;  %v7412_v45 = vpack.c.bf16 %v2026_v50, %v2025_v51  ;;  %v2262_v18 = vsel %vm10576_vm9, %v2258_v63, 0.0  ;;  %v2183_v49 = vsel %vm10580_vm5, %v9328_v17, %v9312_v40  ;;  %v2126_v28 = vadd.f32 %v9387_v58, %v2110_v43  ;;  %v2030_v51 = vld [vmem:[%s10692_s7 + $0x78] sm:$0xff] }
 0xae2   : > { %v2128_v44 = vmax.f32 %v2096_v8, %v2124_v0  ;;  %v2228_v61 = vmul.f32 %v2226_v27, %v10698_v47  ;;  %v2259_v55 = vsel %vm10577_vm8, %v2255_v32, %v2257_v46  ;;  %v2213_v6 = vmax.f32 %v2173_v26, %v2209_v25  ;;  %v2029_v46 = vld [vmem:[%s10692_s7 + $0x70] sm:$0xff] }
 0xae3   : > { %v2298_v30 = vsel %vm10574_vm11, %v2294_v34, 0.0  ;;  %v7415_v23 = vpack.c.bf16 %v2028_v60, %v2027_v56  ;;  %v2206_v33 = vadd.f32 %v9414_v3, %v2190_v16  ;;  %v2264_v40 = vmul.f32 %v2262_v18, %v10699_v7  ;;  %v10701_v0 = vld [vmem:[#allocation59_spill] sm:$0xff]  ;;  %v10702_v8 = vld [vmem:[#allocation54_spill] sm:$0xff] }
 0xae4   : > { %7410 = vmatpush1.bf16.msra.mxu0 %v7409_v37  ;;  %v2227_v37 = vsel %vm10578_vm7, %v2223_v15, 0.0  ;;  %v2192_v17 = vmul.f32 %v2183_v49, %v10697_v19  ;;  %v2295_v58 = vsel %vm10575_vm10, %v2291_v13, %v2293_v53  ;;  %v2098_v50 = vmax.f32 %v2066_v10, %v2094_v59 }
 0xae5   : > { %7411 = vmatprep.subr.bf16.mxu0 %v10693_v4  ;;  %v2168_v31 = vadd.f32 %v9407_v24, %v2152_v62  ;;  %v2263_v3 = vsel %vm10576_vm9, %v2259_v55, 0.0  ;;  %v2277_v5 = vmul.f32 %v10700_v41, %v9038_v20  ;;  %v2170_v14 = vmax.f32 %v2128_v44, %v2166_v57 }
 0xae6   : > { %v2242_v32 = vadd.f32 %v9442_v42, %v2228_v61  ;;  %v2229_v43 = vmul.f32 %v2227_v37, %v10698_v47  ;;  %v2300_v35 = vmul.f32 %v2298_v30, %v10701_v0  ;;  %v2130_v39 = vmax.f32 %v2098_v50, %v2126_v28  ;;  %v2430_v30 = vpop.permute.xlu1 %2429 }
 0xae7   : > { %v2249_v63 = vmax.f32 %v2213_v6, %v9475_v22  ;;  %v2299_v26 = vsel %vm10574_vm11, %v2295_v58, 0.0  ;;  %v7418_v10 = vpack.c.bf16 %v2030_v51, %v2029_v46  ;;  %v2210_v24 = vmax.f32 %v2170_v14, %v2206_v33  ;;  %v10703_v22 = vld [vmem:[#allocation67_spill] sm:$0xff] }
 0xae8   : > { %7413 = vmatpush1.bf16.msra.mxu0 %v7412_v45  ;;  %v2278_v59 = vadd.f32 %v9450_v36, %v2264_v40  ;;  %v2208_v27 = vadd.f32 %v9453_v1, %v2192_v17  ;;  %v2265_v57 = vmul.f32 %v2263_v3, %v10699_v7  ;;  %v2172_v42 = vmax.f32 %v2130_v39, %v2168_v31 }
 0xae9   : > { %7414 = vmatprep.subr.bf16.mxu0 %v10693_v4  ;;  %v2276_v45 = vmul.f32 %v9346_v29, %v9034_v2  ;;  %v2281_v16 = vadd.f32 %v2277_v5, %v10702_v8  ;;  %v2315_v15 = vmul.f32 %v10703_v22, %v9038_v20  ;;  %v2246_v34 = vmax.f32 %v2210_v24, %v2242_v32  ;;  %v2031_v20 = vld [vmem:[%s10692_s7 + $0x80] sm:$0x7f] }
 0xaea   : > { %v2244_v56 = vadd.f32 %v9463_v38, %v2229_v43  ;;  %v2316_v36 = vadd.f32 %v9483_v54, %v2300_v35  ;;  %v2301_v1 = vmul.f32 %v2299_v26, %v10701_v0  ;;  %v2314_v60 = vmul.f32 %v9360_v48, %v9034_v2  ;;  %v10705_v38 = vld [vmem:[#allocation58_spill] sm:$0xff]  ;;  %v2442_v58 = vpop.permute.xlu1 %2441  ;;  %v2417_v43 = vld [vmem:[#allocation4 + $0x18] sm:$0xff]  ;;  %v2780_v24 = vld [vmem:[#allocation2 + $0x80] sm:$0xff] }
 0xaeb   : > { %v2285_v62 = vmax.f32 %v2249_v63, %v2281_v16  ;;  %v2282_v25 = vmax.f32 %v2246_v34, %v2278_v59  ;;  %v2212_v18 = vmax.f32 %v2172_v42, %v2208_v27  ;;  %v2280_v29 = vadd.f32 %v2276_v45, %v2265_v57  ;;  %v2423_v59 = vld [vmem:[#allocation9 + $0xc] sm:$0xf]  ;;  %v2783_v27 = vld [vmem:[#allocation2 + $0x90] sm:$0xff]  ;;  %v2781_v57 = vld [vmem:[#allocation2 + $0x88] sm:$0xff] }
 0xaec   : > { %7416 = vmatpush1.bf16.msra.mxu0 %v7415_v23  ;;  %v10704_v49 = vmov 0.0   ;;  %vm2331_vm11 = vcmask 1046528   ;;  %v2319_v53 = vadd.f32 %v2315_v15, %v10705_v38  ;;  %v2318_v44 = vadd.f32 %v2314_v60, %v2301_v1  ;;  %v2435_v23 = vpop.permute.xlu0 %2434  ;;  %v2788_v42 = vld [vmem:[#allocation6 + $0x20] sm:$0xff]  ;;  %v2784_v45 = vld [vmem:[#allocation2 + $0x98] sm:$0xff]  ;;  %v10711_v15 = vld [vmem:[#allocation34_spill] sm:$0xff] }
 0xaed   : > { %7417 = vmatprep.subr.bf16.mxu0 %v10693_v4  ;;  %v2248_v54 = vmax.f32 %v2212_v18, %v2244_v56  ;;  %v2320_v28 = vmax.f32 %v2282_v25, %v2316_v36  ;;  %vm8302_vm10 = vmmov 0   ;;  %v9609_v8 = vld [vmem:[#allocation13] sm:$0xff]  ;;  %v10710_v16 = vld [vmem:[#allocation35_spill] sm:$0xff]  ;;  %vm2536_vm9 = vcmask 72704  }
 0xaee   : > { %v2323_v61 = vmax.f32 %v2285_v62, %v2319_v53  ;;  %7044 = vmatprep.mubr.msk.f32.mxu1 %vm8302_vm10, %v10704_v49  ;;  %v2456_v35 = vpop.permute.xlu1 %2455  ;;  %v9613_v22 = vrot.slane %v9609_v8, %v10710_v16  ;;  %v9617_v34 = vrot.slane %v9609_v8, %v10711_v15  ;;  %v10712_v18 = vld [vmem:[#allocation40_spill] sm:$0xff]  ;;  %vm2579_vm8 = vcmask 318464  }
 0xaef   : > { %v2284_v2 = vmax.f32 %v2248_v54, %v2280_v29  ;;  %v9625_v29 = vrot.slane %v9609_v8, %v10712_v18  ;;  %vm10613_vm7 = vcmask 269312   ;;  %vm10612_vm6 = vcmask 261120  }
 0xaf0   : > { %7419 = vmatpush1.bf16.msra.mxu0 %v7418_v10  ;;  %v2447_v3 = vpop.permute.xlu0 %2446  ;;  %vm10611_vm5 = vcmask 252928   ;;  %vm10598_vm4 = vcmask 326656   ;;  %vm3483_vm3 = vcmask 39936   ;;  %vm3502_vm1 = vcmask 23552  }
 0xaf1   : > { %2367 = vmatprep.subr.mxu0 %v10704_v49  ;;  %v2322_v48 = vmax.f32 %v2284_v2, %v2318_v44 }
 0xaf4   : > { %6799 = vmatpush1.msk.msra.mxu0 %vm2331_vm11, %v2031_v20  ;;  %vm2546_vm11 = vcmask 64512   ;;  %v10713_v20 = vld [vmem:[#allocation41_spill] sm:$0xff] }
 0xaf5   : > { %2400 = vmatmul.mubr.f32.vlgmr.msra.gmra.mrb[14].mxu0 %v2320_v28  ;;  %7438 = vmatprep.subr.bf16.mxu0 %v10693_v4  ;;  %v9629_v53 = vrot.slane %v9609_v8, %v10713_v20 }
 0xaf6   : > { %6801 = vmatprep.mubr.msk.f32.mxu0 %vm2324_vm15, %v2323_v61 }
 0xaf7   : > { %10714 = vst [vmem:[#allocation67_spill] sm:$0xff] %v9629_v53 }
 0xaf9   : > { %2405 = vmatmul.mubr.f32.gmra.mrb[16].mxu0 %v2322_v48  ;;  %v10715_v48 = vld [vmem:[#allocation42_spill] sm:$0xff] }
 0xafa   : > { %7098 = vmatprep.mubr.msk.f32.mxu0 %vm8302_vm10, %v10704_v49 }
 0xba6   : > { %v9583_v55 = vpop.f32.mrb[10].mxu0 }
 0xba7   : > { %10706 = vst [vmem:[#allocation64_spill] sm:$0xff] %v9583_v55  ;;  %v9585_v6 = vpop.f32.mrb[11].mxu0 }
 0xba8   : > { %10707 = vst [vmem:[#allocation65_spill] sm:$0xff] %v9585_v6 }
 0xbaa   : > { %v9587_v13 = vpop.f32.mrb[12].mxu0 }
 0xbab   : > { %10708 = vst [vmem:[#allocation66_spill] sm:$0xff] %v9587_v13  ;;  %v9589_v37 = vpop.f32.mrb[13].mxu0 }
 0xbac   : > { %10709 = vst [vmem:[#allocation54_spill] sm:$0xff] %v9589_v37 }
 0xbc8   : > { %v9591_v33 = vpop.f32.mrb[14].mxu0 }
 0xbc9   : > { %v2437_v40 = vmul.f32 %v2430_v30, %v9591_v33  ;;  %v2403_v17 = vpop.f32.mrb[15].mxu0  ;;  %v9635_v30 = vrot.slane %v9609_v8, %v10715_v48 }
 0xbca   : > { %v10717_v17 = vld [vmem:[#allocation43_spill] sm:$0xff] }
 0xbcb   : > { %v2449_v51 = vadd.f32 %v2442_v58, %v2437_v40  ;;  %10716 = vst [vmem:[#allocation35_spill] sm:$0xff] %v9635_v30  ;;  %v9641_v58 = vrot.slane %v9609_v8, %v10717_v17 }
 0xbcc   : > { %v9594_v46 = vpop.f32.mrb[16].mxu0 }
 0xbcd   : > { %v2438_v50 = vmul.f32 %v2435_v23, %v9594_v46  ;;  %v2408_v31 = vpop.f32.mrb[17].mxu0  ;;  %v2451_v5 = vmax.f32 %v2449_v51, 0.0  ;;  %10718 = vst [vmem:[#allocation34_spill] sm:$0xff] %v9641_v58 }
 0xbcf   : > { %v2450_v41 = vadd.f32 %v2447_v3, %v2438_v50  ;;  %v10719_v3 = vld [vmem:[#allocation49_spill] sm:$0xff] }
 0xbd1   : > { %v2452_v14 = vmax.f32 %v2450_v41, 0.0  ;;  %v9646_v41 = vrot.slane %v9609_v8, %v10719_v3 }
 0xbd3   : > { %v7421_v32 = vpack.c.bf16 %v2452_v14, %v2451_v5  ;;  %10720 = vst [vmem:[#allocation40_spill] sm:$0xff] %v9646_v41 }
 0xbd5   : > { %7422 = vmatpush3.bf16.msra.mxu1 %v7421_v32 }
 0xbd6   : > { %7423 = vmatprep.subr.bf16.mxu1 %v10693_v4 }
 0xbd8   : > { %7045 = vmatmul.mubr.msk.f32.vlgmr.msra.gmra.mrb[10].mxu1 %vm881_vm0, %v2417_v43  ;;  %v10721_v43 = vld [vmem:[#allocation44_spill] sm:$0xff] }
 0xbd9   : > { %7065 = vmatprep.mubr.msk.f32.mxu1 %vm8302_vm10, %v10704_v49 }
 0xcab   : > { %v2527_v39 = vpop.f32.mrb[10].mxu1 }
 0xcac   : > { %v2528_v63 = vadd.f32 %v2527_v39, %v2456_v35  ;;  %v7046_v26 = vpop.f32.mrb[11].mxu1  ;;  %v9653_v35 = vrot.slane %v9609_v8, %v10721_v43 }
 0xcae   : > { %v2531_v10 = vmax.f32 %v2528_v63, 0.0  ;;  %10722 = vst [vmem:[#allocation41_spill] sm:$0xff] %v9653_v35 }
 0xcb0   : > { %2543 = vrot.lane.b32.xlu1 %v2531_v10, %s8303_s22  ;;  %2533 = vrot.lane.b32.xlu0 %v2531_v10, %s8304_s0  ;;  %v2575_v14 = vmul.f32 %v9635_v30, %v2531_v10 }
 0xcb4   : > { %2562 = vrot.lane.b32.xlu1 %v2531_v10, %s8296_s8  ;;  %2553 = vrot.lane.b32.xlu0 %v2531_v10, %s8305_s19 }
 0xcb8   : > { %2586 = vrot.lane.b32.xlu1 %v2531_v10, %s10615_s3  ;;  %2576 = vrot.lane.b32.xlu0 %v2531_v10, %s8298_s28 }
 0xcbc   : > { %2606 = vrot.lane.b32.xlu1 %v2531_v10, %s10614_s27  ;;  %2596 = vrot.lane.b32.xlu0 %v2531_v10, %s10603_s4 }
 0xcc0   : > { %2798 = vperm.xlu1 %7801, %v2780_v24   ;;  %2618 = vperm.xlu0 %7800, %v2423_v59   ;;  %v9657_v24 = vld [vmem:[#allocation13 + $0x8] sm:$0x1] }
 0xcc4   : > { %2810 = vperm.xlu1 %7801, %v2783_v27   ;;  %2803 = vperm.xlu0 %7800, %v2781_v57  }
 0xcc8   : > { %2824 = vperm.xlu1 %7801, %v2788_v42   ;;  %2815 = vperm.xlu0 %7800, %v2784_v45   ;;  %v9665_v42 = vrot.slane %v9657_v24, %v10711_v15 }
 0xcca   : > { %10723 = vst [vmem:[#allocation42_spill] sm:$0xff] %v9665_v42 }
 0xd22   : > { %v2544_v56 = vpop.permute.xlu1 %2543  ;;  %v2534_v36 = vpop.permute.xlu0 %2533 }
 0xd23   : > { %v2547_v1 = vsel %vm2546_vm11, 0.0, %v2544_v56  ;;  %v2537_v60 = vsel %vm2536_vm9, 0.0, %v2534_v36 }
 0xd24   : > { %v2552_v62 = vmul.f32 %v9613_v22, %v2547_v1  ;;  %v2542_v25 = vmul.f32 %v9617_v34, %v2537_v60  ;;  %v2421_v1 = vld [vmem:[#allocation7 + $0xc] sm:$0xf]  ;;  %v6802_v60 = vld [vmem:[%s10683_s29 + $0x30] sm:$0xff] }
 0xd26   : > { %v7424_v54 = vpack.c.bf16 %v2552_v62, %v2542_v25  ;;  %v2563_v28 = vpop.permute.xlu1 %2562  ;;  %v2554_v44 = vpop.permute.xlu0 %2553 }
 0xd27   : > { %v2565_v61 = vsel %vm1008_vm2, 0.0, %v2563_v28  ;;  %v2556_v2 = vsel %vm2324_vm15, 0.0, %v2554_v44 }
 0xd28   : > { %v2570_v23 = vmul.f32 %v9625_v29, %v2565_v61  ;;  %v2561_v40 = vmul.f32 %v9629_v53, %v2556_v2  ;;  %7425 = vmatpush3.bf16.msra.mxu1 %v7424_v54  ;;  %v6803_v61 = vld [vmem:[%s10683_s29 + $0x38] sm:$0xff] }
 0xd29   : > { %7426 = vmatprep.subr.bf16.mxu1 %v10693_v4 }
 0xd2a   : > { %v7427_v51 = vpack.c.bf16 %v2570_v23, %v2561_v40  ;;  %v2587_v50 = vpop.permute.xlu1 %2586  ;;  %v2577_v31 = vpop.permute.xlu0 %2576 }
 0xd2b   : > { %v2580_v5 = vsel %vm2579_vm8, %v2577_v31, 0.0  ;;  %v2590_v39 = vsel %vm10613_vm7, %v2587_v50, 0.0 }
 0xd2c   : > { %v2585_v32 = vmul.f32 %v9641_v58, %v2580_v5  ;;  %7428 = vmatpush3.bf16.msra.mxu1 %v7427_v51  ;;  %v2595_v10 = vmul.f32 %v9646_v41, %v2590_v39 }
 0xd2d   : > { %7429 = vmatprep.subr.bf16.mxu1 %v10693_v4 }
 0xd2e   : > { %v7430_v63 = vpack.c.bf16 %v2585_v32, %v2575_v14  ;;  %v2597_v26 = vpop.permute.xlu0 %2596  ;;  %v2607_v27 = vpop.permute.xlu1 %2606 }
 0xd2f   : > { %v2600_v59 = vsel %vm10612_vm6, %v2597_v26, 0.0  ;;  %v2610_v56 = vsel %vm10611_vm5, %v2607_v27, 0.0 }
 0xd30   : > { %v2605_v57 = vmul.f32 %v9653_v35, %v2600_v59  ;;  %7431 = vmatpush3.bf16.msra.mxu1 %v7430_v63  ;;  %v2615_v36 = vmul.f32 %v9665_v42, %v2610_v56 }
 0xd31   : > { %7432 = vmatprep.subr.bf16.mxu1 %v10693_v4 }
 0xd32   : > { %v7433_v45 = vpack.c.bf16 %v2605_v57, %v2595_v10  ;;  %v2786_v57 = vld [vmem:[#allocation4 + $0x20] sm:$0xff] }
 0xd34   : > { %7434 = vmatpush3.bf16.msra.mxu1 %v7433_v45 }
 0xd35   : > { %7063 = vmatprep.subr.mxu1 %v10704_v49 }
 0xd38   : > { %7064 = vmatpush3.msra.mxu1 %v2615_v36 }
 0xd39   : > { %7066 = vmatmul.mubr.msk.f32.vlgmr.msra.gmra.mrb[12].mxu1 %vm1115_vm12, %v2421_v1  ;;  %v2792_v1 = vld [vmem:[#allocation9 + $0x10] sm:$0xf] }
 0xd3a   : > { %7070 = vmatprep.mubr.msk.f32.mxu1 %vm1192_vm14, %v6802_v60  ;;  %v3358_v60 = vld [vmem:[#allocation2 + $0xa0] sm:$0xff] }
 0xd3f   : > { %v2619_v62 = vpop.permute.xlu0 %2618  ;;  %v2799_v23 = vpop.permute.xlu1 %2798 }
 0xd43   : > { %v2804_v2 = vpop.permute.xlu0 %2803  ;;  %v2811_v39 = vpop.permute.xlu1 %2810 }
 0xd47   : > { %v2816_v14 = vpop.permute.xlu0 %2815 }
 0xe0c   : > { %v2690_v25 = vpop.f32.mrb[12].mxu1 }
 0xe0d   : > { %v2691_v54 = vadd.f32 %v2690_v25, %v2619_v62  ;;  %v7067_v28 = vpop.f32.mrb[13].mxu1  ;;  %v3361_v62 = vld [vmem:[#allocation2 + $0xb0] sm:$0xff]  ;;  %v3359_v25 = vld [vmem:[#allocation2 + $0xa8] sm:$0xff] }
 0xe0e   : > { %v3362_v28 = vld [vmem:[#allocation2 + $0xb8] sm:$0xff] }
 0xe0f   : > { %v2694_v44 = vmax.f32 %v2691_v54, 0.0  ;;  %v3366_v54 = vld [vmem:[#allocation6 + $0x28] sm:$0xff] }
 0xe11   : > { %7068 = vmatprep.subr.msk.mxu1 %vm1199_vm13, %v2694_v44 }
 0xe12   : > { %7069 = vmatpush3.msk.msra.mxu1 %vm1199_vm13, %v2694_v44 }
 0xe13   : > { %7071 = vmatmul.mubr.msk.f32.vlgmr.msra.gmra.mrb[14].mxu1 %vm1192_vm14, %v6803_v61  ;;  %7435 = vmatprep.subr.bf16.mxu1 %v10693_v4 }
 0xe14   : > { %7077 = vmatprep.mubr.msk.f32.mxu1 %vm8302_vm10, %v10704_v49 }
 0xee6   : > { %v7072_v40 = vpop.f32.mrb[14].mxu1 }
 0xee7   : > { %v9685_v51 = vadd.f32 %v7072_v40, %v9594_v46  ;;  %v2770_v50 = vpop.f32.mrb[15].mxu1  ;;  %v2825_v46 = vpop.permute.xlu1 %2824 }
 0xee8   : > { %v9688_v31 = vadd.f32 %v2770_v50, %v9591_v33 }
 0xee9   : > { %v2807_v5 = vmul.f32 %v2804_v2, %v9685_v51 }
 0xeea   : > { %v2806_v32 = vmul.f32 %v2799_v23, %v9688_v31 }
 0xeeb   : > { %v2819_v63 = vadd.f32 %v2816_v14, %v2807_v5 }
 0xeec   : > { %v2818_v26 = vadd.f32 %v2811_v39, %v2806_v32 }
 0xeed   : > { %v2821_v59 = vmax.f32 %v2819_v63, 0.0 }
 0xeee   : > { %v2820_v10 = vmax.f32 %v2818_v26, 0.0 }
 0xef0   : > { %v7436_v27 = vpack.c.bf16 %v2821_v59, %v2820_v10 }
 0xef2   : > { %7437 = vmatpush3.bf16.msra.mxu1 %v7436_v27 }
 0xef5   : > { %7078 = vmatmul.mubr.msk.f32.vlgmr.msra.gmra.mrb[16].mxu1 %vm881_vm0, %v2786_v57 }
 0xfc8   : > { %v2896_v45 = vpop.f32.mrb[16].mxu1 }
 0xfc9   : > { %v2897_v56 = vadd.f32 %v2896_v45, %v2825_v46  ;;  %v7079_v33 = vpop.f32.mrb[17].mxu1 }
 0xfcb   : > { %v2900_v36 = vmax.f32 %v2897_v56, 0.0 }
 0xfcd   : > { %2907 = vrot.lane.b32.xlu1 %v2900_v36, %s8303_s22  ;;  %2902 = vrot.lane.b32.xlu0 %v2900_v36, %s8304_s0  ;;  %v2922_v45 = vmul.f32 %v2900_v36, %v9635_v30 }
 0xfd1   : > { %2917 = vrot.lane.b32.xlu1 %v2900_v36, %s8296_s8  ;;  %2912 = vrot.lane.b32.xlu0 %v2900_v36, %s8305_s19 }
 0xfd5   : > { %2928 = vrot.lane.b32.xlu1 %v2900_v36, %s10615_s3  ;;  %2923 = vrot.lane.b32.xlu0 %v2900_v36, %s8298_s28 }
 0xfd9   : > { %2938 = vrot.lane.b32.xlu1 %v2900_v36, %s10614_s27  ;;  %2933 = vrot.lane.b32.xlu0 %v2900_v36, %s10603_s4 }
 0xfdd   : > { %3113 = vrot.lane.b32.xlu1 %v9688_v31, %s8304_s0  ;;  %2945 = vperm.xlu0 %7800, %v2792_v1  }
 0xfe1   : > { %3134 = vrot.lane.b32.xlu1 %v9688_v31, %s8303_s22  ;;  %3115 = vrot.lane.b32.xlu0 %v9685_v51, %s8304_s0 }
 0xfe5   : > { %3154 = vrot.lane.b32.xlu1 %v9688_v31, %s8305_s19  ;;  %3136 = vrot.lane.b32.xlu0 %v9685_v51, %s8303_s22 }
 0xfe9   : > { %3174 = vrot.lane.b32.xlu1 %v9688_v31, %s8296_s8  ;;  %3156 = vrot.lane.b32.xlu0 %v9685_v51, %s8305_s19 }
 0xfed   : > { %3194 = vrot.lane.b32.xlu1 %v9688_v31, %s8298_s28  ;;  %3176 = vrot.lane.b32.xlu0 %v9685_v51, %s8296_s8 }
 0xff1   : > { %3214 = vrot.lane.b32.xlu1 %v9688_v31, %s10615_s3  ;;  %3196 = vrot.lane.b32.xlu0 %v9685_v51, %s8298_s28 }
 0xff5   : > { %3234 = vrot.lane.b32.xlu1 %v9688_v31, %s10603_s4  ;;  %3216 = vrot.lane.b32.xlu0 %v9685_v51, %s10615_s3 }
 0xff9   : > { %3254 = vrot.lane.b32.xlu1 %v9688_v31, %s10614_s27  ;;  %3236 = vrot.lane.b32.xlu0 %v9685_v51, %s10603_s4  ;;  %s10782_s4 = sshll.u32 %s10786_s30, 5 }
 0xffd   : > { %3376 = vperm.xlu1 %7801, %v3358_v60   ;;  %3256 = vrot.lane.b32.xlu0 %v9685_v51, %s10614_s27  ;;  %s10729_s27 = sld [smem:[#allocation74_spill]] }
0x1001   : > { %3388 = vperm.xlu1 %7801, %v3361_v62   ;;  %3381 = vperm.xlu0 %7800, %v3359_v25  }
0x1005   : > { %3402 = vperm.xlu1 %7801, %v3366_v54   ;;  %3393 = vperm.xlu0 %7800, %v3362_v28  }
0x103f   : > { %v2908_v44 = vpop.permute.xlu1 %2907  ;;  %v2903_v61 = vpop.permute.xlu0 %2902 }
0x1040   : > { %v2910_v2 = vsel %vm2546_vm11, 0.0, %v2908_v44  ;;  %v2905_v23 = vsel %vm2536_vm9, 0.0, %v2903_v61 }
0x1041   : > { %v2911_v40 = vmul.f32 %v2910_v2, %v9613_v22  ;;  %v2906_v50 = vmul.f32 %v2905_v23, %v9617_v34  ;;  %v2790_v2 = vld [vmem:[#allocation7 + $0x10] sm:$0xf]  ;;  %v6809_v23 = vld [vmem:[%s10683_s29 + $0x40] sm:$0xff] }
0x1042   : > { %7103 = vmatprep.mubr.msk.f32.mxu1 %vm1192_vm14, %v6809_v23 }
0x1043   : > { %v7439_v5 = vpack.c.bf16 %v2911_v40, %v2906_v50  ;;  %v2918_v14 = vpop.permute.xlu1 %2917  ;;  %v2913_v32 = vpop.permute.xlu0 %2912 }
0x1044   : > { %v2920_v39 = vsel %vm1008_vm2, 0.0, %v2918_v14  ;;  %v2915_v63 = vsel %vm2324_vm15, 0.0, %v2913_v32 }
0x1045   : > { %v2921_v26 = vmul.f32 %v2920_v39, %v9625_v29  ;;  %v2916_v59 = vmul.f32 %v2915_v63, %v9629_v53  ;;  %7440 = vmatpush3.bf16.msra.mxu0 %v7439_v5 }
0x1046   : > { %7441 = vmatprep.subr.bf16.mxu0 %v10693_v4 }
0x1047   : > { %v7442_v10 = vpack.c.bf16 %v2921_v26, %v2916_v59  ;;  %v2929_v27 = vpop.permute.xlu1 %2928  ;;  %v2924_v57 = vpop.permute.xlu0 %2923 }
0x1048   : > { %v2926_v46 = vsel %vm2579_vm8, %v2924_v57, 0.0  ;;  %v2931_v33 = vsel %vm10613_vm7, %v2929_v27, 0.0 }
0x1049   : > { %v2927_v56 = vmul.f32 %v2926_v46, %v9641_v58  ;;  %7443 = vmatpush3.bf16.msra.mxu0 %v7442_v10  ;;  %v2932_v25 = vmul.f32 %v2931_v33, %v9646_v41  ;;  %v3123_v10 = vsub.f32 1.0, %v9609_v8 }
0x104a   : > { %7444 = vmatprep.subr.bf16.mxu0 %v10693_v4 }
0x104b   : > { %v7445_v1 = vpack.c.bf16 %v2927_v56, %v2922_v45  ;;  %v2934_v60 = vpop.permute.xlu0 %2933  ;;  %v2939_v54 = vpop.permute.xlu1 %2938  ;;  %v3127_v46 = vrot.slane %v3123_v10, %v10711_v15  ;;  %v3167_v8 = vrot.slane %v3123_v10, %v10713_v20 }
0x104c   : > { %v2936_v62 = vsel %vm10612_vm6, %v2934_v60, 0.0  ;;  %v2941_v44 = vsel %vm10611_vm5, %v2939_v54, 0.0 }
0x104d   : > { %v2937_v28 = vmul.f32 %v2936_v62, %v9653_v35  ;;  %7446 = vmatpush3.bf16.msra.mxu0 %v7445_v1  ;;  %v2942_v61 = vmul.f32 %v2941_v44, %v9665_v42  ;;  %v3147_v1 = vrot.slane %v3123_v10, %v10710_v16  ;;  %v3128_v62 = vmul.f32 %v3127_v46, %v9688_v31 }
0x104e   : > { %7447 = vmatprep.subr.bf16.mxu0 %v10693_v4 }
0x104f   : > { %v7448_v36 = vpack.c.bf16 %v2937_v28, %v2932_v25  ;;  %v3114_v40 = vpop.permute.xlu1 %3113 }
0x1050   : > { %v3119_v57 = vsel %vm2536_vm9, 0.0, %v3114_v40  ;;  %v3207_v40 = vrot.slane %v3123_v10, %v10717_v17 }
0x1051   : > { %7449 = vmatpush3.bf16.msra.mxu0 %v7448_v36  ;;  %v3121_v56 = vmul.f32 %v3119_v57, %v9617_v34  ;;  %v3187_v36 = vrot.slane %v3123_v10, %v10712_v18 }
0x1052   : > { %7096 = vmatprep.subr.mxu0 %v10704_v49 }
0x1053   : > { %v3135_v5 = vpop.permute.xlu1 %3134  ;;  %v3130_v28 = vadd.f32 %v3128_v62, %v3121_v56  ;;  %v3188_v38 = vmul.f32 %v3187_v36, %v9688_v31 }
0x1054   : > { %v3140_v33 = vsel %vm2546_vm11, 0.0, %v3135_v5 }
0x1055   : > { %7097 = vmatpush3.msra.mxu0 %v2942_v61  ;;  %v3142_v54 = vmul.f32 %v3140_v33, %v9613_v22  ;;  %v3168_v33 = vmul.f32 %v3167_v8, %v9688_v31 }
0x1056   : > { %7099 = vmatmul.mubr.msk.f32.vlgmr.msra.gmra.mrb[18].mxu0 %vm1115_vm12, %v2790_v2  ;;  %7458 = vmatprep.subr.bf16.mxu0 %v10693_v4  ;;  %v3148_v2 = vmul.f32 %v3147_v1, %v9688_v31 }
0x1057   : > { %7123 = vmatprep.mubr.msk.f32.mxu0 %vm8302_vm10, %v10704_v49  ;;  %v3155_v32 = vpop.permute.xlu1 %3154 }
0x1058   : > { %v3160_v25 = vsel %vm2324_vm15, 0.0, %v3155_v32  ;;  %v3264_v32 = vsub.f32 1.0, %v9657_v24  ;;  %v3150_v57 = vadd.f32 %v3148_v2, %v3142_v54  ;;  %v3208_v54 = vmul.f32 %v3207_v40, %v9688_v31 }
0x1059   : > { %v3162_v23 = vmul.f32 %v3160_v25, %v9629_v53  ;;  %v3227_v25 = vrot.slane %v3123_v10, %v10719_v3 }
0x105b   : > { %v3175_v63 = vpop.permute.xlu1 %3174  ;;  %v3170_v7 = vadd.f32 %v3168_v33, %v3162_v23  ;;  %v3149_v33 = vmul.f32 %v3147_v1, %v9685_v51 }
0x105c   : > { %v9762_v50 = vpop.permute.xlu0 %2945  ;;  %v3180_v44 = vsel %vm1008_vm2, 0.0, %v3175_v63  ;;  %v3132_v63 = vmax.f32 %v9688_v31, %v3130_v28  ;;  %v9796_v28 = vrot.slane %v3264_v32, %v10711_v15  ;;  %v3228_v32 = vmul.f32 %v3227_v25, %v9688_v31 }
0x105d   : > { %v3182_v56 = vmul.f32 %v3180_v44, %v9625_v29 }
0x105e   : > { %v3152_v19 = vmax.f32 %v3132_v63, %v3150_v57  ;;  %v3169_v63 = vmul.f32 %v3167_v8, %v9685_v51  ;;  %v3106_v8 = vld [vmem:[#allocation18] sm:$0xff] }
0x105f   : > { %v3195_v59 = vpop.permute.xlu1 %3194  ;;  %v3190_v21 = vadd.f32 %v3188_v38, %v3182_v56 }
0x1060   : > { %v3116_v14 = vpop.permute.xlu0 %3115  ;;  %v3200_v5 = vsel %vm2579_vm8, %v3195_v59, 0.0 }
0x1061   : > { %v3120_v62 = vsel %vm2536_vm9, 0.0, %v3116_v14  ;;  %v3202_v47 = vmul.f32 %v3200_v5, %v9641_v58  ;;  %v9793_v14 = vrot.slane %v3123_v10, %v10721_v43  ;;  %v3172_v10 = vmax.f32 %v3152_v19, %v3170_v7 }
0x1062   : > { %v3122_v44 = vmul.f32 %v3120_v62, %v9617_v34 }
0x1063   : > { %v3215_v45 = vpop.permute.xlu1 %3214  ;;  %v3210_v12 = vadd.f32 %v3208_v54, %v3202_v47  ;;  %v3192_v56 = vmax.f32 %v3172_v10, %v3190_v21  ;;  %v3248_v1 = vmul.f32 %v9793_v14, %v9688_v31  ;;  %v3269_v54 = vmul.f32 %v9796_v28, %v9688_v31 }
0x1064   : > { %v3137_v39 = vpop.permute.xlu0 %3136  ;;  %v3220_v59 = vsel %vm10613_vm7, %v3215_v45, 0.0  ;;  %v3129_v45 = vmul.f32 %v3127_v46, %v9685_v51 }
0x1065   : > { %v3141_v24 = vsel %vm2546_vm11, 0.0, %v3137_v39  ;;  %v3222_v39 = vmul.f32 %v3220_v59, %v9646_v41 }
0x1066   : > { %v3143_v62 = vmul.f32 %v3141_v24, %v9613_v22  ;;  %v3131_v38 = vadd.f32 %v3129_v45, %v3122_v44  ;;  %v3212_v24 = vmax.f32 %v3192_v56, %v3210_v12  ;;  %v3107_v45 = vld [vmem:[#allocation18 + $0x8] sm:$0xff] }
0x1067   : > { %v3235_v61 = vpop.permute.xlu1 %3234  ;;  %v3230_v19 = vadd.f32 %v3228_v32, %v3222_v39  ;;  %v3189_v39 = vmul.f32 %v3187_v36, %v9685_v51  ;;  %v7450_v36 = vpack.c.bf16 %v3107_v45, %v3106_v8 }
0x1068   : > { %v3157_v26 = vpop.permute.xlu0 %3156  ;;  %v3240_v23 = vsel %vm10612_vm6, %v3235_v61, 0.0  ;;  %v3151_v47 = vadd.f32 %v3149_v33, %v3143_v62 }
0x1069   : > { %v3161_v5 = vsel %vm2324_vm15, 0.0, %v3157_v26  ;;  %v3242_v61 = vmul.f32 %v3240_v23, %v9653_v35  ;;  %v3232_v10 = vmax.f32 %v3212_v24, %v3230_v19  ;;  %v3249_v24 = vmul.f32 %v9793_v14, %v9685_v51 }
0x106a   : > { %v3163_v26 = vmul.f32 %v3161_v5, %v9629_v53 }
0x106b   : > { %v3255_v2 = vpop.permute.xlu1 %3254  ;;  %v3250_v21 = vadd.f32 %v3248_v1, %v3242_v61 }
0x106c   : > { %v3177_v27 = vpop.permute.xlu0 %3176  ;;  %v3260_v11 = vsel %vm10611_vm5, %v3255_v2, 0.0  ;;  %v3171_v2 = vadd.f32 %v3169_v63, %v3163_v26  ;;  %v3108_v26 = vld [vmem:[#allocation18 + $0x10] sm:$0xff] }
0x106d   : > { %v3181_v46 = vsel %vm1008_vm2, 0.0, %v3177_v27  ;;  %v3262_v7 = vmul.f32 %v3260_v11, %v9665_v42  ;;  %v3133_v27 = vmax.f32 %v9685_v51, %v3131_v38  ;;  %v3209_v11 = vmul.f32 %v3207_v40, %v9685_v51 }
0x106e   : > { %v3183_v44 = vmul.f32 %v3181_v46, %v9625_v29  ;;  %v3252_v63 = vmax.f32 %v3232_v10, %v3250_v21 }
0x106f   : > { %v3153_v32 = vmax.f32 %v3133_v27, %v3151_v47  ;;  %v3271_v38 = vadd.f32 %v3269_v54, %v3262_v7 }
0x1070   : > { %v3197_v60 = vpop.permute.xlu0 %3196  ;;  %v3191_v46 = vadd.f32 %v3189_v39, %v3183_v44 }
0x1071   : > { %v3201_v59 = vsel %vm2579_vm8, %v3197_v60, 0.0  ;;  %v3173_v40 = vmax.f32 %v3153_v32, %v3171_v2  ;;  %v3273_v7 = vmax.f32 %v3252_v63, %v3271_v38  ;;  %v3270_v2 = vmul.f32 %v9796_v28, %v9685_v51 }
0x1072   : > { %v3203_v12 = vmul.f32 %v3201_v59, %v9641_v58  ;;  %v3229_v59 = vmul.f32 %v3227_v25, %v9685_v51 }
0x1073   : > { %v3193_v25 = vmax.f32 %v3173_v40, %v3191_v46  ;;  %v3724_v40 = vld [vmem:[#allocation2 + $0xc0] sm:$0xff] }
0x1074   : > { %v3217_v0 = vpop.permute.xlu0 %3216  ;;  %v3211_v19 = vadd.f32 %v3209_v11, %v3203_v12 }
0x1075   : > { %v3221_v23 = vsel %vm10613_vm7, %v3217_v0, 0.0  ;;  %v3109_v0 = vld [vmem:[#allocation18 + $0x18] sm:$0xff]  ;;  %vm4216_vm7 = vcmask 97280  }
0x1076   : > { %v3223_v56 = vmul.f32 %v3221_v23, %v9646_v41  ;;  %v7454_v47 = vpack.c.bf16 %v3109_v0, %v3108_v26  ;;  %v3213_v27 = vmax.f32 %v3193_v25, %v3211_v19  ;;  %v3110_v23 = vld [vmem:[#allocation18 + $0x20] sm:$0xff]  ;;  %v3364_v0 = vld [vmem:[#allocation4 + $0x28] sm:$0xff] }
0x1077   : > { %v3725_v19 = vld [vmem:[#allocation2 + $0xc8] sm:$0xff] }
0x1078   : > { %v3237_v57 = vpop.permute.xlu0 %3236  ;;  %v3231_v54 = vadd.f32 %v3229_v59, %v3223_v56  ;;  %v3370_v59 = vld [vmem:[#allocation9 + $0x14] sm:$0xf] }
0x1079   : > { %v3241_v61 = vsel %vm10612_vm6, %v3237_v57, 0.0 }
0x107a   : > { %v3243_v57 = vmul.f32 %v3241_v61, %v9653_v35  ;;  %v3233_v14 = vmax.f32 %v3213_v27, %v3231_v54 }
0x107c   : > { %v3257_v60 = vpop.permute.xlu0 %3256  ;;  %v3251_v21 = vadd.f32 %v3249_v24, %v3243_v57  ;;  %v3377_v39 = vpop.permute.xlu1 %3376  ;;  %v3732_v57 = vld [vmem:[#allocation6 + $0x30] sm:$0xff] }
0x107d   : > { %v3261_v9 = vsel %vm10611_vm5, %v3257_v60, 0.0  ;;  %vm8315_vm5 = vmmov 1  }
0x107e   : > { %v3263_v44 = vmul.f32 %v3261_v9, %v9665_v42  ;;  %v3253_v8 = vmax.f32 %v3233_v14, %v3251_v21  ;;  %vm10082_vm6 = vmpackc.low %vm1199_vm13, %vm8315_vm5  ;;  %vm4436_vm5 = vcmask 15360  }
0x1080   : > { %v3382_v9 = vpop.permute.xlu0 %3381 }
0x1084   : > { %v3394_v60 = vpop.permute.xlu0 %3393 }
0x1129   : > { %v3017_v5 = vpop.f32.mrb[18].mxu0 }
0x112a   : > { %v3018_v33 = vadd.f32 %v3017_v5, %v9762_v50  ;;  %v7100_v62 = vpop.f32.mrb[19].mxu0  ;;  %v6810_v50 = vld [vmem:[%s10683_s29 + $0x48] sm:$0xff]  ;;  %v3272_v5 = vadd.f32 %v3270_v2, %v3263_v44 }
0x112b   : > { %v3389_v62 = vpop.permute.xlu1 %3388 }
0x112c   : > { %v3021_v1 = vmax.f32 %v3018_v33, 0.0  ;;  %v3274_v45 = vmax.f32 %v3253_v8, %v3272_v5 }
0x112e   : > { %7101 = vmatprep.subr.msk.mxu1 %vm1199_vm13, %v3021_v1 }
0x112f   : > { %7102 = vmatpush3.msk.msra.mxu1 %vm1199_vm13, %v3021_v1  ;;  %v3403_v46 = vpop.permute.xlu1 %3402 }
0x1130   : > { %7104 = vmatmul.mubr.msk.f32.vlgmr.msra.gmra.mrb[18].mxu1 %vm1192_vm14, %v6810_v50  ;;  %7451 = vmatprep.subr.bf16.mxu1 %v7450_v36  ;;  %v3727_v50 = vld [vmem:[#allocation2 + $0xd0] sm:$0xff] }
0x1131   : > { %7453 = vmatpush3.bf16.msra.mxu1 %v7450_v36  ;;  %7116 = vmatprep.mubr.msk.f32.mxu1 %vm10598_vm4, %v3273_v7  ;;  %v9859_v7 = vld [vmem:[#allocation15] sm:$0xff] }
0x1132   : > { %7455 = vmatprep.subr.bf16.mxu1 %v7454_v47  ;;  %v9863_v24 = vrot.slane %v9859_v7, %v10710_v16  ;;  %v9867_v25 = vrot.slane %v9859_v7, %v10711_v15  ;;  %v9873_v2 = vrot.slane %v9859_v7, %v10712_v18  ;;  %v9879_v5 = vrot.slane %v9859_v7, %v10713_v20 }
0x1135   : > { %7457 = vmatpush3.bf16.msra.mxu1 %v7454_v47  ;;  %v3728_v47 = vld [vmem:[#allocation2 + $0xd8] sm:$0xff] }
0x1136   : > { %7114 = vmatprep.subr.mxu1 %v3110_v23 }
0x1139   : > { %7115 = vmatpush3.msra.mxu1 %v3110_v23 }
0x113a   : > { %7117 = vmatmul.mubr.msk.f32.vlgmr.msra.gmra.mrb[20].mxu1 %vm10598_vm4, %v3274_v45  ;;  %7461 = vmatprep.subr.bf16.mxu1 %v10693_v4  ;;  %vm3526_vm4 = vcmask 89088  }
0x113b   : > { %7144 = vmatprep.mubr.msk.f32.mxu1 %vm8302_vm10, %v10704_v49 }
0x120d   : > { %v9844_v11 = vpop.f32.mrb[20].mxu1 }
0x120e   : > { %v3385_v28 = vmul.f32 %v9844_v11, %v3382_v9  ;;  %v9847_v12 = vpop.f32.mrb[21].mxu1 }
0x120f   : > { %v3384_v33 = vmul.f32 %v3377_v39, %v9847_v12 }
0x1210   : > { %v3397_v10 = vadd.f32 %v3394_v60, %v3385_v28  ;;  %v9885_v60 = vrot.slane %v9859_v7, %v10715_v48 }
0x1211   : > { %v3396_v32 = vadd.f32 %v3389_v62, %v3384_v33 }
0x1212   : > { %v3399_v38 = vmax.f32 %v3397_v10, 0.0  ;;  %v9891_v10 = vrot.slane %v9859_v7, %v10717_v17 }
0x1213   : > { %v3398_v61 = vmax.f32 %v3396_v32, 0.0 }
0x1215   : > { %v7459_v26 = vpack.c.bf16 %v3399_v38, %v3398_v61 }
0x1217   : > { %7460 = vmatpush3.bf16.msra.mxu0 %v7459_v26 }
0x121a   : > { %7124 = vmatmul.mubr.msk.f32.vlgmr.msra.gmra.mrb[20].mxu0 %vm881_vm0, %v3364_v0  ;;  %v9897_v0 = vrot.slane %v9859_v7, %v10719_v3 }
0x12ed   : > { %v3474_v56 = vpop.f32.mrb[20].mxu0 }
0x12ee   : > { %v3475_v1 = vadd.f32 %v3474_v56, %v3403_v46  ;;  %v7125_v36 = vpop.f32.mrb[21].mxu0 }
0x12f0   : > { %v3478_v63 = vmax.f32 %v3475_v1, 0.0  ;;  %v9903_v1 = vrot.slane %v9859_v7, %v10721_v43 }
0x12f2   : > { %3490 = vrot.lane.b32.xlu1 %v3478_v63, %s8309_s20  ;;  %3480 = vrot.lane.b32.xlu0 %v3478_v63, %s8310_s1  ;;  %v3522_v46 = vmul.f32 %v9885_v60, %v3478_v63 }
0x12f6   : > { %3509 = vrot.lane.b32.xlu1 %v3478_v63, %s8296_s8  ;;  %3499 = vrot.lane.b32.xlu0 %v3478_v63, %s8311_s26 }
0x12fa   : > { %3533 = vrot.lane.b32.xlu1 %v3478_v63, %s8312_s23  ;;  %3523 = vrot.lane.b32.xlu0 %v3478_v63, %s8298_s28 }
0x12fe   : > { %3551 = vrot.lane.b32.xlu1 %v3478_v63, %s8313_s6  ;;  %3542 = vrot.lane.b32.xlu0 %v3478_v63, %s8314_s21 }
0x1302   : > { %3742 = vperm.xlu1 %7801, %v3724_v40   ;;  %3562 = vperm.xlu0 %7800, %v3370_v59  }
0x1306   : > { %3754 = vperm.xlu1 %7801, %v3727_v50   ;;  %3747 = vperm.xlu0 %7800, %v3725_v19   ;;  %v9907_v50 = vld [vmem:[#allocation15 + $0x8] sm:$0x1] }
0x130a   : > { %3768 = vperm.xlu1 %7801, %v3732_v57   ;;  %3759 = vperm.xlu0 %7800, %v3728_v47  }
0x1364   : > { %v3491_v54 = vpop.permute.xlu1 %3490  ;;  %v3481_v44 = vpop.permute.xlu0 %3480 }
0x1365   : > { %v3493_v27 = vsel %vm1192_vm14, 0.0, %v3491_v54  ;;  %v3484_v21 = vsel %vm3483_vm3, 0.0, %v3481_v44  ;;  %v9915_v54 = vrot.slane %v9907_v50, %v10711_v15 }
0x1366   : > { %v3498_v23 = vmul.f32 %v9863_v24, %v3493_v27  ;;  %v3489_v14 = vmul.f32 %v9867_v25, %v3484_v21 }
0x1368   : > { %v7462_v8 = vpack.c.bf16 %v3498_v23, %v3489_v14  ;;  %v3510_v45 = vpop.permute.xlu1 %3509  ;;  %v3500_v9 = vpop.permute.xlu0 %3499  ;;  %v3368_v23 = vld [vmem:[#allocation7 + $0x14] sm:$0xf] }
0x1369   : > { %v3512_v39 = vsel %vm1008_vm2, 0.0, %v3510_v45  ;;  %v3503_v28 = vsel %vm3502_vm1, 0.0, %v3500_v9  ;;  %v6818_v14 = vld [vmem:[%s10683_s29 + $0x50] sm:$0xff] }
0x136a   : > { %v3517_v33 = vmul.f32 %v9873_v2, %v3512_v39  ;;  %v3508_v62 = vmul.f32 %v9879_v5, %v3503_v28  ;;  %7463 = vmatpush3.bf16.msra.mxu1 %v7462_v8  ;;  %7149 = vmatprep.mubr.msk.f32.mxu0 %vm1192_vm14, %v6818_v14 }
0x136b   : > { %7464 = vmatprep.subr.bf16.mxu1 %v10693_v4 }
0x136c   : > { %v7465_v32 = vpack.c.bf16 %v3517_v33, %v3508_v62  ;;  %v3534_v38 = vpop.permute.xlu1 %3533  ;;  %v3524_v61 = vpop.permute.xlu0 %3523  ;;  %v6819_v33 = vld [vmem:[%s10683_s29 + $0x58] sm:$0xff] }
0x136d   : > { %v3527_v26 = vsel %vm3526_vm4, %v3524_v61, 0.0  ;;  %v3536_v36 = vsel %vm2536_vm9, %v3534_v38, 0.0 }
0x136e   : > { %v3532_v56 = vmul.f32 %v9891_v10, %v3527_v26  ;;  %7466 = vmatpush3.bf16.msra.mxu1 %v7465_v32  ;;  %v3541_v57 = vmul.f32 %v9897_v0, %v3536_v36 }
0x136f   : > { %7467 = vmatprep.subr.bf16.mxu1 %v10693_v4 }
0x1370   : > { %v7468_v40 = vpack.c.bf16 %v3532_v56, %v3522_v46  ;;  %v3543_v59 = vpop.permute.xlu0 %3542  ;;  %v3552_v63 = vpop.permute.xlu1 %3551 }
0x1371   : > { %v3545_v19 = vsel %vm2546_vm11, %v3543_v59, 0.0  ;;  %v3554_v27 = vsel %vm2324_vm15, %v3552_v63, 0.0 }
0x1372   : > { %v3550_v47 = vmul.f32 %v9903_v1, %v3545_v19  ;;  %7469 = vmatpush3.bf16.msra.mxu1 %v7468_v40  ;;  %v3559_v21 = vmul.f32 %v9915_v54, %v3554_v27  ;;  %v3730_v27 = vld [vmem:[#allocation4 + $0x30] sm:$0xff] }
0x1373   : > { %7470 = vmatprep.subr.bf16.mxu1 %v10693_v4 }
0x1374   : > { %v7471_v44 = vpack.c.bf16 %v3550_v47, %v3541_v57 }
0x1376   : > { %7472 = vmatpush3.bf16.msra.mxu1 %v7471_v44 }
0x1377   : > { %7142 = vmatprep.subr.mxu1 %v10704_v49 }
0x137a   : > { %7143 = vmatpush3.msra.mxu1 %v3559_v21 }
0x137b   : > { %7145 = vmatmul.mubr.msk.f32.vlgmr.msra.gmra.mrb[22].mxu1 %vm1115_vm12, %v3368_v23 }
0x1381   : > { %v3563_v8 = vpop.permute.xlu0 %3562  ;;  %v3743_v32 = vpop.permute.xlu1 %3742 }
0x1385   : > { %v3748_v62 = vpop.permute.xlu0 %3747  ;;  %v3755_v59 = vpop.permute.xlu1 %3754 }
0x1389   : > { %v3760_v36 = vpop.permute.xlu0 %3759 }
0x144e   : > { %v3634_v45 = vpop.f32.mrb[22].mxu1 }
0x144f   : > { %v3635_v9 = vadd.f32 %v3634_v45, %v3563_v8  ;;  %v7146_v39 = vpop.f32.mrb[23].mxu1  ;;  %v3736_v8 = vld [vmem:[#allocation9 + $0x18] sm:$0xf]  ;;  %v4302_v45 = vld [vmem:[#allocation2 + $0xe0] sm:$0xff] }
0x1450   : > { %v4303_v39 = vld [vmem:[#allocation2 + $0xe8] sm:$0xff] }
0x1451   : > { %v3638_v28 = vmax.f32 %v3635_v9, 0.0  ;;  %v4305_v9 = vld [vmem:[#allocation2 + $0xf0] sm:$0xff] }
0x1453   : > { %7147 = vmatprep.subr.msk.mxu0 %vm1199_vm13, %v3638_v28 }
0x1454   : > { %7148 = vmatpush3.msk.msra.mxu0 %vm1199_vm13, %v3638_v28  ;;  %v4310_v28 = vld [vmem:[#allocation6 + $0x38] sm:$0xff] }
0x1455   : > { %7150 = vmatmul.mubr.msk.f32.vlgmr.msra.gmra.mrb[22].mxu0 %vm1192_vm14, %v6819_v33  ;;  %7473 = vmatprep.subr.bf16.mxu0 %v10693_v4  ;;  %v4306_v33 = vld [vmem:[#allocation2 + $0xf8] sm:$0xff] }
0x1456   : > { %7156 = vmatprep.mubr.msk.f32.mxu0 %vm8302_vm10, %v10704_v49 }
0x1528   : > { %v7151_v38 = vpop.f32.mrb[22].mxu0 }
0x1529   : > { %v9935_v61 = vadd.f32 %v7151_v38, %v9844_v11  ;;  %v3714_v26 = vpop.f32.mrb[23].mxu0  ;;  %v3769_v11 = vpop.permute.xlu1 %3768 }
0x152a   : > { %v9938_v46 = vadd.f32 %v3714_v26, %v9847_v12 }
0x152b   : > { %v3751_v56 = vmul.f32 %v3748_v62, %v9935_v61 }
0x152c   : > { %v3750_v40 = vmul.f32 %v3743_v32, %v9938_v46 }
0x152d   : > { %v3763_v19 = vadd.f32 %v3760_v36, %v3751_v56 }
0x152e   : > { %v3762_v57 = vadd.f32 %v3755_v59, %v3750_v40 }
0x152f   : > { %v3765_v63 = vmax.f32 %v3763_v19, 0.0 }
0x1530   : > { %v3764_v47 = vmax.f32 %v3762_v57, 0.0 }
0x1532   : > { %v7474_v44 = vpack.c.bf16 %v3765_v63, %v3764_v47 }
0x1534   : > { %7475 = vmatpush3.bf16.msra.mxu0 %v7474_v44 }
0x1535   : > { %7476 = vmatprep.subr.bf16.mxu0 %v10693_v4 }
0x1537   : > { %7157 = vmatmul.mubr.msk.f32.vlgmr.msra.gmra.mrb[24].mxu0 %vm881_vm0, %v3730_v27 }
0x1538   : > { %7177 = vmatprep.mubr.msk.f32.mxu0 %vm8302_vm10, %v10704_v49 }
0x160a   : > { %v3840_v12 = vpop.f32.mrb[24].mxu0 }
0x160b   : > { %v3841_v21 = vadd.f32 %v3840_v12, %v3769_v11  ;;  %v7158_v23 = vpop.f32.mrb[25].mxu0 }
0x160d   : > { %v3844_v14 = vmax.f32 %v3841_v21, 0.0 }
0x160f   : > { %3851 = vrot.lane.b32.xlu1 %v3844_v14, %s8309_s20  ;;  %3846 = vrot.lane.b32.xlu0 %v3844_v14, %s8310_s1  ;;  %v3866_v23 = vmul.f32 %v3844_v14, %v9885_v60 }
0x1613   : > { %3861 = vrot.lane.b32.xlu1 %v3844_v14, %s8296_s8  ;;  %3856 = vrot.lane.b32.xlu0 %v3844_v14, %s8311_s26 }
0x1617   : > { %3872 = vrot.lane.b32.xlu1 %v3844_v14, %s8312_s23  ;;  %3867 = vrot.lane.b32.xlu0 %v3844_v14, %s8298_s28 }
0x161b   : > { %3882 = vrot.lane.b32.xlu1 %v3844_v14, %s8313_s6  ;;  %3877 = vrot.lane.b32.xlu0 %v3844_v14, %s8314_s21 }
0x161f   : > { %4056 = vrot.lane.b32.xlu1 %v9935_v61, %s8310_s1  ;;  %4054 = vrot.lane.b32.xlu0 %v9938_v46, %s8310_s1 }
0x1623   : > { %4077 = vrot.lane.b32.xlu1 %v9935_v61, %s8309_s20  ;;  %4075 = vrot.lane.b32.xlu0 %v9938_v46, %s8309_s20 }
0x1627   : > { %3889 = vperm.xlu1 %7801, %v3736_v8   ;;  %4095 = vrot.lane.b32.xlu0 %v9938_v46, %s8311_s26 }
0x162b   : > { %4115 = vrot.lane.b32.xlu1 %v9938_v46, %s8296_s8  ;;  %4097 = vrot.lane.b32.xlu0 %v9935_v61, %s8311_s26 }
0x162f   : > { %4135 = vrot.lane.b32.xlu1 %v9938_v46, %s8298_s28  ;;  %4117 = vrot.lane.b32.xlu0 %v9935_v61, %s8296_s8 }
0x1633   : > { %4155 = vrot.lane.b32.xlu1 %v9938_v46, %s8312_s23  ;;  %4137 = vrot.lane.b32.xlu0 %v9935_v61, %s8298_s28 }
0x1637   : > { %4175 = vrot.lane.b32.xlu1 %v9938_v46, %s8314_s21  ;;  %4157 = vrot.lane.b32.xlu0 %v9935_v61, %s8312_s23 }
0x163b   : > { %4195 = vrot.lane.b32.xlu1 %v9938_v46, %s8313_s6  ;;  %4177 = vrot.lane.b32.xlu0 %v9935_v61, %s8314_s21 }
0x163f   : > { %4320 = vperm.xlu1 %7801, %v4302_v45   ;;  %4197 = vrot.lane.b32.xlu0 %v9935_v61, %s8313_s6 }
0x1643   : > { %4332 = vperm.xlu1 %7801, %v4305_v9   ;;  %4325 = vperm.xlu0 %7800, %v4303_v39  }
0x1647   : > { %4346 = vperm.xlu1 %7801, %v4310_v28   ;;  %4337 = vperm.xlu0 %7800, %v4306_v33  }
0x1681   : > { %v3852_v62 = vpop.permute.xlu1 %3851  ;;  %v3847_v32 = vpop.permute.xlu0 %3846 }
0x1682   : > { %v3854_v38 = vsel %vm1192_vm14, 0.0, %v3852_v62  ;;  %v3849_v26 = vsel %vm3483_vm3, 0.0, %v3847_v32 }
0x1683   : > { %v3855_v56 = vmul.f32 %v3854_v38, %v9863_v24  ;;  %v3850_v36 = vmul.f32 %v3849_v26, %v9867_v25 }
0x1685   : > { %v7477_v40 = vpack.c.bf16 %v3855_v56, %v3850_v36  ;;  %v3862_v59 = vpop.permute.xlu1 %3861  ;;  %v3857_v19 = vpop.permute.xlu0 %3856  ;;  %v3734_v56 = vld [vmem:[#allocation7 + $0x18] sm:$0xf]  ;;  %v6825_v36 = vld [vmem:[%s10683_s29 + $0x60] sm:$0xff] }
0x1686   : > { %v3864_v57 = vsel %vm1008_vm2, 0.0, %v3862_v59  ;;  %v3859_v63 = vsel %vm3502_vm1, 0.0, %v3857_v19  ;;  %7182 = vmatprep.mubr.msk.f32.mxu1 %vm1192_vm14, %v6825_v36 }
0x1687   : > { %v3865_v47 = vmul.f32 %v3864_v57, %v9873_v2  ;;  %v3860_v44 = vmul.f32 %v3859_v63, %v9879_v5  ;;  %7478 = vmatpush3.bf16.msra.mxu0 %v7477_v40 }
0x1688   : > { %7479 = vmatprep.subr.bf16.mxu0 %v10693_v4 }
0x1689   : > { %v7480_v27 = vpack.c.bf16 %v3865_v47, %v3860_v44  ;;  %v3873_v11 = vpop.permute.xlu1 %3872  ;;  %v3868_v12 = vpop.permute.xlu0 %3867 }
0x168a   : > { %v3870_v21 = vsel %vm3526_vm4, %v3868_v12, 0.0  ;;  %v3875_v45 = vsel %vm2536_vm9, %v3873_v11, 0.0 }
0x168b   : > { %v3871_v8 = vmul.f32 %v3870_v21, %v9891_v10  ;;  %7481 = vmatpush3.bf16.msra.mxu0 %v7480_v27  ;;  %v3876_v33 = vmul.f32 %v3875_v45, %v9897_v0  ;;  %v4064_v21 = vsub.f32 1.0, %v9859_v7 }
0x168c   : > { %7482 = vmatprep.subr.bf16.mxu0 %v10693_v4 }
0x168d   : > { %v7483_v9 = vpack.c.bf16 %v3871_v8, %v3866_v23  ;;  %v3878_v39 = vpop.permute.xlu0 %3877  ;;  %v3883_v62 = vpop.permute.xlu1 %3882  ;;  %v4128_v36 = vrot.slane %v4064_v21, %v10712_v18 }
0x168e   : > { %v3880_v28 = vsel %vm2546_vm11, %v3878_v39, 0.0  ;;  %v3885_v38 = vsel %vm2324_vm15, %v3883_v62, 0.0 }
0x168f   : > { %v3881_v32 = vmul.f32 %v3880_v28, %v9903_v1  ;;  %7484 = vmatpush3.bf16.msra.mxu0 %v7483_v9  ;;  %v3886_v26 = vmul.f32 %v3885_v38, %v9915_v54  ;;  %v4068_v9 = vrot.slane %v4064_v21, %v10711_v15  ;;  %v4088_v28 = vrot.slane %v4064_v21, %v10710_v16 }
0x1690   : > { %7485 = vmatprep.subr.bf16.mxu0 %v10693_v4  ;;  %v4205_v38 = vsub.f32 1.0, %v9907_v50 }
0x1691   : > { %v7486_v14 = vpack.c.bf16 %v3881_v32, %v3876_v33  ;;  %v4055_v40 = vpop.permute.xlu0 %4054  ;;  %v4057_v59 = vpop.permute.xlu1 %4056  ;;  %v4108_v32 = vrot.slane %v4064_v21, %v10713_v20  ;;  %v4070_v52 = vmul.f32 %v4068_v9, %v9935_v61  ;;  %v4089_v50 = vmul.f32 %v4088_v28, %v9938_v46 }
0x1692   : > { %v4060_v8 = vsel %vm3483_vm3, 0.0, %v4055_v40  ;;  %v4061_v39 = vsel %vm3483_vm3, 0.0, %v4057_v59  ;;  %v4069_v40 = vmul.f32 %v4068_v9, %v9938_v46  ;;  %v4090_v42 = vmul.f32 %v4088_v28, %v9935_v61 }
0x1693   : > { %7487 = vmatpush3.bf16.msra.mxu0 %v7486_v14  ;;  %v4062_v62 = vmul.f32 %v4060_v8, %v9867_v25  ;;  %v4063_v7 = vmul.f32 %v4061_v39, %v9867_v25  ;;  %v4168_v8 = vrot.slane %v4064_v21, %v10719_v3  ;;  %v4109_v35 = vmul.f32 %v4108_v32, %v9938_v46 }
0x1694   : > { %7175 = vmatprep.subr.mxu0 %v10704_v49  ;;  %v4209_v9 = vrot.slane %v4205_v38, %v10711_v15 }
0x1695   : > { %v4076_v19 = vpop.permute.xlu0 %4075  ;;  %v4078_v57 = vpop.permute.xlu1 %4077  ;;  %v4072_v55 = vadd.f32 %v4070_v52, %v4063_v7  ;;  %v4129_v52 = vmul.f32 %v4128_v36, %v9938_v46 }
0x1696   : > { %v4081_v33 = vsel %vm1192_vm14, 0.0, %v4076_v19  ;;  %v4148_v19 = vrot.slane %v4064_v21, %v10717_v17 }
0x1697   : > { %7176 = vmatpush3.msra.mxu0 %v3886_v26  ;;  %v4082_v26 = vsel %vm1192_vm14, 0.0, %v4078_v57  ;;  %v4083_v59 = vmul.f32 %v4081_v33, %v9863_v24  ;;  %v4188_v57 = vrot.slane %v4064_v21, %v10721_v43 }
0x1698   : > { %7178 = vmatmul.mubr.msk.f32.vlgmr.msra.gmra.mrb[26].mxu0 %vm1115_vm12, %v3734_v56  ;;  %7497 = vmatprep.subr.bf16.mxu0 %v10693_v4  ;;  %v4084_v13 = vmul.f32 %v4082_v26, %v9863_v24  ;;  %v4110_v26 = vmul.f32 %v4108_v32, %v9935_v61 }
0x1699   : > { %7217 = vmatprep.mubr.msk.f32.mxu0 %vm8302_vm10, %v10704_v49  ;;  %v4096_v63 = vpop.permute.xlu0 %4095  ;;  %v4091_v41 = vadd.f32 %v4089_v50, %v4083_v59 }
0x169a   : > { %v4101_v56 = vsel %vm3502_vm1, 0.0, %v4096_v63  ;;  %v4071_v63 = vadd.f32 %v4069_v40, %v4062_v62  ;;  %v4092_v7 = vadd.f32 %v4090_v42, %v4084_v13 }
0x169b   : > { %v4103_v6 = vmul.f32 %v4101_v56, %v9879_v5  ;;  %v4130_v56 = vmul.f32 %v4128_v36, %v9935_v61 }
0x169c   : > { %v4073_v28 = vmax.f32 %v9938_v46, %v4071_v63 }
0x169d   : > { %v4098_v44 = vpop.permute.xlu0 %4097  ;;  %v4111_v38 = vadd.f32 %v4109_v35, %v4103_v6  ;;  %v4169_v35 = vmul.f32 %v4168_v8, %v9938_v46 }
0x169e   : > { %v4102_v39 = vsel %vm3502_vm1, 0.0, %v4098_v44  ;;  %v4093_v36 = vmax.f32 %v4073_v28, %v4091_v41 }
0x169f   : > { %v4104_v44 = vmul.f32 %v4102_v39, %v9879_v5  ;;  %v4074_v39 = vmax.f32 %v9935_v61, %v4072_v55 }
0x16a1   : > { %v4118_v11 = vpop.permute.xlu0 %4117  ;;  %v4112_v30 = vadd.f32 %v4110_v26, %v4104_v44 }
0x16a2   : > { %v4122_v21 = vsel %vm1008_vm2, 0.0, %v4118_v11 }
0x16a3   : > { %v4124_v59 = vmul.f32 %v4122_v21, %v9873_v2 }
0x16a5   : > { %v4138_v23 = vpop.permute.xlu0 %4137  ;;  %v4132_v53 = vadd.f32 %v4130_v56, %v4124_v59  ;;  %v4170_v56 = vmul.f32 %v4168_v8, %v9935_v61  ;;  %v4211_v8 = vmul.f32 %v4209_v9, %v9935_v61 }
0x16a6   : > { %v10015_v47 = vpop.permute.xlu1 %3889  ;;  %v4142_v11 = vsel %vm3526_vm4, %v4138_v23, 0.0  ;;  %v4113_v23 = vmax.f32 %v4093_v36, %v4111_v38 }
0x16a7   : > { %v4144_v63 = vmul.f32 %v4142_v11, %v9891_v10 }
0x16a9   : > { %v4158_v14 = vpop.permute.xlu0 %4157 }
0x16aa   : > { %v4116_v27 = vpop.permute.xlu1 %4115  ;;  %v4162_v13 = vsel %vm2536_vm9, %v4158_v14, 0.0  ;;  %v4150_v14 = vmul.f32 %v4148_v19, %v9935_v61 }
0x16ab   : > { %v4121_v33 = vsel %vm1008_vm2, 0.0, %v4116_v27  ;;  %v4164_v26 = vmul.f32 %v4162_v13, %v9897_v0 }
0x16ac   : > { %v4123_v27 = vmul.f32 %v4121_v33, %v9873_v2 }
0x16ad   : > { %v4178_v58 = vpop.permute.xlu0 %4177  ;;  %v4172_v36 = vadd.f32 %v4170_v56, %v4164_v26 }
0x16ae   : > { %v4136_v12 = vpop.permute.xlu1 %4135  ;;  %v4131_v6 = vadd.f32 %v4129_v52, %v4123_v27  ;;  %v4182_v55 = vsel %vm2546_vm11, %v4178_v58, 0.0  ;;  %v4189_v52 = vmul.f32 %v4188_v57, %v9938_v46  ;;  %v4190_v58 = vmul.f32 %v4188_v57, %v9935_v61 }
0x16af   : > { %v4141_v62 = vsel %vm3526_vm4, %v4136_v12, 0.0  ;;  %v4149_v12 = vmul.f32 %v4148_v19, %v9938_v46  ;;  %v4184_v59 = vmul.f32 %v4182_v55, %v9903_v1 }
0x16b0   : > { %v4143_v32 = vmul.f32 %v4141_v62, %v9891_v10  ;;  %v4133_v27 = vmax.f32 %v4113_v23, %v4131_v6 }
0x16b1   : > { %v4198_v21 = vpop.permute.xlu0 %4197 }
0x16b2   : > { %v4156_v45 = vpop.permute.xlu1 %4155  ;;  %v4151_v41 = vadd.f32 %v4149_v12, %v4143_v32  ;;  %v4202_v28 = vsel %vm2324_vm15, %v4198_v21, 0.0  ;;  %v4210_v12 = vmul.f32 %v4209_v9, %v9938_v46  ;;  %v6826_v21 = vld [vmem:[%s10683_s29 + $0x68] sm:$0xff] }
0x16b3   : > { %v4161_v40 = vsel %vm2536_vm9, %v4156_v45, 0.0  ;;  %v4094_v45 = vmax.f32 %v4074_v39, %v4092_v7  ;;  %v4051_v39 = vld [vmem:[#allocation19 + $0x8] sm:$0xf] }
0x16b4   : > { %v4163_v42 = vmul.f32 %v4161_v40, %v9897_v0  ;;  %v4152_v40 = vadd.f32 %v4150_v14, %v4144_v63  ;;  %v4153_v11 = vmax.f32 %v4133_v27, %v4151_v41 }
0x16b5   : > { %v4114_v44 = vmax.f32 %v4094_v45, %v4112_v30  ;;  %v4192_v45 = vadd.f32 %v4190_v58, %v4184_v59 }
0x16b6   : > { %v4176_v37 = vpop.permute.xlu1 %4175  ;;  %v4171_v7 = vadd.f32 %v4169_v35, %v4163_v42 }
0x16b7   : > { %v4181_v33 = vsel %vm2546_vm11, %v4176_v37, 0.0  ;;  %v4134_v30 = vmax.f32 %v4114_v44, %v4132_v53 }
0x16b8   : > { %v4183_v37 = vmul.f32 %v4181_v33, %v9903_v1  ;;  %v4204_v33 = vmul.f32 %v4202_v28, %v9915_v54  ;;  %v4173_v35 = vmax.f32 %v4153_v11, %v4171_v7  ;;  %v4308_v11 = vld [vmem:[#allocation4 + $0x38] sm:$0xff] }
0x16b9   : > { %v4154_v42 = vmax.f32 %v4134_v30, %v4152_v40 }
0x16ba   : > { %v4196_v50 = vpop.permute.xlu1 %4195  ;;  %v4191_v19 = vadd.f32 %v4189_v52, %v4183_v37  ;;  %v4213_v55 = vadd.f32 %v4211_v8, %v4204_v33  ;;  %v4314_v33 = vld [vmem:[#allocation9 + $0x1c] sm:$0xf]  ;;  %v4666_v8 = vld [vmem:[#allocation6 + $0x40] sm:$0xff] }
0x16bb   : > { %v4201_v62 = vsel %vm2324_vm15, %v4196_v50, 0.0  ;;  %v4050_v50 = vld [vmem:[#allocation19] sm:$0xff] }
0x16bc   : > { %v4203_v38 = vmul.f32 %v4201_v62, %v9915_v54  ;;  %v7488_v23 = vpack.c.bf16 %v4051_v39, %v4050_v50  ;;  %v4193_v63 = vmax.f32 %v4173_v35, %v4191_v19  ;;  %v4662_v35 = vld [vmem:[#allocation2 + $0x118] sm:$0xff]  ;;  %v7596_v62 = vadd.f32 %v9685_v51, %v9685_v51 }
0x16be   : > { %v4212_v57 = vadd.f32 %v4210_v12, %v4203_v38  ;;  %v4321_v14 = vpop.permute.xlu1 %4320 }
0x16c0   : > { %v4214_v9 = vmax.f32 %v4193_v63, %v4212_v57  ;;  %v831_v57 = vld [vmem:[#allocation16] sm:$0xff] }
0x16c2   : > { %v4326_v44 = vpop.permute.xlu0 %4325  ;;  %v4333_v38 = vpop.permute.xlu1 %4332 }
0x16c6   : > { %v4338_v28 = vpop.permute.xlu0 %4337  ;;  %v4347_v19 = vpop.permute.xlu1 %4346 }
0x176b   : > { %v3961_v32 = vpop.f32.mrb[26].mxu0 }
0x176c   : > { %v3962_v13 = vadd.f32 %v3961_v32, %v10015_v47  ;;  %v7179_v6 = vpop.f32.mrb[27].mxu0  ;;  %v4174_v47 = vmax.f32 %v4154_v42, %v4172_v36  ;;  %v4658_v36 = vld [vmem:[#allocation2 + $0x100] sm:$0xff]  ;;  %v10112_v42 = vrot.slane %v831_v57, %v10710_v16 }
0x176d   : > { %v4659_v6 = vld [vmem:[#allocation2 + $0x108] sm:$0xff] }
0x176e   : > { %v3965_v53 = vmax.f32 %v3962_v13, 0.0  ;;  %v4194_v41 = vmax.f32 %v4174_v47, %v4192_v45  ;;  %v4661_v13 = vld [vmem:[#allocation2 + $0x110] sm:$0xff]  ;;  %v10115_v45 = vrot.slane %v831_v57, %v10711_v15  ;;  %v10128_v15 = vrot.slane %v831_v57, %v10717_v17 }
0x1770   : > { %7180 = vmatprep.subr.msk.mxu1 %vm1199_vm13, %v3965_v53  ;;  %v4215_v37 = vmax.f32 %v4194_v41, %v4213_v55  ;;  %v10125_v41 = vrot.slane %v831_v57, %v10712_v18 }
0x1771   : > { %7181 = vmatpush3.msk.msra.mxu1 %vm1199_vm13, %v3965_v53 }
0x1772   : > { %7183 = vmatmul.mubr.msk.f32.vlgmr.msra.gmra.mrb[24].mxu1 %vm1192_vm14, %v6826_v21  ;;  %7490 = vmatprep.subr.msk.bf16.mxu1 %vm10082_vm6, %v7488_v23 }
0x1773   : > { %7493 = vmatpush3.bf16.msk.msra.mxu1 %vm10082_vm6, %v7488_v23  ;;  %7189 = vmatprep.mubr.msk.f32.mxu1 %vm4216_vm7, %v4214_v9  ;;  %v10122_v9 = vrot.slane %v831_v57, %v10713_v20 }
0x1774   : > { %7494 = vmatprep.subr.bf16.mxu1 %v10693_v4 }
0x1776   : > { %7190 = vmatmul.mubr.msk.f32.vlgmr.msra.gmra.mrb[26].mxu1 %vm4216_vm7, %v4215_v37 }
0x1777   : > { %7196 = vmatprep.mubr.msk.f32.mxu1 %vm8302_vm10, %v10704_v49 }
0x1849   : > { %v10098_v26 = vpop.f32.mrb[26].mxu1 }
0x184a   : > { %v4329_v52 = vmul.f32 %v10098_v26, %v4326_v44  ;;  %v10101_v27 = vpop.f32.mrb[27].mxu1 }
0x184b   : > { %v4328_v7 = vmul.f32 %v4321_v14, %v10101_v27 }
0x184c   : > { %v4341_v40 = vadd.f32 %v4338_v28, %v4329_v52  ;;  %v10133_v28 = vrot.slane %v831_v57, %v10715_v48 }
0x184d   : > { %v4340_v56 = vadd.f32 %v4333_v38, %v4328_v7  ;;  %v10140_v38 = vrot.slane %v831_v57, %v10721_v43 }
0x184e   : > { %v4343_v58 = vmax.f32 %v4341_v40, 0.0 }
0x184f   : > { %v4342_v59 = vmax.f32 %v4340_v56, 0.0 }
0x1851   : > { %v7495_v30 = vpack.c.bf16 %v4343_v58, %v4342_v59  ;;  %v10144_v58 = vrot.slane %v831_v57, %v10719_v3 }
0x1853   : > { %7496 = vmatpush3.bf16.msra.mxu1 %v7495_v30 }
0x1856   : > { %7197 = vmatmul.mubr.msk.f32.vlgmr.msra.gmra.mrb[28].mxu1 %vm881_vm0, %v4308_v11 }
0x1929   : > { %v4418_v12 = vpop.f32.mrb[28].mxu1 }
0x192a   : > { %v4419_v32 = vadd.f32 %v4418_v12, %v4347_v19  ;;  %v7198_v50 = vpop.f32.mrb[29].mxu1  ;;  %v10151_v12 = vld [vmem:[#allocation16 + $0x8] ss:$0 sm:$0xff] }
0x192b   : > { %v4312_v50 = vld [vmem:[#allocation7 + $0x1c] sm:$0xf] }
0x192c   : > { %v4422_v39 = vmax.f32 %v4419_v32, 0.0 }
0x192e   : > { %4433 = vrot.lane.b32.xlu1 %v4422_v39, %s8316_s24  ;;  %4424 = vrot.lane.b32.xlu0 %v4422_v39, %s8311_s26  ;;  %v4461_v48 = vmul.f32 %v10133_v28, %v4422_v39 }
0x1932   : > { %4462 = vrot.lane.b32.xlu1 %v4422_v39, %s8298_s28  ;;  %4443 = vrot.lane.b32.xlu0 %v4422_v39, %s8296_s8 }
0x1936   : > { %4485 = vrot.lane.b32.xlu1 %v4422_v39, %s8312_s23  ;;  %4476 = vrot.lane.b32.xlu0 %v4422_v39, %s8317_s13  ;;  %v6835_v39 = vld [vmem:[%s10683_s29 + $0x70] sm:$0xff] }
0x1937   : > { %7222 = vmatprep.mubr.msk.f32.mxu1 %vm1192_vm14, %v6835_v39 }
0x193a   : > { %4676 = vperm.xlu1 %7801, %v4658_v36   ;;  %4496 = vperm.xlu0 %7800, %v4314_v33  }
0x193e   : > { %4688 = vperm.xlu1 %7801, %v4661_v13   ;;  %4681 = vperm.xlu0 %7800, %v4659_v6  }
0x1942   : > { %4702 = vperm.xlu1 %7801, %v4666_v8   ;;  %4693 = vperm.xlu0 %7800, %v4662_v35   ;;  %v6836_v35 = vld [vmem:[%s10683_s29 + $0x78] sm:$0xff] }
0x19a0   : > { %v4434_v53 = vpop.permute.xlu1 %4433  ;;  %v4425_v23 = vpop.permute.xlu0 %4424 }
0x19a1   : > { %v4437_v63 = vsel %vm4436_vm5, 0.0, %v4434_v53  ;;  %v4427_v21 = vsel %vm3502_vm1, 0.0, %v4425_v23 }
0x19a2   : > { %v4442_v47 = vmul.f32 %v10112_v42, %v4437_v63  ;;  %v4432_v55 = vmul.f32 %v10115_v45, %v4427_v21 }
0x19a4   : > { %v7498_v16 = vpack.c.bf16 %v4442_v47, %v4432_v55  ;;  %v4463_v37 = vpop.permute.xlu1 %4462  ;;  %v4444_v44 = vpop.permute.xlu0 %4443 }
0x19a5   : > { %v4465_v14 = vsel %vm3502_vm1, %v4463_v37, 0.0  ;;  %v4446_v52 = vsel %vm1008_vm2, 0.0, %v4444_v44 }
0x19a6   : > { %v4451_v7 = vmul.f32 %v10122_v9, %v4446_v52  ;;  %v4456_v20 = vmul.f32 %v10125_v41, %v4446_v52  ;;  %7499 = vmatpush3.bf16.msra.mxu0 %v7498_v16  ;;  %v4470_v18 = vmul.f32 %v10128_v15, %v4465_v14  ;;  %v4475_v11 = vmul.f32 %v10144_v58, %v4465_v14 }
0x19a7   : > { %7500 = vmatprep.subr.bf16.mxu0 %v10693_v4 }
0x19a8   : > { %v7501_v17 = vpack.c.bf16 %v4456_v20, %v4451_v7  ;;  %v4477_v40 = vpop.permute.xlu0 %4476  ;;  %v7504_v59 = vpack.c.bf16 %v4470_v18, %v4461_v48  ;;  %v4486_v19 = vpop.permute.xlu1 %4485 }
0x19a9   : > { %v4479_v56 = vsel %vm4436_vm5, %v4477_v40, 0.0  ;;  %v4488_v3 = vsel %vm1008_vm2, %v4486_v19, 0.0  ;;  %v5065_v19 = vld [vmem:[#allocation2 + $0x128] sm:$0xff] }
0x19aa   : > { %7502 = vmatpush3.bf16.msra.mxu0 %v7501_v17  ;;  %v4484_v30 = vmul.f32 %v10140_v38, %v4479_v56  ;;  %v4493_v32 = vmul.f32 %v10151_v12, %v4488_v3  ;;  %v4664_v17 = vld [vmem:[#allocation4 + $0x40] sm:$0xff]  ;;  %v5068_v3 = vld [vmem:[#allocation2 + $0x138] sm:$0xff] }
0x19ab   : > { %7503 = vmatprep.subr.bf16.mxu0 %v10693_v4 }
0x19ac   : > { %v7507_v43 = vpack.c.bf16 %v4484_v30, %v4475_v11  ;;  %v4670_v30 = vld [vmem:[#allocation9 + $0x20] sm:$0xf] }
0x19ad   : > { %v5067_v11 = vld [vmem:[#allocation2 + $0x130] sm:$0xff] }
0x19ae   : > { %7505 = vmatpush3.bf16.msra.mxu0 %v7504_v59  ;;  %v5064_v59 = vld [vmem:[#allocation2 + $0x120] sm:$0xff] }
0x19af   : > { %7506 = vmatprep.subr.bf16.mxu0 %v10693_v4 }
0x19b2   : > { %7508 = vmatpush3.bf16.msra.mxu0 %v7507_v43  ;;  %v5072_v43 = vld [vmem:[#allocation6 + $0x48] sm:$0xff] }
0x19b3   : > { %7215 = vmatprep.subr.mxu0 %v10704_v49 }
0x19b6   : > { %7216 = vmatpush3.msra.mxu0 %v4493_v32 }
0x19b7   : > { %7218 = vmatmul.mubr.msk.f32.vlgmr.msra.gmra.mrb[28].mxu0 %vm1115_vm12, %v4312_v50 }
0x19b9   : > { %v4497_v36 = vpop.permute.xlu0 %4496  ;;  %v4677_v53 = vpop.permute.xlu1 %4676 }
0x19bd   : > { %v4682_v57 = vpop.permute.xlu0 %4681  ;;  %v4689_v44 = vpop.permute.xlu1 %4688 }
0x19c1   : > { %v4694_v16 = vpop.permute.xlu0 %4693 }
0x1a8a   : > { %v4568_v33 = vpop.f32.mrb[28].mxu0 }
0x1a8b   : > { %v4569_v13 = vadd.f32 %v4568_v33, %v4497_v36  ;;  %v7219_v6 = vpop.f32.mrb[29].mxu0 }
0x1a8d   : > { %v4572_v8 = vmax.f32 %v4569_v13, 0.0 }
0x1a8f   : > { %7220 = vmatprep.subr.msk.mxu1 %vm1199_vm13, %v4572_v8 }
0x1a90   : > { %7221 = vmatpush3.msk.msra.mxu1 %vm1199_vm13, %v4572_v8 }
0x1a91   : > { %7223 = vmatmul.mubr.msk.f32.vlgmr.msra.gmra.mrb[30].mxu1 %vm1192_vm14, %v6836_v35  ;;  %7509 = vmatprep.subr.bf16.mxu1 %v10693_v4 }
0x1a92   : > { %7229 = vmatprep.mubr.msk.f32.mxu1 %vm8302_vm10, %v10704_v49 }
0x1b64   : > { %v7224_v23 = vpop.f32.mrb[30].mxu1 }
0x1b65   : > { %v10171_v63 = vadd.f32 %v7224_v23, %v10098_v26  ;;  %v4648_v21 = vpop.f32.mrb[31].mxu1  ;;  %v4703_v26 = vpop.permute.xlu1 %4702 }
0x1b66   : > { %v10174_v47 = vadd.f32 %v4648_v21, %v10101_v27 }
0x1b67   : > { %v4685_v55 = vmul.f32 %v4682_v57, %v10171_v63 }
0x1b68   : > { %v4684_v37 = vmul.f32 %v4677_v53, %v10174_v47 }
0x1b69   : > { %v4697_v14 = vadd.f32 %v4694_v16, %v4685_v55 }
0x1b6a   : > { %v4696_v52 = vadd.f32 %v4689_v44, %v4684_v37 }
0x1b6b   : > { %v4699_v7 = vmax.f32 %v4697_v14, 0.0 }
0x1b6c   : > { %v4698_v20 = vmax.f32 %v4696_v52, 0.0 }
0x1b6e   : > { %v7510_v18 = vpack.c.bf16 %v4699_v7, %v4698_v20  ;;  %v4668_v7 = vld [vmem:[#allocation7 + $0x20] sm:$0xf] }
0x1b70   : > { %7511 = vmatpush3.bf16.msra.mxu1 %v7510_v18 }
0x1b71   : > { %7512 = vmatprep.subr.bf16.mxu1 %v10693_v4 }
0x1b73   : > { %7230 = vmatmul.mubr.msk.f32.vlgmr.msra.gmra.mrb[32].mxu1 %vm881_vm0, %v4664_v17 }
0x1b74   : > { %7250 = vmatprep.mubr.msk.f32.mxu1 %vm8302_vm10, %v10704_v49 }
0x1c46   : > { %v4774_v27 = vpop.f32.mrb[32].mxu1 }
0x1c47   : > { %v4775_v40 = vadd.f32 %v4774_v27, %v4703_v26  ;;  %v7231_v56 = vpop.f32.mrb[33].mxu1  ;;  %v6844_v27 = vld [vmem:[%s10683_s29 + $0x88] sm:$0xff] }
0x1c49   : > { %v4778_v48 = vmax.f32 %v4775_v40, 0.0 }
0x1c4b   : > { %4785 = vrot.lane.b32.xlu1 %v4778_v48, %s8316_s24  ;;  %4780 = vrot.lane.b32.xlu0 %v4778_v48, %s8311_s26  ;;  %v4796_v37 = vmul.f32 %v4778_v48, %v10133_v28 }
0x1c4f   : > { %4797 = vrot.lane.b32.xlu1 %v4778_v48, %s8298_s28  ;;  %4790 = vrot.lane.b32.xlu0 %v4778_v48, %s8296_s8 }
0x1c53   : > { %4808 = vrot.lane.b32.xlu1 %v4778_v48, %s8312_s23  ;;  %4803 = vrot.lane.b32.xlu0 %v4778_v48, %s8317_s13  ;;  %s10749_s13 = smov 15  }
0x1c57   : > { %5082 = vperm.xlu1 %7801, %v5064_v59   ;;  %4815 = vperm.xlu0 %7800, %v4670_v30  }
0x1c5b   : > { %5094 = vperm.xlu1 %7801, %v5067_v11   ;;  %5087 = vperm.xlu0 %7800, %v5065_v19   ;;  %v7600_v19 = vadd.f32 %v9935_v61, %v9935_v61 }
0x1c5f   : > { %5108 = vperm.xlu1 %7801, %v5072_v43   ;;  %5099 = vperm.xlu0 %7800, %v5068_v3   ;;  %v7602_v3 = vadd.f32 %v9938_v46, %v9938_v46 }
0x1cbd   : > { %v4786_v32 = vpop.permute.xlu1 %4785  ;;  %v4781_v50 = vpop.permute.xlu0 %4780 }
0x1cbe   : > { %v4788_v39 = vsel %vm4436_vm5, 0.0, %v4786_v32  ;;  %v4783_v36 = vsel %vm3502_vm1, 0.0, %v4781_v50 }
0x1cbf   : > { %v4789_v33 = vmul.f32 %v4788_v39, %v10112_v42  ;;  %v4784_v13 = vmul.f32 %v4783_v36, %v10115_v45 }
0x1cc1   : > { %v7513_v6 = vpack.c.bf16 %v4789_v33, %v4784_v13  ;;  %v4798_v8 = vpop.permute.xlu1 %4797  ;;  %v4791_v35 = vpop.permute.xlu0 %4790 }
0x1cc2   : > { %v4800_v57 = vsel %vm3502_vm1, %v4798_v8, 0.0  ;;  %v4793_v53 = vsel %vm1008_vm2, 0.0, %v4791_v35 }
0x1cc3   : > { %v4794_v23 = vmul.f32 %v4793_v53, %v10122_v9  ;;  %v4795_v21 = vmul.f32 %v4793_v53, %v10125_v41  ;;  %7514 = vmatpush3.bf16.msra.mxu1 %v7513_v6  ;;  %v4801_v55 = vmul.f32 %v4800_v57, %v10128_v15  ;;  %v4802_v9 = vmul.f32 %v4800_v57, %v10144_v58  ;;  %v5070_v57 = vld [vmem:[#allocation4 + $0x48] sm:$0xff] }
0x1cc4   : > { %7515 = vmatprep.subr.bf16.mxu1 %v10693_v4 }
0x1cc5   : > { %v7516_v16 = vpack.c.bf16 %v4795_v21, %v4794_v23  ;;  %v4804_v42 = vpop.permute.xlu0 %4803  ;;  %v7519_v44 = vpack.c.bf16 %v4801_v55, %v4796_v37  ;;  %v4809_v41 = vpop.permute.xlu1 %4808  ;;  %v5480_v37 = vld [vmem:[#allocation2 + $0x148] sm:$0xff] }
0x1cc6   : > { %v4806_v45 = vsel %vm4436_vm5, %v4804_v42, 0.0  ;;  %v4811_v15 = vsel %vm1008_vm2, %v4809_v41, 0.0  ;;  %v5076_v42 = vld [vmem:[#allocation9 + $0x24] sm:$0xf]  ;;  %vm10774_vm5 = vcmask 924672  }
0x1cc7   : > { %7517 = vmatpush3.bf16.msra.mxu1 %v7516_v16  ;;  %v4807_v14 = vmul.f32 %v4806_v45, %v10140_v38  ;;  %v4812_v28 = vmul.f32 %v10151_v12, %v4811_v15  ;;  %v6843_v38 = vld [vmem:[%s10683_s29 + $0x80] sm:$0xff]  ;;  %v4976_v12 = vld [vmem:[#allocation21] sm:$0xf]  ;;  %v5482_v45 = vld [vmem:[#allocation2 + $0x150] sm:$0xff] }
0x1cc8   : > { %7518 = vmatprep.subr.bf16.mxu1 %v10693_v4  ;;  %7255 = vmatprep.mubr.msk.f32.mxu0 %vm1192_vm14, %v6843_v38  ;;  %v5479_v16 = vld [vmem:[#allocation2 + $0x140] sm:$0xff] }
0x1cc9   : > { %v7522_v52 = vpack.c.bf16 %v4807_v14, %v4802_v9  ;;  %v5483_v14 = vld [vmem:[#allocation2 + $0x158] sm:$0xff] }
0x1ccb   : > { %7520 = vmatpush3.bf16.msra.mxu1 %v7519_v44  ;;  %v5487_v44 = vld [vmem:[#allocation6 + $0x50] sm:$0xff] }
0x1ccc   : > { %7521 = vmatprep.subr.bf16.mxu1 %v10693_v4 }
0x1ccf   : > { %7523 = vmatpush3.bf16.msra.mxu1 %v7522_v52 }
0x1cd0   : > { %7248 = vmatprep.subr.mxu1 %v10704_v49 }
0x1cd3   : > { %7249 = vmatpush3.msra.mxu1 %v4812_v28 }
0x1cd4   : > { %7251 = vmatmul.mubr.msk.f32.vlgmr.msra.gmra.mrb[34].mxu1 %vm1115_vm12, %v4668_v7  ;;  %7258 = vmatprep.subr.msk.mxu1 %vm1199_vm13, %v4976_v12 }
0x1cd5   : > { %7259 = vmatpush3.msk.msra.mxu1 %vm1199_vm13, %v4976_v12 }
0x1cd6   : > { %v4816_v58 = vpop.permute.xlu0 %4815  ;;  %v5083_v11 = vpop.permute.xlu1 %5082 }
0x1cda   : > { %v5088_v30 = vpop.permute.xlu0 %5087  ;;  %v5095_v33 = vpop.permute.xlu1 %5094 }
0x1cde   : > { %v5109_v46 = vpop.permute.xlu1 %5108 }
0x1da7   : > { %v4887_v20 = vpop.f32.mrb[34].mxu1 }
0x1da8   : > { %v4888_v18 = vadd.f32 %v4887_v20, %v4816_v58  ;;  %v7252_v17 = vpop.f32.mrb[35].mxu1 }
0x1daa   : > { %v4891_v26 = vmax.f32 %v4888_v18, 0.0 }
0x1dac   : > { %7253 = vmatprep.subr.msk.mxu0 %vm1199_vm13, %v4891_v26 }
0x1dad   : > { %7254 = vmatpush3.msk.msra.mxu0 %vm1199_vm13, %v4891_v26 }
0x1dae   : > { %7256 = vmatmul.mubr.msk.f32.vlgmr.msra.gmra.mrb[30].mxu0 %vm1192_vm14, %v6844_v27  ;;  %7524 = vmatprep.subr.bf16.mxu0 %v10693_v4 }
0x1daf   : > { %7267 = vmatprep.mubr.msk.f32.mxu0 %vm8302_vm10, %v10704_v49 }
0x1e81   : > { %v7257_v40 = vpop.f32.mrb[30].mxu0 }
0x1e82   : > { %v4967_v56 = vpop.f32.mrb[31].mxu0  ;;  %v4973_v59 = vadd.f32 %v7257_v40, %v10171_v63 }
0x1e83   : > { %v4968_v48 = vadd.f32 %v4967_v56, %v10174_v47  ;;  %v5100_v47 = vpop.permute.xlu0 %5099 }
0x1e85   : > { %7260 = vmatprep.mubr.msk.f32.mxu1 %vm1192_vm14, %v4968_v48 }
0x1e86   : > { %7261 = vmatmul.mubr.msk.f32.vlgmr.msra.gmra.mrb[24].mxu1 %vm1192_vm14, %v4973_v59 }
0x1f59   : > { %v7262_v43 = vpop.f32.mrb[24].mxu1 }
0x1f5a   : > { %v10231_v32 = vadd.f32 %v7600_v19, %v7262_v43  ;;  %v5052_v50 = vpop.f32.mrb[25].mxu1 }
0x1f5b   : > { %v10233_v39 = vadd.f32 %v7602_v3, %v5052_v50  ;;  %v5074_v50 = vld [vmem:[#allocation7 + $0x24] sm:$0xf] }
0x1f5c   : > { %v5091_v63 = vmul.f32 %v10231_v32, %v5088_v30 }
0x1f5d   : > { %v5090_v36 = vmul.f32 %v10233_v39, %v5083_v11 }
0x1f5e   : > { %v5103_v13 = vadd.f32 %v5100_v47, %v5091_v63 }
0x1f5f   : > { %v5102_v6 = vadd.f32 %v5095_v33, %v5090_v36  ;;  %v6854_v33 = vld [vmem:[%s10683_s29 + $0x98] sm:$0xff] }
0x1f60   : > { %v5105_v8 = vmax.f32 %v5103_v13, 0.0  ;;  %v5390_v13 = vld [vmem:[#allocation22] sm:$0xff] }
0x1f61   : > { %v5104_v35 = vmax.f32 %v5102_v6, 0.0  ;;  %v5391_v6 = vld [vmem:[#allocation22 + $0x8] sm:$0xf] }
0x1f63   : > { %v7525_v61 = vpack.c.bf16 %v5105_v8, %v5104_v35  ;;  %v7539_v8 = vpack.c.bf16 %v5391_v6, %v5390_v13 }
0x1f65   : > { %7526 = vmatpush3.bf16.msra.mxu0 %v7525_v61 }
0x1f66   : > { %7527 = vmatprep.subr.bf16.mxu0 %v10693_v4 }
0x1f68   : > { %7268 = vmatmul.mubr.msk.f32.vlgmr.msra.gmra.mrb[32].mxu0 %vm881_vm0, %v5070_v57 }
0x1f69   : > { %7288 = vmatprep.mubr.msk.f32.mxu0 %vm8302_vm10, %v10704_v49 }
0x203b   : > { %v5180_v53 = vpop.f32.mrb[32].mxu0 }
0x203c   : > { %v5181_v23 = vadd.f32 %v5180_v53, %v5109_v46  ;;  %v7269_v21 = vpop.f32.mrb[33].mxu0 }
0x203e   : > { %v5184_v55 = vmax.f32 %v5181_v23, 0.0 }
0x2040   : > { %5191 = vrot.lane.b32.xlu1 %v5184_v55, %s8309_s20  ;;  %5186 = vrot.lane.b32.xlu0 %v5184_v55, %s8310_s1  ;;  %s10752_s20 = smov 14   ;;  %s10753_s1 = smov 113  }
0x2044   : > { %5201 = vrot.lane.b32.xlu1 %v5184_v55, %s8296_s8  ;;  %5196 = vrot.lane.b32.xlu0 %v5184_v55, %s8311_s26  ;;  %s10726_s26 = smov 121  }
0x2048   : > { %5212 = vrot.lane.b32.xlu1 %v5184_v55, %s8312_s23  ;;  %5207 = vrot.lane.b32.xlu0 %v5184_v55, %s8298_s28  ;;  %s10727_s23 = smov 119  }
0x204c   : > { %5222 = vrot.lane.b32.xlu1 %v5184_v55, %s8313_s6  ;;  %5217 = vrot.lane.b32.xlu0 %v5184_v55, %s8314_s21  ;;  %s10750_s21 = smov 16   ;;  %s10751_s6 = smov 114  }
0x2050   : > { %5497 = vperm.xlu1 %7801, %v5479_v16   ;;  %5229 = vperm.xlu0 %7800, %v5076_v42  }
0x2054   : > { %5509 = vperm.xlu1 %7801, %v5482_v45   ;;  %5502 = vperm.xlu0 %7800, %v5480_v37  }
0x2058   : > { %5523 = vperm.xlu1 %7801, %v5487_v44   ;;  %5514 = vperm.xlu0 %7800, %v5483_v14  }
0x20b2   : > { %v5192_v9 = vpop.permute.xlu1 %5191  ;;  %v5187_v41 = vpop.permute.xlu0 %5186 }
0x20b3   : > { %v5194_v52 = vsel %vm1192_vm14, 0.0, %v5192_v9  ;;  %v5189_v15 = vsel %vm3483_vm3, 0.0, %v5187_v41  ;;  %vm10734_vm3 = vcmask 261120  }
0x20b4   : > { %v5195_v28 = vmul.f32 %v5194_v52, %v9863_v24  ;;  %v5190_v7 = vmul.f32 %v5189_v15, %v9867_v25  ;;  %v5206_v25 = vmul.f32 %v5184_v55, %v9885_v60  ;;  %v7598_v55 = vadd.f32 %v9688_v31, %v9688_v31  ;;  %v5485_v15 = vld [vmem:[#allocation4 + $0x50] sm:$0xff] }
0x20b6   : > { %v7528_v38 = vpack.c.bf16 %v5195_v28, %v5190_v7  ;;  %v5202_v58 = vpop.permute.xlu1 %5201  ;;  %v5197_v20 = vpop.permute.xlu0 %5196 }
0x20b7   : > { %v5204_v18 = vsel %vm1008_vm2, 0.0, %v5202_v58  ;;  %v5199_v17 = vsel %vm3502_vm1, 0.0, %v5197_v20  ;;  %v5898_v20 = vld [vmem:[%s10729_s27] sm:$0xff]  ;;  %vm10733_vm1 = vcmask 269312  }
0x20b8   : > { %v5205_v26 = vmul.f32 %v5204_v18, %v9873_v2  ;;  %v5200_v27 = vmul.f32 %v5199_v17, %v9879_v5  ;;  %7529 = vmatpush3.bf16.msra.mxu0 %v7528_v38  ;;  %v5491_v18 = vld [vmem:[#allocation9 + $0x28] sm:$0xf]  ;;  %v6872_v17 = vld [vmem:[%s10729_s27 + $0x10] sm:$0xff] }
0x20b9   : > { %7530 = vmatprep.subr.bf16.mxu0 %v10693_v4 }
0x20ba   : > { %v7531_v12 = vpack.c.bf16 %v5205_v26, %v5200_v27  ;;  %v5213_v40 = vpop.permute.xlu1 %5212  ;;  %v5208_v56 = vpop.permute.xlu0 %5207  ;;  %v5899_v26 = vld [vmem:[%s10729_s27 + $0x8] sm:$0xff]  ;;  %v6876_v27 = vld [vmem:[%s10729_s27 + $0x20] sm:$0xff] }
0x20bb   : > { %v5210_v24 = vsel %vm3526_vm4, %v5208_v56, 0.0  ;;  %v5215_v59 = vsel %vm2536_vm9, %v5213_v40, 0.0  ;;  %v6878_v40 = vld [vmem:[%s10729_s27 + $0x30] sm:$0xff]  ;;  %v6877_v56 = vld [vmem:[%s10729_s27 + $0x28] sm:$0xff]  ;;  %vm10737_vm4 = vcmask 252928  }
0x20bc   : > { %v5211_v48 = vmul.f32 %v5210_v24, %v9891_v10  ;;  %7532 = vmatpush3.bf16.msra.mxu0 %v7531_v12  ;;  %v5216_v11 = vmul.f32 %v5215_v59, %v9897_v0  ;;  %v6853_v0 = vld [vmem:[%s10683_s29 + $0x90] sm:$0xff]  ;;  %v6873_v12 = vld [vmem:[%s10729_s27 + $0x18] sm:$0xff]  ;;  %v6169_v24 = vld [vmem:[#allocation2 + $0x160] sm:$0xff] }
0x20bd   : > { %7533 = vmatprep.subr.bf16.mxu0 %v10693_v4  ;;  %7293 = vmatprep.mubr.msk.f32.mxu1 %vm1192_vm14, %v6853_v0  ;;  %v6170_v59 = vld [vmem:[#allocation2 + $0x168] sm:$0xff] }
0x20be   : > { %v7534_v2 = vpack.c.bf16 %v5211_v48, %v5206_v25  ;;  %v5218_v30 = vpop.permute.xlu0 %5217  ;;  %v5223_v19 = vpop.permute.xlu1 %5222  ;;  %v6879_v25 = vld [vmem:[%s10729_s27 + $0x38] sm:$0xff]  ;;  %v6172_v48 = vld [vmem:[#allocation2 + $0x170] sm:$0xff] }
0x20bf   : > { %v5220_v5 = vsel %vm2546_vm11, %v5218_v30, 0.0  ;;  %v5225_v10 = vsel %vm2324_vm15, %v5223_v19, 0.0  ;;  %v6173_v30 = vld [vmem:[#allocation2 + $0x178] sm:$0xff] }
0x20c0   : > { %v5221_v43 = vmul.f32 %v5220_v5, %v9903_v1  ;;  %7535 = vmatpush3.bf16.msra.mxu0 %v7534_v2  ;;  %v5226_v3 = vmul.f32 %v5225_v10, %v9915_v54  ;;  %v6177_v2 = vld [vmem:[#allocation6 + $0x58] sm:$0xff] }
0x20c1   : > { %7536 = vmatprep.subr.bf16.mxu0 %v10693_v4 }
0x20c2   : > { %v7537_v60 = vpack.c.bf16 %v5221_v43, %v5216_v11 }
0x20c4   : > { %7538 = vmatpush3.bf16.msra.mxu0 %v7537_v60 }
0x20c5   : > { %7286 = vmatprep.subr.mxu0 %v10704_v49 }
0x20c8   : > { %7287 = vmatpush3.msra.mxu0 %v5226_v3 }
0x20c9   : > { %7289 = vmatmul.mubr.msk.f32.vlgmr.msra.gmra.mrb[34].mxu0 %vm1115_vm12, %v5074_v50  ;;  %7548 = vmatprep.subr.bf16.mxu0 %v10693_v4 }
0x20ca   : > { %7328 = vmatprep.mubr.msk.f32.mxu0 %vm8302_vm10, %v10704_v49 }
0x20cf   : > { %v5230_v1 = vpop.permute.xlu0 %5229  ;;  %v5498_v23 = vpop.permute.xlu1 %5497 }
0x20d3   : > { %v5503_v53 = vpop.permute.xlu0 %5502  ;;  %v5510_v44 = vpop.permute.xlu1 %5509 }
0x20d7   : > { %v5515_v45 = vpop.permute.xlu0 %5514  ;;  %v5524_v31 = vpop.permute.xlu1 %5523 }
0x219c   : > { %v5301_v63 = vpop.f32.mrb[34].mxu0 }
0x219d   : > { %v5302_v47 = vadd.f32 %v5301_v63, %v5230_v1  ;;  %v7290_v36 = vpop.f32.mrb[35].mxu0 }
0x219e   : > { %v10730_v36 = vld [vmem:[#allocation67_spill] sm:$0xff] }
0x219f   : > { %v5305_v54 = vmax.f32 %v5302_v47, 0.0 }
0x21a1   : > { %7291 = vmatprep.subr.msk.mxu1 %vm1199_vm13, %v5305_v54 }
0x21a2   : > { %7292 = vmatpush3.msk.msra.mxu1 %vm1199_vm13, %v5305_v54 }
0x21a3   : > { %7294 = vmatmul.mubr.msk.f32.vlgmr.msra.gmra.mrb[36].mxu1 %vm1192_vm14, %v6854_v33  ;;  %7541 = vmatprep.subr.msk.bf16.mxu1 %vm10082_vm6, %v7539_v8 }
0x21a4   : > { %7544 = vmatpush3.bf16.msk.msra.mxu1 %vm10082_vm6, %v7539_v8  ;;  %vm10739_vm6 = vcmask 326656  }
0x21a5   : > { %7545 = vmatprep.subr.bf16.mxu1 %v10693_v4 }
0x2276   : > { %v7295_v35 = vpop.f32.mrb[36].mxu1 }
0x2277   : > { %v5381_v61 = vpop.f32.mrb[37].mxu1  ;;  %v5387_v46 = vadd.f32 %v10231_v32, %v7295_v35  ;;  %v10732_v35 = vld [vmem:[#allocation34_spill] sm:$0xff] }
0x2278   : > { %v5382_v57 = vadd.f32 %v10233_v39, %v5381_v61 }
0x227a   : > { %7300 = vmatprep.mubr.msk.f32.mxu1 %vm4216_vm7, %v5382_v57 }
0x227b   : > { %7301 = vmatmul.mubr.msk.f32.vlgmr.msra.gmra.mrb[18].mxu1 %vm4216_vm7, %v5387_v46  ;;  %vm10740_vm7 = vmmov %vm10739_vm6 }
0x227c   : > { %7307 = vmatprep.mubr.msk.f32.mxu1 %vm8302_vm10, %v10704_v49  ;;  %vm10766_vm10 = vcmask 1039360  }
0x234e   : > { %v7302_v21 = vpop.f32.mrb[18].mxu1 }
0x234f   : > { %v10299_v16 = vadd.f32 %v7596_v62, %v7302_v21  ;;  %v5467_v39 = vpop.f32.mrb[19].mxu1 }
0x2350   : > { %v10301_v32 = vadd.f32 %v7598_v55, %v5467_v39  ;;  %v10736_v55 = vld [vmem:[#allocation41_spill] sm:$0xff] }
0x2351   : > { %v5506_v42 = vmul.f32 %v10299_v16, %v5503_v53 }
0x2352   : > { %v5505_v37 = vmul.f32 %v10301_v32, %v5498_v23  ;;  %v10735_v23 = vld [vmem:[#allocation40_spill] sm:$0xff] }
0x2353   : > { %v5518_v14 = vadd.f32 %v5515_v45, %v5506_v42 }
0x2354   : > { %v5517_v9 = vadd.f32 %v5510_v44, %v5505_v37  ;;  %v10738_v37 = vld [vmem:[#allocation42_spill] sm:$0xff] }
0x2355   : > { %v5520_v41 = vmax.f32 %v5518_v14, 0.0  ;;  %v5489_v14 = vld [vmem:[#allocation7 + $0x28] sm:$0xf] }
0x2356   : > { %v5519_v52 = vmax.f32 %v5517_v9, 0.0  ;;  %v6863_v9 = vld [vmem:[%s10683_s29 + $0xa0] sm:$0xff] }
0x2358   : > { %v7546_v51 = vpack.c.bf16 %v5520_v41, %v5519_v52  ;;  %v5806_v52 = vld [vmem:[#allocation24 + $0x8] sm:$0xff] }
0x235a   : > { %7547 = vmatpush3.bf16.msra.mxu1 %v7546_v51  ;;  %v5808_v51 = vld [vmem:[#allocation24 + $0x18] sm:$0xff] }
0x235d   : > { %7308 = vmatmul.mubr.msk.f32.vlgmr.msra.gmra.mrb[38].mxu1 %vm881_vm0, %v5485_v15 }
0x235e   : > { %7333 = vmatprep.mubr.msk.f32.mxu1 %vm1192_vm14, %v6863_v9  ;;  %v5935_v9 = vld [vmem:[#allocation10] sm:$0xff] }
0x2430   : > { %v5595_v28 = vpop.f32.mrb[38].mxu1 }
0x2431   : > { %v5596_v7 = vadd.f32 %v5595_v28, %v5524_v31  ;;  %v7309_v38 = vpop.f32.mrb[39].mxu1  ;;  %v5805_v28 = vld [vmem:[#allocation24] sm:$0xff] }
0x2432   : > { %v5810_v38 = vld [vmem:[#allocation24 + $0x28] sm:$0xff] }
0x2433   : > { %v5599_v58 = vmax.f32 %v5596_v7, 0.0  ;;  %v5807_v7 = vld [vmem:[#allocation24 + $0x10] sm:$0xff] }
0x2435   : > { %5606 = vrot.lane.b32.xlu1 %v5599_v58, %s8303_s22  ;;  %5601 = vrot.lane.b32.xlu0 %v5599_v58, %s8304_s0  ;;  %s10783_s0 = sld [smem:[#allocation77_spill]] }
0x2439   : > { %5616 = vrot.lane.b32.xlu1 %v5599_v58, %s8296_s8  ;;  %5611 = vrot.lane.b32.xlu0 %v5599_v58, %s8305_s19 }
0x243b   : > { %s818_s19 = scalar_lea.vmem %s10783_s0, %s10782_s4 }
0x243d   : > { %5627 = vrot.lane.b32.xlu1 %v5599_v58, %s10726_s26  ;;  %5622 = vrot.lane.b32.xlu0 %v5599_v58, %s8298_s28  ;;  %s10754_s26 = smov 112  }
0x2441   : > { %5637 = vrot.lane.b32.xlu1 %v5599_v58, %s10727_s23  ;;  %5632 = vrot.lane.b32.xlu0 %v5599_v58, %s10728_s2 }
0x2445   : > { %5902 = vperm.xlu1 %7801, %v5898_v20   ;;  %5644 = vperm.xlu0 %7800, %v5491_v18   ;;  %v7560_v18 = vpack.c.bf16 %v5808_v51, %v5806_v52 }
0x2449   : > { %5919 = vperm.xlu1 %7801, %v6872_v17   ;;  %5907 = vperm.xlu0 %7800, %v5899_v26   ;;  %v6864_v17 = vld [vmem:[%s10683_s29 + $0xa8] sm:$0xff]  ;;  %v7562_v26 = vpack.c.bf16 %v5807_v7, %v5805_v28 }
0x244d   : > { %6025 = vperm.xlu1 %7801, %v6876_v27   ;;  %5924 = vperm.xlu0 %7800, %v6873_v12   ;;  %v5809_v12 = vld [vmem:[#allocation24 + $0x20] sm:$0xff] }
0x2451   : > { %6042 = vperm.xlu1 %7801, %v6878_v40   ;;  %6030 = vperm.xlu0 %7800, %v6877_v56   ;;  %v5811_v40 = vld [vmem:[#allocation24 + $0x30] sm:$0xff] }
0x2452   : > { %v7566_v56 = vpack.c.bf16 %v5811_v40, %v5809_v12 }
0x2455   : > { %6187 = vperm.xlu1 %7801, %v6169_v24   ;;  %6047 = vperm.xlu0 %7800, %v6879_v25   ;;  %v5814_v24 = vld [vmem:[#allocation24 + $0x48] sm:$0xff]  ;;  %v5813_v25 = vld [vmem:[#allocation24 + $0x40] sm:$0xff] }
0x2459   : > { %6201 = vperm.xlu1 %7801, %v6172_v48   ;;  %6192 = vperm.xlu0 %7800, %v6170_v59  }
0x245d   : > { %6219 = vperm.xlu1 %7801, %v6177_v2   ;;  %6206 = vperm.xlu0 %7800, %v6173_v30  }
0x24a7   : > { %v5607_v5 = vpop.permute.xlu1 %5606  ;;  %v5602_v11 = vpop.permute.xlu0 %5601 }
0x24a8   : > { %v5609_v19 = vsel %vm2546_vm11, 0.0, %v5607_v5  ;;  %v5604_v43 = vsel %vm2536_vm9, 0.0, %v5602_v11  ;;  %v10741_v5 = vld [vmem:[#allocation60_spill] sm:$0xff]  ;;  %vm10760_vm9 = vcmask 113664   ;;  %vm10772_vm11 = vcmask 990208  }
0x24a9   : > { %v5610_v60 = vmul.f32 %v5609_v19, %v9613_v22  ;;  %v5605_v10 = vmul.f32 %v5604_v43, %v9617_v34  ;;  %v10731_v34 = vld [vmem:[#allocation35_spill] sm:$0xff]  ;;  %v10742_v11 = vld [vmem:[#allocation64_spill] sm:$0xff]  ;;  %v10743_v43 = vld [vmem:[#allocation61_spill] sm:$0xff] }
0x24aa   : > { %v5621_v8 = vmul.f32 %v5599_v58, %v10731_v34  ;;  %v5812_v58 = vld [vmem:[#allocation24 + $0x38] sm:$0xff]  ;;  %v10380_v19 = vadd.f32 %v10742_v11, %v10741_v5 }
0x24ab   : > { %v7549_v3 = vpack.c.bf16 %v5610_v60, %v5605_v10  ;;  %v5617_v50 = vpop.permute.xlu1 %5616  ;;  %v5612_v0 = vpop.permute.xlu0 %5611  ;;  %v7564_v27 = vpack.c.bf16 %v5812_v58, %v5810_v38  ;;  %v10744_v60 = vld [vmem:[#allocation65_spill] sm:$0xff]  ;;  %v6060_v5 = vld [vmem:[#allocation10 + $0x18] sm:$0xff] }
0x24ac   : > { %v5619_v1 = vsel %vm1008_vm2, 0.0, %v5617_v50  ;;  %v5614_v63 = vsel %vm2324_vm15, 0.0, %v5612_v0  ;;  %v10384_v10 = vadd.f32 %v10744_v60, %v10743_v43 }
0x24ad   : > { %v5620_v47 = vmul.f32 %v5619_v1, %v9625_v29  ;;  %v5615_v54 = vmul.f32 %v5614_v63, %v10730_v36  ;;  %7550 = vmatpush3.bf16.msra.mxu0 %v7549_v3  ;;  %v10745_v63 = vld [vmem:[#allocation62_spill] sm:$0xff] }
0x24ae   : > { %7551 = vmatprep.subr.bf16.mxu0 %v10693_v4 }
0x24af   : > { %v7552_v33 = vpack.c.bf16 %v5620_v47, %v5615_v54  ;;  %v5628_v13 = vpop.permute.xlu1 %5627  ;;  %v5623_v6 = vpop.permute.xlu0 %5622  ;;  %v10746_v47 = vld [vmem:[#allocation66_spill] sm:$0xff] }
0x24b0   : > { %v5625_v22 = vsel %vm2579_vm8, %v5623_v6, 0.0  ;;  %v5630_v57 = vsel %vm10733_vm1, %v5628_v13, 0.0  ;;  %v10390_v36 = vadd.f32 %v10746_v47, %v10745_v63  ;;  %v10748_v13 = vld [vmem:[#allocation54_spill] sm:$0xff]  ;;  %vm10755_vm8 = vcmask 121856  }
0x24b1   : > { %v5626_v61 = vmul.f32 %v5625_v22, %v10732_v35  ;;  %7553 = vmatpush3.bf16.msra.mxu0 %v7552_v33  ;;  %v5631_v62 = vmul.f32 %v5630_v57, %v10735_v23  ;;  %v10747_v33 = vld [vmem:[#allocation63_spill] sm:$0xff]  ;;  %vm10775_vm1 = vcmask 982016  }
0x24b2   : > { %7554 = vmatprep.subr.bf16.mxu0 %v10693_v4  ;;  %v10394_v6 = vadd.f32 %v10748_v13, %v10747_v33 }
0x24b3   : > { %v7555_v29 = vpack.c.bf16 %v5626_v61, %v5621_v8  ;;  %v5633_v46 = vpop.permute.xlu0 %5632  ;;  %v5638_v21 = vpop.permute.xlu1 %5637 }
0x24b4   : > { %v5635_v53 = vsel %vm10734_vm3, %v5633_v46, 0.0  ;;  %v5640_v45 = vsel %vm10737_vm4, %v5638_v21, 0.0  ;;  %vm10778_vm3 = vcmask 916480   ;;  %vm10779_vm4 = vcmask 973824  }
0x24b5   : > { %v5636_v39 = vmul.f32 %v5635_v53, %v10736_v55  ;;  %7556 = vmatpush3.bf16.msra.mxu0 %v7555_v29  ;;  %v5641_v44 = vmul.f32 %v5640_v45, %v10738_v37 }
0x24b6   : > { %7557 = vmatprep.subr.bf16.mxu0 %v10693_v4 }
0x24b7   : > { %v7558_v42 = vpack.c.bf16 %v5636_v39, %v5631_v62 }
0x24b9   : > { %7559 = vmatpush3.bf16.msra.mxu0 %v7558_v42 }
0x24ba   : > { %7326 = vmatprep.subr.mxu0 %v10704_v49 }
0x24bd   : > { %7327 = vmatpush3.msra.mxu0 %v5641_v44 }
0x24be   : > { %7329 = vmatmul.mubr.msk.f32.vlgmr.msra.gmra.mrb[36].mxu0 %vm1115_vm12, %v5489_v14 }
0x24bf   : > { %6007 = vmatprep.mubr.f32.mxu0 %v10704_v49 }
0x24c4   : > { %v5645_v4 = vpop.permute.xlu0 %5644  ;;  %v5903_v3 = vpop.permute.xlu1 %5902 }
0x24c8   : > { %v5908_v1 = vpop.permute.xlu0 %5907  ;;  %v5920_v61 = vpop.permute.xlu1 %5919 }
0x24cc   : > { %v5925_v53 = vpop.permute.xlu0 %5924 }
0x24d0   : > { %v6031_v52 = vpop.permute.xlu0 %6030 }
0x2591   : > { %v5716_v41 = vpop.f32.mrb[36].mxu0 }
0x2592   : > { %v5717_v15 = vadd.f32 %v5716_v41, %v5645_v4  ;;  %v7330_v31 = vpop.f32.mrb[37].mxu0  ;;  %v5936_v4 = vld [vmem:[#allocation10 + $0x8] sm:$0xff]  ;;  %v6026_v41 = vpop.permute.xlu1 %6025 }
0x2594   : > { %v5720_v20 = vmax.f32 %v5717_v15, 0.0 }
0x2596   : > { %7331 = vmatprep.subr.msk.mxu1 %vm1199_vm13, %v5720_v20  ;;  %v6043_v7 = vpop.permute.xlu1 %6042 }
0x2597   : > { %7332 = vmatpush3.msk.msra.mxu1 %vm1199_vm13, %v5720_v20 }
0x2598   : > { %7334 = vmatmul.mubr.msk.f32.vlgmr.msra.gmra.mrb[40].mxu1 %vm1192_vm14, %v6864_v17  ;;  %7561 = vmatprep.subr.bf16.mxu1 %v7560_v18  ;;  %v6048_v17 = vpop.permute.xlu0 %6047 }
0x2599   : > { %7563 = vmatpush1.bf16.msra.mxu1 %v7562_v26  ;;  %5885 = vmatprep.mubr.f32.mxu1 %v10704_v49 }
0x259a   : > { %7565 = vmatprep.subr.bf16.mxu1 %v7564_v27 }
0x259d   : > { %7567 = vmatpush1.bf16.msra.mxu1 %v7566_v56 }
0x259e   : > { %5829 = vmatprep.subr.mxu1 %v5814_v24 }
0x25a1   : > { %5830 = vmatpush1.msra.mxu1 %v5813_v25 }
0x266b   : > { %v7335_v48 = vpop.f32.mrb[40].mxu1 }
0x266c   : > { %v5796_v59 = vpop.f32.mrb[41].mxu1  ;;  %v5802_v30 = vadd.f32 %v10299_v16, %v7335_v48 }
0x266d   : > { %v5797_v2 = vadd.f32 %v10301_v32, %v5796_v59 }
0x266f   : > { %6870 = vmatmul.mubr.msk.f32.vlgmr.msra.gmra.mrb[42].mxu1 %vm10739_vm6, %v5797_v2 }
0x2670   : > { %5891 = vmatprep.mubr.f32.mxu1 %v10704_v49 }
0x2673   : > { %6871 = vmatmul.mubr.msk.f32.gmra.mrb[44].mxu1 %vm10740_vm7, %v5802_v30  ;;  %v6059_v30 = vld [vmem:[#allocation10 + $0x10] sm:$0xff] }
0x2674   : > { %6131 = vmatprep.mubr.f32.mxu1 %v10704_v49 }
0x2742   : > { %v5887_v32 = vpop.f32.mrb[42].mxu1 }
0x2743   : > { %v5888_v50 = vadd.f32 %v5887_v32, %v10380_v19  ;;  %v5889_v0 = vpop.f32.mrb[43].mxu1 }
0x2744   : > { %v5890_v16 = vadd.f32 %v5889_v0, %v10384_v10 }
0x2745   : > { %v5910_v54 = vmul.f32 %v5903_v3, %v5888_v50 }
0x2746   : > { %v5911_v22 = vmul.f32 %v5903_v3, %v5890_v16  ;;  %v5893_v34 = vpop.f32.mrb[44].mxu1 }
0x2747   : > { %v5894_v8 = vadd.f32 %v5893_v34, %v10390_v36  ;;  %v5895_v35 = vpop.f32.mrb[45].mxu1  ;;  %v5927_v29 = vadd.f32 %v5920_v61, %v5910_v54 }
0x2748   : > { %v5896_v57 = vadd.f32 %v5895_v35, %v10394_v6  ;;  %v5928_v23 = vadd.f32 %v5920_v61, %v5911_v22 }
0x2749   : > { %v5912_v46 = vmul.f32 %v5908_v1, %v5894_v8  ;;  %v5931_v39 = vmax.f32 %v5927_v29, 0.0  ;;  %v6188_v29 = vpop.permute.xlu1 %6187 }
0x274a   : > { %v5913_v62 = vmul.f32 %v5908_v1, %v5896_v57  ;;  %v5932_v45 = vmax.f32 %v5928_v23, 0.0  ;;  %v6193_v23 = vpop.permute.xlu0 %6192 }
0x274b   : > { %v5929_v21 = vadd.f32 %v5925_v53, %v5912_v46 }
0x274c   : > { %v5930_v55 = vadd.f32 %v5925_v53, %v5913_v62 }
0x274d   : > { %v5933_v42 = vmax.f32 %v5929_v21, 0.0 }
0x274e   : > { %v5934_v37 = vmax.f32 %v5930_v55, 0.0 }
0x274f   : > { %v7570_v44 = vpack.c.bf16 %v5933_v42, %v5931_v39 }
0x2750   : > { %v7568_v14 = vpack.c.bf16 %v5934_v37, %v5932_v45 }
0x2752   : > { %7569 = vmatprep.subr.bf16.mxu0 %v7568_v14 }
0x2753   : > { %7571 = vmatpush1.bf16.msra.mxu0 %v7570_v44 }
0x2756   : > { %6874 = vmatmul.mubr.msk.f32.vlgmr.msra.gmra.mrb[38].mxu0 %vm881_vm0, %v5935_v9  ;;  %v6207_v9 = vpop.permute.xlu0 %6206 }
0x2757   : > { %6013 = vmatprep.mubr.f32.mxu0 %v10704_v49 }
0x275a   : > { %6875 = vmatmul.mubr.msk.f32.gmra.mrb[40].mxu0 %vm881_vm0, %v5936_v4 }
0x275b   : > { %6289 = vmatprep.mubr.f32.mxu0 %v10704_v49 }
0x2829   : > { %v6009_v51 = vpop.f32.mrb[38].mxu0 }
0x282a   : > { %v6033_v15 = vmul.f32 %v6026_v41, %v6009_v51  ;;  %v6011_v31 = vpop.f32.mrb[39].mxu0 }
0x282b   : > { %v6034_v28 = vmul.f32 %v6026_v41, %v6011_v31 }
0x282c   : > { %v6050_v58 = vadd.f32 %v6043_v7, %v6033_v15 }
0x282d   : > { %v6015_v38 = vpop.f32.mrb[40].mxu0  ;;  %v6051_v26 = vadd.f32 %v6043_v7, %v6034_v28 }
0x282e   : > { %v6035_v20 = vmul.f32 %v6031_v52, %v6015_v38  ;;  %v6017_v18 = vpop.f32.mrb[41].mxu0  ;;  %v6054_v56 = vmax.f32 %v6050_v58, 0.0 }
0x282f   : > { %v6036_v27 = vmul.f32 %v6031_v52, %v6017_v18  ;;  %v6055_v25 = vmax.f32 %v6051_v26, 0.0 }
0x2830   : > { %v6052_v12 = vadd.f32 %v6048_v17, %v6035_v20 }
0x2831   : > { %v6053_v40 = vadd.f32 %v6048_v17, %v6036_v27 }
0x2832   : > { %v6056_v24 = vmax.f32 %v6052_v12, 0.0 }
0x2833   : > { %v6057_v48 = vmax.f32 %v6053_v40, 0.0  ;;  %v6181_v40 = vld [vmem:[#allocation9 + $0x2c] sm:$0xf] }
0x2834   : > { %v7574_v59 = vpack.c.bf16 %v6056_v24, %v6054_v56 }
0x2835   : > { %v7572_v2 = vpack.c.bf16 %v6057_v48, %v6055_v25  ;;  %v10756_v48 = vld [vmem:[#allocation37_spill] sm:$0xff] }
0x2837   : > { %7573 = vmatprep.subr.bf16.mxu1 %v7572_v2 }
0x2838   : > { %7575 = vmatpush1.bf16.msra.mxu1 %v7574_v59 }
0x283b   : > { %6880 = vmatmul.mubr.msk.f32.vlgmr.msra.gmra.mrb[46].mxu1 %vm881_vm0, %v6059_v30  ;;  %v10757_v30 = vld [vmem:[#allocation36_spill] sm:$0xff] }
0x283c   : > { %6137 = vmatprep.mubr.f32.mxu1 %v10704_v49 }
0x283f   : > { %6881 = vmatmul.mubr.msk.f32.gmra.mrb[48].mxu1 %vm881_vm0, %v6060_v5 }
0x2840   : > { %6436 = vmatprep.mubr.f32.mxu1 %v10704_v49 }
0x290e   : > { %v6133_v11 = vpop.f32.mrb[46].mxu1 }
0x290f   : > { %v6144_v43 = vmul.f32 0.5, %v6133_v11  ;;  %v6135_v60 = vpop.f32.mrb[47].mxu1  ;;  %v10758_v11 = vld [vmem:[#allocation39_spill] sm:$0xff] }
0x2910   : > { %v6145_v3 = vmul.f32 0.5, %v6135_v60  ;;  %v10759_v60 = vld [vmem:[#allocation38_spill] sm:$0xff] }
0x2911   : > { %7802 = vtanh.f32 %v6144_v43 }
0x2912   : > { %7804 = vtanh.f32 %v6145_v3  ;;  %v6139_v32 = vpop.f32.mrb[48].mxu1 }
0x2913   : > { %v6146_v50 = vmul.f32 0.5, %v6139_v32  ;;  %v6141_v0 = vpop.f32.mrb[49].mxu1 }
0x2914   : > { %v6147_v1 = vmul.f32 0.5, %v6141_v0 }
0x2915   : > { %7806 = vtanh.f32 %v6146_v50 }
0x2916   : > { %7808 = vtanh.f32 %v6147_v1 }
0x291b   : > { %v7803_v16 = vpop.eup %7802 }
0x291c   : > { %v7805_v63 = vpop.eup %7804  ;;  %v6152_v47 = vadd.f32 1.0, %v7803_v16 }
0x291d   : > { %v6153_v54 = vadd.f32 1.0, %v7805_v63 }
0x291e   : > { %v6156_v33 = vmul.f32 0.5, %v6152_v47 }
0x291f   : > { %v7807_v13 = vpop.eup %7806  ;;  %v6157_v22 = vmul.f32 0.5, %v6153_v54 }
0x2920   : > { %v7809_v34 = vpop.eup %7808  ;;  %v6160_v8 = vadd.f32 1.0, %v6156_v33  ;;  %v6154_v35 = vadd.f32 1.0, %v7807_v13  ;;  %v10761_v13 = vld [vmem:[#allocation46_spill] sm:$0xff] }
0x2921   : > { %v6161_v61 = vadd.f32 1.0, %v6157_v22  ;;  %v6155_v57 = vadd.f32 1.0, %v7809_v34  ;;  %v10762_v34 = vld [vmem:[#allocation45_spill] sm:$0xff] }
0x2922   : > { %v10407_v46 = vmul.f32 %v6160_v8, %v10380_v19  ;;  %v6158_v53 = vmul.f32 0.5, %v6154_v35  ;;  %v6202_v19 = vpop.permute.xlu1 %6201  ;;  %v10763_v35 = vld [vmem:[#allocation47_spill] sm:$0xff] }
0x2923   : > { %v10410_v62 = vmul.f32 %v6161_v61, %v10384_v10  ;;  %v6159_v21 = vmul.f32 0.5, %v6155_v57  ;;  %v10764_v57 = vld [vmem:[#allocation48_spill] sm:$0xff] }
0x2924   : > { %v6162_v55 = vadd.f32 1.0, %v6158_v53  ;;  %v6195_v45 = vmul.f32 %v6188_v29, %v10407_v46 }
0x2925   : > { %v6163_v39 = vadd.f32 1.0, %v6159_v21  ;;  %v6196_v42 = vmul.f32 %v6188_v29, %v10410_v62 }
0x2926   : > { %v10415_v37 = vmul.f32 %v6162_v55, %v10390_v36  ;;  %v6209_v41 = vadd.f32 %v6202_v19, %v6195_v45  ;;  %v6220_v58 = vpop.permute.xlu1 %6219  ;;  %v10767_v45 = vld [vmem:[#allocation52_spill] sm:$0xff] }
0x2927   : > { %v10418_v44 = vmul.f32 %v6163_v39, %v10394_v6  ;;  %v6210_v4 = vadd.f32 %v6202_v19, %v6196_v42  ;;  %v6175_v6 = vld [vmem:[#allocation4 + $0x58] sm:$0xff] }
0x2928   : > { %v6197_v14 = vmul.f32 %v6193_v23, %v10415_v37  ;;  %v6213_v7 = vmax.f32 %v6209_v41, 0.0  ;;  %v10770_v41 = vld [vmem:[#allocation50_spill] sm:$0xff] }
0x2929   : > { %v6198_v10 = vmul.f32 %v6193_v23, %v10418_v44  ;;  %v6214_v31 = vmax.f32 %v6210_v4, 0.0 }
0x292a   : > { %v6211_v52 = vadd.f32 %v6207_v9, %v6197_v14  ;;  %v10768_v14 = vld [vmem:[#allocation51_spill] sm:$0xff] }
0x292b   : > { %v6212_v51 = vadd.f32 %v6207_v9, %v6198_v10  ;;  %v10769_v10 = vld [vmem:[#allocation53_spill] sm:$0xff] }
0x292c   : > { %v6215_v15 = vmax.f32 %v6211_v52, 0.0 }
0x292d   : > { %v6216_v28 = vmax.f32 %v6212_v51, 0.0 }
0x292e   : > { %v7578_v36 = vpack.c.bf16 %v6215_v15, %v6213_v7 }
0x292f   : > { %v7576_v38 = vpack.c.bf16 %v6216_v28, %v6214_v31 }
0x2931   : > { %7577 = vmatprep.subr.bf16.mxu0 %v7576_v38 }
0x2932   : > { %7579 = vmatpush1.bf16.msra.mxu0 %v7578_v36 }
0x2935   : > { %6884 = vmatmul.mubr.msk.f32.vlgmr.msra.gmra.mrb[42].mxu0 %vm881_vm0, %v6175_v6  ;;  %v10773_v6 = vld [vmem:[#allocation55_spill] sm:$0xff] }
0x2936   : > { %6521 = vmatprep.mubr.f32.mxu0 %v10704_v49 }
0x2a08   : > { %v6291_v20 = vpop.f32.mrb[42].mxu0 }
0x2a09   : > { %v6292_v18 = vadd.f32 %v6291_v20, %v6220_v58  ;;  %v6293_v17 = vpop.f32.mrb[43].mxu0 }
0x2a0a   : > { %v6294_v27 = vadd.f32 %v6293_v17, %v6220_v58 }
0x2a0b   : > { %v6296_v26 = vmax.f32 %v6292_v18, 0.0  ;;  %v10776_v18 = vld [vmem:[#allocation56_spill] sm:$0xff] }
0x2a0c   : > { %v6297_v12 = vmax.f32 %v6294_v27, 0.0 }
0x2a0d   : > { %6305 = vrot.lane.b32.xlu1 %v6296_v26, %s10749_s13  ;;  %6299 = vrot.lane.b32.xlu0 %v6296_v26, %s10750_s21  ;;  %v6328_v9 = vmul.f32 %v6296_v26, %v10768_v14 }
0x2a0e   : > { %v6329_v52 = vmul.f32 %v6297_v12, %v10770_v41 }
0x2a11   : > { %6340 = vrot.lane.b32.xlu1 %v6296_v26, %s10751_s6  ;;  %6318 = vrot.lane.b32.xlu0 %v6296_v26, %s8296_s8 }
0x2a15   : > { %6320 = vrot.lane.b32.xlu1 %v6297_v12, %s8296_s8  ;;  %6311 = vrot.lane.b32.xlu0 %v6296_v26, %s10752_s20 }
0x2a19   : > { %6332 = vrot.lane.b32.xlu1 %v6297_v12, %s8298_s28  ;;  %6330 = vrot.lane.b32.xlu0 %v6296_v26, %s8298_s28 }
0x2a1d   : > { %6348 = vrot.lane.b32.xlu1 %v6296_v26, %s10753_s1  ;;  %6342 = vrot.lane.b32.xlu0 %v6297_v12, %s10751_s6 }
0x2a21   : > { %6356 = vrot.lane.b32.xlu1 %v6296_v26, %s10754_s26  ;;  %6350 = vrot.lane.b32.xlu0 %v6297_v12, %s10753_s1  ;;  %v10777_v26 = vld [vmem:[#allocation57_spill] sm:$0xff] }
0x2a25   : > { %6366 = vperm.xlu1 %7801, %v6181_v40   ;;  %6358 = vrot.lane.b32.xlu0 %v6297_v12, %s10754_s26 }
0x2a7f   : > { %v6306_v56 = vpop.permute.xlu1 %6305  ;;  %v6300_v24 = vpop.permute.xlu0 %6299 }
0x2a80   : > { %v6308_v25 = vsel %vm10755_vm8, 0.0, %v6306_v56  ;;  %v6310_v59 = vmul.f32 %v6306_v56, %v10756_v48  ;;  %v6302_v2 = vsel %vm881_vm0, 0.0, %v6300_v24  ;;  %v6304_v5 = vmul.f32 %v6300_v24, %v10757_v30  ;;  %v10780_v48 = vld [vmem:[#allocation58_spill] sm:$0xff] }
0x2a81   : > { %v6309_v43 = vmul.f32 %v6308_v25, %v10758_v11  ;;  %v6303_v3 = vmul.f32 %v6302_v2, %v10759_v60  ;;  %vm10765_vm0 = vcmask 48128   ;;  %v6179_v30 = vld [vmem:[#allocation7 + $0x2c] sm:$0xf] }
0x2a82   : > { %v7580_v32 = vpack.c.bf16 %v6310_v59, %v6304_v5  ;;  %v10781_v59 = vld [vmem:[#allocation59_spill] sm:$0xff] }
0x2a83   : > { %v7582_v50 = vpack.c.bf16 %v6309_v43, %v6303_v3  ;;  %v6341_v0 = vpop.permute.xlu1 %6340  ;;  %v6319_v1 = vpop.permute.xlu0 %6318 }
0x2a84   : > { %7581 = vmatprep.subr.bf16.mxu1 %v7580_v32  ;;  %v6325_v16 = vsel %vm1008_vm2, 0.0, %v6319_v1 }
0x2a85   : > { %7583 = vmatpush1.bf16.msra.mxu1 %v7582_v50  ;;  %v6326_v8 = vmul.f32 %v6325_v16, %v10762_v34 }
0x2a87   : > { %v6321_v63 = vpop.permute.xlu1 %6320  ;;  %v6312_v47 = vpop.permute.xlu0 %6311 }
0x2a88   : > { %v6322_v54 = vsel %vm1008_vm2, %v6319_v1, %v6321_v63  ;;  %v6314_v33 = vsel %vm10760_vm9, 0.0, %v6312_v47  ;;  %v6316_v22 = vmul.f32 %v6312_v47, %v10761_v13  ;;  %vm10771_vm2 = vcmask 932864   ;;  %v6883_v1 = vld [vmem:[%s10683_s29 + $0xb8] sm:$0xff] }
0x2a89   : > { %v6327_v61 = vmul.f32 %v6322_v54, %v10763_v35  ;;  %v6315_v29 = vmul.f32 %v6314_v33, %v10764_v57 }
0x2a8b   : > { %v7584_v53 = vpack.c.bf16 %v6327_v61, %v6316_v22  ;;  %v7586_v23 = vpack.c.bf16 %v6326_v8, %v6315_v29  ;;  %v6333_v21 = vpop.permute.xlu1 %6332  ;;  %v6331_v55 = vpop.permute.xlu0 %6330 }
0x2a8c   : > { %v6337_v39 = vsel %vm10765_vm0, %v6333_v21, 0.0  ;;  %v6334_v42 = vsel %vm10766_vm10, %v6331_v55, %v6333_v21 }
0x2a8d   : > { %v6339_v19 = vmul.f32 %v6337_v39, %v10767_v45  ;;  %v6338_v4 = vmul.f32 %v6334_v42, %v10769_v10  ;;  %7585 = vmatprep.subr.bf16.mxu1 %v7584_v53 }
0x2a8e   : > { %7587 = vmatpush1.bf16.msra.mxu1 %v7586_v23 }
0x2a8f   : > { %v7590_v51 = vpack.c.bf16 %v6338_v4, %v6328_v9  ;;  %v6343_v15 = vpop.permute.xlu0 %6342  ;;  %v7588_v31 = vpack.c.bf16 %v6339_v19, %v6329_v52  ;;  %v6349_v7 = vpop.permute.xlu1 %6348 }
0x2a90   : > { %v6344_v28 = vsel %vm10771_vm2, %v6341_v0, %v6343_v15  ;;  %v6882_v0 = vld [vmem:[%s10683_s29 + $0xb0] sm:$0xff] }
0x2a91   : > { %7589 = vmatprep.subr.bf16.mxu1 %v7588_v31  ;;  %v6346_v38 = vsel %vm10772_vm11, %v6344_v28, 0.0 }
0x2a92   : > { %7591 = vmatpush1.bf16.msra.mxu1 %v7590_v51  ;;  %v6347_v17 = vmul.f32 %v6346_v38, %v10776_v18 }
0x2a93   : > { %v6351_v36 = vpop.permute.xlu0 %6350  ;;  %7593 = vmatprep.subr.bf16.mxu1 %v10773_v6  ;;  %v6357_v12 = vpop.permute.xlu1 %6356 }
0x2a94   : > { %v6352_v58 = vsel %vm10774_vm5, %v6349_v7, %v6351_v36 }
0x2a95   : > { %v6354_v20 = vsel %vm10775_vm1, %v6352_v58, 0.0 }
0x2a96   : > { %v6355_v27 = vmul.f32 %v6354_v20, %v10777_v26 }
0x2a97   : > { %v6359_v40 = vpop.permute.xlu0 %6358 }
0x2a98   : > { %v7594_v56 = vpack.c.bf16 %v6355_v27, %v6347_v17  ;;  %v6360_v24 = vsel %vm10778_vm3, %v6357_v12, %v6359_v40 }
0x2a99   : > { %v6362_v25 = vsel %vm10779_vm4, %v6360_v24, 0.0 }
0x2a9a   : > { %7595 = vmatpush1.bf16.msra.mxu1 %v7594_v56  ;;  %v6363_v2 = vmul.f32 %v6362_v25, %v10781_v59 }
0x2a9b   : > { %6388 = vmatprep.subr.mxu1 %v10780_v48 }
0x2a9e   : > { %6389 = vmatpush1.msra.mxu1 %v6363_v2 }
0x2a9f   : > { %6885 = vmatmul.mubr.msk.f32.vlgmr.msra.gmra.mrb[50].mxu1 %vm1115_vm12, %v6179_v30 }
0x2aa4   : > { %v6367_v5 = vpop.permute.xlu1 %6366 }
0x2b72   : > { %v6438_v11 = vpop.f32.mrb[50].mxu1 }
0x2b73   : > { %v6439_v43 = vadd.f32 %v6438_v11, %v6367_v5  ;;  %v6440_v60 = vpop.f32.mrb[51].mxu1 }
0x2b74   : > { %v6441_v3 = vadd.f32 %v6440_v60, %v6367_v5 }
0x2b75   : > { %v6443_v50 = vmax.f32 %v6439_v43, 0.0 }
0x2b76   : > { %v6444_v32 = vmax.f32 %v6441_v3, 0.0 }
0x2b78   : > { %6886 = vmatprep.subr.msk.mxu0 %vm1199_vm13, %v6444_v32 }
0x2b79   : > { %6887 = vmatpush1.msk.msra.mxu0 %vm1199_vm13, %v6443_v50 }
0x2b7a   : > { %6888 = vmatmul.mubr.msk.f32.vlgmr.msra.gmra.mrb[44].mxu0 %vm1192_vm14, %v6882_v0 }
0x2b7b   : > { %6527 = vmatprep.mubr.f32.mxu0 %v10704_v49 }
0x2b7e   : > { %6889 = vmatmul.mubr.msk.f32.gmra.mrb[46].mxu0 %vm1192_vm14, %v6883_v1 }
0x2c4d   : > { %v6523_v16 = vpop.f32.mrb[44].mxu0 }
0x2c4e   : > { %v6524_v63 = vadd.f32 %v6523_v16, %v10407_v46  ;;  %v6525_v47 = vpop.f32.mrb[45].mxu0 }
0x2c4f   : > { %v6526_v54 = vadd.f32 %v6525_v47, %v10410_v62 }
0x2c50   : > { %6534 = vst [vmem:[%s818_s19] sm:$0xff] %v6524_v63 }
0x2c51   : > { %6535 = vst.msk [vmem:[%s818_s19 + $0x8] sm:$0xff] %vm2324_vm15, %v6526_v54  ;;  %v6529_v49 = vpop.f32.mrb[46].mxu0 }
0x2c52   : > { %v6530_v33 = vadd.f32 %v6529_v49, %v10415_v37  ;;  %v6531_v13 = vpop.f32.mrb[47].mxu0 }
0x2c53   : > { %v6532_v22 = vadd.f32 %v6531_v13, %v10418_v44 }
0x2c54   : > { %6536 = vst [vmem:[%s818_s19 + $0x10] sm:$0xff] %v6530_v33 }
0x2c55   : > { %6537 = vst.msk [vmem:[%s818_s19 + $0x18] sm:$0xff] %vm2324_vm15, %v6532_v22 }
0x2c56 PF: > { %s10784_s30 = sld [smem:[#allocation33_spill]] }
0x2c5c   : > { %s37_s0 = sadd.s32 1, %s10784_s30  }
0x2c5d   : > { %p34_p12 = scmp.ge.s32.totalorder %s37_s0, 4  }
0x2c5f   :  { %36 = sbr.rel (!%p34_p12) target bundleno = 19 (0x13), region = 269 }
0x2c66   :  { %6559 = vsyncpa [#allocation3], 1 }
0x2c67   :  { %6561 = vsyncpa [#allocation3 + $0x1], 1 }
0x2c68   :  { %6562 = vsyncpa [#allocation5], 1 }
0x2c69   :  { %6563 = vsyncpa [#allocation8], 1 }
0x2c6a   :  { %6564 = vsyncpa [#allocation11], 1 }
0x2c6b   :  { %6565 = vsyncpa [#allocation14], 1 }
0x2c6c   :  { %6566 = vsyncpa [#allocation17], 1 }
0x2c6d   :  { %6567 = vsyncpa [#allocation20], 1 }
0x2c6e   :  { %6568 = vsyncpa [#allocation23], 1 }

</bundles_post_ra>
